<compile_context>
chip_gen: v7x
topology: tpu7x:2x2x1
jax: 0.10.0
libtpu: 0.0.40
codegen_flags: <defaults>
</compile_context>

<pallas_src>
import jax
import jax.numpy as jnp
from jax.experimental import pallas as pl
from jax.experimental.pallas import tpu as pltpu

NEG_SLOPE = 0.01          # F.leaky_relu default negative_slope
H = W = 16                # spatial size of the test input
HW = H * W                # 256
CP = 128                  # all layer input channels are zero-padded to 128 lanes
K = 9 * CP                # im2col contraction depth (1152)
COUT_LAST = 256           # output channels of the final layer
R0, C0 = 1, 8             # interior origin inside the padded activation buffer
PH, PW = H + 2, C0 + W + 1  # padded activation buffer spatial dims: (18, 25)
MT = 128                  # row / channel tile for the matmuls (keeps vregs low)


def _encoder_kernel(x_ref, w1, b1, w2, b2, w3, b3, w4, b4, o_ref,
                    pad_ref, patch_ref):
    """Fused 4-layer conv encoder for one image (activations stay in VMEM)."""

    def build_patch(src):
        # im2col: patch[y*W + x, t*CP + c] = padded_src[y + ky, x + kx, c]
        # with t = ky*3 + kx.  All destination stores are lane-aligned blocks.
        for ky in range(3):
            for kx in range(3):
                t = ky * 3 + kx
                blk = src[R0 - 1 + ky: R0 - 1 + ky + H,
                          C0 - 1 + kx: C0 - 1 + kx + W, :]         # (16,16,128) f32
                patch_ref[:, t * CP:(t + 1) * CP] = (
                    blk.reshape(HW, CP).astype(jnp.bfloat16))

    # Zero the padded activation buffer once per image: borders and the
    # channel padding must stay exactly zero; the interior is overwritten.
    pad_ref[...] = jnp.zeros_like(pad_ref)

    # ---- layers 1-3: conv3x3 + bias + leaky_relu --------------------------
    # Result is written straight into the (sublane-aligned) interior of the
    # padded VMEM buffer, ready to be the next layer's input.
    rows = MT // W                                     # 8 image rows per tile
    for w_ref, b_ref, src in ((w1, b1, x_ref),
                              (w2, b2, pad_ref),
                              (w3, b3, pad_ref)):
        build_patch(src)
        for mb in range(HW // MT):                     # 2 row tiles of 128
            y = jnp.dot(patch_ref[mb * MT:(mb + 1) * MT, :], w_ref[...],
                        preferred_element_type=jnp.float32)       # (128,128) f32
            y = y + b_ref[...]
            y = jnp.where(y >= 0, y, NEG_SLOPE * y)
            pad_ref[R0 + mb * rows: R0 + (mb + 1) * rows, C0:C0 + W, :] = (
                y.reshape(rows, W, CP))

    # ---- layer 4: conv3x3 + bias + tanh, stored transposed ----------------
    # Output block is (C, H*W) per image => NCHW-flatten order, lane-dense.
    build_patch(pad_ref)
    for cb in range(COUT_LAST // MT):                  # 2 channel tiles of 128
        for mb in range(HW // MT):                     # 2 row tiles of 128
            y = jnp.dot(patch_ref[mb * MT:(mb + 1) * MT, :],
                        w4[:, cb * MT:(cb + 1) * MT],
                        preferred_element_type=jnp.float32)       # (128,128) f32
            y = jnp.tanh(y + b4[:, cb * MT:(cb + 1) * MT])
            o_ref[cb * MT:(cb + 1) * MT, mb * MT:(mb + 1) * MT] = y.T


def _encoder_pallas(x_pad, weights, biases):
    N = x_pad.shape[0]
    w1, w2, w3, w4 = weights
    b1, b2, b3, b4 = biases
    return pl.pallas_call(
        _encoder_kernel,
        out_shape=jax.ShapeDtypeStruct((N, COUT_LAST, HW), jnp.float32),
        grid=(N,),
        in_specs=[
            pl.BlockSpec((None, PH, PW, CP), lambda n: (n, 0, 0, 0)),
            pl.BlockSpec(w1.shape, lambda n: (0, 0)),
            pl.BlockSpec(b1.shape, lambda n: (0, 0)),
            pl.BlockSpec(w2.shape, lambda n: (0, 0)),
            pl.BlockSpec(b2.shape, lambda n: (0, 0)),
            pl.BlockSpec(w3.shape, lambda n: (0, 0)),
            pl.BlockSpec(b3.shape, lambda n: (0, 0)),
            pl.BlockSpec(w4.shape, lambda n: (0, 0)),
            pl.BlockSpec(b4.shape, lambda n: (0, 0)),
        ],
        out_specs=pl.BlockSpec((None, COUT_LAST, HW), lambda n: (n, 0, 0)),
        scratch_shapes=[
            pltpu.VMEM((PH, PW, CP), jnp.float32),   # padded activations (~230 KB)
            pltpu.VMEM((HW, K), jnp.bfloat16),       # im2col patch matrix (~590 KB)
        ],
        compiler_params=pltpu.CompilerParams(
            dimension_semantics=("parallel",)),
    )(x_pad, w1, b1, w2, b2, w3, b3, w4, b4)


def _prep_layer(w, b, cout_pad):
    """(3,3,Cin,Cout) HWIO conv weight -> (9*128, Cout_pad) bf16 im2col weight."""
    cin, cout = w.shape[2], w.shape[3]
    w = jnp.pad(w, ((0, 0), (0, 0), (0, CP - cin), (0, cout_pad - cout)))
    w = w.reshape(9 * CP, cout_pad).astype(jnp.bfloat16)   # row = (ky*3+kx)*128 + c
    b = jnp.pad(b, (0, cout_pad - cout)).reshape(1, cout_pad).astype(jnp.float32)
    return w, b


def init_params(key):
    """Deterministic Conv2d-style (Kaiming-uniform-ish) init for the 4 layers."""
    dims = [(1, 64), (64, 64), (64, 128), (128, 256)]
    params = []
    for i, (cin, cout) in enumerate(dims):
        kw, kb = jax.random.split(jax.random.fold_in(key, i))
        fan_in = cin * 9
        bound = 1.0 / jnp.sqrt(jnp.float32(fan_in))
        w = jax.random.uniform(kw, (3, 3, cin, cout), jnp.float32, -bound, bound)
        b = jax.random.uniform(kb, (cout,), jnp.float32, -bound, bound)
        params.append((w, b))
    return params


@jax.jit
def encoder_forward(x_nchw, params):
    N = x_nchw.shape[0]
    # NCHW (PyTorch) -> NHWC; pad channels to 128 lanes and spatially for the
    # 3x3 halo (interior placed at [1:17, 8:24] so in-kernel stores stay
    # sublane-aligned).  This is the only wrapper-side pad.
    x = jnp.transpose(x_nchw, (0, 2, 3, 1)).astype(jnp.float32)
    x = jnp.pad(x, ((0, 0), (R0, PH - H - R0), (C0, PW - W - C0),
                    (0, CP - x.shape[-1])))
    cout_pads = (CP, CP, CP, COUT_LAST)
    weights, biases = [], []
    for (w, b), cp in zip(params, cout_pads):
        wp, bp = _prep_layer(w, b, cp)
        weights.append(wp)
        biases.append(bp)
    out = _encoder_pallas(x, weights, biases)   # (N, C=256, H*W) NCHW-flatten order
    # Dropout(p=0.5): identity at inference (eval mode).
    return out.reshape(N, COUT_LAST * H * W)


if __name__ == "__main__":
    key = jax.random.PRNGKey(0)
    kx, kp = jax.random.split(key)
    # x: NCHW, 1 input channel (Encoder's first layer is NIN(1, 64))
    x = jax.random.normal(kx, (2, 1, 16, 16), dtype=jnp.float32)
    params = init_params(kp)

    h = encoder_forward(x, params)
    h = jax.block_until_ready(h)

    assert h.shape == (2, 256 * 16 * 16), h.shape
    assert bool(jnp.all(jnp.isfinite(h)))
    print("KERNEL_OK")
</pallas_src>

<mosaic_0001>
module attributes {stable_mosaic.version = 11 : i64} {
  func.func @_encoder_kernel(%arg0: i32, %arg1: memref<1x18x25x128xf32, #tpu.memory_space<vmem>>, %arg2: memref<1152x128xbf16, #tpu.memory_space<vmem>>, %arg3: memref<1x128xf32, #tpu.memory_space<vmem>>, %arg4: memref<1152x128xbf16, #tpu.memory_space<vmem>>, %arg5: memref<1x128xf32, #tpu.memory_space<vmem>>, %arg6: memref<1152x128xbf16, #tpu.memory_space<vmem>>, %arg7: memref<1x128xf32, #tpu.memory_space<vmem>>, %arg8: memref<1152x256xbf16, #tpu.memory_space<vmem>>, %arg9: memref<1x256xf32, #tpu.memory_space<vmem>>, %arg10: memref<1x256x256xf32, #tpu.memory_space<vmem>>, %arg11: memref<18x25x128xf32, #tpu.memory_space<vmem>>, %arg12: memref<256x1152xbf16, #tpu.memory_space<vmem>>) attributes {dimension_semantics = [#tpu.dimension_semantics<parallel>], iteration_bounds = array<i64: 2>, scalar_prefetch = 0 : i64, scratch_operands = 2 : i64, tpu.core_type = #tpu.core_type<tc>, window_params = [{transform_indices = @transform_0, window_bounds = array<i64: 1, 18, 25, 128>}, {pipeline_mode = #tpu.pipeline_mode<synchronous>, transform_indices = @transform_1, window_bounds = array<i64: 1152, 128>}, {pipeline_mode = #tpu.pipeline_mode<synchronous>, transform_indices = @transform_2, window_bounds = array<i64: 1, 128>}, {pipeline_mode = #tpu.pipeline_mode<synchronous>, transform_indices = @transform_3, window_bounds = array<i64: 1152, 128>}, {pipeline_mode = #tpu.pipeline_mode<synchronous>, transform_indices = @transform_4, window_bounds = array<i64: 1, 128>}, {pipeline_mode = #tpu.pipeline_mode<synchronous>, transform_indices = @transform_5, window_bounds = array<i64: 1152, 128>}, {pipeline_mode = #tpu.pipeline_mode<synchronous>, transform_indices = @transform_6, window_bounds = array<i64: 1, 128>}, {pipeline_mode = #tpu.pipeline_mode<synchronous>, transform_indices = @transform_7, window_bounds = array<i64: 1152, 256>}, {pipeline_mode = #tpu.pipeline_mode<synchronous>, transform_indices = @transform_8, window_bounds = array<i64: 1, 256>}, {transform_indices = @transform_9, window_bounds = array<i64: 1, 256, 256>}]} {
    %cst = arith.constant 0.000000e+00 : f32
    %0 = vector.broadcast %cst : f32 to vector<18x25x128xf32>
    %c0 = arith.constant 0 : index
    %c0_0 = arith.constant 0 : index
    %c0_1 = arith.constant 0 : index
    %1 = vector.load %arg11[%c0, %c0_0, %c0_1] : memref<18x25x128xf32, #tpu.memory_space<vmem>>, vector<18x25x128xf32>
    tpu.vector_store %arg11[%c0, %c0_0, %c0_1], %0 {strides = array<i32>} : memref<18x25x128xf32, #tpu.memory_space<vmem>>, vector<18x25x128xf32>,
    %c0_2 = arith.constant 0 : index
    %c0_3 = arith.constant 0 : index
    %c7 = arith.constant 7 : index
    %c0_4 = arith.constant 0 : index
    %2 = vector.load %arg1[%c0_2, %c0_3, %c7, %c0_4] : memref<1x18x25x128xf32, #tpu.memory_space<vmem>>, vector<1x16x16x128xf32>
    %3 = vector.shape_cast %2 : vector<1x16x16x128xf32> to vector<16x16x128xf32>
    %4 = vector.shape_cast %3 : vector<16x16x128xf32> to vector<256x128xf32>
    %5 = arith.truncf %4 : vector<256x128xf32> to vector<256x128xbf16>
    %c0_5 = arith.constant 0 : index
    %c0_6 = arith.constant 0 : index
    %6 = vector.load %arg12[%c0_5, %c0_6] : memref<256x1152xbf16, #tpu.memory_space<vmem>>, vector<256x128xbf16>
    tpu.vector_store %arg12[%c0_5, %c0_6], %5 {strides = array<i32>} : memref<256x1152xbf16, #tpu.memory_space<vmem>>, vector<256x128xbf16>,
    %c0_7 = arith.constant 0 : index
    %c0_8 = arith.constant 0 : index
    %c8 = arith.constant 8 : index
    %c0_9 = arith.constant 0 : index
    %7 = vector.load %arg1[%c0_7, %c0_8, %c8, %c0_9] : memref<1x18x25x128xf32, #tpu.memory_space<vmem>>, vector<1x16x16x128xf32>
    %8 = vector.shape_cast %7 : vector<1x16x16x128xf32> to vector<16x16x128xf32>
    %9 = vector.shape_cast %8 : vector<16x16x128xf32> to vector<256x128xf32>
    %10 = arith.truncf %9 : vector<256x128xf32> to vector<256x128xbf16>
    %c0_10 = arith.constant 0 : index
    %c128 = arith.constant 128 : index
    %11 = vector.load %arg12[%c0_10, %c128] : memref<256x1152xbf16, #tpu.memory_space<vmem>>, vector<256x128xbf16>
    tpu.vector_store %arg12[%c0_10, %c128], %10 {strides = array<i32>} : memref<256x1152xbf16, #tpu.memory_space<vmem>>, vector<256x128xbf16>,
    %c0_11 = arith.constant 0 : index
    %c0_12 = arith.constant 0 : index
    %c9 = arith.constant 9 : index
    %c0_13 = arith.constant 0 : index
    %12 = vector.load %arg1[%c0_11, %c0_12, %c9, %c0_13] : memref<1x18x25x128xf32, #tpu.memory_space<vmem>>, vector<1x16x16x128xf32>
    %13 = vector.shape_cast %12 : vector<1x16x16x128xf32> to vector<16x16x128xf32>
    %14 = vector.shape_cast %13 : vector<16x16x128xf32> to vector<256x128xf32>
    %15 = arith.truncf %14 : vector<256x128xf32> to vector<256x128xbf16>
    %c0_14 = arith.constant 0 : index
    %c256 = arith.constant 256 : index
    %16 = vector.load %arg12[%c0_14, %c256] : memref<256x1152xbf16, #tpu.memory_space<vmem>>, vector<256x128xbf16>
    tpu.vector_store %arg12[%c0_14, %c256], %15 {strides = array<i32>} : memref<256x1152xbf16, #tpu.memory_space<vmem>>, vector<256x128xbf16>,
    %c0_15 = arith.constant 0 : index
    %c1 = arith.constant 1 : index
    %c7_16 = arith.constant 7 : index
    %c0_17 = arith.constant 0 : index
    %17 = vector.load %arg1[%c0_15, %c1, %c7_16, %c0_17] : memref<1x18x25x128xf32, #tpu.memory_space<vmem>>, vector<1x16x16x128xf32>
    %18 = vector.shape_cast %17 : vector<1x16x16x128xf32> to vector<16x16x128xf32>
    %19 = vector.shape_cast %18 : vector<16x16x128xf32> to vector<256x128xf32>
    %20 = arith.truncf %19 : vector<256x128xf32> to vector<256x128xbf16>
    %c0_18 = arith.constant 0 : index
    %c384 = arith.constant 384 : index
    %21 = vector.load %arg12[%c0_18, %c384] : memref<256x1152xbf16, #tpu.memory_space<vmem>>, vector<256x128xbf16>
    tpu.vector_store %arg12[%c0_18, %c384], %20 {strides = array<i32>} : memref<256x1152xbf16, #tpu.memory_space<vmem>>, vector<256x128xbf16>,
    %c0_19 = arith.constant 0 : index
    %c1_20 = arith.constant 1 : index
    %c8_21 = arith.constant 8 : index
    %c0_22 = arith.constant 0 : index
    %22 = vector.load %arg1[%c0_19, %c1_20, %c8_21, %c0_22] : memref<1x18x25x128xf32, #tpu.memory_space<vmem>>, vector<1x16x16x128xf32>
    %23 = vector.shape_cast %22 : vector<1x16x16x128xf32> to vector<16x16x128xf32>
    %24 = vector.shape_cast %23 : vector<16x16x128xf32> to vector<256x128xf32>
    %25 = arith.truncf %24 : vector<256x128xf32> to vector<256x128xbf16>
    %c0_23 = arith.constant 0 : index
    %c512 = arith.constant 512 : index
    %26 = vector.load %arg12[%c0_23, %c512] : memref<256x1152xbf16, #tpu.memory_space<vmem>>, vector<256x128xbf16>
    tpu.vector_store %arg12[%c0_23, %c512], %25 {strides = array<i32>} : memref<256x1152xbf16, #tpu.memory_space<vmem>>, vector<256x128xbf16>,
    %c0_24 = arith.constant 0 : index
    %c1_25 = arith.constant 1 : index
    %c9_26 = arith.constant 9 : index
    %c0_27 = arith.constant 0 : index
    %27 = vector.load %arg1[%c0_24, %c1_25, %c9_26, %c0_27] : memref<1x18x25x128xf32, #tpu.memory_space<vmem>>, vector<1x16x16x128xf32>
    %28 = vector.shape_cast %27 : vector<1x16x16x128xf32> to vector<16x16x128xf32>
    %29 = vector.shape_cast %28 : vector<16x16x128xf32> to vector<256x128xf32>
    %30 = arith.truncf %29 : vector<256x128xf32> to vector<256x128xbf16>
    %c0_28 = arith.constant 0 : index
    %c640 = arith.constant 640 : index
    %31 = vector.load %arg12[%c0_28, %c640] : memref<256x1152xbf16, #tpu.memory_space<vmem>>, vector<256x128xbf16>
    tpu.vector_store %arg12[%c0_28, %c640], %30 {strides = array<i32>} : memref<256x1152xbf16, #tpu.memory_space<vmem>>, vector<256x128xbf16>,
    %c0_29 = arith.constant 0 : index
    %c2 = arith.constant 2 : index
    %c7_30 = arith.constant 7 : index
    %c0_31 = arith.constant 0 : index
    %32 = vector.load %arg1[%c0_29, %c2, %c7_30, %c0_31] : memref<1x18x25x128xf32, #tpu.memory_space<vmem>>, vector<1x16x16x128xf32>
    %33 = vector.shape_cast %32 : vector<1x16x16x128xf32> to vector<16x16x128xf32>
    %34 = vector.shape_cast %33 : vector<16x16x128xf32> to vector<256x128xf32>
    %35 = arith.truncf %34 : vector<256x128xf32> to vector<256x128xbf16>
    %c0_32 = arith.constant 0 : index
    %c768 = arith.constant 768 : index
    %36 = vector.load %arg12[%c0_32, %c768] : memref<256x1152xbf16, #tpu.memory_space<vmem>>, vector<256x128xbf16>
    tpu.vector_store %arg12[%c0_32, %c768], %35 {strides = array<i32>} : memref<256x1152xbf16, #tpu.memory_space<vmem>>, vector<256x128xbf16>,
    %c0_33 = arith.constant 0 : index
    %c2_34 = arith.constant 2 : index
    %c8_35 = arith.constant 8 : index
    %c0_36 = arith.constant 0 : index
    %37 = vector.load %arg1[%c0_33, %c2_34, %c8_35, %c0_36] : memref<1x18x25x128xf32, #tpu.memory_space<vmem>>, vector<1x16x16x128xf32>
    %38 = vector.shape_cast %37 : vector<1x16x16x128xf32> to vector<16x16x128xf32>
    %39 = vector.shape_cast %38 : vector<16x16x128xf32> to vector<256x128xf32>
    %40 = arith.truncf %39 : vector<256x128xf32> to vector<256x128xbf16>
    %c0_37 = arith.constant 0 : index
    %c896 = arith.constant 896 : index
    %41 = vector.load %arg12[%c0_37, %c896] : memref<256x1152xbf16, #tpu.memory_space<vmem>>, vector<256x128xbf16>
    tpu.vector_store %arg12[%c0_37, %c896], %40 {strides = array<i32>} : memref<256x1152xbf16, #tpu.memory_space<vmem>>, vector<256x128xbf16>,
    %c0_38 = arith.constant 0 : index
    %c2_39 = arith.constant 2 : index
    %c9_40 = arith.constant 9 : index
    %c0_41 = arith.constant 0 : index
    %42 = vector.load %arg1[%c0_38, %c2_39, %c9_40, %c0_41] : memref<1x18x25x128xf32, #tpu.memory_space<vmem>>, vector<1x16x16x128xf32>
    %43 = vector.shape_cast %42 : vector<1x16x16x128xf32> to vector<16x16x128xf32>
    %44 = vector.shape_cast %43 : vector<16x16x128xf32> to vector<256x128xf32>
    %45 = arith.truncf %44 : vector<256x128xf32> to vector<256x128xbf16>
    %c0_42 = arith.constant 0 : index
    %c1024 = arith.constant 1024 : index
    %46 = vector.load %arg12[%c0_42, %c1024] : memref<256x1152xbf16, #tpu.memory_space<vmem>>, vector<256x128xbf16>
    tpu.vector_store %arg12[%c0_42, %c1024], %45 {strides = array<i32>} : memref<256x1152xbf16, #tpu.memory_space<vmem>>, vector<256x128xbf16>,
    %c0_43 = arith.constant 0 : index
    %c0_44 = arith.constant 0 : index
    %47 = vector.load %arg12[%c0_43, %c0_44] : memref<256x1152xbf16, #tpu.memory_space<vmem>>, vector<128x1152xbf16>
    %c0_45 = arith.constant 0 : index
    %c0_46 = arith.constant 0 : index
    %48 = vector.load %arg2[%c0_45, %c0_46] : memref<1152x128xbf16, #tpu.memory_space<vmem>>, vector<1152x128xbf16>
    %cst_47 = arith.constant dense<0.000000e+00> : vector<128x128xf32>
    %49 = tpu.matmul %47, %48, %cst_47 {dimension_numbers = #tpu.dot_dimension_numbers<[1], [0], [0], [1], [0, 0, 1, 1], [], []>} : vector<128x1152xbf16>, vector<1152x128xbf16>, vector<128x128xf32> -> vector<128x128xf32>
    %c0_48 = arith.constant 0 : index
    %c0_49 = arith.constant 0 : index
    %50 = vector.load %arg3[%c0_48, %c0_49] : memref<1x128xf32, #tpu.memory_space<vmem>>, vector<1x128xf32>
    %51 = vector.broadcast %50 : vector<1x128xf32> to vector<128x128xf32>
    %52 = arith.addf %49, %51 : vector<128x128xf32>
    %cst_50 = arith.constant 0.000000e+00 : f32
    %53 = vector.broadcast %cst_50 : f32 to vector<128x128xf32>
    %54 = arith.cmpf oge, %52, %53 : vector<128x128xf32>
    %cst_51 = arith.constant 0.00999999977 : f32
    %55 = vector.broadcast %cst_51 : f32 to vector<128x128xf32>
    %56 = arith.mulf %55, %52 : vector<128x128xf32>
    %57 = arith.select %54, %52, %56 : vector<128x128xi1>, vector<128x128xf32>
    %58 = vector.shape_cast %57 : vector<128x128xf32> to vector<8x16x128xf32>
    %c1_52 = arith.constant 1 : index
    %c8_53 = arith.constant 8 : index
    %c0_54 = arith.constant 0 : index
    %59 = vector.load %arg11[%c1_52, %c8_53, %c0_54] : memref<18x25x128xf32, #tpu.memory_space<vmem>>, vector<8x16x128xf32>
    tpu.vector_store %arg11[%c1_52, %c8_53, %c0_54], %58 {strides = array<i32>} : memref<18x25x128xf32, #tpu.memory_space<vmem>>, vector<8x16x128xf32>,
    %c128_55 = arith.constant 128 : index
    %c0_56 = arith.constant 0 : index
    %60 = vector.load %arg12[%c128_55, %c0_56] : memref<256x1152xbf16, #tpu.memory_space<vmem>>, vector<128x1152xbf16>
    %c0_57 = arith.constant 0 : index
    %c0_58 = arith.constant 0 : index
    %61 = vector.load %arg2[%c0_57, %c0_58] : memref<1152x128xbf16, #tpu.memory_space<vmem>>, vector<1152x128xbf16>
    %cst_59 = arith.constant dense<0.000000e+00> : vector<128x128xf32>
    %62 = tpu.matmul %60, %61, %cst_59 {dimension_numbers = #tpu.dot_dimension_numbers<[1], [0], [0], [1], [0, 0, 1, 1], [], []>} : vector<128x1152xbf16>, vector<1152x128xbf16>, vector<128x128xf32> -> vector<128x128xf32>
    %c0_60 = arith.constant 0 : index
    %c0_61 = arith.constant 0 : index
    %63 = vector.load %arg3[%c0_60, %c0_61] : memref<1x128xf32, #tpu.memory_space<vmem>>, vector<1x128xf32>
    %64 = vector.broadcast %63 : vector<1x128xf32> to vector<128x128xf32>
    %65 = arith.addf %62, %64 : vector<128x128xf32>
    %cst_62 = arith.constant 0.000000e+00 : f32
    %66 = vector.broadcast %cst_62 : f32 to vector<128x128xf32>
    %67 = arith.cmpf oge, %65, %66 : vector<128x128xf32>
    %cst_63 = arith.constant 0.00999999977 : f32
    %68 = vector.broadcast %cst_63 : f32 to vector<128x128xf32>
    %69 = arith.mulf %68, %65 : vector<128x128xf32>
    %70 = arith.select %67, %65, %69 : vector<128x128xi1>, vector<128x128xf32>
    %71 = vector.shape_cast %70 : vector<128x128xf32> to vector<8x16x128xf32>
    %c9_64 = arith.constant 9 : index
    %c8_65 = arith.constant 8 : index
    %c0_66 = arith.constant 0 : index
    %72 = vector.load %arg11[%c9_64, %c8_65, %c0_66] : memref<18x25x128xf32, #tpu.memory_space<vmem>>, vector<8x16x128xf32>
    tpu.vector_store %arg11[%c9_64, %c8_65, %c0_66], %71 {strides = array<i32>} : memref<18x25x128xf32, #tpu.memory_space<vmem>>, vector<8x16x128xf32>,
    %c0_67 = arith.constant 0 : index
    %c7_68 = arith.constant 7 : index
    %c0_69 = arith.constant 0 : index
    %73 = vector.load %arg11[%c0_67, %c7_68, %c0_69] : memref<18x25x128xf32, #tpu.memory_space<vmem>>, vector<16x16x128xf32>
    %74 = vector.shape_cast %73 : vector<16x16x128xf32> to vector<256x128xf32>
    %75 = arith.truncf %74 : vector<256x128xf32> to vector<256x128xbf16>
    %c0_70 = arith.constant 0 : index
    %c0_71 = arith.constant 0 : index
    %76 = vector.load %arg12[%c0_70, %c0_71] : memref<256x1152xbf16, #tpu.memory_space<vmem>>, vector<256x128xbf16>
    tpu.vector_store %arg12[%c0_70, %c0_71], %75 {strides = array<i32>} : memref<256x1152xbf16, #tpu.memory_space<vmem>>, vector<256x128xbf16>,
    %c0_72 = arith.constant 0 : index
    %c8_73 = arith.constant 8 : index
    %c0_74 = arith.constant 0 : index
    %77 = vector.load %arg11[%c0_72, %c8_73, %c0_74] : memref<18x25x128xf32, #tpu.memory_space<vmem>>, vector<16x16x128xf32>
    %78 = vector.shape_cast %77 : vector<16x16x128xf32> to vector<256x128xf32>
    %79 = arith.truncf %78 : vector<256x128xf32> to vector<256x128xbf16>
    %c0_75 = arith.constant 0 : index
    %c128_76 = arith.constant 128 : index
    %80 = vector.load %arg12[%c0_75, %c128_76] : memref<256x1152xbf16, #tpu.memory_space<vmem>>, vector<256x128xbf16>
    tpu.vector_store %arg12[%c0_75, %c128_76], %79 {strides = array<i32>} : memref<256x1152xbf16, #tpu.memory_space<vmem>>, vector<256x128xbf16>,
    %c0_77 = arith.constant 0 : index
    %c9_78 = arith.constant 9 : index
    %c0_79 = arith.constant 0 : index
    %81 = vector.load %arg11[%c0_77, %c9_78, %c0_79] : memref<18x25x128xf32, #tpu.memory_space<vmem>>, vector<16x16x128xf32>
    %82 = vector.shape_cast %81 : vector<16x16x128xf32> to vector<256x128xf32>
    %83 = arith.truncf %82 : vector<256x128xf32> to vector<256x128xbf16>
    %c0_80 = arith.constant 0 : index
    %c256_81 = arith.constant 256 : index
    %84 = vector.load %arg12[%c0_80, %c256_81] : memref<256x1152xbf16, #tpu.memory_space<vmem>>, vector<256x128xbf16>
    tpu.vector_store %arg12[%c0_80, %c256_81], %83 {strides = array<i32>} : memref<256x1152xbf16, #tpu.memory_space<vmem>>, vector<256x128xbf16>,
    %c1_82 = arith.constant 1 : index
    %c7_83 = arith.constant 7 : index
    %c0_84 = arith.constant 0 : index
    %85 = vector.load %arg11[%c1_82, %c7_83, %c0_84] : memref<18x25x128xf32, #tpu.memory_space<vmem>>, vector<16x16x128xf32>
    %86 = vector.shape_cast %85 : vector<16x16x128xf32> to vector<256x128xf32>
    %87 = arith.truncf %86 : vector<256x128xf32> to vector<256x128xbf16>
    %c0_85 = arith.constant 0 : index
    %c384_86 = arith.constant 384 : index
    %88 = vector.load %arg12[%c0_85, %c384_86] : memref<256x1152xbf16, #tpu.memory_space<vmem>>, vector<256x128xbf16>
    tpu.vector_store %arg12[%c0_85, %c384_86], %87 {strides = array<i32>} : memref<256x1152xbf16, #tpu.memory_space<vmem>>, vector<256x128xbf16>,
    %c1_87 = arith.constant 1 : index
    %c8_88 = arith.constant 8 : index
    %c0_89 = arith.constant 0 : index
    %89 = vector.load %arg11[%c1_87, %c8_88, %c0_89] : memref<18x25x128xf32, #tpu.memory_space<vmem>>, vector<16x16x128xf32>
    %90 = vector.shape_cast %89 : vector<16x16x128xf32> to vector<256x128xf32>
    %91 = arith.truncf %90 : vector<256x128xf32> to vector<256x128xbf16>
    %c0_90 = arith.constant 0 : index
    %c512_91 = arith.constant 512 : index
    %92 = vector.load %arg12[%c0_90, %c512_91] : memref<256x1152xbf16, #tpu.memory_space<vmem>>, vector<256x128xbf16>
    tpu.vector_store %arg12[%c0_90, %c512_91], %91 {strides = array<i32>} : memref<256x1152xbf16, #tpu.memory_space<vmem>>, vector<256x128xbf16>,
    %c1_92 = arith.constant 1 : index
    %c9_93 = arith.constant 9 : index
    %c0_94 = arith.constant 0 : index
    %93 = vector.load %arg11[%c1_92, %c9_93, %c0_94] : memref<18x25x128xf32, #tpu.memory_space<vmem>>, vector<16x16x128xf32>
    %94 = vector.shape_cast %93 : vector<16x16x128xf32> to vector<256x128xf32>
    %95 = arith.truncf %94 : vector<256x128xf32> to vector<256x128xbf16>
    %c0_95 = arith.constant 0 : index
    %c640_96 = arith.constant 640 : index
    %96 = vector.load %arg12[%c0_95, %c640_96] : memref<256x1152xbf16, #tpu.memory_space<vmem>>, vector<256x128xbf16>
    tpu.vector_store %arg12[%c0_95, %c640_96], %95 {strides = array<i32>} : memref<256x1152xbf16, #tpu.memory_space<vmem>>, vector<256x128xbf16>,
    %c2_97 = arith.constant 2 : index
    %c7_98 = arith.constant 7 : index
    %c0_99 = arith.constant 0 : index
    %97 = vector.load %arg11[%c2_97, %c7_98, %c0_99] : memref<18x25x128xf32, #tpu.memory_space<vmem>>, vector<16x16x128xf32>
    %98 = vector.shape_cast %97 : vector<16x16x128xf32> to vector<256x128xf32>
    %99 = arith.truncf %98 : vector<256x128xf32> to vector<256x128xbf16>
    %c0_100 = arith.constant 0 : index
    %c768_101 = arith.constant 768 : index
    %100 = vector.load %arg12[%c0_100, %c768_101] : memref<256x1152xbf16, #tpu.memory_space<vmem>>, vector<256x128xbf16>
    tpu.vector_store %arg12[%c0_100, %c768_101], %99 {strides = array<i32>} : memref<256x1152xbf16, #tpu.memory_space<vmem>>, vector<256x128xbf16>,
    %c2_102 = arith.constant 2 : index
    %c8_103 = arith.constant 8 : index
    %c0_104 = arith.constant 0 : index
    %101 = vector.load %arg11[%c2_102, %c8_103, %c0_104] : memref<18x25x128xf32, #tpu.memory_space<vmem>>, vector<16x16x128xf32>
    %102 = vector.shape_cast %101 : vector<16x16x128xf32> to vector<256x128xf32>
    %103 = arith.truncf %102 : vector<256x128xf32> to vector<256x128xbf16>
    %c0_105 = arith.constant 0 : index
    %c896_106 = arith.constant 896 : index
    %104 = vector.load %arg12[%c0_105, %c896_106] : memref<256x1152xbf16, #tpu.memory_space<vmem>>, vector<256x128xbf16>
    tpu.vector_store %arg12[%c0_105, %c896_106], %103 {strides = array<i32>} : memref<256x1152xbf16, #tpu.memory_space<vmem>>, vector<256x128xbf16>,
    %c2_107 = arith.constant 2 : index
    %c9_108 = arith.constant 9 : index
    %c0_109 = arith.constant 0 : index
    %105 = vector.load %arg11[%c2_107, %c9_108, %c0_109] : memref<18x25x128xf32, #tpu.memory_space<vmem>>, vector<16x16x128xf32>
    %106 = vector.shape_cast %105 : vector<16x16x128xf32> to vector<256x128xf32>
    %107 = arith.truncf %106 : vector<256x128xf32> to vector<256x128xbf16>
    %c0_110 = arith.constant 0 : index
    %c1024_111 = arith.constant 1024 : index
    %108 = vector.load %arg12[%c0_110, %c1024_111] : memref<256x1152xbf16, #tpu.memory_space<vmem>>, vector<256x128xbf16>
    tpu.vector_store %arg12[%c0_110, %c1024_111], %107 {strides = array<i32>} : memref<256x1152xbf16, #tpu.memory_space<vmem>>, vector<256x128xbf16>,
    %c0_112 = arith.constant 0 : index
    %c0_113 = arith.constant 0 : index
    %109 = vector.load %arg12[%c0_112, %c0_113] : memref<256x1152xbf16, #tpu.memory_space<vmem>>, vector<128x1152xbf16>
    %c0_114 = arith.constant 0 : index
    %c0_115 = arith.constant 0 : index
    %110 = vector.load %arg4[%c0_114, %c0_115] : memref<1152x128xbf16, #tpu.memory_space<vmem>>, vector<1152x128xbf16>
    %cst_116 = arith.constant dense<0.000000e+00> : vector<128x128xf32>
    %111 = tpu.matmul %109, %110, %cst_116 {dimension_numbers = #tpu.dot_dimension_numbers<[1], [0], [0], [1], [0, 0, 1, 1], [], []>} : vector<128x1152xbf16>, vector<1152x128xbf16>, vector<128x128xf32> -> vector<128x128xf32>
    %c0_117 = arith.constant 0 : index
    %c0_118 = arith.constant 0 : index
    %112 = vector.load %arg5[%c0_117, %c0_118] : memref<1x128xf32, #tpu.memory_space<vmem>>, vector<1x128xf32>
    %113 = vector.broadcast %112 : vector<1x128xf32> to vector<128x128xf32>
    %114 = arith.addf %111, %113 : vector<128x128xf32>
    %cst_119 = arith.constant 0.000000e+00 : f32
    %115 = vector.broadcast %cst_119 : f32 to vector<128x128xf32>
    %116 = arith.cmpf oge, %114, %115 : vector<128x128xf32>
    %cst_120 = arith.constant 0.00999999977 : f32
    %117 = vector.broadcast %cst_120 : f32 to vector<128x128xf32>
    %118 = arith.mulf %117, %114 : vector<128x128xf32>
    %119 = arith.select %116, %114, %118 : vector<128x128xi1>, vector<128x128xf32>
    %120 = vector.shape_cast %119 : vector<128x128xf32> to vector<8x16x128xf32>
    %c1_121 = arith.constant 1 : index
    %c8_122 = arith.constant 8 : index
    %c0_123 = arith.constant 0 : index
    %121 = vector.load %arg11[%c1_121, %c8_122, %c0_123] : memref<18x25x128xf32, #tpu.memory_space<vmem>>, vector<8x16x128xf32>
    tpu.vector_store %arg11[%c1_121, %c8_122, %c0_123], %120 {strides = array<i32>} : memref<18x25x128xf32, #tpu.memory_space<vmem>>, vector<8x16x128xf32>,
    %c128_124 = arith.constant 128 : index
    %c0_125 = arith.constant 0 : index
    %122 = vector.load %arg12[%c128_124, %c0_125] : memref<256x1152xbf16, #tpu.memory_space<vmem>>, vector<128x1152xbf16>
    %c0_126 = arith.constant 0 : index
    %c0_127 = arith.constant 0 : index
    %123 = vector.load %arg4[%c0_126, %c0_127] : memref<1152x128xbf16, #tpu.memory_space<vmem>>, vector<1152x128xbf16>
    %cst_128 = arith.constant dense<0.000000e+00> : vector<128x128xf32>
    %124 = tpu.matmul %122, %123, %cst_128 {dimension_numbers = #tpu.dot_dimension_numbers<[1], [0], [0], [1], [0, 0, 1, 1], [], []>} : vector<128x1152xbf16>, vector<1152x128xbf16>, vector<128x128xf32> -> vector<128x128xf32>
    %c0_129 = arith.constant 0 : index
    %c0_130 = arith.constant 0 : index
    %125 = vector.load %arg5[%c0_129, %c0_130] : memref<1x128xf32, #tpu.memory_space<vmem>>, vector<1x128xf32>
    %126 = vector.broadcast %125 : vector<1x128xf32> to vector<128x128xf32>
    %127 = arith.addf %124, %126 : vector<128x128xf32>
    %cst_131 = arith.constant 0.000000e+00 : f32
    %128 = vector.broadcast %cst_131 : f32 to vector<128x128xf32>
    %129 = arith.cmpf oge, %127, %128 : vector<128x128xf32>
    %cst_132 = arith.constant 0.00999999977 : f32
    %130 = vector.broadcast %cst_132 : f32 to vector<128x128xf32>
    %131 = arith.mulf %130, %127 : vector<128x128xf32>
    %132 = arith.select %129, %127, %131 : vector<128x128xi1>, vector<128x128xf32>
    %133 = vector.shape_cast %132 : vector<128x128xf32> to vector<8x16x128xf32>
    %c9_133 = arith.constant 9 : index
    %c8_134 = arith.constant 8 : index
    %c0_135 = arith.constant 0 : index
    %134 = vector.load %arg11[%c9_133, %c8_134, %c0_135] : memref<18x25x128xf32, #tpu.memory_space<vmem>>, vector<8x16x128xf32>
    tpu.vector_store %arg11[%c9_133, %c8_134, %c0_135], %133 {strides = array<i32>} : memref<18x25x128xf32, #tpu.memory_space<vmem>>, vector<8x16x128xf32>,
    %c0_136 = arith.constant 0 : index
    %c7_137 = arith.constant 7 : index
    %c0_138 = arith.constant 0 : index
    %135 = vector.load %arg11[%c0_136, %c7_137, %c0_138] : memref<18x25x128xf32, #tpu.memory_space<vmem>>, vector<16x16x128xf32>
    %136 = vector.shape_cast %135 : vector<16x16x128xf32> to vector<256x128xf32>
    %137 = arith.truncf %136 : vector<256x128xf32> to vector<256x128xbf16>
    %c0_139 = arith.constant 0 : index
    %c0_140 = arith.constant 0 : index
    %138 = vector.load %arg12[%c0_139, %c0_140] : memref<256x1152xbf16, #tpu.memory_space<vmem>>, vector<256x128xbf16>
    tpu.vector_store %arg12[%c0_139, %c0_140], %137 {strides = array<i32>} : memref<256x1152xbf16, #tpu.memory_space<vmem>>, vector<256x128xbf16>,
    %c0_141 = arith.constant 0 : index
    %c8_142 = arith.constant 8 : index
    %c0_143 = arith.constant 0 : index
    %139 = vector.load %arg11[%c0_141, %c8_142, %c0_143] : memref<18x25x128xf32, #tpu.memory_space<vmem>>, vector<16x16x128xf32>
    %140 = vector.shape_cast %139 : vector<16x16x128xf32> to vector<256x128xf32>
    %141 = arith.truncf %140 : vector<256x128xf32> to vector<256x128xbf16>
    %c0_144 = arith.constant 0 : index
    %c128_145 = arith.constant 128 : index
    %142 = vector.load %arg12[%c0_144, %c128_145] : memref<256x1152xbf16, #tpu.memory_space<vmem>>, vector<256x128xbf16>
    tpu.vector_store %arg12[%c0_144, %c128_145], %141 {strides = array<i32>} : memref<256x1152xbf16, #tpu.memory_space<vmem>>, vector<256x128xbf16>,
    %c0_146 = arith.constant 0 : index
    %c9_147 = arith.constant 9 : index
    %c0_148 = arith.constant 0 : index
    %143 = vector.load %arg11[%c0_146, %c9_147, %c0_148] : memref<18x25x128xf32, #tpu.memory_space<vmem>>, vector<16x16x128xf32>
    %144 = vector.shape_cast %143 : vector<16x16x128xf32> to vector<256x128xf32>
    %145 = arith.truncf %144 : vector<256x128xf32> to vector<256x128xbf16>
    %c0_149 = arith.constant 0 : index
    %c256_150 = arith.constant 256 : index
    %146 = vector.load %arg12[%c0_149, %c256_150] : memref<256x1152xbf16, #tpu.memory_space<vmem>>, vector<256x128xbf16>
    tpu.vector_store %arg12[%c0_149, %c256_150], %145 {strides = array<i32>} : memref<256x1152xbf16, #tpu.memory_space<vmem>>, vector<256x128xbf16>,
    %c1_151 = arith.constant 1 : index
    %c7_152 = arith.constant 7 : index
    %c0_153 = arith.constant 0 : index
    %147 = vector.load %arg11[%c1_151, %c7_152, %c0_153] : memref<18x25x128xf32, #tpu.memory_space<vmem>>, vector<16x16x128xf32>
    %148 = vector.shape_cast %147 : vector<16x16x128xf32> to vector<256x128xf32>
    %149 = arith.truncf %148 : vector<256x128xf32> to vector<256x128xbf16>
    %c0_154 = arith.constant 0 : index
    %c384_155 = arith.constant 384 : index
    %150 = vector.load %arg12[%c0_154, %c384_155] : memref<256x1152xbf16, #tpu.memory_space<vmem>>, vector<256x128xbf16>
    tpu.vector_store %arg12[%c0_154, %c384_155], %149 {strides = array<i32>} : memref<256x1152xbf16, #tpu.memory_space<vmem>>, vector<256x128xbf16>,
    %c1_156 = arith.constant 1 : index
    %c8_157 = arith.constant 8 : index
    %c0_158 = arith.constant 0 : index
    %151 = vector.load %arg11[%c1_156, %c8_157, %c0_158] : memref<18x25x128xf32, #tpu.memory_space<vmem>>, vector<16x16x128xf32>
    %152 = vector.shape_cast %151 : vector<16x16x128xf32> to vector<256x128xf32>
    %153 = arith.truncf %152 : vector<256x128xf32> to vector<256x128xbf16>
    %c0_159 = arith.constant 0 : index
    %c512_160 = arith.constant 512 : index
    %154 = vector.load %arg12[%c0_159, %c512_160] : memref<256x1152xbf16, #tpu.memory_space<vmem>>, vector<256x128xbf16>
    tpu.vector_store %arg12[%c0_159, %c512_160], %153 {strides = array<i32>} : memref<256x1152xbf16, #tpu.memory_space<vmem>>, vector<256x128xbf16>,
    %c1_161 = arith.constant 1 : index
    %c9_162 = arith.constant 9 : index
    %c0_163 = arith.constant 0 : index
    %155 = vector.load %arg11[%c1_161, %c9_162, %c0_163] : memref<18x25x128xf32, #tpu.memory_space<vmem>>, vector<16x16x128xf32>
    %156 = vector.shape_cast %155 : vector<16x16x128xf32> to vector<256x128xf32>
    %157 = arith.truncf %156 : vector<256x128xf32> to vector<256x128xbf16>
    %c0_164 = arith.constant 0 : index
    %c640_165 = arith.constant 640 : index
    %158 = vector.load %arg12[%c0_164, %c640_165] : memref<256x1152xbf16, #tpu.memory_space<vmem>>, vector<256x128xbf16>
    tpu.vector_store %arg12[%c0_164, %c640_165], %157 {strides = array<i32>} : memref<256x1152xbf16, #tpu.memory_space<vmem>>, vector<256x128xbf16>,
    %c2_166 = arith.constant 2 : index
    %c7_167 = arith.constant 7 : index
    %c0_168 = arith.constant 0 : index
    %159 = vector.load %arg11[%c2_166, %c7_167, %c0_168] : memref<18x25x128xf32, #tpu.memory_space<vmem>>, vector<16x16x128xf32>
    %160 = vector.shape_cast %159 : vector<16x16x128xf32> to vector<256x128xf32>
    %161 = arith.truncf %160 : vector<256x128xf32> to vector<256x128xbf16>
    %c0_169 = arith.constant 0 : index
    %c768_170 = arith.constant 768 : index
    %162 = vector.load %arg12[%c0_169, %c768_170] : memref<256x1152xbf16, #tpu.memory_space<vmem>>, vector<256x128xbf16>
    tpu.vector_store %arg12[%c0_169, %c768_170], %161 {strides = array<i32>} : memref<256x1152xbf16, #tpu.memory_space<vmem>>, vector<256x128xbf16>,
    %c2_171 = arith.constant 2 : index
    %c8_172 = arith.constant 8 : index
    %c0_173 = arith.constant 0 : index
    %163 = vector.load %arg11[%c2_171, %c8_172, %c0_173] : memref<18x25x128xf32, #tpu.memory_space<vmem>>, vector<16x16x128xf32>
    %164 = vector.shape_cast %163 : vector<16x16x128xf32> to vector<256x128xf32>
    %165 = arith.truncf %164 : vector<256x128xf32> to vector<256x128xbf16>
    %c0_174 = arith.constant 0 : index
    %c896_175 = arith.constant 896 : index
    %166 = vector.load %arg12[%c0_174, %c896_175] : memref<256x1152xbf16, #tpu.memory_space<vmem>>, vector<256x128xbf16>
    tpu.vector_store %arg12[%c0_174, %c896_175], %165 {strides = array<i32>} : memref<256x1152xbf16, #tpu.memory_space<vmem>>, vector<256x128xbf16>,
    %c2_176 = arith.constant 2 : index
    %c9_177 = arith.constant 9 : index
    %c0_178 = arith.constant 0 : index
    %167 = vector.load %arg11[%c2_176, %c9_177, %c0_178] : memref<18x25x128xf32, #tpu.memory_space<vmem>>, vector<16x16x128xf32>
    %168 = vector.shape_cast %167 : vector<16x16x128xf32> to vector<256x128xf32>
    %169 = arith.truncf %168 : vector<256x128xf32> to vector<256x128xbf16>
    %c0_179 = arith.constant 0 : index
    %c1024_180 = arith.constant 1024 : index
    %170 = vector.load %arg12[%c0_179, %c1024_180] : memref<256x1152xbf16, #tpu.memory_space<vmem>>, vector<256x128xbf16>
    tpu.vector_store %arg12[%c0_179, %c1024_180], %169 {strides = array<i32>} : memref<256x1152xbf16, #tpu.memory_space<vmem>>, vector<256x128xbf16>,
    %c0_181 = arith.constant 0 : index
    %c0_182 = arith.constant 0 : index
    %171 = vector.load %arg12[%c0_181, %c0_182] : memref<256x1152xbf16, #tpu.memory_space<vmem>>, vector<128x1152xbf16>
    %c0_183 = arith.constant 0 : index
    %c0_184 = arith.constant 0 : index
    %172 = vector.load %arg6[%c0_183, %c0_184] : memref<1152x128xbf16, #tpu.memory_space<vmem>>, vector<1152x128xbf16>
    %cst_185 = arith.constant dense<0.000000e+00> : vector<128x128xf32>
    %173 = tpu.matmul %171, %172, %cst_185 {dimension_numbers = #tpu.dot_dimension_numbers<[1], [0], [0], [1], [0, 0, 1, 1], [], []>} : vector<128x1152xbf16>, vector<1152x128xbf16>, vector<128x128xf32> -> vector<128x128xf32>
    %c0_186 = arith.constant 0 : index
    %c0_187 = arith.constant 0 : index
    %174 = vector.load %arg7[%c0_186, %c0_187] : memref<1x128xf32, #tpu.memory_space<vmem>>, vector<1x128xf32>
    %175 = vector.broadcast %174 : vector<1x128xf32> to vector<128x128xf32>
    %176 = arith.addf %173, %175 : vector<128x128xf32>
    %cst_188 = arith.constant 0.000000e+00 : f32
    %177 = vector.broadcast %cst_188 : f32 to vector<128x128xf32>
    %178 = arith.cmpf oge, %176, %177 : vector<128x128xf32>
    %cst_189 = arith.constant 0.00999999977 : f32
    %179 = vector.broadcast %cst_189 : f32 to vector<128x128xf32>
    %180 = arith.mulf %179, %176 : vector<128x128xf32>
    %181 = arith.select %178, %176, %180 : vector<128x128xi1>, vector<128x128xf32>
    %182 = vector.shape_cast %181 : vector<128x128xf32> to vector<8x16x128xf32>
    %c1_190 = arith.constant 1 : index
    %c8_191 = arith.constant 8 : index
    %c0_192 = arith.constant 0 : index
    %183 = vector.load %arg11[%c1_190, %c8_191, %c0_192] : memref<18x25x128xf32, #tpu.memory_space<vmem>>, vector<8x16x128xf32>
    tpu.vector_store %arg11[%c1_190, %c8_191, %c0_192], %182 {strides = array<i32>} : memref<18x25x128xf32, #tpu.memory_space<vmem>>, vector<8x16x128xf32>,
    %c128_193 = arith.constant 128 : index
    %c0_194 = arith.constant 0 : index
    %184 = vector.load %arg12[%c128_193, %c0_194] : memref<256x1152xbf16, #tpu.memory_space<vmem>>, vector<128x1152xbf16>
    %c0_195 = arith.constant 0 : index
    %c0_196 = arith.constant 0 : index
    %185 = vector.load %arg6[%c0_195, %c0_196] : memref<1152x128xbf16, #tpu.memory_space<vmem>>, vector<1152x128xbf16>
    %cst_197 = arith.constant dense<0.000000e+00> : vector<128x128xf32>
    %186 = tpu.matmul %184, %185, %cst_197 {dimension_numbers = #tpu.dot_dimension_numbers<[1], [0], [0], [1], [0, 0, 1, 1], [], []>} : vector<128x1152xbf16>, vector<1152x128xbf16>, vector<128x128xf32> -> vector<128x128xf32>
    %c0_198 = arith.constant 0 : index
    %c0_199 = arith.constant 0 : index
    %187 = vector.load %arg7[%c0_198, %c0_199] : memref<1x128xf32, #tpu.memory_space<vmem>>, vector<1x128xf32>
    %188 = vector.broadcast %187 : vector<1x128xf32> to vector<128x128xf32>
    %189 = arith.addf %186, %188 : vector<128x128xf32>
    %cst_200 = arith.constant 0.000000e+00 : f32
    %190 = vector.broadcast %cst_200 : f32 to vector<128x128xf32>
    %191 = arith.cmpf oge, %189, %190 : vector<128x128xf32>
    %cst_201 = arith.constant 0.00999999977 : f32
    %192 = vector.broadcast %cst_201 : f32 to vector<128x128xf32>
    %193 = arith.mulf %192, %189 : vector<128x128xf32>
    %194 = arith.select %191, %189, %193 : vector<128x128xi1>, vector<128x128xf32>
    %195 = vector.shape_cast %194 : vector<128x128xf32> to vector<8x16x128xf32>
    %c9_202 = arith.constant 9 : index
    %c8_203 = arith.constant 8 : index
    %c0_204 = arith.constant 0 : index
    %196 = vector.load %arg11[%c9_202, %c8_203, %c0_204] : memref<18x25x128xf32, #tpu.memory_space<vmem>>, vector<8x16x128xf32>
    tpu.vector_store %arg11[%c9_202, %c8_203, %c0_204], %195 {strides = array<i32>} : memref<18x25x128xf32, #tpu.memory_space<vmem>>, vector<8x16x128xf32>,
    %c0_205 = arith.constant 0 : index
    %c7_206 = arith.constant 7 : index
    %c0_207 = arith.constant 0 : index
    %197 = vector.load %arg11[%c0_205, %c7_206, %c0_207] : memref<18x25x128xf32, #tpu.memory_space<vmem>>, vector<16x16x128xf32>
    %198 = vector.shape_cast %197 : vector<16x16x128xf32> to vector<256x128xf32>
    %199 = arith.truncf %198 : vector<256x128xf32> to vector<256x128xbf16>
    %c0_208 = arith.constant 0 : index
    %c0_209 = arith.constant 0 : index
    %200 = vector.load %arg12[%c0_208, %c0_209] : memref<256x1152xbf16, #tpu.memory_space<vmem>>, vector<256x128xbf16>
    tpu.vector_store %arg12[%c0_208, %c0_209], %199 {strides = array<i32>} : memref<256x1152xbf16, #tpu.memory_space<vmem>>, vector<256x128xbf16>,
    %c0_210 = arith.constant 0 : index
    %c8_211 = arith.constant 8 : index
    %c0_212 = arith.constant 0 : index
    %201 = vector.load %arg11[%c0_210, %c8_211, %c0_212] : memref<18x25x128xf32, #tpu.memory_space<vmem>>, vector<16x16x128xf32>
    %202 = vector.shape_cast %201 : vector<16x16x128xf32> to vector<256x128xf32>
    %203 = arith.truncf %202 : vector<256x128xf32> to vector<256x128xbf16>
    %c0_213 = arith.constant 0 : index
    %c128_214 = arith.constant 128 : index
    %204 = vector.load %arg12[%c0_213, %c128_214] : memref<256x1152xbf16, #tpu.memory_space<vmem>>, vector<256x128xbf16>
    tpu.vector_store %arg12[%c0_213, %c128_214], %203 {strides = array<i32>} : memref<256x1152xbf16, #tpu.memory_space<vmem>>, vector<256x128xbf16>,
    %c0_215 = arith.constant 0 : index
    %c9_216 = arith.constant 9 : index
    %c0_217 = arith.constant 0 : index
    %205 = vector.load %arg11[%c0_215, %c9_216, %c0_217] : memref<18x25x128xf32, #tpu.memory_space<vmem>>, vector<16x16x128xf32>
    %206 = vector.shape_cast %205 : vector<16x16x128xf32> to vector<256x128xf32>
    %207 = arith.truncf %206 : vector<256x128xf32> to vector<256x128xbf16>
    %c0_218 = arith.constant 0 : index
    %c256_219 = arith.constant 256 : index
    %208 = vector.load %arg12[%c0_218, %c256_219] : memref<256x1152xbf16, #tpu.memory_space<vmem>>, vector<256x128xbf16>
    tpu.vector_store %arg12[%c0_218, %c256_219], %207 {strides = array<i32>} : memref<256x1152xbf16, #tpu.memory_space<vmem>>, vector<256x128xbf16>,
    %c1_220 = arith.constant 1 : index
    %c7_221 = arith.constant 7 : index
    %c0_222 = arith.constant 0 : index
    %209 = vector.load %arg11[%c1_220, %c7_221, %c0_222] : memref<18x25x128xf32, #tpu.memory_space<vmem>>, vector<16x16x128xf32>
    %210 = vector.shape_cast %209 : vector<16x16x128xf32> to vector<256x128xf32>
    %211 = arith.truncf %210 : vector<256x128xf32> to vector<256x128xbf16>
    %c0_223 = arith.constant 0 : index
    %c384_224 = arith.constant 384 : index
    %212 = vector.load %arg12[%c0_223, %c384_224] : memref<256x1152xbf16, #tpu.memory_space<vmem>>, vector<256x128xbf16>
    tpu.vector_store %arg12[%c0_223, %c384_224], %211 {strides = array<i32>} : memref<256x1152xbf16, #tpu.memory_space<vmem>>, vector<256x128xbf16>,
    %c1_225 = arith.constant 1 : index
    %c8_226 = arith.constant 8 : index
    %c0_227 = arith.constant 0 : index
    %213 = vector.load %arg11[%c1_225, %c8_226, %c0_227] : memref<18x25x128xf32, #tpu.memory_space<vmem>>, vector<16x16x128xf32>
    %214 = vector.shape_cast %213 : vector<16x16x128xf32> to vector<256x128xf32>
    %215 = arith.truncf %214 : vector<256x128xf32> to vector<256x128xbf16>
    %c0_228 = arith.constant 0 : index
    %c512_229 = arith.constant 512 : index
    %216 = vector.load %arg12[%c0_228, %c512_229] : memref<256x1152xbf16, #tpu.memory_space<vmem>>, vector<256x128xbf16>
    tpu.vector_store %arg12[%c0_228, %c512_229], %215 {strides = array<i32>} : memref<256x1152xbf16, #tpu.memory_space<vmem>>, vector<256x128xbf16>,
    %c1_230 = arith.constant 1 : index
    %c9_231 = arith.constant 9 : index
    %c0_232 = arith.constant 0 : index
    %217 = vector.load %arg11[%c1_230, %c9_231, %c0_232] : memref<18x25x128xf32, #tpu.memory_space<vmem>>, vector<16x16x128xf32>
    %218 = vector.shape_cast %217 : vector<16x16x128xf32> to vector<256x128xf32>
    %219 = arith.truncf %218 : vector<256x128xf32> to vector<256x128xbf16>
    %c0_233 = arith.constant 0 : index
    %c640_234 = arith.constant 640 : index
    %220 = vector.load %arg12[%c0_233, %c640_234] : memref<256x1152xbf16, #tpu.memory_space<vmem>>, vector<256x128xbf16>
    tpu.vector_store %arg12[%c0_233, %c640_234], %219 {strides = array<i32>} : memref<256x1152xbf16, #tpu.memory_space<vmem>>, vector<256x128xbf16>,
    %c2_235 = arith.constant 2 : index
    %c7_236 = arith.constant 7 : index
    %c0_237 = arith.constant 0 : index
    %221 = vector.load %arg11[%c2_235, %c7_236, %c0_237] : memref<18x25x128xf32, #tpu.memory_space<vmem>>, vector<16x16x128xf32>
    %222 = vector.shape_cast %221 : vector<16x16x128xf32> to vector<256x128xf32>
    %223 = arith.truncf %222 : vector<256x128xf32> to vector<256x128xbf16>
    %c0_238 = arith.constant 0 : index
    %c768_239 = arith.constant 768 : index
    %224 = vector.load %arg12[%c0_238, %c768_239] : memref<256x1152xbf16, #tpu.memory_space<vmem>>, vector<256x128xbf16>
    tpu.vector_store %arg12[%c0_238, %c768_239], %223 {strides = array<i32>} : memref<256x1152xbf16, #tpu.memory_space<vmem>>, vector<256x128xbf16>,
    %c2_240 = arith.constant 2 : index
    %c8_241 = arith.constant 8 : index
    %c0_242 = arith.constant 0 : index
    %225 = vector.load %arg11[%c2_240, %c8_241, %c0_242] : memref<18x25x128xf32, #tpu.memory_space<vmem>>, vector<16x16x128xf32>
    %226 = vector.shape_cast %225 : vector<16x16x128xf32> to vector<256x128xf32>
    %227 = arith.truncf %226 : vector<256x128xf32> to vector<256x128xbf16>
    %c0_243 = arith.constant 0 : index
    %c896_244 = arith.constant 896 : index
    %228 = vector.load %arg12[%c0_243, %c896_244] : memref<256x1152xbf16, #tpu.memory_space<vmem>>, vector<256x128xbf16>
    tpu.vector_store %arg12[%c0_243, %c896_244], %227 {strides = array<i32>} : memref<256x1152xbf16, #tpu.memory_space<vmem>>, vector<256x128xbf16>,
    %c2_245 = arith.constant 2 : index
    %c9_246 = arith.constant 9 : index
    %c0_247 = arith.constant 0 : index
    %229 = vector.load %arg11[%c2_245, %c9_246, %c0_247] : memref<18x25x128xf32, #tpu.memory_space<vmem>>, vector<16x16x128xf32>
    %230 = vector.shape_cast %229 : vector<16x16x128xf32> to vector<256x128xf32>
    %231 = arith.truncf %230 : vector<256x128xf32> to vector<256x128xbf16>
    %c0_248 = arith.constant 0 : index
    %c1024_249 = arith.constant 1024 : index
    %232 = vector.load %arg12[%c0_248, %c1024_249] : memref<256x1152xbf16, #tpu.memory_space<vmem>>, vector<256x128xbf16>
    tpu.vector_store %arg12[%c0_248, %c1024_249], %231 {strides = array<i32>} : memref<256x1152xbf16, #tpu.memory_space<vmem>>, vector<256x128xbf16>,
    %c0_250 = arith.constant 0 : index
    %c0_251 = arith.constant 0 : index
    %233 = vector.load %arg12[%c0_250, %c0_251] : memref<256x1152xbf16, #tpu.memory_space<vmem>>, vector<128x1152xbf16>
    %c0_252 = arith.constant 0 : index
    %c0_253 = arith.constant 0 : index
    %234 = vector.load %arg8[%c0_252, %c0_253] : memref<1152x256xbf16, #tpu.memory_space<vmem>>, vector<1152x128xbf16>
    %cst_254 = arith.constant dense<0.000000e+00> : vector<128x128xf32>
    %235 = tpu.matmul %233, %234, %cst_254 {dimension_numbers = #tpu.dot_dimension_numbers<[1], [0], [0], [1], [0, 0, 1, 1], [], []>} : vector<128x1152xbf16>, vector<1152x128xbf16>, vector<128x128xf32> -> vector<128x128xf32>
    %c0_255 = arith.constant 0 : index
    %c0_256 = arith.constant 0 : index
    %236 = vector.load %arg9[%c0_255, %c0_256] : memref<1x256xf32, #tpu.memory_space<vmem>>, vector<1x128xf32>
    %237 = vector.broadcast %236 : vector<1x128xf32> to vector<128x128xf32>
    %238 = arith.addf %235, %237 : vector<128x128xf32>
    %239 = math.tanh %238 : vector<128x128xf32>
    %240 = tpu.transpose %239, [1, 0] : vector<128x128xf32> -> vector<128x128xf32>
    %c0_257 = arith.constant 0 : index
    %c0_258 = arith.constant 0 : index
    %c0_259 = arith.constant 0 : index
    %241 = vector.load %arg10[%c0_257, %c0_258, %c0_259] : memref<1x256x256xf32, #tpu.memory_space<vmem>>, vector<1x128x128xf32>
    %242 = vector.shape_cast %241 : vector<1x128x128xf32> to vector<128x128xf32>
    %243 = vector.shape_cast %240 : vector<128x128xf32> to vector<1x128x128xf32>
    tpu.vector_store %arg10[%c0_257, %c0_258, %c0_259], %243 {strides = array<i32>} : memref<1x256x256xf32, #tpu.memory_space<vmem>>, vector<1x128x128xf32>,
    %c128_260 = arith.constant 128 : index
    %c0_261 = arith.constant 0 : index
    %244 = vector.load %arg12[%c128_260, %c0_261] : memref<256x1152xbf16, #tpu.memory_space<vmem>>, vector<128x1152xbf16>
    %c0_262 = arith.constant 0 : index
    %c0_263 = arith.constant 0 : index
    %245 = vector.load %arg8[%c0_262, %c0_263] : memref<1152x256xbf16, #tpu.memory_space<vmem>>, vector<1152x128xbf16>
    %cst_264 = arith.constant dense<0.000000e+00> : vector<128x128xf32>
    %246 = tpu.matmul %244, %245, %cst_264 {dimension_numbers = #tpu.dot_dimension_numbers<[1], [0], [0], [1], [0, 0, 1, 1], [], []>} : vector<128x1152xbf16>, vector<1152x128xbf16>, vector<128x128xf32> -> vector<128x128xf32>
    %c0_265 = arith.constant 0 : index
    %c0_266 = arith.constant 0 : index
    %247 = vector.load %arg9[%c0_265, %c0_266] : memref<1x256xf32, #tpu.memory_space<vmem>>, vector<1x128xf32>
    %248 = vector.broadcast %247 : vector<1x128xf32> to vector<128x128xf32>
    %249 = arith.addf %246, %248 : vector<128x128xf32>
    %250 = math.tanh %249 : vector<128x128xf32>
    %251 = tpu.transpose %250, [1, 0] : vector<128x128xf32> -> vector<128x128xf32>
    %c0_267 = arith.constant 0 : index
    %c0_268 = arith.constant 0 : index
    %c128_269 = arith.constant 128 : index
    %252 = vector.load %arg10[%c0_267, %c0_268, %c128_269] : memref<1x256x256xf32, #tpu.memory_space<vmem>>, vector<1x128x128xf32>
    %253 = vector.shape_cast %252 : vector<1x128x128xf32> to vector<128x128xf32>
    %254 = vector.shape_cast %251 : vector<128x128xf32> to vector<1x128x128xf32>
    tpu.vector_store %arg10[%c0_267, %c0_268, %c128_269], %254 {strides = array<i32>} : memref<1x256x256xf32, #tpu.memory_space<vmem>>, vector<1x128x128xf32>,
    %c0_270 = arith.constant 0 : index
    %c0_271 = arith.constant 0 : index
    %255 = vector.load %arg12[%c0_270, %c0_271] : memref<256x1152xbf16, #tpu.memory_space<vmem>>, vector<128x1152xbf16>
    %c0_272 = arith.constant 0 : index
    %c128_273 = arith.constant 128 : index
    %256 = vector.load %arg8[%c0_272, %c128_273] : memref<1152x256xbf16, #tpu.memory_space<vmem>>, vector<1152x128xbf16>
    %cst_274 = arith.constant dense<0.000000e+00> : vector<128x128xf32>
    %257 = tpu.matmul %255, %256, %cst_274 {dimension_numbers = #tpu.dot_dimension_numbers<[1], [0], [0], [1], [0, 0, 1, 1], [], []>} : vector<128x1152xbf16>, vector<1152x128xbf16>, vector<128x128xf32> -> vector<128x128xf32>
    %c0_275 = arith.constant 0 : index
    %c128_276 = arith.constant 128 : index
    %258 = vector.load %arg9[%c0_275, %c128_276] : memref<1x256xf32, #tpu.memory_space<vmem>>, vector<1x128xf32>
    %259 = vector.broadcast %258 : vector<1x128xf32> to vector<128x128xf32>
    %260 = arith.addf %257, %259 : vector<128x128xf32>
    %261 = math.tanh %260 : vector<128x128xf32>
    %262 = tpu.transpose %261, [1, 0] : vector<128x128xf32> -> vector<128x128xf32>
    %c0_277 = arith.constant 0 : index
    %c128_278 = arith.constant 128 : index
    %c0_279 = arith.constant 0 : index
    %263 = vector.load %arg10[%c0_277, %c128_278, %c0_279] : memref<1x256x256xf32, #tpu.memory_space<vmem>>, vector<1x128x128xf32>
    %264 = vector.shape_cast %263 : vector<1x128x128xf32> to vector<128x128xf32>
    %265 = vector.shape_cast %262 : vector<128x128xf32> to vector<1x128x128xf32>
    tpu.vector_store %arg10[%c0_277, %c128_278, %c0_279], %265 {strides = array<i32>} : memref<1x256x256xf32, #tpu.memory_space<vmem>>, vector<1x128x128xf32>,
    %c128_280 = arith.constant 128 : index
    %c0_281 = arith.constant 0 : index
    %266 = vector.load %arg12[%c128_280, %c0_281] : memref<256x1152xbf16, #tpu.memory_space<vmem>>, vector<128x1152xbf16>
    %c0_282 = arith.constant 0 : index
    %c128_283 = arith.constant 128 : index
    %267 = vector.load %arg8[%c0_282, %c128_283] : memref<1152x256xbf16, #tpu.memory_space<vmem>>, vector<1152x128xbf16>
    %cst_284 = arith.constant dense<0.000000e+00> : vector<128x128xf32>
    %268 = tpu.matmul %266, %267, %cst_284 {dimension_numbers = #tpu.dot_dimension_numbers<[1], [0], [0], [1], [0, 0, 1, 1], [], []>} : vector<128x1152xbf16>, vector<1152x128xbf16>, vector<128x128xf32> -> vector<128x128xf32>
    %c0_285 = arith.constant 0 : index
    %c128_286 = arith.constant 128 : index
    %269 = vector.load %arg9[%c0_285, %c128_286] : memref<1x256xf32, #tpu.memory_space<vmem>>, vector<1x128xf32>
    %270 = vector.broadcast %269 : vector<1x128xf32> to vector<128x128xf32>
    %271 = arith.addf %268, %270 : vector<128x128xf32>
    %272 = math.tanh %271 : vector<128x128xf32>
    %273 = tpu.transpose %272, [1, 0] : vector<128x128xf32> -> vector<128x128xf32>
    %c0_287 = arith.constant 0 : index
    %c128_288 = arith.constant 128 : index
    %c128_289 = arith.constant 128 : index
    %274 = vector.load %arg10[%c0_287, %c128_288, %c128_289] : memref<1x256x256xf32, #tpu.memory_space<vmem>>, vector<1x128x128xf32>
    %275 = vector.shape_cast %274 : vector<1x128x128xf32> to vector<128x128xf32>
    %276 = vector.shape_cast %273 : vector<128x128xf32> to vector<1x128x128xf32>
    tpu.vector_store %arg10[%c0_287, %c128_288, %c128_289], %276 {strides = array<i32>} : memref<1x256x256xf32, #tpu.memory_space<vmem>>, vector<1x128x128xf32>,
    return
  }
  func.func @transform_0(%arg0: i32) -> (i32, i32, i32, i32) {
    %c0_i32 = arith.constant 0 : i32
    %c0_i32_0 = arith.constant 0 : i32
    %c0_i32_1 = arith.constant 0 : i32
    %c0_i32_2 = arith.constant 0 : i32
    return %arg0, %c0_i32, %c0_i32_0, %c0_i32_1 : i32, i32, i32, i32
  }
  func.func @transform_1(%arg0: i32) -> (i32, i32) {
    %c0_i32 = arith.constant 0 : i32
    %c0_i32_0 = arith.constant 0 : i32
    %c0_i32_1 = arith.constant 0 : i32
    return %c0_i32, %c0_i32_0 : i32, i32
  }
  func.func @transform_2(%arg0: i32) -> (i32, i32) {
    %c0_i32 = arith.constant 0 : i32
    %c0_i32_0 = arith.constant 0 : i32
    %c0_i32_1 = arith.constant 0 : i32
    return %c0_i32, %c0_i32_0 : i32, i32
  }
  func.func @transform_3(%arg0: i32) -> (i32, i32) {
    %c0_i32 = arith.constant 0 : i32
    %c0_i32_0 = arith.constant 0 : i32
    %c0_i32_1 = arith.constant 0 : i32
    return %c0_i32, %c0_i32_0 : i32, i32
  }
  func.func @transform_4(%arg0: i32) -> (i32, i32) {
    %c0_i32 = arith.constant 0 : i32
    %c0_i32_0 = arith.constant 0 : i32
    %c0_i32_1 = arith.constant 0 : i32
    return %c0_i32, %c0_i32_0 : i32, i32
  }
  func.func @transform_5(%arg0: i32) -> (i32, i32) {
    %c0_i32 = arith.constant 0 : i32
    %c0_i32_0 = arith.constant 0 : i32
    %c0_i32_1 = arith.constant 0 : i32
    return %c0_i32, %c0_i32_0 : i32, i32
  }
  func.func @transform_6(%arg0: i32) -> (i32, i32) {
    %c0_i32 = arith.constant 0 : i32
    %c0_i32_0 = arith.constant 0 : i32
    %c0_i32_1 = arith.constant 0 : i32
    return %c0_i32, %c0_i32_0 : i32, i32
  }
  func.func @transform_7(%arg0: i32) -> (i32, i32) {
    %c0_i32 = arith.constant 0 : i32
    %c0_i32_0 = arith.constant 0 : i32
    %c0_i32_1 = arith.constant 0 : i32
    return %c0_i32, %c0_i32_0 : i32, i32
  }
  func.func @transform_8(%arg0: i32) -> (i32, i32) {
    %c0_i32 = arith.constant 0 : i32
    %c0_i32_0 = arith.constant 0 : i32
    %c0_i32_1 = arith.constant 0 : i32
    return %c0_i32, %c0_i32_0 : i32, i32
  }
  func.func @transform_9(%arg0: i32) -> (i32, i32, i32) {
    %c0_i32 = arith.constant 0 : i32
    %c0_i32_0 = arith.constant 0 : i32
    %c0_i32_1 = arith.constant 0 : i32
    return %arg0, %c0_i32, %c0_i32_0 : i32, i32, i32
  }
}

</mosaic_0001>

<bundles_post_ra>
// kernel: encoder_forward.1
= control target key start
LH: loop header
LB: loop body
LE: loop exit
PB: predicated region body
PF: predicated region fallthrough
CT: control target
= control target key end

     0   :  { %s19706_s30 = smov 0   ;;  %s24786_s0 = inlined_call_operand.vmem [shape: f32[2,18,25,128], index: 0, kind: input, shape index: {}]   ;;  %s24787_s1 = inlined_call_operand.vmem [shape: bf16[1152,128], index: 1, kind: input, shape index: {}]   ;;  %s24788_s2 = inlined_call_operand.vmem [shape: f32[1,128], index: 2, kind: input, shape index: {}]   ;;  %s24789_s3 = inlined_call_operand.vmem [shape: bf16[1152,128], index: 3, kind: input, shape index: {}]   ;;  %s24790_s4 = inlined_call_operand.vmem [shape: f32[1,128], index: 4, kind: input, shape index: {}]   ;;  %s24791_s5 = inlined_call_operand.vmem [shape: bf16[1152,128], index: 5, kind: input, shape index: {}]   ;;  %s24792_s6 = inlined_call_operand.vmem [shape: f32[1,128], index: 6, kind: input, shape index: {}]   ;;  %s24793_s7 = inlined_call_operand.vmem [shape: bf16[1152,256], index: 7, kind: input, shape index: {}]   ;;  %s24794_s8 = inlined_call_operand.vmem [shape: f32[1,256], index: 8, kind: input, shape index: {}]   ;;  %s24795_s9 = inlined_call_operand.vmem [shape: f32[2,256,256], index: 9, kind: output, shape index: {}]  }
   0x1 LB: > { %s14810_s10 = sadd.s32 4294967295, %s19652_s30   ;;  %p14814_p0 = scmp.ge.s32.totalorder %s19652_s30, 1  ;;  %s19652_s30 = sphi %s19706_s30, %s19_s30  }
   0x2   : > { %p287_p1 = scmp.lt.s32.totalorder %s19652_s30, 3 }
   0x4   : > { %p288_p2 = pnand %p14814_p0, %p287_p1 }
   0x6   : > { %291 = sbr.rel (%p288_p2) target bundleno = 2107 (0x83b), region = 56 }
   0xd   : > { %v18793_v0 = vld [vmem:[%s24787_s1 + $0x40] sm:$0xff]   ;;  %v18797_v4 = vld [vmem:[%s24787_s1 + $0x48] sm:$0xff]   ;;  %v18801_v8 = vld [vmem:[%s24787_s1 + $0x50] sm:$0xff]   ;;  %p323_p3 = scmp.lt.s32.totalorder %s14810_s10, 1 }
   0xe   : > { %v18794_v1 = vld [vmem:[%s24787_s1 + $0xc0] sm:$0xff]   ;;  %15743 = vmatprep.subr.bf16.mxu0 %v18793_v0  ;;  %v18798_v5 = vld [vmem:[%s24787_s1 + $0xc8] sm:$0xff]   ;;  %v18802_v9 = vld [vmem:[%s24787_s1 + $0xd0] sm:$0xff]  }
   0xf   : > { %v18795_v2 = vld [vmem:[%s24787_s1] sm:$0xff]   ;;  %15807 = vmatprep.subr.bf16.mxu1 %v18794_v1  ;;  %v18799_v6 = vld [vmem:[%s24787_s1 + $0x8] sm:$0xff]   ;;  %v18803_v10 = vld [vmem:[%s24787_s1 + $0x10] sm:$0xff]   ;;  %s24959_s10 = smov (!%p323_p3, %s14810_s10), 1 }
  0x10   : > { %v18796_v3 = vld [vmem:[%s24787_s1 + $0x80] sm:$0xff]   ;;  %15744 = vmatpush3.bf16.msra.mxu0 %v18795_v2  ;;  %v18800_v7 = vld [vmem:[%s24787_s1 + $0x88] sm:$0xff]   ;;  %v18804_v11 = vld [vmem:[%s24787_s1 + $0x90] sm:$0xff]   ;;  %s18783_s25 = smul.u32 576, %s24959_s10  ;;  %s15742_s27 = sshll.u32 %s24959_s10, 9 }
  0x11   : > { %15808 = vmatpush3.bf16.msra.mxu1 %v18796_v3  ;;  %15745 = vmatprep.subr.bf16.mxu0 %v18797_v4  ;;  %v18805_v12 = vld [vmem:[%s24787_s1 + $0x58] sm:$0xff]   ;;  %v18809_v16 = vld [vmem:[%s24787_s1 + $0x60] sm:$0xff]   ;;  %v18813_v20 = vld [vmem:[%s24787_s1 + $0x68] sm:$0xff]   ;;  %s24660_s11 = scalar_lea.vmem %s24795_s9, %s15742_s27 }
  0x12   : > { %15809 = vmatprep.subr.bf16.mxu1 %v18798_v5  ;;  %v18806_v13 = vld [vmem:[%s24787_s1 + $0xd8] sm:$0xff]   ;;  %v18810_v17 = vld [vmem:[%s24787_s1 + $0xe0] sm:$0xff]   ;;  %v18814_v21 = vld [vmem:[%s24787_s1 + $0xe8] sm:$0xff]   ;;  %s19814_s17 = scalar_lea.vmem %s24786_s0, %s18783_s25 }
  0x13   : > { %v18807_v14 = vld [vmem:[%s24787_s1 + $0x18] sm:$0xff]   ;;  %v18811_v18 = vld [vmem:[%s24787_s1 + $0x20] sm:$0xff]   ;;  %v18815_v22 = vld [vmem:[%s24787_s1 + $0x28] sm:$0xff]  }
  0x14   : > { %15746 = vmatpush3.bf16.msra.mxu0 %v18799_v6  ;;  %v18808_v15 = vld [vmem:[%s24787_s1 + $0x98] sm:$0xff]   ;;  %v18812_v19 = vld [vmem:[%s24787_s1 + $0xa0] sm:$0xff]   ;;  %v18816_v23 = vld [vmem:[%s24787_s1 + $0xa8] sm:$0xff]  }
  0x15   : > { %15810 = vmatpush3.bf16.msra.mxu1 %v18800_v7  ;;  %15747 = vmatprep.subr.bf16.mxu0 %v18801_v8  ;;  %v18817_v24 = vld [vmem:[%s24787_s1 + $0x70] sm:$0xff]   ;;  %v18821_v28 = vld [vmem:[%s24787_s1 + $0x78] sm:$0xff]   ;;  %v470_v32 = vld [vmem:[%s19814_s17 + $0x8] sm:$0xff] }
  0x16   : > { %15811 = vmatprep.subr.bf16.mxu1 %v18802_v9  ;;  %v18818_v25 = vld [vmem:[%s24787_s1 + $0xf0] sm:$0xff]   ;;  %v18822_v29 = vld [vmem:[%s24787_s1 + $0xf8] sm:$0xff]   ;;  %v14818_v34 = vld [vmem:[%s19814_s17 + $0x27] sm:$0xff] }
  0x17   : > { %v18819_v26 = vld [vmem:[%s24787_s1 + $0x30] sm:$0xff]   ;;  %v18823_v30 = vld [vmem:[%s24787_s1 + $0x38] sm:$0xff]   ;;  %v406_v37 = vld [vmem:[%s19814_s17 + $0x7] sm:$0xff] }
  0x18   : > { %15748 = vmatpush3.bf16.msra.mxu0 %v18803_v10  ;;  %v18820_v27 = vld [vmem:[%s24787_s1 + $0xb0] sm:$0xff]   ;;  %v18824_v31 = vld [vmem:[%s24787_s1 + $0xb8] sm:$0xff]   ;;  %v18825_v44 = vld [vmem:[%s24787_s1 + $0x1c0] sm:$0xff]  }
  0x19   : > { %15812 = vmatpush3.bf16.msra.mxu1 %v18804_v11  ;;  %15749 = vmatprep.subr.bf16.mxu0 %v18805_v12  ;;  %v471_v33 = vld [vmem:[%s19814_s17 + $0x10] sm:$0xff]  ;;  %v18826_v45 = vld [vmem:[%s24787_s1 + $0x180] sm:$0xff]   ;;  %v472_v46 = vld [vmem:[%s19814_s17 + $0x28] sm:$0xff] }
  0x1a   : > { %15813 = vmatprep.subr.bf16.mxu1 %v18806_v13  ;;  %v502_v35 = vpack.c.bf16 %v471_v33, %v470_v32  ;;  %v14819_v36 = vld [vmem:[%s19814_s17 + $0x2f] sm:$0xff]  ;;  %v14820_v48 = vld [vmem:[%s19814_s17 + $0x47] sm:$0xff] }
  0x1b   : > { %v407_v38 = vld [vmem:[%s19814_s17 + $0xf] sm:$0xff]  ;;  %v631_v39 = vpack.c.bf16 %v14819_v36, %v14818_v34  ;;  %v18827_v54 = vld [vmem:[%s24787_s1 + $0x140] sm:$0xff]  }
  0x1c   : > { %15750 = vmatpush3.bf16.msra.mxu0 %v18807_v14  ;;  %v438_v40 = vpack.c.bf16 %v407_v38, %v406_v37  ;;  %v534_v41 = vld [vmem:[%s19814_s17 + $0x9] sm:$0xff]  ;;  %v535_v42 = vld [vmem:[%s19814_s17 + $0x11] sm:$0xff]  ;;  %1671 = vmatprep.mubr.bf16.mxu0 %v502_v35  ;;  %v18829_v57 = vld [vmem:[%s24787_s1 + $0x100] sm:$0xff]  }
  0x1d   : > { %15814 = vmatpush3.bf16.msra.mxu1 %v18808_v15  ;;  %15751 = vmatprep.subr.bf16.mxu0 %v18809_v16  ;;  %v566_v43 = vpack.c.bf16 %v535_v42, %v534_v41  ;;  %v473_v47 = vld [vmem:[%s19814_s17 + $0x30] sm:$0xff]  ;;  %v18828_v55 = vld [vmem:[%s24787_s1 + $0x1c8] sm:$0xff]   ;;  %v18843_v37 = vld [vmem:[%s24787_s1 + $0x160] sm:$0xff]  }
  0x1e   : > { %15815 = vmatprep.subr.bf16.mxu1 %v18810_v17  ;;  %1768 = vmatprep.mubr.bf16.mxu1 %v631_v39  ;;  %v14821_v49 = vld [vmem:[%s19814_s17 + $0x4f] sm:$0xff]  ;;  %v19840_v50 = vpack.c.bf16 %v473_v47, %v472_v46  ;;  %v14822_v61 = vld [vmem:[%s19814_s17 + $0x67] sm:$0xff]  ;;  %v18836_v17 = vld [vmem:[%s24787_s1 + $0x1d8] sm:$0xff]  }
  0x1f   : > { %v19842_v51 = vpack.c.bf16 %v14821_v49, %v14820_v48  ;;  %v536_v52 = vld [vmem:[%s19814_s17 + $0x29] sm:$0xff]  ;;  %v537_v53 = vld [vmem:[%s19814_s17 + $0x31] sm:$0xff]  ;;  %v18845_v41 = vld [vmem:[%s24787_s1 + $0x120] sm:$0xff]  }
  0x20   : > { %15752 = vmatpush3.bf16.msra.mxu0 %v18811_v18  ;;  %v19854_v56 = vpack.c.bf16 %v537_v53, %v536_v52  ;;  %v18830_v58 = vld [vmem:[%s24787_s1 + $0x188] sm:$0xff]   ;;  %v475_v60 = vld [vmem:[%s19814_s17 + $0x50] sm:$0xff] }
  0x21   : > { %15816 = vmatpush3.bf16.msra.mxu1 %v18812_v19  ;;  %15753 = vmatprep.subr.bf16.mxu0 %v18813_v20  ;;  %v474_v59 = vld [vmem:[%s19814_s17 + $0x48] sm:$0xff]  ;;  %v539_v2 = vld [vmem:[%s19814_s17 + $0x51] sm:$0xff] }
  0x22   : > { %15817 = vmatprep.subr.bf16.mxu1 %v18814_v21  ;;  %v14823_v62 = vld [vmem:[%s19814_s17 + $0x6f] sm:$0xff]  ;;  %v19866_v63 = vpack.c.bf16 %v475_v60, %v474_v59  ;;  %v14824_v10 = vld [vmem:[%s19814_s17 + $0x87] sm:$0xff]  ;;  %v18838_v19 = vld [vmem:[%s24787_s1 + $0x198] sm:$0xff]  }
  0x23   : > { %v19868_v0 = vpack.c.bf16 %v14823_v62, %v14822_v61  ;;  %v538_v1 = vld [vmem:[%s19814_s17 + $0x49] sm:$0xff]  ;;  %v541_v16 = vld [vmem:[%s19814_s17 + $0x71] sm:$0xff] }
  0x24   : > { %15754 = vmatpush3.bf16.msra.mxu0 %v18815_v22  ;;  %v18831_v3 = vld [vmem:[%s24787_s1 + $0x148] sm:$0xff]   ;;  %v18832_v4 = vld [vmem:[%s24787_s1 + $0x1d0] sm:$0xff]   ;;  %v19888_v8 = vpack.c.bf16 %v539_v2, %v538_v1 }
  0x25   : > { %15818 = vmatpush3.bf16.msra.mxu1 %v18816_v23  ;;  %15755 = vmatprep.subr.bf16.mxu0 %v18817_v24  ;;  %v18833_v5 = vld [vmem:[%s24787_s1 + $0x108] sm:$0xff]   ;;  %v18834_v6 = vld [vmem:[%s24787_s1 + $0x190] sm:$0xff]  }
  0x26   : > { %15819 = vmatprep.subr.bf16.mxu1 %v18818_v25  ;;  %v476_v7 = vld [vmem:[%s19814_s17 + $0x68] sm:$0xff]  ;;  %v477_v9 = vld [vmem:[%s19814_s17 + $0x70] sm:$0xff] }
  0x27   : > { %v14825_v11 = vld [vmem:[%s19814_s17 + $0x8f] sm:$0xff]  ;;  %v19893_v12 = vpack.c.bf16 %v477_v9, %v476_v7  ;;  %v14826_v22 = vld [vmem:[%s19814_s17 + $0xa7] sm:$0xff]  ;;  %v18854_v7 = vld [vmem:[%s24787_s1 + $0x1b8] sm:$0xff]  }
  0x28   : > { %15756 = vmatpush3.bf16.msra.mxu0 %v18819_v26  ;;  %v19895_v13 = vpack.c.bf16 %v14825_v11, %v14824_v10  ;;  %v18835_v14 = vld [vmem:[%s24787_s1 + $0x150] sm:$0xff]   ;;  %v478_v20 = vld [vmem:[%s19814_s17 + $0x88] sm:$0xff]  ;;  %v18839_v26 = vld [vmem:[%s24787_s1 + $0x158] sm:$0xff]  }
  0x29   : > { %15820 = vmatpush3.bf16.msra.mxu1 %v18820_v27  ;;  %15757 = vmatprep.subr.bf16.mxu0 %v18821_v28  ;;  %v540_v15 = vld [vmem:[%s19814_s17 + $0x69] sm:$0xff]  ;;  %v18840_v28 = vld [vmem:[%s24787_s1 + $0x1e0] sm:$0xff]   ;;  %v543_v32 = vld [vmem:[%s19814_s17 + $0x91] sm:$0xff] }
  0x2a   : > { %15821 = vmatprep.subr.bf16.mxu1 %v18822_v29  ;;  %v18837_v18 = vld [vmem:[%s24787_s1 + $0x110] sm:$0xff]   ;;  %v19919_v24 = vpack.c.bf16 %v541_v16, %v540_v15  ;;  %v18841_v29 = vld [vmem:[%s24787_s1 + $0x118] sm:$0xff]   ;;  %v480_v33 = vld [vmem:[%s19814_s17 + $0xa8] sm:$0xff] }
  0x2b   : > { %v479_v21 = vld [vmem:[%s19814_s17 + $0x90] sm:$0xff]  ;;  %v14828_v35 = vld [vmem:[%s19814_s17 + $0xc7] sm:$0xff]  ;;  %v18855_v9 = vld [vmem:[%s24787_s1 + $0x178] sm:$0xff]  }
  0x2c   : > { %15758 = vmatpush3.bf16.msra.mxu0 %v18823_v30  ;;  %v14827_v23 = vld [vmem:[%s19814_s17 + $0xaf] sm:$0xff]  ;;  %v19921_v25 = vpack.c.bf16 %v479_v21, %v478_v20  ;;  %v14830_v48 = vld [vmem:[%s19814_s17 + $0xe7] sm:$0xff]  ;;  %v18856_v10 = vld [vmem:[%s24787_s1 + $0x138] sm:$0xff]  }
  0x2d   : > { %15822 = vmatpush3.bf16.msra.mxu1 %v18824_v31  ;;  %15871 = vmatprep.subr.bf16.mxu0 %v18827_v54  ;;  %v19926_v27 = vpack.c.bf16 %v14827_v23, %v14826_v22  ;;  %v542_v30 = vld [vmem:[%s19814_s17 + $0x89] sm:$0xff]  ;;  %v18842_v31 = vld [vmem:[%s24787_s1 + $0x1a0] sm:$0xff]   ;;  %v547_v62 = vld [vmem:[%s19814_s17 + $0xd1] sm:$0xff] }
  0x2e   : > { %15935 = vmatprep.subr.bf16.mxu1 %v18825_v44  ;;  %v481_v34 = vld [vmem:[%s19814_s17 + $0xb0] sm:$0xff]  ;;  %v18844_v38 = vld [vmem:[%s24787_s1 + $0x1e8] sm:$0xff]   ;;  %v18857_v15 = vld [vmem:[%s24787_s1 + $0x40] sm:$0xff]  }
  0x2f   : > { %1672 = vmatmul.mubr.bf16.vlgmr.msra.gmra.mrb[0].mxu0 %v438_v40  ;;  %v14829_v36 = vld [vmem:[%s19814_s17 + $0xcf] sm:$0xff]  ;;  %v19955_v40 = vpack.c.bf16 %v481_v34, %v480_v33  ;;  %v18858_v21 = vld [vmem:[%s24787_s1] sm:$0xff]  }
  0x30   : > { %1769 = vmatmul.mubr.bf16.vlgmr.msra.gmra.mrb[0].mxu1 %v566_v43  ;;  %1679 = vmatprep.mubr.bf16.mxu0 %v19840_v50  ;;  %v19960_v42 = vpack.c.bf16 %v14829_v36, %v14828_v35  ;;  %v18846_v43 = vld [vmem:[%s24787_s1 + $0x1a8] sm:$0xff]   ;;  %v483_v47 = vld [vmem:[%s19814_s17 + $0xd0] sm:$0xff]  ;;  %v18878_v36 = vld [vmem:[%s24787_s1 + $0x78] sm:$0xff]  }
  0x31   : > { %15936 = vmatpush3.bf16.msra.mxu1 %v18826_v45  ;;  %1776 = vmatprep.mubr.bf16.mxu1 %v19842_v51  ;;  %v544_v44 = vld [vmem:[%s19814_s17 + $0xa9] sm:$0xff]  ;;  %v545_v45 = vld [vmem:[%s19814_s17 + $0xb1] sm:$0xff] }
  0x32   : > { %15937 = vmatprep.subr.bf16.mxu1 %v18828_v55  ;;  %15872 = vmatpush3.bf16.msra.mxu0 %v18829_v57  ;;  %v482_v46 = vld [vmem:[%s19814_s17 + $0xc8] sm:$0xff]  ;;  %v18848_v53 = vld [vmem:[%s24787_s1 + $0x1f0] sm:$0xff]   ;;  %v19987_v57 = vpack.c.bf16 %v545_v45, %v544_v44 }
  0x33   : > { %15873 = vmatprep.subr.bf16.mxu0 %v18831_v3  ;;  %v14831_v49 = vld [vmem:[%s19814_s17 + $0xef] sm:$0xff]  ;;  %v18852_v3 = vld [vmem:[%s24787_s1 + $0x1f8] sm:$0xff]  }
  0x34   : > { %v18847_v52 = vld [vmem:[%s24787_s1 + $0x168] sm:$0xff]   ;;  %v18850_v55 = vld [vmem:[%s24787_s1 + $0x1b0] sm:$0xff]   ;;  %v19991_v59 = vpack.c.bf16 %v14831_v49, %v14830_v48 }
  0x35   : > { %15938 = vmatpush3.bf16.msra.mxu1 %v18830_v58  ;;  %v18849_v54 = vld [vmem:[%s24787_s1 + $0x128] sm:$0xff]   ;;  %v19989_v58 = vpack.c.bf16 %v483_v47, %v482_v46  ;;  %v18851_v60 = vld [vmem:[%s24787_s1 + $0x170] sm:$0xff]  }
  0x36   : > { %15939 = vmatprep.subr.bf16.mxu1 %v18832_v4  ;;  %15874 = vmatpush3.bf16.msra.mxu0 %v18833_v5  ;;  %v546_v61 = vld [vmem:[%s19814_s17 + $0xc9] sm:$0xff]  ;;  %v14897_v45 = vld [vmem:[%s19814_s17 + $0x111] sm:$0xff] }
  0x37   : > { %1680 = vmatmul.mubr.bf16.gmra.mrb[4].mxu0 %v631_v39  ;;  %15875 = vmatprep.subr.bf16.mxu0 %v18835_v14  ;;  %v19953_v39 = vpack.c.bf16 %v543_v32, %v542_v30  ;;  %v484_v1 = vld [vmem:[%s19814_s17 + $0xe8] sm:$0xff]  ;;  %v485_v2 = vld [vmem:[%s19814_s17 + $0xf0] sm:$0xff]  ;;  %v20021_v11 = vpack.c.bf16 %v547_v62, %v546_v61  ;;  %v18867_v30 = vld [vmem:[%s24787_s1 + $0x18] sm:$0xff]  }
  0x38   : > { %1777 = vmatmul.mubr.bf16.gmra.mrb[4].mxu1 %v19854_v56  ;;  %1687 = vmatprep.mubr.bf16.mxu0 %v19866_v63  ;;  %v14832_v4 = vld [vmem:[%s19814_s17 + $0x107] sm:$0xff]  ;;  %v14833_v5 = vld [vmem:[%s19814_s17 + $0x10f] sm:$0xff]  ;;  %v20023_v14 = vpack.c.bf16 %v485_v2, %v484_v1 }
  0x39   : > { %1784 = vmatprep.mubr.bf16.mxu1 %v19868_v0  ;;  %15940 = vmatpush3.bf16.msra.mxu1 %v18834_v6  ;;  %v18853_v6 = vld [vmem:[%s24787_s1 + $0x130] sm:$0xff]   ;;  %v20028_v16 = vpack.c.bf16 %v14833_v5, %v14832_v4  ;;  %v18860_v22 = vld [vmem:[%s24787_s1 + $0x48] sm:$0xff]  }
  0x3a   : > { %15941 = vmatprep.subr.bf16.mxu1 %v18836_v17  ;;  %15876 = vmatpush3.bf16.msra.mxu0 %v18837_v18  ;;  %v18859_v17 = vld [vmem:[%s24787_s1 + $0x200] sm:$0xff]   ;;  %v548_v18 = vld [vmem:[%s19814_s17 + $0xe9] sm:$0xff] }
  0x3b   : > { %15877 = vmatprep.subr.bf16.mxu0 %v18839_v26  ;;  %v18862_v23 = vld [vmem:[%s24787_s1 + $0x208] sm:$0xff]   ;;  %v18864_v26 = vld [vmem:[%s24787_s1 + $0x10] sm:$0xff]  }
  0x3c   : > { %v18872_v32 = vld [vmem:[%s24787_s1 + $0x68] sm:$0xff]   ;;  %v18876_v35 = vld [vmem:[%s24787_s1 + $0x30] sm:$0xff]  }
  0x3d   : > { %15942 = vmatpush3.bf16.msra.mxu1 %v18838_v19  ;;  %v549_v19 = vld [vmem:[%s19814_s17 + $0xf1] sm:$0xff]  ;;  %v18874_v33 = vld [vmem:[%s24787_s1 + $0x228] sm:$0xff]  }
  0x3e   : > { %15943 = vmatprep.subr.bf16.mxu1 %v18840_v28  ;;  %15878 = vmatpush3.bf16.msra.mxu0 %v18841_v29  ;;  %v20039_v20 = vpack.c.bf16 %v549_v19, %v548_v18  ;;  %v18866_v28 = vld [vmem:[%s24787_s1 + $0x58] sm:$0xff]   ;;  %v18873_v34 = vld [vmem:[%s24787_s1 + $0x28] sm:$0xff]   ;;  %v18894_v62 = vld [vmem:[%s24787_s1 + $0x150] sm:$0xff]  }
  0x3f   : > { %1688 = vmatmul.mubr.bf16.gmra.mrb[8].mxu0 %v19842_v51  ;;  %15879 = vmatprep.subr.bf16.mxu0 %v18843_v37  ;;  %v18868_v29 = vld [vmem:[%s24787_s1 + $0x218] sm:$0xff]   ;;  %v14960_v46 = vld [vmem:[%s19814_s17 + $0x128] sm:$0xff]  ;;  %v491_v1 = vld [vmem:[%s19814_s17 + $0x150] sm:$0xff] }
  0x40   : > { %1785 = vmatmul.mubr.bf16.gmra.mrb[8].mxu1 %v19888_v8  ;;  %1695 = vmatprep.mubr.bf16.mxu0 %v19893_v12  ;;  %v18880_v37 = vld [vmem:[%s24787_s1 + $0x238] sm:$0xff]   ;;  %v14928_v49 = vld [vmem:[%s19814_s17 + $0x127] sm:$0xff]  ;;  %v18889_v2 = vld [vmem:[%s24787_s1 + $0x90] sm:$0xff]  }
  0x41   : > { %1792 = vmatprep.mubr.bf16.mxu1 %v19895_v13  ;;  %15944 = vmatpush3.bf16.msra.mxu1 %v18842_v31  ;;  %v18870_v31 = vld [vmem:[%s24787_s1 + $0x20] sm:$0xff]   ;;  %v490_v61 = vld [vmem:[%s19814_s17 + $0x148] sm:$0xff]  ;;  %v18896_v5 = vld [vmem:[%s24787_s1 + $0x110] sm:$0xff]  }
  0x42   : > { %15945 = vmatprep.subr.bf16.mxu1 %v18844_v38  ;;  %15880 = vmatpush3.bf16.msra.mxu0 %v18845_v41  ;;  %v18879_v38 = vld [vmem:[%s24787_s1 + $0x38] sm:$0xff]   ;;  %v14958_v41 = vld [vmem:[%s19814_s17 + $0x108] sm:$0xff]  ;;  %v20199_v4 = vpack.c.bf16 %v491_v1, %v490_v61  ;;  %v18906_v19 = vld [vmem:[%s24787_s1 + $0x120] sm:$0xff]  }
  0x43   : > { %15881 = vmatprep.subr.bf16.mxu0 %v18847_v52  ;;  %v14929_v52 = vld [vmem:[%s19814_s17 + $0x12f] sm:$0xff]  ;;  %v434_v61 = vld [vmem:[%s19814_s17 + $0x1c7] sm:$0xff]  ;;  %v18922_v1 = vld [vmem:[%s24787_s1 + $0x198] sm:$0xff]  }
  0x45   : > { %15946 = vmatpush3.bf16.msra.mxu1 %v18846_v43  ;;  %v14959_v43 = vld [vmem:[%s19814_s17 + $0x110] sm:$0xff] }
  0x46   : > { %15947 = vmatprep.subr.bf16.mxu1 %v18848_v53  ;;  %15882 = vmatpush3.bf16.msra.mxu0 %v18849_v54  ;;  %v894_v44 = vpack.c.bf16 %v14959_v43, %v14958_v41  ;;  %v20156_v53 = vpack.c.bf16 %v14929_v52, %v14928_v49  ;;  %v18883_v54 = vld [vmem:[%s24787_s1 + $0x80] sm:$0xff]   ;;  %v18912_v41 = vld [vmem:[%s24787_s1 + $0x138] sm:$0xff]   ;;  %v433_v49 = vld [vmem:[%s19814_s17 + $0x1af] sm:$0xff] }
  0x47   : > { %1696 = vmatmul.mubr.bf16.gmra.mrb[12].mxu0 %v19868_v0  ;;  %15883 = vmatprep.subr.bf16.mxu0 %v18851_v60  ;;  %v18887_v60 = vld [vmem:[%s24787_s1 + $0xd0] sm:$0xff]   ;;  %v20299_v43 = vld [vmem:[%s24787_s1 + $0x200] sm:$0xff]   ;;  %v18917_v52 = vld [vmem:[%s24787_s1 + $0x188] sm:$0xff]  }
  0x48   : > { %1793 = vmatmul.mubr.bf16.gmra.mrb[12].mxu1 %v19919_v24  ;;  %1703 = vmatprep.mubr.bf16.mxu0 %v19921_v25 }
  0x49   : > { %1800 = vmatprep.mubr.bf16.mxu1 %v19926_v27  ;;  %15948 = vmatpush3.bf16.msra.mxu1 %v18850_v55  ;;  %v18884_v55 = vld [vmem:[%s24787_s1 + $0x100] sm:$0xff]  }
  0x4a   : > { %15949 = vmatprep.subr.bf16.mxu1 %v18852_v3  ;;  %15884 = vmatpush3.bf16.msra.mxu0 %v18853_v6  ;;  %v18892_v3 = vld [vmem:[%s24787_s1 + $0x98] sm:$0xff]   ;;  %v426_v6 = vld [vmem:[%s19814_s17 + $0x147] sm:$0xff] }
  0x4b   : > { %15885 = vmatprep.subr.bf16.mxu0 %v18855_v9  ;;  %v427_v9 = vld [vmem:[%s19814_s17 + $0x14f] sm:$0xff] }
  0x4c   : > { %v20230_v18 = vpack.c.bf16 %v427_v9, %v426_v6  ;;  %v18925_v6 = vld [vmem:[%s24787_s1 + $0x1a0] sm:$0xff]   ;;  %v18926_v9 = vld [vmem:[%s24787_s1 + $0x1e8] sm:$0xff]  }
  0x4d   : > { %15950 = vmatpush3.bf16.msra.mxu1 %v18854_v7  ;;  %v18900_v7 = vld [vmem:[%s24787_s1 + $0x158] sm:$0xff]  }
  0x4e   : > { %15886 = vmatpush3.bf16.msra.mxu0 %v18856_v10  ;;  %16015 = vmatprep.subr.bf16.mxu1 %v18857_v15  ;;  %v18893_v10 = vld [vmem:[%s24787_s1 + $0xe0] sm:$0xff]   ;;  %v492_v15 = vld [vmem:[%s19814_s17 + $0x168] sm:$0xff] }
  0x4f   : > { %1704 = vmatmul.mubr.bf16.gmra.mrb[16].mxu0 %v19895_v13  ;;  %18463 = vmatprep.subr.bf16.mxu0 %v18859_v17 }
  0x50   : > { %1801 = vmatmul.mubr.bf16.gmra.mrb[16].mxu1 %v19953_v39  ;;  %1711 = vmatprep.mubr.bf16.mxu0 %v19955_v40 }
  0x51   : > { %1808 = vmatprep.mubr.bf16.mxu1 %v19960_v42 }
  0x57   : > { %1712 = vmatmul.mubr.bf16.gmra.mrb[20].mxu0 %v19926_v27 }
  0x58   : > { %1809 = vmatmul.mubr.bf16.gmra.mrb[20].mxu1 %v19987_v57  ;;  %1719 = vmatprep.mubr.bf16.mxu0 %v19989_v58 }
  0x59   : > { %1816 = vmatprep.mubr.bf16.mxu1 %v19991_v59 }
  0x5f   : > { %1720 = vmatmul.mubr.bf16.gmra.mrb[24].mxu0 %v19960_v42 }
  0x60   : > { %1817 = vmatmul.mubr.bf16.gmra.mrb[24].mxu1 %v20021_v11  ;;  %1727 = vmatprep.mubr.bf16.mxu0 %v20023_v14 }
  0x61   : > { %1824 = vmatprep.mubr.bf16.mxu1 %v20028_v16 }
  0x67   : > { %1728 = vmatmul.mubr.bf16.gmra.mrb[28].mxu0 %v19991_v59 }
  0x68   : > { %1825 = vmatmul.mubr.bf16.gmra.mrb[28].mxu1 %v20039_v20  ;;  %1865 = vmatprep.mubr.bf16.mxu0 %v19854_v56  ;;  %v18861_v56 = vld [vmem:[%s24787_s1 + $0x8] sm:$0xff]  }
  0x69   : > { %1962 = vmatprep.mubr.bf16.mxu1 %v19866_v63 }
  0x6f   : > { %1866 = vmatmul.mubr.bf16.vlgmr.msra.gmra.mrb[32].mxu0 %v19840_v50  ;;  %v18863_v50 = vld [vmem:[%s24787_s1 + $0x50] sm:$0xff]  }
  0x70   : > { %1963 = vmatmul.mubr.bf16.vlgmr.msra.gmra.mrb[32].mxu1 %v19842_v51  ;;  %1873 = vmatprep.mubr.bf16.mxu0 %v19888_v8  ;;  %v18865_v51 = vld [vmem:[%s24787_s1 + $0x210] sm:$0xff]  }
  0x71   : > { %16016 = vmatpush3.bf16.msra.mxu1 %v18858_v21  ;;  %1970 = vmatprep.mubr.bf16.mxu1 %v19893_v12  ;;  %v18907_v21 = vld [vmem:[%s24787_s1 + $0x168] sm:$0xff]  }
  0x72   : > { %16017 = vmatprep.subr.bf16.mxu1 %v18860_v22  ;;  %18464 = vmatpush3.bf16.msra.mxu0 %v18859_v17  ;;  %v18905_v17 = vld [vmem:[%s24787_s1 + $0x160] sm:$0xff]   ;;  %v18898_v22 = vld [vmem:[%s24787_s1 + $0xa8] sm:$0xff]  }
  0x73   : > { %18465 = vmatprep.subr.bf16.mxu0 %v18862_v23 }
  0x75   : > { %16018 = vmatpush3.bf16.msra.mxu1 %v18861_v56  ;;  %v14992_v56 = vld [vmem:[%s19814_s17 + $0x129] sm:$0xff] }
  0x76   : > { %16019 = vmatprep.subr.bf16.mxu1 %v18863_v50  ;;  %18466 = vmatpush3.bf16.msra.mxu0 %v18862_v23  ;;  %v14993_v50 = vld [vmem:[%s19814_s17 + $0x131] sm:$0xff] }
  0x77   : > { %1874 = vmatmul.mubr.bf16.gmra.mrb[36].mxu0 %v19866_v63  ;;  %18467 = vmatprep.subr.bf16.mxu0 %v18865_v51  ;;  %v18869_v63 = vld [vmem:[%s24787_s1 + $0x60] sm:$0xff]  }
  0x78   : > { %1971 = vmatmul.mubr.bf16.gmra.mrb[36].mxu1 %v19868_v0  ;;  %1881 = vmatprep.mubr.bf16.mxu0 %v19919_v24  ;;  %v18871_v0 = vld [vmem:[%s24787_s1 + $0x220] sm:$0xff]  }
  0x79   : > { %1978 = vmatprep.mubr.bf16.mxu1 %v19921_v25  ;;  %16020 = vmatpush3.bf16.msra.mxu1 %v18864_v26  ;;  %v429_v26 = vld [vmem:[%s19814_s17 + $0x16f] sm:$0xff] }
  0x7a   : > { %16021 = vmatprep.subr.bf16.mxu1 %v18866_v28  ;;  %18468 = vmatpush3.bf16.msra.mxu0 %v18865_v51  ;;  %v428_v51 = vld [vmem:[%s19814_s17 + $0x167] sm:$0xff]  ;;  %v18899_v28 = vld [vmem:[%s24787_s1 + $0xf0] sm:$0xff]  }
  0x7b   : > { %18469 = vmatprep.subr.bf16.mxu0 %v18868_v29 }
  0x7d   : > { %16022 = vmatpush3.bf16.msra.mxu1 %v18867_v30  ;;  %v495_v30 = vld [vmem:[%s19814_s17 + $0x190] sm:$0xff] }
  0x7e   : > { %16023 = vmatprep.subr.bf16.mxu1 %v18869_v63  ;;  %18470 = vmatpush3.bf16.msra.mxu0 %v18868_v29  ;;  %v494_v29 = vld [vmem:[%s19814_s17 + $0x188] sm:$0xff] }
  0x7f   : > { %1882 = vmatmul.mubr.bf16.gmra.mrb[40].mxu0 %v19893_v12  ;;  %18471 = vmatprep.subr.bf16.mxu0 %v18871_v0  ;;  %v18875_v12 = vld [vmem:[%s24787_s1 + $0x70] sm:$0xff]   ;;  %v18908_v63 = vld [vmem:[%s24787_s1 + $0x128] sm:$0xff]  }
  0x80   : > { %1979 = vmatmul.mubr.bf16.gmra.mrb[40].mxu1 %v19895_v13  ;;  %1889 = vmatprep.mubr.bf16.mxu0 %v19953_v39  ;;  %v18877_v13 = vld [vmem:[%s24787_s1 + $0x230] sm:$0xff]  }
  0x81   : > { %1986 = vmatprep.mubr.bf16.mxu1 %v19955_v40  ;;  %16024 = vmatpush3.bf16.msra.mxu1 %v18870_v31  ;;  %v20264_v31 = vpack.c.bf16 %v429_v26, %v428_v51  ;;  %v559_v51 = vld [vmem:[%s19814_s17 + $0x191] sm:$0xff] }
  0x82   : > { %16025 = vmatprep.subr.bf16.mxu1 %v18872_v32  ;;  %18472 = vmatpush3.bf16.msra.mxu0 %v18871_v0  ;;  %v20262_v0 = vpack.c.bf16 %v14993_v50, %v14992_v56  ;;  %v18901_v32 = vld [vmem:[%s24787_s1 + $0xb0] sm:$0xff]   ;;  %v18931_v56 = vld [vmem:[%s24787_s1 + $0x1f8] sm:$0xff]  }
  0x83   : > { %18473 = vmatprep.subr.bf16.mxu0 %v18874_v33  ;;  %v558_v50 = vld [vmem:[%s19814_s17 + $0x189] sm:$0xff]  ;;  %v18932_v26 = vld [vmem:[%s24787_s1 + $0x1b8] sm:$0xff]  }
  0x85   : > { %16026 = vmatpush3.bf16.msra.mxu1 %v18873_v34  ;;  %v20272_v34 = vpack.c.bf16 %v495_v30, %v494_v29  ;;  %v20401_v29 = vpack.c.bf16 %v559_v51, %v558_v50  ;;  %v18919_v30 = vld [vmem:[%s24787_s1 + $0x208] sm:$0xff]  }
  0x86   : > { %16027 = vmatprep.subr.bf16.mxu1 %v18875_v12  ;;  %18474 = vmatpush3.bf16.msra.mxu0 %v18874_v33  ;;  %v18903_v33 = vld [vmem:[%s24787_s1 + $0xf8] sm:$0xff]   ;;  %v18910_v12 = vld [vmem:[%s24787_s1 + $0x130] sm:$0xff]  }
  0x87   : > { %1890 = vmatmul.mubr.bf16.gmra.mrb[44].mxu0 %v19921_v25  ;;  %18475 = vmatprep.subr.bf16.mxu0 %v18877_v13  ;;  %v18882_v25 = vld [vmem:[%s24787_s1 + $0x140] sm:$0xff]  }
  0x88   : > { %1987 = vmatmul.mubr.bf16.gmra.mrb[44].mxu1 %v19926_v27  ;;  %1897 = vmatprep.mubr.bf16.mxu0 %v19987_v57  ;;  %v18881_v27 = vld [vmem:[%s24787_s1 + $0xc0] sm:$0xff]  }
  0x89   : > { %1994 = vmatprep.mubr.bf16.mxu1 %v19989_v58  ;;  %16028 = vmatpush3.bf16.msra.mxu1 %v18876_v35  ;;  %v18911_v35 = vld [vmem:[%s24787_s1 + $0x178] sm:$0xff]  }
  0x8a   : > { %16029 = vmatprep.subr.bf16.mxu1 %v18878_v36  ;;  %18476 = vmatpush3.bf16.msra.mxu0 %v18877_v13  ;;  %v18904_v13 = vld [vmem:[%s24787_s1 + $0xb8] sm:$0xff]   ;;  %v430_v36 = vld [vmem:[%s19814_s17 + $0x187] sm:$0xff] }
  0x8b   : > { %18477 = vmatprep.subr.bf16.mxu0 %v18880_v37 }
  0x8d   : > { %16030 = vmatpush3.bf16.msra.mxu1 %v18879_v38  ;;  %v18913_v38 = vld [vmem:[%s24787_s1 + $0x1c0] sm:$0xff]  }
  0x8e   : > { %18478 = vmatpush3.bf16.msra.mxu0 %v18880_v37  ;;  %16143 = vmatprep.subr.bf16.mxu1 %v18882_v25  ;;  %v431_v37 = vld [vmem:[%s19814_s17 + $0x18f] sm:$0xff] }
  0x8f   : > { %1898 = vmatmul.mubr.bf16.gmra.mrb[48].mxu0 %v19955_v40  ;;  %16079 = vmatprep.subr.bf16.mxu0 %v18881_v27  ;;  %v14896_v40 = vld [vmem:[%s19814_s17 + $0x109] sm:$0xff] }
  0x90   : > { %1995 = vmatmul.mubr.bf16.gmra.mrb[48].mxu1 %v19960_v42  ;;  %1905 = vmatprep.mubr.bf16.mxu0 %v20021_v11  ;;  %v14961_v42 = vld [vmem:[%s19814_s17 + $0x130] sm:$0xff]  ;;  %v20146_v47 = vpack.c.bf16 %v14897_v45, %v14896_v40  ;;  %v496_v25 = vld [vmem:[%s19814_s17 + $0x1a8] sm:$0xff]  ;;  %v20305_v40 = vpack.c.bf16 %v431_v37, %v430_v36  ;;  %v18933_v36 = vld [vmem:[%s24787_s1 + $0x220] sm:$0xff]  }
  0x91   : > { %2002 = vmatprep.mubr.bf16.mxu1 %v20023_v14  ;;  %v20148_v48 = vpack.c.bf16 %v14961_v42, %v14960_v46  ;;  %v497_v27 = vld [vmem:[%s19814_s17 + $0x1b0] sm:$0xff]  ;;  %v18916_v45 = vld [vmem:[%s24787_s1 + $0x1c8] sm:$0xff]  }
  0x92   : > { %v20310_v46 = vpack.c.bf16 %v497_v27, %v496_v25  ;;  %v432_v42 = vld [vmem:[%s19814_s17 + $0x1a7] sm:$0xff] }
  0x93   : > { %v18934_v25 = vld [vmem:[%s24787_s1 + $0x228] sm:$0xff]  }
  0x94   : > { %v564_v27 = vld [vmem:[%s19814_s17 + $0x1e9] sm:$0xff] }
  0x97   : > { %1906 = vmatmul.mubr.bf16.gmra.mrb[52].mxu0 %v19989_v58  ;;  %v18885_v58 = vld [vmem:[%s24787_s1 + $0xc8] sm:$0xff]  }
  0x98   : > { %2003 = vmatmul.mubr.bf16.gmra.mrb[52].mxu1 %v19991_v59  ;;  %1913 = vmatprep.mubr.bf16.mxu0 %v20039_v20  ;;  %v18886_v59 = vld [vmem:[%s24787_s1 + $0x88] sm:$0xff]  }
  0x99   : > { %2010 = vmatprep.mubr.bf16.mxu1 %v894_v44 }
  0x9f   : > { %1914 = vmatmul.mubr.bf16.gmra.mrb[56].mxu0 %v20023_v14  ;;  %v18902_v14 = vld [vmem:[%s24787_s1 + $0x118] sm:$0xff]  }
  0xa0   : > { %2011 = vmatmul.mubr.bf16.gmra.mrb[56].mxu1 %v20028_v16  ;;  %1921 = vmatprep.mubr.bf16.mxu0 %v20146_v47 }
  0xa1   : > { %2018 = vmatprep.mubr.bf16.mxu1 %v20148_v48 }
  0xa7   : > { %1922 = vmatmul.mubr.bf16.gmra.mrb[60].mxu0 %v894_v44 }
  0xa8   : > { %2019 = vmatmul.mubr.bf16.gmra.mrb[60].mxu1 %v20156_v53  ;;  %18479 = vmatprep.mubr.bf16.mxu0 %v19888_v8  ;;  %v18888_v8 = vld [vmem:[%s24787_s1 + $0x148] sm:$0xff]  }
  0xa9   : > { %2876 = vmatprep.mubr.bf16.mxu1 %v894_v44  ;;  %v18914_v44 = vld [vmem:[%s24787_s1 + $0x180] sm:$0xff]  }
  0xaf   : > { %18480 = vmatmul.mubr.bf16.vlgmr.msra.gmra.mrb[64].mxu0 %v19919_v24  ;;  %v18890_v24 = vld [vmem:[%s24787_s1 + $0x108] sm:$0xff]  }
  0xb0   : > { %2877 = vmatmul.mubr.bf16.vlgmr.msra.gmra.mrb[64].mxu1 %v20028_v16  ;;  %16080 = vmatpush3.bf16.msra.mxu0 %v18883_v54  ;;  %v493_v16 = vld [vmem:[%s19814_s17 + $0x170] sm:$0xff] }
  0xb1   : > { %16144 = vmatpush3.bf16.msra.mxu1 %v18884_v55  ;;  %16081 = vmatprep.subr.bf16.mxu0 %v18885_v58  ;;  %v20241_v23 = vpack.c.bf16 %v493_v16, %v492_v15  ;;  %v499_v54 = vld [vmem:[%s19814_s17 + $0x1d0] sm:$0xff]  ;;  %v20330_v58 = vpack.c.bf16 %v433_v49, %v432_v42  ;;  %v18927_v16 = vld [vmem:[%s24787_s1 + $0x1a8] sm:$0xff]  }
  0xb2   : > { %18483 = vmatprep.mubr.bf16.mxu0 %v19953_v39  ;;  %2884 = vmatprep.mubr.bf16.mxu1 %v20148_v48  ;;  %v18891_v39 = vld [vmem:[%s24787_s1 + $0xd8] sm:$0xff]   ;;  %v18920_v55 = vld [vmem:[%s24787_s1 + $0x190] sm:$0xff]  }
  0xb3   : > { %16145 = vmatprep.subr.bf16.mxu1 %v18888_v8  ;;  %v18921_v8 = vld [vmem:[%s24787_s1 + $0x1d8] sm:$0xff]   ;;  %v437_v15 = vld [vmem:[%s19814_s17 + $0x1ef] sm:$0xff] }
  0xb4   : > { %16082 = vmatpush3.bf16.msra.mxu0 %v18886_v59  ;;  %v18935_v42 = vld [vmem:[%s24787_s1 + $0x230] sm:$0xff]  }
  0xb5   : > { %16083 = vmatprep.subr.bf16.mxu0 %v18887_v60  ;;  %16146 = vmatpush3.bf16.msra.mxu1 %v18890_v24  ;;  %v554_v60 = vld [vmem:[%s19814_s17 + $0x149] sm:$0xff]  ;;  %v555_v24 = vld [vmem:[%s19814_s17 + $0x151] sm:$0xff] }
  0xb6   : > { %16147 = vmatprep.subr.bf16.mxu1 %v18894_v62  ;;  %v435_v62 = vld [vmem:[%s19814_s17 + $0x1cf] sm:$0xff] }
  0xb7   : > { %18484 = vmatmul.mubr.bf16.gmra.mrb[68].mxu0 %v19987_v57  ;;  %v18895_v57 = vld [vmem:[%s24787_s1 + $0xa0] sm:$0xff]  }
  0xb8   : > { %2885 = vmatmul.mubr.bf16.gmra.mrb[68].mxu1 %v20156_v53  ;;  %16084 = vmatpush3.bf16.msra.mxu0 %v18889_v2  ;;  %v500_v2 = vld [vmem:[%s19814_s17 + $0x1e8] sm:$0xff] }
  0xb9   : > { %16085 = vmatprep.subr.bf16.mxu0 %v18891_v39  ;;  %18487 = vmatprep.mubr.bf16.mxu0 %v20021_v11  ;;  %v18897_v11 = vld [vmem:[%s24787_s1 + $0xe8] sm:$0xff]   ;;  %v501_v39 = vld [vmem:[%s19814_s17 + $0x1f0] sm:$0xff] }
  0xba   : > { %2892 = vmatprep.mubr.bf16.mxu1 %v20199_v4  ;;  %16148 = vmatpush3.bf16.msra.mxu1 %v18896_v5  ;;  %v20353_v5 = vpack.c.bf16 %v555_v24, %v554_v60 }
  0xbb   : > { %16149 = vmatprep.subr.bf16.mxu1 %v18900_v7  ;;  %v20358_v7 = vpack.c.bf16 %v435_v62, %v434_v61 }
  0xbc   : > { %16086 = vmatpush3.bf16.msra.mxu0 %v18892_v3  ;;  %v18923_v3 = vld [vmem:[%s24787_s1 + $0x1e0] sm:$0xff]  }
  0xbd   : > { %16087 = vmatprep.subr.bf16.mxu0 %v18893_v10  ;;  %v20363_v10 = vpack.c.bf16 %v501_v39, %v500_v2  ;;  %v18936_v2 = vld [vmem:[%s24787_s1 + $0x238] sm:$0xff]  }
  0xbe   : > { %16150 = vmatpush3.bf16.msra.mxu1 %v18902_v14  ;;  %v557_v14 = vld [vmem:[%s19814_s17 + $0x171] sm:$0xff] }
  0xbf   : > { %18488 = vmatmul.mubr.bf16.gmra.mrb[72].mxu0 %v20039_v20  ;;  %16151 = vmatprep.subr.bf16.mxu1 %v18905_v17  ;;  %v18909_v20 = vld [vmem:[%s24787_s1 + $0x170] sm:$0xff]  }
  0xc0   : > { %2893 = vmatmul.mubr.bf16.gmra.mrb[72].mxu1 %v20230_v18  ;;  %16088 = vmatpush3.bf16.msra.mxu0 %v18895_v57  ;;  %v556_v57 = vld [vmem:[%s19814_s17 + $0x169] sm:$0xff] }
  0xc1   : > { %16089 = vmatprep.subr.bf16.mxu0 %v18897_v11  ;;  %18491 = vmatprep.mubr.bf16.mxu0 %v20146_v47  ;;  %v436_v11 = vld [vmem:[%s19814_s17 + $0x1e7] sm:$0xff]  ;;  %v18928_v17 = vld [vmem:[%s24787_s1 + $0x1f0] sm:$0xff]  }
  0xc2   : > { %2900 = vmatprep.mubr.bf16.mxu1 %v20241_v23  ;;  %16152 = vmatpush3.bf16.msra.mxu1 %v18906_v19  ;;  %v20379_v19 = vpack.c.bf16 %v557_v14, %v556_v57  ;;  %v18942_v14 = vld [vmem:[%s24789_s3 + $0xc0] sm:$0xff]  }
  0xc3   : > { %16153 = vmatprep.subr.bf16.mxu1 %v18907_v21  ;;  %v18930_v21 = vld [vmem:[%s24787_s1 + $0x1b0] sm:$0xff]  }
  0xc4   : > { %16090 = vmatpush3.bf16.msra.mxu0 %v18898_v22  ;;  %v20384_v22 = vpack.c.bf16 %v437_v15, %v436_v11 }
  0xc5   : > { %16091 = vmatprep.subr.bf16.mxu0 %v18899_v28  ;;  %v18937_v28 = vld [vmem:[%s24789_s3 + $0x40] sm:$0xff]  }
  0xc6   : > { %16154 = vmatpush3.bf16.msra.mxu1 %v18908_v63  ;;  %v560_v63 = vld [vmem:[%s19814_s17 + $0x1a9] sm:$0xff] }
  0xc7   : > { %18492 = vmatmul.mubr.bf16.gmra.mrb[76].mxu0 %v20262_v0  ;;  %16155 = vmatprep.subr.bf16.mxu1 %v18909_v20  ;;  %v561_v20 = vld [vmem:[%s19814_s17 + $0x1b1] sm:$0xff] }
  0xc8   : > { %2901 = vmatmul.mubr.bf16.gmra.mrb[76].mxu1 %v20264_v31  ;;  %16092 = vmatpush3.bf16.msra.mxu0 %v18901_v32  ;;  %v20416_v32 = vpack.c.bf16 %v561_v20, %v560_v63  ;;  %v18939_v63 = vld [vmem:[%s24789_s3 + $0x48] sm:$0xff]  }
  0xc9   : > { %16093 = vmatprep.subr.bf16.mxu0 %v18903_v33  ;;  %2908 = vmatprep.mubr.bf16.mxu1 %v20272_v34  ;;  %v562_v33 = vld [vmem:[%s19814_s17 + $0x1c9] sm:$0xff] }
  0xca   : > { %2973 = vmatprep.mubr.bf16.mxu0 %v20156_v53  ;;  %16156 = vmatpush3.bf16.msra.mxu1 %v18910_v12  ;;  %v498_v53 = vld [vmem:[%s19814_s17 + $0x1c8] sm:$0xff]  ;;  %v563_v12 = vld [vmem:[%s19814_s17 + $0x1d1] sm:$0xff] }
  0xcb   : > { %16157 = vmatprep.subr.bf16.mxu1 %v18911_v35  ;;  %v20335_v59 = vpack.c.bf16 %v499_v54, %v498_v53  ;;  %v14849_v35 = vld [vmem:[%s19814_s17 + $0x20f] sm:$0xff]  ;;  %v20432_v37 = vpack.c.bf16 %v563_v12, %v562_v33 }
  0xcc   : > { %16094 = vmatpush3.bf16.msra.mxu0 %v18904_v13  ;;  %v14848_v13 = vld [vmem:[%s19814_s17 + $0x207] sm:$0xff] }
  0xcd   : > { %16207 = vmatprep.subr.bf16.mxu0 %v18913_v38  ;;  %v20434_v38 = vpack.c.bf16 %v14849_v35, %v14848_v13 }
  0xce   : > { %16158 = vmatpush3.bf16.msra.mxu1 %v18912_v41  ;;  %v565_v41 = vld [vmem:[%s19814_s17 + $0x1f1] sm:$0xff] }
  0xcf   : > { %2974 = vmatmul.mubr.bf16.vlgmr.msra.gmra.mrb[80].mxu0 %v20146_v47  ;;  %18495 = vmatprep.subr.bf16.mxu1 %v20299_v43  ;;  %v18918_v47 = vld [vmem:[%s24787_s1 + $0x1d0] sm:$0xff]   ;;  %v20453_v53 = vpack.c.bf16 %v565_v41, %v564_v27 }
  0xd0   : > { %2909 = vmatmul.mubr.bf16.gmra.mrb[80].mxu1 %v20305_v40  ;;  %2981 = vmatprep.mubr.bf16.mxu0 %v20230_v18 }
  0xd1   : > { %2916 = vmatprep.mubr.bf16.mxu1 %v20310_v46  ;;  %16208 = vmatpush3.bf16.msra.mxu0 %v18914_v44  ;;  %v19654_v44 = vmov 0.0  }
  0xd2   : > { %16209 = vmatprep.subr.bf16.mxu0 %v18916_v45  ;;  %334 = vst [vmem:[#allocation2] sm:$0xff] %v19654_v44  ;;  %335 = vst [vmem:[#allocation2 + $0x8] sm:$0xff] %v19654_v44 }
  0xd3   : > { %336 = vst [vmem:[#allocation2 + $0x10] sm:$0xff] %v19654_v44  ;;  %337 = vst [vmem:[#allocation2 + $0x18] sm:$0x1] %v19654_v44 }
  0xd4   : > { %338 = vst [vmem:[#allocation2 + $0x20] sm:$0xff] %v19654_v44  ;;  %341 = vst [vmem:[#allocation2 + $0x38] sm:$0x1] %v19654_v44 }
  0xd5   : > { %16210 = vmatpush3.bf16.msra.mxu0 %v18917_v52  ;;  %342 = vst [vmem:[#allocation2 + $0x40] sm:$0xff] %v19654_v44  ;;  %345 = vst [vmem:[#allocation2 + $0x58] sm:$0x1] %v19654_v44 }
  0xd6   : > { %16211 = vmatprep.subr.bf16.mxu0 %v18918_v47  ;;  %346 = vst [vmem:[#allocation2 + $0x60] sm:$0xff] %v19654_v44  ;;  %349 = vst [vmem:[#allocation2 + $0x78] sm:$0x1] %v19654_v44 }
  0xd7   : > { %2982 = vmatmul.mubr.bf16.gmra.mrb[84].mxu0 %v20262_v0  ;;  %350 = vst [vmem:[#allocation2 + $0x80] sm:$0xff] %v19654_v44  ;;  %353 = vst [vmem:[#allocation2 + $0x98] sm:$0x1] %v19654_v44 }
  0xd8   : > { %2917 = vmatmul.mubr.bf16.gmra.mrb[84].mxu1 %v20330_v58  ;;  %2989 = vmatprep.mubr.bf16.mxu0 %v20264_v31  ;;  %354 = vst [vmem:[#allocation2 + $0xa0] sm:$0xff] %v19654_v44  ;;  %357 = vst [vmem:[#allocation2 + $0xb8] sm:$0x1] %v19654_v44 }
  0xd9   : > { %2924 = vmatprep.mubr.bf16.mxu1 %v20335_v59  ;;  %16212 = vmatpush3.bf16.msra.mxu0 %v18920_v55  ;;  %358 = vst [vmem:[#allocation2 + $0xc0] sm:$0xff] %v19654_v44  ;;  %361 = vst [vmem:[#allocation2 + $0xd8] sm:$0x1] %v19654_v44 }
  0xda   : > { %16213 = vmatprep.subr.bf16.mxu0 %v18921_v8  ;;  %362 = vst [vmem:[#allocation2 + $0xe0] sm:$0xff] %v19654_v44  ;;  %365 = vst [vmem:[#allocation2 + $0xf8] sm:$0x1] %v19654_v44 }
  0xdb   : > { %366 = vst [vmem:[#allocation2 + $0x100] sm:$0xff] %v19654_v44  ;;  %369 = vst [vmem:[#allocation2 + $0x118] sm:$0x1] %v19654_v44 }
  0xdc   : > { %370 = vst [vmem:[#allocation2 + $0x120] sm:$0xff] %v19654_v44  ;;  %373 = vst [vmem:[#allocation2 + $0x138] sm:$0x1] %v19654_v44 }
  0xdd   : > { %16214 = vmatpush3.bf16.msra.mxu0 %v18922_v1  ;;  %374 = vst [vmem:[#allocation2 + $0x140] sm:$0xff] %v19654_v44  ;;  %377 = vst [vmem:[#allocation2 + $0x158] sm:$0x1] %v19654_v44 }
  0xde   : > { %16215 = vmatprep.subr.bf16.mxu0 %v18923_v3  ;;  %378 = vst [vmem:[#allocation2 + $0x160] sm:$0xff] %v19654_v44  ;;  %381 = vst [vmem:[#allocation2 + $0x178] sm:$0x1] %v19654_v44 }
  0xdf   : > { %2990 = vmatmul.mubr.bf16.gmra.mrb[88].mxu0 %v20353_v5  ;;  %382 = vst [vmem:[#allocation2 + $0x180] sm:$0xff] %v19654_v44  ;;  %385 = vst [vmem:[#allocation2 + $0x198] sm:$0x1] %v19654_v44 }
  0xe0   : > { %2925 = vmatmul.mubr.bf16.gmra.mrb[88].mxu1 %v20358_v7  ;;  %2997 = vmatprep.mubr.bf16.mxu0 %v20305_v40  ;;  %386 = vst [vmem:[#allocation2 + $0x1a0] sm:$0xff] %v19654_v44  ;;  %389 = vst [vmem:[#allocation2 + $0x1b8] sm:$0x1] %v19654_v44 }
  0xe1   : > { %2932 = vmatprep.mubr.bf16.mxu1 %v20363_v10  ;;  %16216 = vmatpush3.bf16.msra.mxu0 %v18925_v6  ;;  %390 = vst [vmem:[#allocation2 + $0x1c0] sm:$0xff] %v19654_v44  ;;  %393 = vst [vmem:[#allocation2 + $0x1d8] sm:$0x1] %v19654_v44 }
  0xe2   : > { %16217 = vmatprep.subr.bf16.mxu0 %v18926_v9  ;;  %394 = vst [vmem:[#allocation2 + $0x1e0] sm:$0xff] %v19654_v44  ;;  %397 = vst [vmem:[#allocation2 + $0x1f8] sm:$0x1] %v19654_v44 }
  0xe3   : > { %398 = vst [vmem:[#allocation2 + $0x200] sm:$0xff] %v19654_v44  ;;  %401 = vst [vmem:[#allocation2 + $0x218] sm:$0x1] %v19654_v44 }
  0xe4   : > { %402 = vst [vmem:[#allocation2 + $0x220] sm:$0xff] %v19654_v44  ;;  %403 = vst [vmem:[#allocation2 + $0x228] sm:$0xff] %v19654_v44 }
  0xe5   : > { %16218 = vmatpush3.bf16.msra.mxu0 %v18927_v16  ;;  %404 = vst [vmem:[#allocation2 + $0x230] sm:$0xff] %v19654_v44  ;;  %405 = vst [vmem:[#allocation2 + $0x238] sm:$0x1] %v19654_v44  ;;  %v18938_v16 = vld [vmem:[%s24789_s3] sm:$0xff]  }
  0xe6   : > { %16219 = vmatprep.subr.bf16.mxu0 %v18928_v17 }
  0xe7   : > { %2998 = vmatmul.mubr.bf16.gmra.mrb[92].mxu0 %v20379_v19 }
  0xe8   : > { %2933 = vmatmul.mubr.bf16.gmra.mrb[92].mxu1 %v20384_v22  ;;  %3005 = vmatprep.mubr.bf16.mxu0 %v20330_v58 }
  0xe9   : > { %3070 = vmatprep.mubr.bf16.mxu1 %v20262_v0  ;;  %16220 = vmatpush3.bf16.msra.mxu0 %v18930_v21  ;;  %v18924_v0 = vld [vmem:[%s24787_s1 + $0x210] sm:$0xff]  }
  0xea   : > { %16221 = vmatprep.subr.bf16.mxu0 %v18931_v56 }
  0xed   : > { %16222 = vmatpush3.bf16.msra.mxu0 %v18932_v26 }
  0xee   : > { %16287 = vmatprep.subr.bf16.mxu0 %v18937_v28 }
  0xef   : > { %3006 = vmatmul.mubr.bf16.gmra.mrb[96].mxu0 %v20401_v29 }
  0xf0   : > { %3071 = vmatmul.mubr.bf16.vlgmr.msra.gmra.mrb[96].mxu1 %v20148_v48  ;;  %3013 = vmatprep.mubr.bf16.mxu0 %v20358_v7  ;;  %v18929_v48 = vld [vmem:[%s24787_s1 + $0x218] sm:$0xff]  }
  0xf1   : > { %18496 = vmatpush3.bf16.msra.mxu1 %v20299_v43  ;;  %3078 = vmatprep.mubr.bf16.mxu1 %v20353_v5  ;;  %v20447_v43 = vld [vmem:[%s24788_s2] ss:$0 sm:$0xff] }
  0xf2   : > { %18497 = vmatprep.subr.bf16.mxu1 %v18919_v30 }
  0xf5   : > { %18498 = vmatpush3.bf16.msra.mxu1 %v18919_v30 }
  0xf6   : > { %18499 = vmatprep.subr.bf16.mxu1 %v18924_v0 }
  0xf7   : > { %3014 = vmatmul.mubr.bf16.gmra.mrb[100].mxu0 %v20416_v32 }
  0xf8   : > { %3079 = vmatmul.mubr.bf16.gmra.mrb[100].mxu1 %v20199_v4  ;;  %3021 = vmatprep.mubr.bf16.mxu0 %v20384_v22 }
  0xf9   : > { %3086 = vmatprep.mubr.bf16.mxu1 %v20379_v19  ;;  %18500 = vmatpush3.bf16.msra.mxu1 %v18924_v0  ;;  %v18940_v0 = vld [vmem:[%s24789_s3 + $0x8] sm:$0xff]  }
  0xfa   : > { %18501 = vmatprep.subr.bf16.mxu1 %v18929_v48 }
  0xfd   : > { %18502 = vmatpush3.bf16.msra.mxu1 %v18929_v48 }
  0xfe   : > { %18503 = vmatprep.subr.bf16.mxu1 %v18933_v36 }
  0xff   : > { %3022 = vmatmul.mubr.bf16.gmra.mrb[104].mxu0 %v20432_v37 }
 0x100   : > { %3087 = vmatmul.mubr.bf16.gmra.mrb[104].mxu1 %v20241_v23  ;;  %3029 = vmatprep.mubr.bf16.mxu0 %v20434_v38 }
 0x101   : > { %3094 = vmatprep.mubr.bf16.mxu1 %v20401_v29  ;;  %18504 = vmatpush3.bf16.msra.mxu1 %v18933_v36 }
 0x102   : > { %v15759_v45 = vpop.f32.mrb[0].mxu0  ;;  %18505 = vmatprep.subr.bf16.mxu1 %v18934_v25 }
 0x103   : > { %v15823_v49 = vpop.f32.mrb[0].mxu1  ;;  %v15760_v52 = vpop.f32.mrb[1].mxu0 }
 0x104   : > { %v15761_v54 = vadd.f32 %v15760_v52, %v15759_v45  ;;  %v15824_v47 = vpop.f32.mrb[1].mxu1  ;;  %v15762_v55 = vpop.f32.mrb[2].mxu0 }
 0x105   : > { %v15825_v8 = vadd.f32 %v15824_v47, %v15823_v49  ;;  %v15826_v60 = vpop.f32.mrb[2].mxu1  ;;  %v15763_v24 = vpop.f32.mrb[3].mxu0  ;;  %18506 = vmatpush3.bf16.msra.mxu1 %v18934_v25  ;;  %v18945_v47 = vld [vmem:[%s24789_s3 + $0x58] sm:$0xff]  }
 0x106   : > { %v1674_v61 = vadd.f32 %v15761_v54, %v20447_v43  ;;  %v15764_v62 = vadd.f32 %v15763_v24, %v15762_v55  ;;  %v15827_v1 = vpop.f32.mrb[3].mxu1  ;;  %18507 = vmatprep.subr.bf16.mxu1 %v18935_v42 }
 0x107   : > { %v15828_v39 = vadd.f32 %v15827_v1, %v15826_v60  ;;  %3030 = vmatmul.mubr.bf16.gmra.mrb[108].mxu0 %v20453_v53 }
 0x108   : > { %v20460_v3 = vadd.f32 %v15825_v8, %v1674_v61  ;;  %v1677_v6 = vadd.f32 %v15764_v62, %v20447_v43  ;;  %3095 = vmatmul.mubr.bf16.gmra.mrb[108].mxu1 %v20272_v34  ;;  %3167 = vmatprep.mubr.bf16.mxu0 %v20199_v4  ;;  %v18947_v8 = vld [vmem:[%s24789_s3 + $0x18] sm:$0xff]   ;;  %v14912_v61 = vld [vmem:[%s19814_s17 + $0x209] sm:$0xff] }
 0x109   : > { %3102 = vmatprep.mubr.bf16.mxu1 %v20416_v32  ;;  %18508 = vmatpush3.bf16.msra.mxu1 %v18935_v42  ;;  %v18943_v42 = vld [vmem:[%s24789_s3 + $0x10] sm:$0xff]  }
 0x10a   : > { %v20466_v9 = vadd.f32 %v15828_v39, %v1677_v6  ;;  %v15765_v57 = vpop.f32.mrb[4].mxu0  ;;  %18509 = vmatprep.subr.bf16.mxu1 %v18936_v2  ;;  %v14913_v62 = vld [vmem:[%s19814_s17 + $0x211] sm:$0xff] }
 0x10b   : > { %v15829_v11 = vpop.f32.mrb[4].mxu1  ;;  %v15766_v15 = vpop.f32.mrb[5].mxu0 }
 0x10c   : > { %v15767_v17 = vadd.f32 %v15766_v15, %v15765_v57  ;;  %v15830_v21 = vpop.f32.mrb[5].mxu1  ;;  %v15768_v4 = vpop.f32.mrb[6].mxu0  ;;  %v18951_v57 = vld [vmem:[%s24789_s3 + $0x20] sm:$0xff]  }
 0x10d   : > { %v15831_v56 = vadd.f32 %v15830_v21, %v15829_v11  ;;  %v15832_v50 = vpop.f32.mrb[6].mxu1  ;;  %v15769_v51 = vpop.f32.mrb[7].mxu0  ;;  %18510 = vmatpush3.bf16.msra.mxu1 %v18936_v2  ;;  %v18949_v2 = vld [vmem:[%s24789_s3 + $0x60] sm:$0xff]   ;;  %v20520_v21 = vpack.c.bf16 %v14913_v62, %v14912_v61 }
 0x10e   : > { %v1682_v26 = vadd.f32 %v15767_v17, %v20447_v43  ;;  %v15770_v28 = vadd.f32 %v15769_v51, %v15768_v4  ;;  %v15833_v30 = vpop.f32.mrb[7].mxu1  ;;  %16351 = vmatprep.subr.bf16.mxu1 %v18942_v14  ;;  %v18953_v51 = vld [vmem:[%s24789_s3 + $0x68] sm:$0xff]  }
 0x10f   : > { %v15834_v20 = vadd.f32 %v15833_v30, %v15832_v50  ;;  %3168 = vmatmul.mubr.bf16.vlgmr.msra.gmra.mrb[112].mxu0 %v20230_v18  ;;  %v18941_v18 = vld [vmem:[%s24789_s3 + $0x50] sm:$0xff]  }
 0x110   : > { %v20482_v33 = vadd.f32 %v15831_v56, %v1682_v26  ;;  %v1685_v48 = vadd.f32 %v15770_v28, %v20447_v43  ;;  %3103 = vmatmul.mubr.bf16.gmra.mrb[112].mxu1 %v20310_v46  ;;  %3175 = vmatprep.mubr.bf16.mxu0 %v20241_v23  ;;  %v14880_v28 = vld [vmem:[%s19814_s17 + $0x208] sm:$0xff]  ;;  %v14881_v30 = vld [vmem:[%s19814_s17 + $0x210] sm:$0xff] }
 0x111   : > { %3110 = vmatprep.mubr.bf16.mxu1 %v20432_v37  ;;  %16288 = vmatpush3.bf16.msra.mxu0 %v18938_v16 }
 0x112   : > { %v20488_v12 = vadd.f32 %v15834_v20, %v1685_v48  ;;  %v15771_v13 = vpop.f32.mrb[8].mxu0  ;;  %16289 = vmatprep.subr.bf16.mxu0 %v18939_v63  ;;  %v18955_v63 = vld [vmem:[%s24789_s3 + $0x28] sm:$0xff]  }
 0x113   : > { %v15835_v35 = vpop.f32.mrb[8].mxu1  ;;  %v15772_v36 = vpop.f32.mrb[9].mxu0 }
 0x114   : > { %v15773_v25 = vadd.f32 %v15772_v36, %v15771_v13  ;;  %v15836_v27 = vpop.f32.mrb[9].mxu1  ;;  %v15774_v41 = vpop.f32.mrb[10].mxu0  ;;  %v18957_v13 = vld [vmem:[%s24789_s3 + $0x70] sm:$0xff]  }
 0x115   : > { %v15837_v44 = vadd.f32 %v15836_v27, %v15835_v35  ;;  %v15838_v45 = vpop.f32.mrb[10].mxu1  ;;  %v15775_v23 = vpop.f32.mrb[11].mxu0  ;;  %16290 = vmatpush3.bf16.msra.mxu0 %v18940_v0  ;;  %v18959_v36 = vld [vmem:[%s24789_s3 + $0x30] sm:$0xff]  }
 0x116   : > { %v1690_v49 = vadd.f32 %v15773_v25, %v20447_v43  ;;  %v15776_v52 = vadd.f32 %v15775_v23, %v15774_v41  ;;  %v15839_v54 = vpop.f32.mrb[11].mxu1  ;;  %16291 = vmatprep.subr.bf16.mxu0 %v18941_v18  ;;  %v20546_v41 = vpack.c.bf16 %v14881_v30, %v14880_v28 }
 0x117   : > { %v15840_v55 = vadd.f32 %v15839_v54, %v15838_v45  ;;  %3176 = vmatmul.mubr.bf16.gmra.mrb[116].mxu0 %v20264_v31  ;;  %v18961_v54 = vld [vmem:[%s24789_s3 + $0x78] sm:$0xff]  }
 0x118   : > { %v20504_v60 = vadd.f32 %v15837_v44, %v1690_v49  ;;  %v1693_v24 = vadd.f32 %v15776_v52, %v20447_v43  ;;  %3111 = vmatmul.mubr.bf16.gmra.mrb[116].mxu1 %v20335_v59  ;;  %3183 = vmatprep.mubr.bf16.mxu0 %v20272_v34 }
 0x119   : > { %3118 = vmatprep.mubr.bf16.mxu1 %v20453_v53  ;;  %16292 = vmatpush3.bf16.msra.mxu0 %v18943_v42 }
 0x11a   : > { %v20512_v1 = vadd.f32 %v15840_v55, %v1693_v24  ;;  %v15777_v31 = vpop.f32.mrb[12].mxu0  ;;  %16293 = vmatprep.subr.bf16.mxu0 %v18945_v47  ;;  %v18963_v24 = vld [vmem:[%s24789_s3 + $0x38] sm:$0xff]  }
 0x11b   : > { %v15841_v39 = vpop.f32.mrb[12].mxu1  ;;  %v15778_v6 = vpop.f32.mrb[13].mxu0 }
 0x11c   : > { %v15779_v34 = vadd.f32 %v15778_v6, %v15777_v31  ;;  %v15842_v14 = vpop.f32.mrb[13].mxu1  ;;  %v15780_v11 = vpop.f32.mrb[14].mxu0 }
 0x11d   : > { %v15843_v15 = vadd.f32 %v15842_v14, %v15841_v39  ;;  %v15844_v16 = vpop.f32.mrb[14].mxu1  ;;  %v15781_v17 = vpop.f32.mrb[15].mxu0  ;;  %16294 = vmatpush3.bf16.msra.mxu0 %v18947_v8 }
 0x11e   : > { %v1698_v4 = vadd.f32 %v15779_v34, %v20447_v43  ;;  %v15782_v56 = vadd.f32 %v15781_v17, %v15780_v11  ;;  %v15845_v50 = vpop.f32.mrb[15].mxu1  ;;  %16295 = vmatprep.subr.bf16.mxu0 %v18949_v2  ;;  %v18946_v17 = vld [vmem:[%s24789_s3 + $0xc8] sm:$0xff]  }
 0x11f   : > { %v15846_v26 = vadd.f32 %v15845_v50, %v15844_v16  ;;  %3184 = vmatmul.mubr.bf16.gmra.mrb[120].mxu0 %v20305_v40 }
 0x120   : > { %v20532_v20 = vadd.f32 %v15843_v15, %v1698_v4  ;;  %v1701_v0 = vadd.f32 %v15782_v56, %v20447_v43  ;;  %3119 = vmatmul.mubr.bf16.gmra.mrb[120].mxu1 %v20363_v10  ;;  %3191 = vmatprep.mubr.bf16.mxu0 %v20310_v46 }
 0x121   : > { %3126 = vmatprep.mubr.bf16.mxu1 %v20520_v21  ;;  %16296 = vmatpush3.bf16.msra.mxu0 %v18951_v57 }
 0x122   : > { %v20538_v48 = vadd.f32 %v15846_v26, %v1701_v0  ;;  %v15783_v40 = vpop.f32.mrb[16].mxu0  ;;  %16297 = vmatprep.subr.bf16.mxu0 %v18953_v51  ;;  %v18948_v51 = vld [vmem:[%s24789_s3 + $0x88] sm:$0xff]  }
 0x123   : > { %v15847_v18 = vpop.f32.mrb[16].mxu1  ;;  %v15784_v35 = vpop.f32.mrb[17].mxu0 }
 0x124   : > { %v15785_v25 = vadd.f32 %v15784_v35, %v15783_v40  ;;  %v15848_v27 = vpop.f32.mrb[17].mxu1  ;;  %v15786_v46 = vpop.f32.mrb[18].mxu0 }
 0x125   : > { %v15849_v44 = vadd.f32 %v15848_v27, %v15847_v18  ;;  %v15850_v45 = vpop.f32.mrb[18].mxu1  ;;  %v15787_v23 = vpop.f32.mrb[19].mxu0  ;;  %16298 = vmatpush3.bf16.msra.mxu0 %v18955_v63  ;;  %v18952_v18 = vld [vmem:[%s24789_s3 + $0x90] sm:$0xff]   ;;  %v18954_v27 = vld [vmem:[%s24789_s3 + $0xd8] sm:$0xff]  }
 0x126   : > { %v1706_v42 = vadd.f32 %v15785_v25, %v20447_v43  ;;  %v15788_v49 = vadd.f32 %v15787_v23, %v15786_v46  ;;  %v15851_v52 = vpop.f32.mrb[19].mxu1  ;;  %16299 = vmatprep.subr.bf16.mxu0 %v18957_v13  ;;  %v14976_v23 = vld [vmem:[%s19814_s17 + $0x228] sm:$0xff] }
 0x127   : > { %v15852_v47 = vadd.f32 %v15851_v52, %v15850_v45  ;;  %3192 = vmatmul.mubr.bf16.gmra.mrb[124].mxu0 %v20330_v58  ;;  %v18971_v58 = vld [vmem:[%s24789_s3 + $0x140] sm:$0xff]  }
 0x128   : > { %v20553_v55 = vadd.f32 %v15849_v44, %v1706_v42  ;;  %v1709_v8 = vadd.f32 %v15788_v49, %v20447_v43  ;;  %3127 = vmatmul.mubr.bf16.gmra.mrb[124].mxu1 %v20546_v41  ;;  %3199 = vmatprep.mubr.bf16.mxu0 %v20335_v59  ;;  %v18944_v59 = vld [vmem:[%s24789_s3 + $0x80] sm:$0xff]   ;;  %v14977_v42 = vld [vmem:[%s19814_s17 + $0x230] sm:$0xff]  ;;  %v18956_v49 = vld [vmem:[%s24789_s3 + $0x98] sm:$0xff]  }
 0x129   : > { %18511 = vmatprep.mubr.bf16.mxu1 %v20353_v5  ;;  %16300 = vmatpush3.bf16.msra.mxu0 %v18959_v36 }
 0x12a   : > { %v20562_v61 = vadd.f32 %v15852_v47, %v1709_v8  ;;  %v15789_v62 = vpop.f32.mrb[20].mxu0  ;;  %16301 = vmatprep.subr.bf16.mxu0 %v18961_v54 }
 0x12b   : > { %v15853_v31 = vpop.f32.mrb[20].mxu1  ;;  %v15790_v2 = vpop.f32.mrb[21].mxu0 }
 0x12c   : > { %v15791_v5 = vadd.f32 %v15790_v2, %v15789_v62  ;;  %v15854_v39 = vpop.f32.mrb[21].mxu1  ;;  %v15792_v6 = vpop.f32.mrb[22].mxu0  ;;  %v18960_v2 = vld [vmem:[%s24789_s3 + $0xa0] sm:$0xff]  }
 0x12d   : > { %v15855_v57 = vadd.f32 %v15854_v39, %v15853_v31  ;;  %v15856_v34 = vpop.f32.mrb[22].mxu1  ;;  %v15793_v14 = vpop.f32.mrb[23].mxu0  ;;  %16302 = vmatpush3.bf16.msra.mxu0 %v18963_v24  ;;  %v903_v24 = vpack.c.bf16 %v14977_v42, %v14976_v23  ;;  %v19655_v23 = vmov 0.0|0.0   ;;  %v18969_v42 = vld [vmem:[%s24789_s3 + $0x1c0] sm:$0xff]  }
 0x12e   : > { %v1714_v11 = vadd.f32 %v15791_v5, %v20447_v43  ;;  %v15794_v15 = vadd.f32 %v15793_v14, %v15792_v6  ;;  %v15857_v16 = vpop.f32.mrb[23].mxu1  ;;  %16415 = vmatprep.subr.bf16.mxu0 %v18971_v58  ;;  %v14944_v6 = vld [vmem:[%s19814_s17 + $0x227] sm:$0xff] }
 0x12f   : > { %v15858_v4 = vadd.f32 %v15857_v16, %v15856_v34  ;;  %3200 = vmatmul.mubr.bf16.gmra.mrb[128].mxu0 %v20358_v7  ;;  %v18950_v7 = vld [vmem:[%s24789_s3 + $0xd0] sm:$0xff]   ;;  %v18962_v34 = vld [vmem:[%s24789_s3 + $0xe8] sm:$0xff]  }
 0x130   : > { %v20575_v56 = vadd.f32 %v15855_v57, %v1714_v11  ;;  %v1717_v50 = vadd.f32 %v15794_v15, %v20447_v43  ;;  %18512 = vmatmul.mubr.bf16.vlgmr.msra.gmra.mrb[128].mxu1 %v20379_v19  ;;  %3207 = vmatprep.mubr.bf16.mxu0 %v20363_v10  ;;  %v14945_v57 = vld [vmem:[%s19814_s17 + $0x22f] sm:$0xff] }
 0x131   : > { %18515 = vmatprep.mubr.bf16.mxu1 %v20401_v29  ;;  %16352 = vmatpush3.bf16.msra.mxu1 %v18944_v59  ;;  %v15008_v16 = vld [vmem:[%s19814_s17 + $0x229] sm:$0xff] }
 0x132   : > { %v20584_v26 = vadd.f32 %v15858_v4, %v1717_v50  ;;  %v15795_v28 = vpop.f32.mrb[24].mxu0  ;;  %16353 = vmatprep.subr.bf16.mxu1 %v18946_v17  ;;  %v15009_v17 = vld [vmem:[%s19814_s17 + $0x231] sm:$0xff]  ;;  %v18964_v4 = vld [vmem:[%s24789_s3 + $0xa8] sm:$0xff]  }
 0x133   : > { %v15859_v30 = vpop.f32.mrb[24].mxu1  ;;  %v15796_v63 = vpop.f32.mrb[25].mxu0 }
 0x134   : > { %v15797_v19 = vadd.f32 %v15796_v63, %v15795_v28  ;;  %v15860_v0 = vpop.f32.mrb[25].mxu1  ;;  %v15798_v10 = vpop.f32.mrb[26].mxu0  ;;  %v839_v28 = vpack.c.bf16 %v14945_v57, %v14944_v6  ;;  %v967_v63 = vpack.c.bf16 %v15009_v17, %v15008_v16  ;;  %v18979_v57 = vld [vmem:[%s24789_s3 + $0x150] sm:$0xff]  }
 0x135   : > { %v15861_v40 = vadd.f32 %v15860_v0, %v15859_v30  ;;  %v15862_v29 = vpop.f32.mrb[26].mxu1  ;;  %v15799_v13 = vpop.f32.mrb[27].mxu0  ;;  %16354 = vmatpush3.bf16.msra.mxu1 %v18948_v51 }
 0x136   : > { %v1722_v35 = vadd.f32 %v15797_v19, %v20447_v43  ;;  %v15800_v36 = vadd.f32 %v15799_v13, %v15798_v10  ;;  %v15863_v25 = vpop.f32.mrb[27].mxu1  ;;  %16355 = vmatprep.subr.bf16.mxu1 %v18950_v7 }
 0x137   : > { %v15864_v46 = vadd.f32 %v15863_v25, %v15862_v29  ;;  %3208 = vmatmul.mubr.bf16.gmra.mrb[132].mxu0 %v20384_v22  ;;  %v18967_v25 = vld [vmem:[%s24789_s3 + $0xf8] sm:$0xff]  }
 0x138   : > { %v20597_v44 = vadd.f32 %v15861_v40, %v1722_v35  ;;  %v1725_v45 = vadd.f32 %v15800_v36, %v20447_v43  ;;  %18516 = vmatmul.mubr.bf16.gmra.mrb[132].mxu1 %v20416_v32  ;;  %3215 = vmatprep.mubr.bf16.mxu0 %v20546_v41  ;;  %v18958_v32 = vld [vmem:[%s24789_s3 + $0xe0] sm:$0xff]   ;;  %v18966_v40 = vld [vmem:[%s24789_s3 + $0xb0] sm:$0xff]  }
 0x139   : > { %18519 = vmatprep.mubr.bf16.mxu1 %v20432_v37  ;;  %16356 = vmatpush3.bf16.msra.mxu1 %v18952_v18  ;;  %v3394_v35 = vld [vmem:[#allocation2 + $0x7] sm:$0xff]  ;;  %v3395_v36 = vld [vmem:[#allocation2 + $0xf] sm:$0xff] }
 0x13a   : > { %v20608_v52 = vadd.f32 %v15864_v46, %v1725_v45  ;;  %v15801_v22 = vpop.f32.mrb[28].mxu0  ;;  %16357 = vmatprep.subr.bf16.mxu1 %v18954_v27 }
 0x13b   : > { %v15865_v41 = vpop.f32.mrb[28].mxu1  ;;  %v15802_v54 = vpop.f32.mrb[29].mxu0 }
 0x13c   : > { %v15803_v37 = vadd.f32 %v15802_v54, %v15801_v22  ;;  %v15866_v47 = vpop.f32.mrb[29].mxu1  ;;  %v15804_v8 = vpop.f32.mrb[30].mxu0  ;;  %v3426_v54 = vpack.c.bf16 %v3395_v36, %v3394_v35 }
 0x13d   : > { %v15867_v62 = vadd.f32 %v15866_v47, %v15865_v41  ;;  %v15868_v58 = vpop.f32.mrb[30].mxu1  ;;  %v15805_v31 = vpop.f32.mrb[31].mxu0  ;;  %16358 = vmatpush3.bf16.msra.mxu1 %v18956_v49 }
 0x13e   : > { %v1730_v59 = vadd.f32 %v15803_v37, %v20447_v43  ;;  %v15806_v5 = vadd.f32 %v15805_v31, %v15804_v8  ;;  %v15869_v39 = vpop.f32.mrb[31].mxu1  ;;  %16359 = vmatprep.subr.bf16.mxu1 %v18958_v32  ;;  %v18975_v37 = vld [vmem:[%s24789_s3 + $0x148] sm:$0xff]  }
 0x13f   : > { %v15870_v14 = vadd.f32 %v15869_v39, %v15868_v58  ;;  %3216 = vmatmul.mubr.bf16.gmra.mrb[136].mxu0 %v20434_v38  ;;  %v18965_v38 = vld [vmem:[%s24789_s3 + $0xf0] sm:$0xff]   ;;  %v18977_v39 = vld [vmem:[%s24789_s3 + $0x108] sm:$0xff]  }
 0x140   : > { %v20623_v11 = vadd.f32 %v15867_v62, %v1730_v59  ;;  %v1733_v15 = vadd.f32 %v15806_v5, %v20447_v43  ;;  %18520 = vmatmul.mubr.bf16.gmra.mrb[136].mxu1 %v20453_v53  ;;  %3223 = vmatprep.mubr.bf16.mxu0 %v903_v24 }
 0x141   : > { %18523 = vmatprep.mubr.bf16.mxu1 %v20520_v21  ;;  %16360 = vmatpush3.bf16.msra.mxu1 %v18960_v2 }
 0x142   : > { %v20633_v50 = vadd.f32 %v15870_v14, %v1733_v15  ;;  %v15887_v51 = vpop.f32.mrb[32].mxu0  ;;  %16361 = vmatprep.subr.bf16.mxu1 %v18962_v34 }
 0x143   : > { %v15951_v43 = vpop.f32.mrb[32].mxu1  ;;  %v15888_v53 = vpop.f32.mrb[33].mxu0 }
 0x144   : > { %v15889_v7 = vadd.f32 %v15888_v53, %v15887_v51  ;;  %v15952_v21 = vpop.f32.mrb[33].mxu1  ;;  %v15890_v30 = vpop.f32.mrb[34].mxu0  ;;  %v18983_v51 = vld [vmem:[%s24789_s3 + $0x158] sm:$0xff]  }
 0x145   : > { %v15953_v19 = vadd.f32 %v15952_v21, %v15951_v43  ;;  %v15954_v0 = vpop.f32.mrb[34].mxu1  ;;  %v15891_v10 = vpop.f32.mrb[35].mxu0  ;;  %16362 = vmatpush3.bf16.msra.mxu1 %v18964_v4  ;;  %v18981_v4 = vld [vmem:[%s24789_s3 + $0x110] sm:$0xff]  }
 0x146   : > { %v1868_v29 = vadd.f32 %v15889_v7, %v20460_v3  ;;  %v15892_v13 = vadd.f32 %v15891_v10, %v15890_v30  ;;  %v15955_v18 = vpop.f32.mrb[35].mxu1  ;;  %16363 = vmatprep.subr.bf16.mxu1 %v18965_v38  ;;  %v18968_v3 = vld [vmem:[%s24789_s3 + $0xb8] sm:$0xff]   ;;  %v18985_v10 = vld [vmem:[%s24789_s3 + $0x160] sm:$0xff]  }
 0x147   : > { %v15956_v27 = vadd.f32 %v15955_v18, %v15954_v0  ;;  %3224 = vmatmul.mubr.bf16.gmra.mrb[140].mxu0 %v839_v28 }
 0x148   : > { %v1871_v46 = vadd.f32 %v15892_v13, %v20466_v9  ;;  %18524 = vmatmul.mubr.bf16.gmra.mrb[140].mxu1 %v967_v63  ;;  %v20646_v45 = vadd.f32 %v15953_v19, %v1868_v29  ;;  %4658 = vmatprep.mubr.bf16.mxu0 %v19655_v23  ;;  %v18973_v9 = vld [vmem:[%s24789_s3 + $0x100] sm:$0xff]   ;;  %v18984_v19 = vld [vmem:[%s24789_s3 + $0x118] sm:$0xff]  }
 0x149   : > { %16364 = vmatpush3.bf16.msra.mxu1 %v18966_v40 }
 0x14a   : > { %v15893_v49 = vpop.f32.mrb[36].mxu0  ;;  %v20654_v22 = vadd.f32 %v15956_v27, %v1871_v46  ;;  %16365 = vmatprep.subr.bf16.mxu1 %v18967_v25  ;;  %v18989_v25 = vld [vmem:[%s24789_s3 + $0x168] sm:$0xff]  }
 0x14b   : > { %v15957_v32 = vpop.f32.mrb[36].mxu1  ;;  %v15894_v41 = vpop.f32.mrb[37].mxu0 }
 0x14c   : > { %v15895_v47 = vadd.f32 %v15894_v41, %v15893_v49  ;;  %v15958_v8 = vpop.f32.mrb[37].mxu1  ;;  %v15896_v24 = vpop.f32.mrb[38].mxu0  ;;  %v18990_v41 = vld [vmem:[%s24789_s3 + $0x128] sm:$0xff]  }
 0x14d   : > { %v15959_v62 = vadd.f32 %v15958_v8, %v15957_v32  ;;  %v15960_v58 = vpop.f32.mrb[38].mxu1  ;;  %v15897_v31 = vpop.f32.mrb[39].mxu0  ;;  %16366 = vmatpush3.bf16.msra.mxu1 %v18968_v3  ;;  %v18991_v8 = vld [vmem:[%s24789_s3 + $0x170] sm:$0xff]  }
 0x14e   : > { %v1876_v2 = vadd.f32 %v15895_v47, %v20482_v33  ;;  %v15898_v59 = vadd.f32 %v15897_v31, %v15896_v24  ;;  %v15961_v5 = vpop.f32.mrb[39].mxu1  ;;  %16479 = vmatprep.subr.bf16.mxu1 %v18969_v42 }
 0x14f   : > { %v15962_v6 = vadd.f32 %v15961_v5, %v15960_v58  ;;  %4659 = vmatmul.mubr.bf16.vlgmr.msra.gmra.mrb[144].mxu0 %v3426_v54 }
 0x150   : > { %v1879_v34 = vadd.f32 %v15898_v59, %v20488_v12  ;;  %v20670_v14 = vadd.f32 %v15959_v62, %v1876_v2  ;;  %16416 = vmatpush3.bf16.msra.mxu0 %v18973_v9 }
 0x151   : > { %16417 = vmatprep.subr.bf16.mxu0 %v18975_v37 }
 0x152   : > { %v15899_v33 = vpop.f32.mrb[40].mxu0  ;;  %v20672_v15 = vadd.f32 %v15962_v6, %v1879_v34 }
 0x153   : > { %v15963_v16 = vpop.f32.mrb[40].mxu1  ;;  %v15900_v17 = vpop.f32.mrb[41].mxu0 }
 0x154   : > { %v15901_v38 = vadd.f32 %v15900_v17, %v15899_v33  ;;  %v15964_v43 = vpop.f32.mrb[41].mxu1  ;;  %v15902_v12 = vpop.f32.mrb[42].mxu0  ;;  %16418 = vmatpush3.bf16.msra.mxu0 %v18977_v39  ;;  %v18996_v17 = vld [vmem:[%s24789_s3 + $0x138] sm:$0xff]  }
 0x155   : > { %v15965_v53 = vadd.f32 %v15964_v43, %v15963_v16  ;;  %v15966_v28 = vpop.f32.mrb[42].mxu1  ;;  %v15903_v7 = vpop.f32.mrb[43].mxu0  ;;  %16419 = vmatprep.subr.bf16.mxu0 %v18979_v57  ;;  %v19003_v43 = vld [vmem:[%s24789_s3 + $0x200] sm:$0xff]  }
 0x156   : > { %v1884_v21 = vadd.f32 %v15901_v38, %v20504_v60  ;;  %v15904_v30 = vadd.f32 %v15903_v7, %v15902_v12  ;;  %v15967_v63 = vpop.f32.mrb[43].mxu1  ;;  %v18987_v60 = vld [vmem:[%s24789_s3 + $0x120] sm:$0xff]  }
 0x157   : > { %v15968_v0 = vadd.f32 %v15967_v63, %v15966_v28 }
 0x158   : > { %v1887_v40 = vadd.f32 %v15904_v30, %v20512_v1  ;;  %v20688_v29 = vadd.f32 %v15965_v53, %v1884_v21  ;;  %16420 = vmatpush3.bf16.msra.mxu0 %v18981_v4 }
 0x159   : > { %16421 = vmatprep.subr.bf16.mxu0 %v18983_v51 }
 0x15a   : > { %v15905_v13 = vpop.f32.mrb[44].mxu0  ;;  %v20690_v18 = vadd.f32 %v15968_v0, %v1887_v40 }
 0x15b   : > { %v15969_v35 = vpop.f32.mrb[44].mxu1  ;;  %v15906_v36 = vpop.f32.mrb[45].mxu0 }
 0x15c   : > { %v15907_v27 = vadd.f32 %v15906_v36, %v15905_v13  ;;  %v15970_v46 = vpop.f32.mrb[45].mxu1  ;;  %v15908_v1 = vpop.f32.mrb[46].mxu0  ;;  %16422 = vmatpush3.bf16.msra.mxu0 %v18984_v19 }
 0x15d   : > { %v15971_v23 = vadd.f32 %v15970_v46, %v15969_v35  ;;  %v15972_v3 = vpop.f32.mrb[46].mxu1  ;;  %v15909_v42 = vpop.f32.mrb[47].mxu0  ;;  %16423 = vmatprep.subr.bf16.mxu0 %v18985_v10 }
 0x15e   : > { %v1892_v49 = vadd.f32 %v15907_v27, %v20532_v20  ;;  %v15910_v9 = vadd.f32 %v15909_v42, %v15908_v1  ;;  %v15973_v32 = vpop.f32.mrb[47].mxu1  ;;  %v18993_v20 = vld [vmem:[%s24789_s3 + $0x130] sm:$0xff]  }
 0x15f   : > { %v15974_v54 = vadd.f32 %v15973_v32, %v15972_v3 }
 0x160   : > { %v1895_v37 = vadd.f32 %v15910_v9, %v20538_v48  ;;  %v20703_v47 = vadd.f32 %v15971_v23, %v1892_v49  ;;  %16424 = vmatpush3.bf16.msra.mxu0 %v18987_v60  ;;  %v18995_v48 = vld [vmem:[%s24789_s3 + $0x178] sm:$0xff]  }
 0x161   : > { %16425 = vmatprep.subr.bf16.mxu0 %v18989_v25 }
 0x162   : > { %v15911_v24 = vpop.f32.mrb[48].mxu0  ;;  %v20708_v62 = vadd.f32 %v15974_v54, %v1895_v37 }
 0x163   : > { %v15975_v58 = vpop.f32.mrb[48].mxu1  ;;  %v15912_v31 = vpop.f32.mrb[49].mxu0 }
 0x164   : > { %v15913_v2 = vadd.f32 %v15912_v31, %v15911_v24  ;;  %v15976_v59 = vpop.f32.mrb[49].mxu1  ;;  %v15914_v5 = vpop.f32.mrb[50].mxu0  ;;  %16426 = vmatpush3.bf16.msra.mxu0 %v18990_v41 }
 0x165   : > { %v15977_v39 = vadd.f32 %v15976_v59, %v15975_v58  ;;  %v15978_v6 = vpop.f32.mrb[50].mxu1  ;;  %v15915_v57 = vpop.f32.mrb[51].mxu0  ;;  %16427 = vmatprep.subr.bf16.mxu0 %v18991_v8 }
 0x166   : > { %v1900_v34 = vadd.f32 %v15913_v2, %v20553_v55  ;;  %v15916_v33 = vadd.f32 %v15915_v57, %v15914_v5  ;;  %v15979_v16 = vpop.f32.mrb[51].mxu1 }
 0x167   : > { %v15980_v4 = vadd.f32 %v15979_v16, %v15978_v6 }
 0x168   : > { %v1903_v51 = vadd.f32 %v15916_v33, %v20562_v61  ;;  %v20721_v38 = vadd.f32 %v15977_v39, %v1900_v34  ;;  %16428 = vmatpush3.bf16.msra.mxu0 %v18993_v20 }
 0x169   : > { %16429 = vmatprep.subr.bf16.mxu0 %v18995_v48 }
 0x16a   : > { %v15917_v12 = vpop.f32.mrb[52].mxu0  ;;  %v20726_v53 = vadd.f32 %v15980_v4, %v1903_v51 }
 0x16b   : > { %v15981_v55 = vpop.f32.mrb[52].mxu1  ;;  %v15918_v28 = vpop.f32.mrb[53].mxu0 }
 0x16c   : > { %v15919_v7 = vadd.f32 %v15918_v28, %v15917_v12  ;;  %v15982_v21 = vpop.f32.mrb[53].mxu1  ;;  %v15920_v30 = vpop.f32.mrb[54].mxu0  ;;  %16430 = vmatpush3.bf16.msra.mxu0 %v18996_v17 }
 0x16d   : > { %v15983_v63 = vadd.f32 %v15982_v21, %v15981_v55  ;;  %v15984_v19 = vpop.f32.mrb[54].mxu1  ;;  %v15921_v61 = vpop.f32.mrb[55].mxu0  ;;  %18527 = vmatprep.subr.bf16.mxu0 %v19003_v43 }
 0x16e   : > { %v1908_v0 = vadd.f32 %v15919_v7, %v20575_v56  ;;  %v15922_v10 = vadd.f32 %v15921_v61, %v15920_v30  ;;  %v15985_v40 = vpop.f32.mrb[55].mxu1 }
 0x16f   : > { %v15986_v13 = vadd.f32 %v15985_v40, %v15984_v19 }
 0x170   : > { %v1911_v60 = vadd.f32 %v15922_v10, %v20584_v26  ;;  %v20730_v35 = vadd.f32 %v15983_v63, %v1908_v0 }
 0x172   : > { %v15923_v36 = vpop.f32.mrb[56].mxu0  ;;  %v20732_v25 = vadd.f32 %v15986_v13, %v1911_v60 }
 0x173   : > { %v15987_v27 = vpop.f32.mrb[56].mxu1  ;;  %v15924_v46 = vpop.f32.mrb[57].mxu0 }
 0x174   : > { %v15925_v1 = vadd.f32 %v15924_v46, %v15923_v36  ;;  %v15988_v23 = vpop.f32.mrb[57].mxu1  ;;  %v15926_v3 = vpop.f32.mrb[58].mxu0 }
 0x175   : > { %v15989_v42 = vadd.f32 %v15988_v23, %v15987_v27  ;;  %v15990_v49 = vpop.f32.mrb[58].mxu1  ;;  %v15927_v9 = vpop.f32.mrb[59].mxu0 }
 0x176   : > { %v1916_v56 = vadd.f32 %v15925_v1, %v20597_v44  ;;  %v15928_v32 = vadd.f32 %v15927_v9, %v15926_v3  ;;  %v15991_v41 = vpop.f32.mrb[59].mxu1 }
 0x177   : > { %v15992_v54 = vadd.f32 %v15991_v41, %v15990_v49 }
 0x178   : > { %v1919_v26 = vadd.f32 %v15928_v32, %v20608_v52  ;;  %v20736_v37 = vadd.f32 %v15989_v42, %v1916_v56 }
 0x17a   : > { %v15929_v8 = vpop.f32.mrb[60].mxu0  ;;  %v20738_v24 = vadd.f32 %v15992_v54, %v1919_v26 }
 0x17b   : > { %v15993_v20 = vpop.f32.mrb[60].mxu1  ;;  %v15930_v58 = vpop.f32.mrb[61].mxu0 }
 0x17c   : > { %v15931_v31 = vadd.f32 %v15930_v58, %v15929_v8  ;;  %v15994_v48 = vpop.f32.mrb[61].mxu1  ;;  %v15932_v2 = vpop.f32.mrb[62].mxu0  ;;  %v3523_v58 = vld [vmem:[#allocation2 + $0x11] sm:$0xff] }
 0x17d   : > { %v15995_v59 = vadd.f32 %v15994_v48, %v15993_v20  ;;  %v15996_v5 = vpop.f32.mrb[62].mxu1  ;;  %v15933_v39 = vpop.f32.mrb[63].mxu0  ;;  %v3522_v20 = vld [vmem:[#allocation2 + $0x9] sm:$0xff] }
 0x17e   : > { %v1924_v44 = vadd.f32 %v15931_v31, %v20623_v11  ;;  %v15934_v6 = vadd.f32 %v15933_v39, %v15932_v2  ;;  %v15997_v57 = vpop.f32.mrb[63].mxu1 }
 0x17f   : > { %v15998_v34 = vadd.f32 %v15997_v57, %v15996_v5 }
 0x180   : > { %v1927_v52 = vadd.f32 %v15934_v6, %v20633_v50  ;;  %v20742_v33 = vadd.f32 %v15995_v59, %v1924_v44  ;;  %v3554_v6 = vpack.c.bf16 %v3523_v58, %v3522_v20 }
 0x182   : > { %v18481_v16 = vpop.f32.mrb[64].mxu0  ;;  %v20744_v17 = vadd.f32 %v15998_v34, %v1927_v52 }
 0x183   : > { %v2070_v4 = vadd.f32 %v18481_v16, %v20670_v14  ;;  %v16031_v51 = vpop.f32.mrb[64].mxu1  ;;  %v2061_v43 = vpop.f32.mrb[65].mxu0 }
 0x184   : > { %v2062_v12 = vadd.f32 %v2061_v43, %v20646_v45  ;;  %v16032_v55 = vpop.f32.mrb[65].mxu1  ;;  %v18482_v28 = vpop.f32.mrb[66].mxu0  ;;  %v18970_v43 = vld [vmem:[%s24789_s3 + $0x180] sm:$0xff]  }
 0x185   : > { %vm2126_vm0 = vcmp.ge.f32.partialorder %v2070_v4, 0.0  ;;  %v2142_v11 = vmul.f32 0.01, %v2070_v4  ;;  %v20748_v7 = vadd.f32 %v16032_v55, %v16031_v51  ;;  %v2073_v21 = vadd.f32 %v18482_v28, %v20672_v15  ;;  %v16034_v50 = vpop.f32.mrb[66].mxu1  ;;  %v2064_v30 = vpop.f32.mrb[67].mxu0 }
 0x186   : > { %vm2124_vm1 = vcmp.ge.f32.partialorder %v2062_v12, 0.0  ;;  %v2140_v63 = vmul.f32 0.01, %v2062_v12  ;;  %v2065_v19 = vadd.f32 %v2064_v30, %v20654_v22  ;;  %v16035_v61 = vpop.f32.mrb[67].mxu1 }
 0x187   : > { %v20752_v14 = vsel %vm2126_vm0, %v2070_v4, %v2142_v11  ;;  %vm2127_vm2 = vcmp.ge.f32.partialorder %v2073_v21, 0.0  ;;  %v2143_v0 = vmul.f32 0.01, %v2073_v21  ;;  %v20755_v40 = vadd.f32 %v16035_v61, %v16034_v50 }
 0x188   : > { %2175 = vst [vmem:[#allocation2 + $0x48] sm:$0xff] %v20752_v14  ;;  %v2156_v45 = vsel %vm2124_vm1, %v2062_v12, %v2140_v63  ;;  %vm2125_vm3 = vcmp.ge.f32.partialorder %v2065_v19, 0.0  ;;  %v2141_v10 = vmul.f32 0.01, %v2065_v19 }
 0x189   : > { %2173 = vst [vmem:[#allocation2 + $0x28] sm:$0xff] %v2156_v45  ;;  %v20757_v15 = vsel %vm2127_vm2, %v2073_v21, %v2143_v0 }
 0x18a   : > { %2176 = vst [vmem:[#allocation2 + $0x50] sm:$0xff] %v20757_v15  ;;  %v20760_v13 = vsel %vm2125_vm3, %v2065_v19, %v2141_v10  ;;  %v18485_v22 = vpop.f32.mrb[68].mxu0  ;;  %v3492_v60 = vpack.c.bf16 %v20757_v15, %v20752_v14  ;;  %v18976_v14 = vld [vmem:[%s24789_s3 + $0x1d0] sm:$0xff]  }
 0x18b   : > { %2174 = vst [vmem:[#allocation2 + $0x30] sm:$0xff] %v20760_v13  ;;  %v2086_v36 = vadd.f32 %v18485_v22, %v20703_v47  ;;  %v16037_v27 = vpop.f32.mrb[68].mxu1  ;;  %v2077_v46 = vpop.f32.mrb[69].mxu0  ;;  %v3491_v1 = vpack.c.bf16 %v20760_v13, %v2156_v45 }
 0x18c   : > { %v2078_v23 = vadd.f32 %v2077_v46, %v20688_v29  ;;  %v16038_v3 = vpop.f32.mrb[69].mxu1  ;;  %v18486_v42 = vpop.f32.mrb[70].mxu0 }
 0x18d   : > { %vm2130_vm4 = vcmp.ge.f32.partialorder %v2086_v36, 0.0  ;;  %v2146_v49 = vmul.f32 0.01, %v2086_v36  ;;  %v20768_v9 = vadd.f32 %v16038_v3, %v16037_v27  ;;  %v2089_v56 = vadd.f32 %v18486_v42, %v20708_v62  ;;  %v16040_v32 = vpop.f32.mrb[70].mxu1  ;;  %v2080_v41 = vpop.f32.mrb[71].mxu0  ;;  %4666 = vmatprep.mubr.bf16.mxu0 %v3491_v1 }
 0x18e   : > { %vm2128_vm5 = vcmp.ge.f32.partialorder %v2078_v23, 0.0  ;;  %v2144_v54 = vmul.f32 0.01, %v2078_v23  ;;  %v2081_v47 = vadd.f32 %v2080_v41, %v20690_v18  ;;  %v16041_v26 = vpop.f32.mrb[71].mxu1 }
 0x18f   : > { %v20772_v8 = vsel %vm2130_vm4, %v2086_v36, %v2146_v49  ;;  %vm2131_vm6 = vcmp.ge.f32.partialorder %v2089_v56, 0.0  ;;  %v2147_v29 = vmul.f32 0.01, %v2089_v56  ;;  %v20777_v48 = vadd.f32 %v16041_v26, %v16040_v32  ;;  %v3588_v4 = vld [vmem:[#allocation2 + $0x47] sm:$0xff] }
 0x190   : > { %2179 = vst [vmem:[#allocation2 + $0x88] sm:$0xff] %v20772_v8  ;;  %v20775_v31 = vsel %vm2128_vm5, %v2078_v23, %v2144_v54  ;;  %vm2129_vm7 = vcmp.ge.f32.partialorder %v2081_v47, 0.0  ;;  %v2145_v62 = vmul.f32 0.01, %v2081_v47  ;;  %v3586_v39 = vld [vmem:[#allocation2 + $0x27] sm:$0xff]  ;;  %v18978_v54 = vld [vmem:[%s24789_s3 + $0x190] sm:$0xff]  }
 0x191   : > { %2177 = vst [vmem:[#allocation2 + $0x68] sm:$0xff] %v20775_v31  ;;  %v20780_v2 = vsel %vm2131_vm6, %v2089_v56, %v2147_v29  ;;  %v3589_v18 = vld [vmem:[#allocation2 + $0x4f] sm:$0xff] }
 0x192   : > { %2180 = vst [vmem:[#allocation2 + $0x90] sm:$0xff] %v20780_v2  ;;  %v20783_v59 = vsel %vm2129_vm7, %v2081_v47, %v2145_v62  ;;  %v18489_v5 = vpop.f32.mrb[72].mxu0  ;;  %v3587_v44 = vld [vmem:[#allocation2 + $0x2f] sm:$0xff]  ;;  %v20793_v11 = vpack.c.bf16 %v3589_v18, %v3588_v4  ;;  %v3494_v21 = vpack.c.bf16 %v20780_v2, %v20772_v8 }
 0x193   : > { %2178 = vst [vmem:[#allocation2 + $0x70] sm:$0xff] %v20783_v59  ;;  %v2102_v57 = vadd.f32 %v18489_v5, %v20730_v35  ;;  %v16043_v34 = vpop.f32.mrb[72].mxu1  ;;  %v2093_v52 = vpop.f32.mrb[73].mxu0  ;;  %v3618_v16 = vpack.c.bf16 %v3587_v44, %v3586_v39  ;;  %v3493_v51 = vpack.c.bf16 %v20783_v59, %v20775_v31  ;;  %v18972_v35 = vld [vmem:[%s24789_s3 + $0x1c8] sm:$0xff]   ;;  %v3525_v46 = vld [vmem:[#allocation2 + $0x31] sm:$0xff]  ;;  %v18986_v31 = vld [vmem:[%s24789_s3 + $0x1e0] sm:$0xff]  }
 0x194   : > { %v2094_v12 = vadd.f32 %v2093_v52, %v20721_v38  ;;  %v16044_v55 = vpop.f32.mrb[73].mxu1  ;;  %v18490_v28 = vpop.f32.mrb[74].mxu0 }
 0x195   : > { %vm2134_vm8 = vcmp.ge.f32.partialorder %v2102_v57, 0.0  ;;  %v2150_v50 = vmul.f32 0.01, %v2102_v57  ;;  %v20800_v30 = vadd.f32 %v16044_v55, %v16043_v34  ;;  %v2105_v63 = vadd.f32 %v18490_v28, %v20732_v25  ;;  %v16046_v19 = vpop.f32.mrb[74].mxu1  ;;  %v2096_v61 = vpop.f32.mrb[75].mxu0  ;;  %4755 = vmatprep.mubr.bf16.mxu1 %v3618_v16  ;;  %4667 = vmatmul.mubr.bf16.gmra.mrb[148].mxu0 %v3618_v16  ;;  %v18974_v25 = vld [vmem:[%s24789_s3 + $0x188] sm:$0xff]  }
 0x196   : > { %vm2132_vm9 = vcmp.ge.f32.partialorder %v2094_v12, 0.0  ;;  %v2148_v38 = vmul.f32 0.01, %v2094_v12  ;;  %v2097_v0 = vadd.f32 %v2096_v61, %v20726_v53  ;;  %v16047_v45 = vpop.f32.mrb[75].mxu1  ;;  %4756 = vmatmul.mubr.bf16.vlgmr.msra.gmra.mrb[144].mxu1 %v3554_v6  ;;  %4674 = vmatprep.mubr.bf16.mxu0 %v3492_v60  ;;  %v3524_v60 = vld [vmem:[#allocation2 + $0x29] sm:$0xff]  ;;  %v3527_v28 = vld [vmem:[#allocation2 + $0x51] sm:$0xff] }
 0x197   : > { %v20807_v10 = vsel %vm2134_vm8, %v2102_v57, %v2150_v50  ;;  %vm2135_vm10 = vcmp.ge.f32.partialorder %v2105_v63, 0.0  ;;  %v2151_v22 = vmul.f32 0.01, %v2105_v63  ;;  %4763 = vmatprep.mubr.bf16.mxu1 %v20793_v11  ;;  %16480 = vmatpush3.bf16.msra.mxu1 %v18970_v43  ;;  %v20816_v27 = vadd.f32 %v16047_v45, %v16046_v19  ;;  %v3526_v55 = vld [vmem:[#allocation2 + $0x49] sm:$0xff] }
 0x198   : > { %2183 = vst [vmem:[#allocation2 + $0xc8] sm:$0xff] %v20807_v10  ;;  %v20814_v53 = vsel %vm2132_vm9, %v2094_v12, %v2148_v38  ;;  %vm2133_vm11 = vcmp.ge.f32.partialorder %v2097_v0, 0.0  ;;  %v2149_v36 = vmul.f32 0.01, %v2097_v0  ;;  %16481 = vmatprep.subr.bf16.mxu1 %v18972_v35  ;;  %v3590_v32 = vld [vmem:[#allocation2 + $0x67] sm:$0xff]  ;;  %v20835_v20 = vpack.c.bf16 %v3525_v46, %v3524_v60 }
 0x199   : > { %2181 = vst [vmem:[#allocation2 + $0xa8] sm:$0xff] %v20814_v53  ;;  %v20822_v15 = vsel %vm2135_vm10, %v2105_v63, %v2151_v22  ;;  %v3593_v63 = vld [vmem:[#allocation2 + $0x8f] sm:$0xff]  ;;  %v3592_v60 = vld [vmem:[#allocation2 + $0x87] sm:$0xff] }
 0x19a   : > { %2184 = vst [vmem:[#allocation2 + $0xd0] sm:$0xff] %v20822_v15  ;;  %v20825_v1 = vsel %vm2133_vm11, %v2097_v0, %v2149_v36  ;;  %v18493_v23 = vpop.f32.mrb[76].mxu0  ;;  %v3591_v3 = vld [vmem:[#allocation2 + $0x6f] sm:$0xff]  ;;  %v3496_v62 = vpack.c.bf16 %v20822_v15, %v20807_v10  ;;  %v18988_v0 = vld [vmem:[%s24789_s3 + $0x1a0] sm:$0xff]  }
 0x19b   : > { %2182 = vst [vmem:[#allocation2 + $0xb0] sm:$0xff] %v20825_v1  ;;  %v2118_v42 = vadd.f32 %v18493_v23, %v20742_v33  ;;  %v16049_v49 = vpop.f32.mrb[76].mxu1  ;;  %v2109_v56 = vpop.f32.mrb[77].mxu0  ;;  %16482 = vmatpush3.bf16.msra.mxu1 %v18974_v25  ;;  %v3495_v41 = vpack.c.bf16 %v20825_v1, %v20814_v53  ;;  %v20837_v58 = vpack.c.bf16 %v3591_v3, %v3590_v32  ;;  %v18980_v33 = vld [vmem:[%s24789_s3 + $0x1d8] sm:$0xff]   ;;  %v18992_v46 = vld [vmem:[%s24789_s3 + $0x1e8] sm:$0xff]  }
 0x19c   : > { %v2110_v47 = vadd.f32 %v2109_v56, %v20736_v37  ;;  %v16050_v26 = vpop.f32.mrb[77].mxu1  ;;  %v18494_v29 = vpop.f32.mrb[78].mxu0  ;;  %16483 = vmatprep.subr.bf16.mxu1 %v18976_v14  ;;  %v20880_v14 = vpack.c.bf16 %v3527_v28, %v3526_v55 }
 0x19d   : > { %vm2138_vm12 = vcmp.ge.f32.partialorder %v2118_v42, 0.0  ;;  %v2154_v18 = vmul.f32 0.01, %v2118_v42  ;;  %v20844_v5 = vadd.f32 %v16050_v26, %v16049_v49  ;;  %v2121_v37 = vadd.f32 %v18494_v29, %v20744_v17  ;;  %v16052_v39 = vpop.f32.mrb[78].mxu1  ;;  %v2112_v44 = vpop.f32.mrb[79].mxu0  ;;  %4675 = vmatmul.mubr.bf16.gmra.mrb[152].mxu0 %v20793_v11  ;;  %v18982_v17 = vld [vmem:[%s24789_s3 + $0x198] sm:$0xff]  }
 0x19e   : > { %vm2136_vm13 = vcmp.ge.f32.partialorder %v2110_v47, 0.0  ;;  %v2152_v6 = vmul.f32 0.01, %v2110_v47  ;;  %v2113_v57 = vadd.f32 %v2112_v44, %v20738_v24  ;;  %v16053_v34 = vpop.f32.mrb[79].mxu1  ;;  %4764 = vmatmul.mubr.bf16.gmra.mrb[148].mxu1 %v20835_v20  ;;  %4682 = vmatprep.mubr.bf16.mxu0 %v3493_v51  ;;  %v20867_v51 = vld [vmem:[%s24788_s2] ss:$0 sm:$0xff]  ;;  %v20888_v49 = vpack.c.bf16 %v3593_v63, %v3592_v60 }
 0x19f   : > { %v2170_v52 = vsel %vm2138_vm12, %v2118_v42, %v2154_v18  ;;  %vm2139_vm14 = vcmp.ge.f32.partialorder %v2121_v37, 0.0  ;;  %v2155_v16 = vmul.f32 0.01, %v2121_v37  ;;  %4771 = vmatprep.mubr.bf16.mxu1 %v20837_v58  ;;  %16484 = vmatpush3.bf16.msra.mxu1 %v18978_v54  ;;  %v20859_v43 = vadd.f32 %v16053_v34, %v16052_v39  ;;  %v18994_v26 = vld [vmem:[%s24789_s3 + $0x1a8] sm:$0xff]   ;;  %v18997_v29 = vld [vmem:[%s24789_s3 + $0x1f0] sm:$0xff]  }
 0x1a0   : > { %2187 = vst [vmem:[#allocation2 + $0x108] sm:$0xff] %v2170_v52  ;;  %v20857_v4 = vsel %vm2136_vm13, %v2110_v47, %v2152_v6  ;;  %vm2137_vm15 = vcmp.ge.f32.partialorder %v2113_v57, 0.0  ;;  %v2153_v24 = vmul.f32 0.01, %v2113_v57  ;;  %16485 = vmatprep.subr.bf16.mxu1 %v18980_v33  ;;  %v2879_v45 = vadd.f32 %v20748_v7, %v20867_v51  ;;  %v3528_v33 = vld [vmem:[#allocation2 + $0x69] sm:$0xff]  ;;  %v3529_v18 = vld [vmem:[#allocation2 + $0x71] sm:$0xff] }
 0x1a1   : > { %2185 = vst [vmem:[#allocation2 + $0xe8] sm:$0xff] %v20857_v4  ;;  %v2171_v12 = vsel %vm2139_vm14, %v2121_v37, %v2155_v16  ;;  %v2882_v7 = vadd.f32 %v20755_v40, %v20867_v51  ;;  %v18998_v39 = vld [vmem:[%s24789_s3 + $0x1b0] sm:$0xff]   ;;  %v2887_v44 = vadd.f32 %v20768_v9, %v20867_v51  ;;  %v20914_v52 = vpack.c.bf16 %v3529_v18, %v3528_v33  ;;  %v3594_v16 = vld [vmem:[#allocation2 + $0xa7] sm:$0xff] }
 0x1a2   : > { %2188 = vst [vmem:[#allocation2 + $0x110] sm:$0xff] %v2171_v12  ;;  %v20870_v35 = vsel %vm2137_vm15, %v2113_v57, %v2153_v24  ;;  %v16095_v50 = vpop.f32.mrb[80].mxu0  ;;  %v3595_v2 = vld [vmem:[#allocation2 + $0xaf] sm:$0xff]  ;;  %v2890_v9 = vadd.f32 %v20777_v48, %v20867_v51  ;;  %v2898_v18 = vadd.f32 %v20816_v27, %v20867_v51 }
 0x1a3   : > { %2186 = vst [vmem:[#allocation2 + $0xf0] sm:$0xff] %v20870_v35  ;;  %v16055_v19 = vpop.f32.mrb[80].mxu1  ;;  %v16096_v61 = vpop.f32.mrb[81].mxu0  ;;  %16486 = vmatpush3.bf16.msra.mxu1 %v18982_v17  ;;  %v3497_v38 = vpack.c.bf16 %v20870_v35, %v20857_v4  ;;  %v18999_v17 = vld [vmem:[%s24789_s3 + $0x1f8] sm:$0xff]   ;;  %v20922_v55 = vpack.c.bf16 %v3595_v2, %v3594_v16  ;;  %v3530_v48 = vld [vmem:[#allocation2 + $0x89] sm:$0xff] }
 0x1a4   : > { %v16056_v22 = vpop.f32.mrb[81].mxu1  ;;  %v16097_v25 = vadd.f32 %v16096_v61, %v16095_v50  ;;  %v16098_v36 = vpop.f32.mrb[82].mxu0  ;;  %16487 = vmatprep.subr.bf16.mxu1 %v18986_v31  ;;  %v19001_v61 = vld [vmem:[%s24789_s3 + $0x40] sm:$0xff]  }
 0x1a5   : > { %v20885_v23 = vadd.f32 %v16056_v22, %v16055_v19  ;;  %v16058_v3 = vpop.f32.mrb[82].mxu1  ;;  %v16099_v42 = vpop.f32.mrb[83].mxu0  ;;  %4683 = vmatmul.mubr.bf16.gmra.mrb[156].mxu0 %v20837_v58  ;;  %v19000_v19 = vld [vmem:[%s24789_s3 + $0x1b8] sm:$0xff]  }
 0x1a6   : > { %v20892_v56 = vadd.f32 %v16097_v25, %v2879_v45  ;;  %v16059_v32 = vpop.f32.mrb[83].mxu1  ;;  %v16100_v54 = vadd.f32 %v16099_v42, %v16098_v36  ;;  %4772 = vmatmul.mubr.bf16.gmra.mrb[152].mxu1 %v20880_v14  ;;  %4690 = vmatprep.mubr.bf16.mxu0 %v3494_v21  ;;  %v3531_v45 = vld [vmem:[#allocation2 + $0x91] sm:$0xff] }
 0x1a7   : > { %v20898_v47 = vadd.f32 %v16059_v32, %v16058_v3  ;;  %4779 = vmatprep.mubr.bf16.mxu1 %v20888_v49  ;;  %16488 = vmatpush3.bf16.msra.mxu1 %v18988_v0  ;;  %v3597_v25 = vld [vmem:[#allocation2 + $0xcf] sm:$0xff]  ;;  %v20945_v32 = vpack.c.bf16 %v3531_v45, %v3530_v48 }
 0x1a8   : > { %v20904_v40 = vadd.f32 %v16100_v54, %v2882_v7  ;;  %16489 = vmatprep.subr.bf16.mxu1 %v18992_v46  ;;  %v2895_v46 = vadd.f32 %v20800_v30, %v20867_v51  ;;  %v3598_v27 = vld [vmem:[#allocation2 + $0xe7] sm:$0xff] }
 0x1aa   : > { %v16101_v8 = vpop.f32.mrb[84].mxu0 }
 0x1ab   : > { %v16061_v21 = vpop.f32.mrb[84].mxu1  ;;  %v16102_v37 = vpop.f32.mrb[85].mxu0  ;;  %16490 = vmatpush3.bf16.msra.mxu1 %v18994_v26 }
 0x1ac   : > { %v16062_v6 = vpop.f32.mrb[85].mxu1  ;;  %v16103_v57 = vadd.f32 %v16102_v37, %v16101_v8  ;;  %v16104_v34 = vpop.f32.mrb[86].mxu0  ;;  %16491 = vmatprep.subr.bf16.mxu1 %v18997_v29  ;;  %v3532_v37 = vld [vmem:[#allocation2 + $0xa9] sm:$0xff] }
 0x1ad   : > { %v20919_v24 = vadd.f32 %v16062_v6, %v16061_v21  ;;  %v16064_v31 = vpop.f32.mrb[86].mxu1  ;;  %v16105_v12 = vpop.f32.mrb[87].mxu0  ;;  %4691 = vmatmul.mubr.bf16.gmra.mrb[160].mxu0 %v20888_v49 }
 0x1ae   : > { %v20926_v28 = vadd.f32 %v16103_v57, %v2887_v44  ;;  %v16065_v50 = vpop.f32.mrb[87].mxu1  ;;  %v16106_v63 = vadd.f32 %v16105_v12, %v16104_v34  ;;  %4780 = vmatmul.mubr.bf16.gmra.mrb[156].mxu1 %v20914_v52  ;;  %4698 = vmatprep.mubr.bf16.mxu0 %v3495_v41  ;;  %v3596_v41 = vld [vmem:[#allocation2 + $0xc7] sm:$0xff]  ;;  %v3599_v57 = vld [vmem:[#allocation2 + $0xef] sm:$0xff] }
 0x1af   : > { %v20938_v0 = vadd.f32 %v16065_v50, %v16064_v31  ;;  %4787 = vmatprep.mubr.bf16.mxu1 %v20922_v55  ;;  %16492 = vmatpush3.bf16.msra.mxu1 %v18998_v39  ;;  %v20950_v33 = vpack.c.bf16 %v3597_v25, %v3596_v41  ;;  %v3533_v39 = vld [vmem:[#allocation2 + $0xb1] sm:$0xff] }
 0x1b0   : > { %v20941_v22 = vadd.f32 %v16106_v63, %v2890_v9  ;;  %16493 = vmatprep.subr.bf16.mxu1 %v18999_v17  ;;  %v2903_v17 = vadd.f32 %v20844_v5, %v20867_v51  ;;  %v20967_v15 = vpack.c.bf16 %v3533_v39, %v3532_v37  ;;  %v20972_v63 = vpack.c.bf16 %v3599_v57, %v3598_v27  ;;  %v3535_v41 = vld [vmem:[#allocation2 + $0xd1] sm:$0xff] }
 0x1b2   : > { %v16107_v53 = vpop.f32.mrb[88].mxu0 }
 0x1b3   : > { %v16067_v36 = vpop.f32.mrb[88].mxu1  ;;  %v16108_v60 = vpop.f32.mrb[89].mxu0  ;;  %16494 = vmatpush3.bf16.msra.mxu1 %v19000_v19  ;;  %v2906_v19 = vadd.f32 %v20859_v43, %v20867_v51  ;;  %v3600_v43 = vld [vmem:[#allocation2 + $0x107] sm:$0xff] }
 0x1b4   : > { %v16068_v3 = vpop.f32.mrb[89].mxu1  ;;  %v16109_v42 = vadd.f32 %v16108_v60, %v16107_v53  ;;  %v16110_v7 = vpop.f32.mrb[90].mxu0  ;;  %16559 = vmatprep.subr.bf16.mxu1 %v19001_v61  ;;  %v3534_v53 = vld [vmem:[#allocation2 + $0xc9] sm:$0xff] }
 0x1b5   : > { %v20947_v54 = vadd.f32 %v16068_v3, %v16067_v36  ;;  %v16070_v26 = vpop.f32.mrb[90].mxu1  ;;  %v16111_v29 = vpop.f32.mrb[91].mxu0  ;;  %4699 = vmatmul.mubr.bf16.gmra.mrb[164].mxu0 %v20922_v55  ;;  %v3601_v60 = vld [vmem:[#allocation2 + $0x10f] sm:$0xff]  ;;  %v20989_v35 = vpack.c.bf16 %v3535_v41, %v3534_v53 }
 0x1b6   : > { %v20954_v8 = vadd.f32 %v16109_v42, %v2895_v46  ;;  %v16071_v30 = vpop.f32.mrb[91].mxu1  ;;  %v16112_v2 = vadd.f32 %v16111_v29, %v16110_v7  ;;  %4788 = vmatmul.mubr.bf16.gmra.mrb[160].mxu1 %v20945_v32  ;;  %4706 = vmatprep.mubr.bf16.mxu0 %v3496_v62  ;;  %v2911_v42 = vadd.f32 %v20885_v23, %v20867_v51  ;;  %v3650_v23 = vld [vmem:[#allocation2 + $0x28] sm:$0xff] }
 0x1b7   : > { %v20960_v21 = vadd.f32 %v16071_v30, %v16070_v26  ;;  %4795 = vmatprep.mubr.bf16.mxu1 %v20950_v33  ;;  %v20992_v30 = vpack.c.bf16 %v3601_v60, %v3600_v43 }
 0x1b8   : > { %v20963_v44 = vadd.f32 %v16112_v2, %v2898_v18  ;;  %v2914_v2 = vadd.f32 %v20898_v47, %v20867_v51 }
 0x1ba   : > { %v16113_v6 = vpop.f32.mrb[92].mxu0 }
 0x1bb   : > { %v16073_v34 = vpop.f32.mrb[92].mxu1  ;;  %v16114_v16 = vpop.f32.mrb[93].mxu0 }
 0x1bc   : > { %v16074_v31 = vpop.f32.mrb[93].mxu1  ;;  %v16115_v12 = vadd.f32 %v16114_v16, %v16113_v6  ;;  %v16116_v10 = vpop.f32.mrb[94].mxu0  ;;  %v3537_v16 = vld [vmem:[#allocation2 + $0xf1] sm:$0xff] }
 0x1bd   : > { %v20969_v62 = vadd.f32 %v16074_v31, %v16073_v34  ;;  %v16076_v9 = vpop.f32.mrb[94].mxu1  ;;  %v16117_v50 = vpop.f32.mrb[95].mxu0  ;;  %4707 = vmatmul.mubr.bf16.gmra.mrb[168].mxu0 %v20950_v33  ;;  %v3536_v34 = vld [vmem:[#allocation2 + $0xe9] sm:$0xff] }
 0x1be   : > { %v20976_v61 = vadd.f32 %v16115_v12, %v2903_v17  ;;  %v16077_v48 = vpop.f32.mrb[95].mxu1  ;;  %v16118_v5 = vadd.f32 %v16117_v50, %v16116_v10  ;;  %4796 = vmatmul.mubr.bf16.gmra.mrb[164].mxu1 %v20967_v15  ;;  %4714 = vmatprep.mubr.bf16.mxu0 %v3497_v38  ;;  %v3843_v12 = vld [vmem:[#allocation2 + $0x48] sm:$0xff]  ;;  %v3844_v10 = vld [vmem:[#allocation2 + $0x50] sm:$0xff]  ;;  %v3682_v50 = vpack.c.bf16 %v20760_v13, %v3650_v23 }
 0x1bf   : > { %v20982_v45 = vadd.f32 %v16077_v48, %v16076_v9  ;;  %4803 = vmatprep.mubr.bf16.mxu1 %v20972_v63  ;;  %v21015_v41 = vpack.c.bf16 %v3537_v16, %v3536_v34  ;;  %v3875_v60 = vpack.c.bf16 %v3844_v10, %v3843_v12 }
 0x1c0   : > { %v20985_v25 = vadd.f32 %v16118_v5, %v2906_v19  ;;  %v2919_v19 = vadd.f32 %v20919_v24, %v20867_v51 }
 0x1c2   : > { %v16119_v36 = vpop.f32.mrb[96].mxu0 }
 0x1c3   : > { %v16159_v46 = vpop.f32.mrb[96].mxu1  ;;  %v16120_v3 = vpop.f32.mrb[97].mxu0 }
 0x1c4   : > { %v16121_v7 = vadd.f32 %v16120_v3, %v16119_v36  ;;  %v16160_v26 = vpop.f32.mrb[97].mxu1  ;;  %v16122_v4 = vpop.f32.mrb[98].mxu0 }
 0x1c5   : > { %v16161_v38 = vadd.f32 %v16160_v26, %v16159_v46  ;;  %v16162_v29 = vpop.f32.mrb[98].mxu1  ;;  %v16123_v18 = vpop.f32.mrb[99].mxu0  ;;  %4715 = vmatmul.mubr.bf16.gmra.mrb[172].mxu0 %v20972_v63  ;;  %v2922_v46 = vadd.f32 %v20938_v0, %v20867_v51  ;;  %v19641_v26 = vld [vmem:[%s24789_s3 + $0x200] sm:$0xff]   ;;  %v19009_v0 = vld [vmem:[%s24789_s3 + $0x210] sm:$0xff]  }
 0x1c6   : > { %v20996_v37 = vadd.f32 %v16121_v7, %v2911_v42  ;;  %v16124_v39 = vadd.f32 %v16123_v18, %v16122_v4  ;;  %v16163_v6 = vpop.f32.mrb[99].mxu1  ;;  %4804 = vmatmul.mubr.bf16.gmra.mrb[168].mxu1 %v20989_v35  ;;  %4852 = vmatprep.mubr.bf16.mxu0 %v20835_v20  ;;  %v19006_v20 = vld [vmem:[%s24789_s3 + $0x208] sm:$0xff]  }
 0x1c7   : > { %v21001_v27 = vadd.f32 %v16161_v38, %v20892_v56  ;;  %v16164_v57 = vadd.f32 %v16163_v6, %v16162_v29  ;;  %4811 = vmatprep.mubr.bf16.mxu1 %v20992_v30  ;;  %v3845_v29 = vld [vmem:[#allocation2 + $0x68] sm:$0xff]  ;;  %v19012_v6 = vld [vmem:[%s24789_s3 + $0x218] sm:$0xff]  }
 0x1c8   : > { %v21004_v17 = vadd.f32 %v16124_v39, %v2914_v2  ;;  %v19004_v18 = vld [vmem:[%s24789_s3 + $0x48] sm:$0xff]   ;;  %v3876_v10 = vpack.c.bf16 %v20783_v59, %v3845_v29  ;;  %v2938_v29 = vadd.f32 %v20982_v45, %v20867_v51 }
 0x1c9   : > { %v21007_v47 = vadd.f32 %v16164_v57, %v20904_v40  ;;  %v19005_v59 = vld [vmem:[%s24789_s3 + $0x8] sm:$0xff]  }
 0x1ca   : > { %v16125_v31 = vpop.f32.mrb[100].mxu0 }
 0x1cb   : > { %v16165_v9 = vpop.f32.mrb[100].mxu1  ;;  %v16126_v56 = vpop.f32.mrb[101].mxu0 }
 0x1cc   : > { %v16127_v48 = vadd.f32 %v16126_v56, %v16125_v31  ;;  %v16166_v5 = vpop.f32.mrb[101].mxu1  ;;  %v16128_v53 = vpop.f32.mrb[102].mxu0 }
 0x1cd   : > { %v16167_v40 = vadd.f32 %v16166_v5, %v16165_v9  ;;  %v16168_v36 = vpop.f32.mrb[102].mxu1  ;;  %v16129_v43 = vpop.f32.mrb[103].mxu0  ;;  %4853 = vmatmul.mubr.bf16.vlgmr.msra.gmra.mrb[176].mxu0 %v3682_v50 }
 0x1ce   : > { %v21019_v3 = vadd.f32 %v16127_v48, %v2919_v19  ;;  %v16130_v42 = vadd.f32 %v16129_v43, %v16128_v53  ;;  %v16169_v13 = vpop.f32.mrb[103].mxu1  ;;  %4812 = vmatmul.mubr.bf16.gmra.mrb[172].mxu1 %v21015_v41  ;;  %4860 = vmatprep.mubr.bf16.mxu0 %v20880_v14  ;;  %v19002_v14 = vld [vmem:[%s24789_s3] sm:$0xff]   ;;  %v3847_v53 = vld [vmem:[#allocation2 + $0x88] sm:$0xff] }
 0x1cf   : > { %v21024_v24 = vadd.f32 %v16167_v40, %v20926_v28  ;;  %v16170_v7 = vadd.f32 %v16169_v13, %v16168_v36  ;;  %4949 = vmatprep.mubr.bf16.mxu1 %v3875_v60  ;;  %18528 = vmatpush3.bf16.msra.mxu0 %v19641_v26  ;;  %v3848_v40 = vld [vmem:[#allocation2 + $0x90] sm:$0xff]  ;;  %v19010_v36 = vld [vmem:[%s24789_s3 + $0x58] sm:$0xff]  }
 0x1d0   : > { %v21029_v4 = vadd.f32 %v16130_v42, %v2922_v46  ;;  %18529 = vmatprep.subr.bf16.mxu0 %v19006_v20  ;;  %v2935_v46 = vadd.f32 %v20969_v62, %v20867_v51 }
 0x1d1   : > { %v21035_v38 = vadd.f32 %v16170_v7, %v20941_v22  ;;  %v2927_v22 = vadd.f32 %v20947_v54, %v20867_v51 }
 0x1d2   : > { %v16131_v28 = vpop.f32.mrb[104].mxu0 }
 0x1d3   : > { %v16171_v2 = vpop.f32.mrb[104].mxu1  ;;  %v16132_v39 = vpop.f32.mrb[105].mxu0  ;;  %18530 = vmatpush3.bf16.msra.mxu0 %v19006_v20  ;;  %v2930_v20 = vadd.f32 %v20960_v21, %v20867_v51  ;;  %v19007_v21 = vld [vmem:[%s24789_s3 + $0x50] sm:$0xff]   ;;  %v19014_v51 = vld [vmem:[%s24789_s3 + $0x60] sm:$0xff]  }
 0x1d4   : > { %v16133_v23 = vadd.f32 %v16132_v39, %v16131_v28  ;;  %v16172_v57 = vpop.f32.mrb[105].mxu1  ;;  %v16134_v34 = vpop.f32.mrb[106].mxu0  ;;  %18531 = vmatprep.subr.bf16.mxu0 %v19009_v0  ;;  %v3877_v28 = vpack.c.bf16 %v3848_v40, %v3847_v53  ;;  %v19021_v53 = vld [vmem:[%s24789_s3 + $0x70] sm:$0xff]  }
 0x1d5   : > { %v16173_v16 = vadd.f32 %v16172_v57, %v16171_v2  ;;  %v16174_v31 = vpop.f32.mrb[106].mxu1  ;;  %v16135_v12 = vpop.f32.mrb[107].mxu0  ;;  %4861 = vmatmul.mubr.bf16.gmra.mrb[180].mxu0 %v3875_v60  ;;  %v3849_v57 = vld [vmem:[#allocation2 + $0xa8] sm:$0xff] }
 0x1d6   : > { %v21051_v9 = vadd.f32 %v16133_v23, %v2927_v22  ;;  %v16136_v56 = vadd.f32 %v16135_v12, %v16134_v34  ;;  %v16175_v50 = vpop.f32.mrb[107].mxu1  ;;  %4950 = vmatmul.mubr.bf16.vlgmr.msra.gmra.mrb[176].mxu1 %v20793_v11  ;;  %4868 = vmatprep.mubr.bf16.mxu0 %v20914_v52  ;;  %v19013_v11 = vld [vmem:[%s24789_s3 + $0x220] sm:$0xff]   ;;  %v19011_v22 = vld [vmem:[%s24789_s3 + $0x18] sm:$0xff]   ;;  %v19018_v34 = vld [vmem:[%s24789_s3 + $0x68] sm:$0xff]  }
 0x1d7   : > { %v21056_v54 = vadd.f32 %v16173_v16, %v20954_v8  ;;  %v16176_v19 = vadd.f32 %v16175_v50, %v16174_v31  ;;  %4957 = vmatprep.mubr.bf16.mxu1 %v3876_v10  ;;  %16560 = vmatpush3.bf16.msra.mxu1 %v19002_v14  ;;  %v19008_v8 = vld [vmem:[%s24789_s3 + $0x10] sm:$0xff]   ;;  %v19020_v12 = vld [vmem:[%s24789_s3 + $0x238] sm:$0xff]  }
 0x1d8   : > { %v21064_v48 = vadd.f32 %v16136_v56, %v2930_v20  ;;  %16561 = vmatprep.subr.bf16.mxu1 %v19004_v18  ;;  %18532 = vmatpush3.bf16.msra.mxu0 %v19009_v0 }
 0x1d9   : > { %v21070_v52 = vadd.f32 %v16176_v19, %v20963_v44  ;;  %18533 = vmatprep.subr.bf16.mxu0 %v19012_v6  ;;  %v19016_v44 = vld [vmem:[%s24789_s3 + $0x228] sm:$0xff]  }
 0x1da   : > { %v16137_v5 = vpop.f32.mrb[108].mxu0 }
 0x1db   : > { %v16177_v43 = vpop.f32.mrb[108].mxu1  ;;  %v16138_v60 = vpop.f32.mrb[109].mxu0  ;;  %16562 = vmatpush3.bf16.msra.mxu1 %v19005_v59  ;;  %v3878_v59 = vpack.c.bf16 %v20825_v1, %v3849_v57 }
 0x1dc   : > { %v16139_v42 = vadd.f32 %v16138_v60, %v16137_v5  ;;  %v16178_v13 = vpop.f32.mrb[109].mxu1  ;;  %v16140_v7 = vpop.f32.mrb[110].mxu0  ;;  %16563 = vmatprep.subr.bf16.mxu1 %v19007_v21  ;;  %18534 = vmatpush3.bf16.msra.mxu0 %v19012_v6  ;;  %v19019_v5 = vld [vmem:[%s24789_s3 + $0x28] sm:$0xff]  }
 0x1dd   : > { %v16179_v26 = vadd.f32 %v16178_v13, %v16177_v43  ;;  %v16180_v0 = vpop.f32.mrb[110].mxu1  ;;  %v16141_v14 = vpop.f32.mrb[111].mxu0  ;;  %4869 = vmatmul.mubr.bf16.gmra.mrb[184].mxu0 %v3876_v10  ;;  %18535 = vmatprep.subr.bf16.mxu0 %v19013_v11 }
 0x1de   : > { %v21085_v18 = vadd.f32 %v16139_v42, %v2935_v46  ;;  %v16142_v2 = vadd.f32 %v16141_v14, %v16140_v7  ;;  %v16181_v39 = vpop.f32.mrb[111].mxu1  ;;  %4958 = vmatmul.mubr.bf16.gmra.mrb[180].mxu1 %v20837_v58  ;;  %4876 = vmatprep.mubr.bf16.mxu0 %v20945_v32  ;;  %v19017_v58 = vld [vmem:[%s24789_s3 + $0x230] sm:$0xff]  }
 0x1df   : > { %v21090_v62 = vadd.f32 %v16179_v26, %v20976_v61  ;;  %v16182_v6 = vadd.f32 %v16181_v39, %v16180_v0  ;;  %4965 = vmatprep.mubr.bf16.mxu1 %v3877_v28  ;;  %16564 = vmatpush3.bf16.msra.mxu1 %v19008_v8  ;;  %v19015_v61 = vld [vmem:[%s24789_s3 + $0x20] sm:$0xff]   ;;  %v19023_v42 = vld [vmem:[%s24789_s3 + $0x30] sm:$0xff]   ;;  %v3851_v26 = vld [vmem:[#allocation2 + $0xc8] sm:$0xff] }
 0x1e0   : > { %v21095_v23 = vadd.f32 %v16142_v2, %v2938_v29  ;;  %16565 = vmatprep.subr.bf16.mxu1 %v19010_v36  ;;  %18536 = vmatpush3.bf16.msra.mxu0 %v19013_v11  ;;  %v3659_v36 = vld [vmem:[#allocation2 + $0xb0] sm:$0xff]  ;;  %v19029_v2 = vld [vmem:[%s24789_s3 + $0x38] sm:$0xff]  }
 0x1e1   : > { %v21104_v32 = vadd.f32 %v16182_v6, %v20985_v25  ;;  %18537 = vmatprep.subr.bf16.mxu0 %v19016_v44  ;;  %v3686_v46 = vpack.c.bf16 %v3659_v36, %v3849_v57  ;;  %v3854_v57 = vld [vmem:[#allocation2 + $0xf0] sm:$0xff] }
 0x1e2   : > { %v16223_v45 = vpop.f32.mrb[112].mxu0  ;;  %v3856_v36 = vld [vmem:[#allocation2 + $0x110] sm:$0xff] }
 0x1e3   : > { %v16183_v16 = vpop.f32.mrb[112].mxu1  ;;  %v16224_v31 = vpop.f32.mrb[113].mxu0  ;;  %16566 = vmatpush3.bf16.msra.mxu1 %v19011_v22 }
 0x1e4   : > { %v16184_v25 = vpop.f32.mrb[113].mxu1  ;;  %v16225_v10 = vadd.f32 %v16224_v31, %v16223_v45  ;;  %v16226_v20 = vpop.f32.mrb[114].mxu0  ;;  %16567 = vmatprep.subr.bf16.mxu1 %v19014_v51  ;;  %18538 = vmatpush3.bf16.msra.mxu0 %v19016_v44  ;;  %v19034_v51 = vld [vmem:[%s24789_s3 + $0x140] sm:$0xff]  }
 0x1e5   : > { %v16185_v56 = vadd.f32 %v16184_v25, %v16183_v16  ;;  %v16186_v50 = vpop.f32.mrb[114].mxu1  ;;  %v16227_v19 = vpop.f32.mrb[115].mxu0  ;;  %4877 = vmatmul.mubr.bf16.gmra.mrb[188].mxu0 %v3877_v28  ;;  %18539 = vmatprep.subr.bf16.mxu0 %v19017_v58 }
 0x1e6   : > { %v16187_v21 = vpop.f32.mrb[115].mxu1  ;;  %v16228_v11 = vadd.f32 %v16227_v19, %v16226_v20  ;;  %4966 = vmatmul.mubr.bf16.gmra.mrb[184].mxu1 %v20888_v49  ;;  %4884 = vmatprep.mubr.bf16.mxu0 %v20967_v15  ;;  %v21119_v8 = vadd.f32 %v16225_v10, %v21001_v27  ;;  %v19022_v49 = vld [vmem:[%s24789_s3 + $0xc0] sm:$0xff]  }
 0x1e7   : > { %v21128_v1 = vadd.f32 %v16185_v56, %v20996_v37  ;;  %v16188_v40 = vadd.f32 %v16187_v21, %v16186_v50  ;;  %4973 = vmatprep.mubr.bf16.mxu1 %v3878_v59  ;;  %16568 = vmatpush3.bf16.msra.mxu1 %v19015_v61  ;;  %v3852_v37 = vld [vmem:[#allocation2 + $0xd0] sm:$0xff] }
 0x1e8   : > { %v21134_v15 = vadd.f32 %v16228_v11, %v21007_v47  ;;  %16569 = vmatprep.subr.bf16.mxu1 %v19018_v34  ;;  %18540 = vmatpush3.bf16.msra.mxu0 %v19017_v58  ;;  %v3879_v29 = vpack.c.bf16 %v3852_v37, %v3851_v26  ;;  %v3728_v21 = vld [vmem:[#allocation2 + $0x109] sm:$0xff]  ;;  %v3729_v11 = vld [vmem:[#allocation2 + $0x111] sm:$0xff] }
 0x1e9   : > { %v21137_v27 = vadd.f32 %v16188_v40, %v21004_v17  ;;  %18541 = vmatprep.subr.bf16.mxu0 %v19020_v12  ;;  %v19027_v17 = vld [vmem:[%s24789_s3 + $0x78] sm:$0xff]   ;;  %v3907_v26 = vld [vmem:[#allocation2 + $0x49] sm:$0xff] }
 0x1ea   : > { %v16229_v43 = vpop.f32.mrb[116].mxu0 }
 0x1eb   : > { %v16189_v60 = vpop.f32.mrb[116].mxu1  ;;  %v16230_v44 = vpop.f32.mrb[117].mxu0  ;;  %16570 = vmatpush3.bf16.msra.mxu1 %v19019_v5 }
 0x1ec   : > { %v16190_v13 = vpop.f32.mrb[117].mxu1  ;;  %v16231_v7 = vadd.f32 %v16230_v44, %v16229_v43  ;;  %v16232_v47 = vpop.f32.mrb[118].mxu0  ;;  %18542 = vmatpush3.bf16.msra.mxu0 %v19020_v12  ;;  %16571 = vmatprep.subr.bf16.mxu1 %v19021_v53 }
 0x1ed   : > { %v16191_v0 = vadd.f32 %v16190_v13, %v16189_v60  ;;  %v16192_v14 = vpop.f32.mrb[118].mxu1  ;;  %v16233_v28 = vpop.f32.mrb[119].mxu0  ;;  %4885 = vmatmul.mubr.bf16.gmra.mrb[192].mxu0 %v3686_v46  ;;  %16623 = vmatprep.subr.bf16.mxu0 %v19022_v49 }
 0x1ee   : > { %v16193_v39 = vpop.f32.mrb[119].mxu1  ;;  %v16234_v6 = vadd.f32 %v16233_v28, %v16232_v47  ;;  %4974 = vmatmul.mubr.bf16.gmra.mrb[188].mxu1 %v20922_v55  ;;  %4892 = vmatprep.mubr.bf16.mxu0 %v20989_v35  ;;  %v21151_v22 = vadd.f32 %v16231_v7, %v21024_v24  ;;  %v3853_v24 = vld [vmem:[#allocation2 + $0xe8] sm:$0xff] }
 0x1ef   : > { %v21157_v58 = vadd.f32 %v16191_v0, %v21019_v3  ;;  %v16194_v61 = vadd.f32 %v16193_v39, %v16192_v14  ;;  %4981 = vmatprep.mubr.bf16.mxu1 %v3879_v29  ;;  %16572 = vmatpush3.bf16.msra.mxu1 %v19023_v42 }
 0x1f0   : > { %v21160_v45 = vadd.f32 %v16234_v6, %v21035_v38  ;;  %16573 = vmatprep.subr.bf16.mxu1 %v19027_v17  ;;  %v3880_v38 = vpack.c.bf16 %v3854_v57, %v3853_v24  ;;  %v3908_v17 = vld [vmem:[#allocation2 + $0x51] sm:$0xff] }
 0x1f1   : > { %v21163_v55 = vadd.f32 %v16194_v61, %v21029_v4 }
 0x1f2   : > { %v16235_v35 = vpop.f32.mrb[120].mxu0 }
 0x1f3   : > { %v16195_v34 = vpop.f32.mrb[120].mxu1  ;;  %v16236_v16 = vpop.f32.mrb[121].mxu0  ;;  %16574 = vmatpush3.bf16.msra.mxu1 %v19029_v2 }
 0x1f4   : > { %v16196_v31 = vpop.f32.mrb[121].mxu1  ;;  %v16237_v12 = vadd.f32 %v16236_v16, %v16235_v35  ;;  %v16238_v3 = vpop.f32.mrb[122].mxu0  ;;  %16687 = vmatprep.subr.bf16.mxu1 %v19034_v51 }
 0x1f5   : > { %v16197_v25 = vadd.f32 %v16196_v31, %v16195_v34  ;;  %v16198_v10 = vpop.f32.mrb[122].mxu1  ;;  %v16239_v20 = vpop.f32.mrb[123].mxu0  ;;  %4893 = vmatmul.mubr.bf16.gmra.mrb[196].mxu0 %v3879_v29  ;;  %v3910_v31 = vld [vmem:[#allocation2 + $0x71] sm:$0xff] }
 0x1f6   : > { %v16199_v56 = vpop.f32.mrb[123].mxu1  ;;  %v16240_v50 = vadd.f32 %v16239_v20, %v16238_v3  ;;  %4982 = vmatmul.mubr.bf16.gmra.mrb[192].mxu1 %v20950_v33  ;;  %4900 = vmatprep.mubr.bf16.mxu0 %v21015_v41  ;;  %v21168_v4 = vadd.f32 %v16237_v12, %v21056_v54  ;;  %v3855_v33 = vld [vmem:[#allocation2 + $0x108] sm:$0xff]  ;;  %v3912_v20 = vld [vmem:[#allocation2 + $0x91] sm:$0xff] }
 0x1f7   : > { %v21171_v19 = vadd.f32 %v16197_v25, %v21051_v9  ;;  %v16200_v59 = vadd.f32 %v16199_v56, %v16198_v10  ;;  %4989 = vmatprep.mubr.bf16.mxu1 %v3880_v38  ;;  %v21179_v9 = vpack.c.bf16 %v3729_v11, %v3728_v21  ;;  %v21181_v42 = vpack.c.bf16 %v3856_v36, %v3855_v33  ;;  %v3911_v25 = vld [vmem:[#allocation2 + $0x89] sm:$0xff] }
 0x1f8   : > { %v21174_v5 = vadd.f32 %v16240_v50, %v21070_v52  ;;  %v19025_v56 = vld [vmem:[%s24789_s3 + $0xc8] sm:$0xff]  }
 0x1f9   : > { %v21177_v53 = vadd.f32 %v16200_v59, %v21064_v48 }
 0x1fa   : > { %v16241_v40 = vpop.f32.mrb[124].mxu0 }
 0x1fb   : > { %v16201_v41 = vpop.f32.mrb[124].mxu1  ;;  %v16242_v49 = vpop.f32.mrb[125].mxu0 }
 0x1fc   : > { %v16202_v54 = vpop.f32.mrb[125].mxu1  ;;  %v16243_v43 = vadd.f32 %v16242_v49, %v16241_v40  ;;  %v16244_v37 = vpop.f32.mrb[126].mxu0  ;;  %v3941_v49 = vpack.c.bf16 %v3912_v20, %v3911_v25 }
 0x1fd   : > { %v16203_v60 = vadd.f32 %v16202_v54, %v16201_v41  ;;  %v16204_v44 = vpop.f32.mrb[126].mxu1  ;;  %v16245_v46 = vpop.f32.mrb[127].mxu0  ;;  %4901 = vmatmul.mubr.bf16.gmra.mrb[200].mxu0 %v3880_v38  ;;  %v19026_v54 = vld [vmem:[%s24789_s3 + $0x88] sm:$0xff]  }
 0x1fe   : > { %v16205_v52 = vpop.f32.mrb[127].mxu1  ;;  %v16246_v13 = vadd.f32 %v16245_v46, %v16244_v37  ;;  %4990 = vmatmul.mubr.bf16.gmra.mrb[196].mxu1 %v20972_v63  ;;  %4908 = vmatprep.mubr.bf16.mxu0 %v21179_v9  ;;  %v3194_v48 = vadd.f32 %v16243_v43, %v21090_v62 }
 0x1ff   : > { %v21187_v7 = vadd.f32 %v16203_v60, %v21085_v18  ;;  %v16206_v47 = vadd.f32 %v16205_v52, %v16204_v44  ;;  %4997 = vmatprep.mubr.bf16.mxu1 %v21181_v42  ;;  %v3939_v18 = vpack.c.bf16 %v3908_v17, %v3907_v26 }
 0x200   : > { %v3197_v0 = vadd.f32 %v16246_v13, %v21104_v32 }
 0x201   : > { %v21192_v14 = vadd.f32 %v16206_v47, %v21095_v23 }
 0x202   : > { %v16247_v28 = vpop.f32.mrb[128].mxu0 }
 0x203   : > { %v18513_v29 = vpop.f32.mrb[128].mxu1  ;;  %v16248_v63 = vpop.f32.mrb[129].mxu0 }
 0x204   : > { %v3275_v2 = vadd.f32 %v18513_v29, %v21151_v22  ;;  %v16249_v39 = vadd.f32 %v16248_v63, %v16247_v28  ;;  %v3266_v62 = vpop.f32.mrb[129].mxu1  ;;  %v16250_v6 = vpop.f32.mrb[130].mxu0  ;;  %v3909_v22 = vld [vmem:[#allocation2 + $0x69] sm:$0xff] }
 0x205   : > { %v3267_v51 = vadd.f32 %v3266_v62, %v21119_v8  ;;  %v18514_v61 = vpop.f32.mrb[130].mxu1  ;;  %v16251_v35 = vpop.f32.mrb[131].mxu0  ;;  %4909 = vmatmul.mubr.bf16.gmra.mrb[204].mxu0 %v21181_v42  ;;  %v3940_v21 = vpack.c.bf16 %v3910_v31, %v3909_v22  ;;  %v3913_v63 = vld [vmem:[#allocation2 + $0xa9] sm:$0xff]  ;;  %v3916_v62 = vld [vmem:[#allocation2 + $0xd1] sm:$0xff] }
 0x206   : > { %vm3331_vm0 = vcmp.ge.f32.partialorder %v3275_v2, 0.0  ;;  %v3347_v32 = vmul.f32 0.01, %v3275_v2  ;;  %v3278_v23 = vadd.f32 %v18514_v61, %v21160_v45  ;;  %v16252_v24 = vadd.f32 %v16251_v35, %v16250_v6  ;;  %v3269_v57 = vpop.f32.mrb[131].mxu1  ;;  %4998 = vmatmul.mubr.bf16.gmra.mrb[200].mxu1 %v20992_v30  ;;  %18543 = vmatprep.mubr.bf16.mxu0 %v3939_v18  ;;  %v19024_v45 = vld [vmem:[%s24789_s3 + $0x80] sm:$0xff]  }
 0x207   : > { %vm3329_vm1 = vcmp.ge.f32.partialorder %v3267_v51, 0.0  ;;  %v3345_v34 = vmul.f32 0.01, %v3267_v51  ;;  %v3270_v16 = vadd.f32 %v3269_v57, %v21134_v15  ;;  %v21201_v8 = vadd.f32 %v16249_v39, %v21128_v1  ;;  %v3915_v39 = vld [vmem:[#allocation2 + $0xc9] sm:$0xff] }
 0x208   : > { %v21203_v12 = vsel %vm3331_vm0, %v3275_v2, %v3347_v32  ;;  %vm3332_vm2 = vcmp.ge.f32.partialorder %v3278_v23, 0.0  ;;  %v3348_v3 = vmul.f32 0.01, %v3278_v23  ;;  %v21209_v30 = vadd.f32 %v16252_v24, %v21137_v27  ;;  %v3914_v2 = vld [vmem:[#allocation2 + $0xb1] sm:$0xff] }
 0x209   : > { %3380 = vst [vmem:[#allocation2 + $0x148] sm:$0xff] %v21203_v12  ;;  %v3361_v10 = vsel %vm3329_vm1, %v3267_v51, %v3345_v34  ;;  %vm3330_vm3 = vcmp.ge.f32.partialorder %v3270_v16, 0.0  ;;  %v3346_v15 = vmul.f32 0.01, %v3270_v16  ;;  %v19030_v24 = vld [vmem:[%s24789_s3 + $0x90] sm:$0xff]   ;;  %v3943_v25 = vpack.c.bf16 %v3916_v62, %v3915_v39  ;;  %v19036_v39 = vld [vmem:[%s24789_s3 + $0x100] sm:$0xff]  }
 0x20a   : > { %3378 = vst [vmem:[#allocation2 + $0x128] sm:$0xff] %v3361_v10  ;;  %v21212_v1 = vsel %vm3332_vm2, %v3278_v23, %v3348_v3  ;;  %v16253_v38 = vpop.f32.mrb[132].mxu0  ;;  %v3942_v23 = vpack.c.bf16 %v3914_v2, %v3913_v63 }
 0x20b   : > { %3381 = vst [vmem:[#allocation2 + $0x150] sm:$0xff] %v21212_v1  ;;  %v3362_v50 = vsel %vm3330_vm3, %v3270_v16, %v3346_v15  ;;  %v18517_v59 = vpop.f32.mrb[132].mxu1  ;;  %v16254_v27 = vpop.f32.mrb[133].mxu0  ;;  %v3500_v11 = vpack.c.bf16 %v21212_v1, %v21203_v12  ;;  %v19051_v12 = vld [vmem:[%s24789_s3 + $0x168] sm:$0xff]   ;;  %v19056_v1 = vld [vmem:[%s24789_s3 + $0x180] sm:$0xff]  }
 0x20c   : > { %3379 = vst [vmem:[#allocation2 + $0x130] sm:$0xff] %v3362_v50  ;;  %v3291_v40 = vadd.f32 %v18517_v59, %v3194_v48  ;;  %v16255_v33 = vadd.f32 %v16254_v27, %v16253_v38  ;;  %v3282_v36 = vpop.f32.mrb[133].mxu1  ;;  %v16256_v41 = vpop.f32.mrb[134].mxu0  ;;  %v21223_v43 = vpack.c.bf16 %v3362_v50, %v3361_v10 }
 0x20d   : > { %v3283_v37 = vadd.f32 %v3282_v36, %v21168_v4  ;;  %v18518_v60 = vpop.f32.mrb[134].mxu1  ;;  %v16257_v44 = vpop.f32.mrb[135].mxu0  ;;  %18544 = vmatmul.mubr.bf16.vlgmr.msra.gmra.mrb[208].mxu0 %v3940_v21  ;;  %v19028_v4 = vld [vmem:[%s24789_s3 + $0xd0] sm:$0xff]  }
 0x20e   : > { %vm3335_vm4 = vcmp.ge.f32.partialorder %v3291_v40, 0.0  ;;  %v3351_v46 = vmul.f32 0.01, %v3291_v40  ;;  %v3294_v52 = vadd.f32 %v18518_v60, %v3197_v0  ;;  %v16258_v13 = vadd.f32 %v16257_v44, %v16256_v41  ;;  %v3285_v48 = vpop.f32.mrb[135].mxu1  ;;  %18547 = vmatprep.mubr.bf16.mxu0 %v3941_v49  ;;  %16624 = vmatpush3.bf16.msra.mxu0 %v19024_v45  ;;  %v19031_v45 = vld [vmem:[%s24789_s3 + $0xd8] sm:$0xff]   ;;  %v3411_v60 = vld [vmem:[#allocation2 + $0x10f] sm:$0xff] }
 0x20f   : > { %vm3333_vm5 = vcmp.ge.f32.partialorder %v3283_v37, 0.0  ;;  %v3349_v47 = vmul.f32 0.01, %v3283_v37  ;;  %v3286_v26 = vadd.f32 %v3285_v48, %v21174_v5  ;;  %v3210_v17 = vadd.f32 %v16255_v33, %v21157_v58  ;;  %16625 = vmatprep.subr.bf16.mxu0 %v19025_v56  ;;  %5005 = vmatprep.mubr.bf16.mxu1 %v21223_v43  ;;  %v19032_v33 = vld [vmem:[%s24789_s3 + $0x98] sm:$0xff]  }
 0x210   : > { %v21232_v28 = vsel %vm3335_vm4, %v3291_v40, %v3351_v46  ;;  %vm3336_vm6 = vcmp.ge.f32.partialorder %v3294_v52, 0.0  ;;  %v3352_v0 = vmul.f32 0.01, %v3294_v52  ;;  %v3213_v29 = vadd.f32 %v16258_v13, %v21163_v55 }
 0x211   : > { %3384 = vst [vmem:[#allocation2 + $0x188] sm:$0xff] %v21232_v28  ;;  %v21236_v5 = vsel %vm3333_vm5, %v3283_v37, %v3349_v47  ;;  %vm3334_vm7 = vcmp.ge.f32.partialorder %v3286_v26, 0.0  ;;  %v3350_v58 = vmul.f32 0.01, %v3286_v26  ;;  %v3793_v35 = vld [vmem:[#allocation2 + $0x127] sm:$0xff]  ;;  %v3918_v37 = vld [vmem:[#allocation2 + $0xf1] sm:$0xff] }
 0x212   : > { %3382 = vst [vmem:[#allocation2 + $0x168] sm:$0xff] %v21236_v5  ;;  %v21239_v6 = vsel %vm3336_vm6, %v3294_v52, %v3352_v0  ;;  %v16259_v18 = vpop.f32.mrb[136].mxu0  ;;  %16626 = vmatpush3.bf16.msra.mxu0 %v19026_v54  ;;  %v3917_v54 = vld [vmem:[#allocation2 + $0xe9] sm:$0xff] }
 0x213   : > { %3385 = vst [vmem:[#allocation2 + $0x190] sm:$0xff] %v21239_v6  ;;  %v21242_v51 = vsel %vm3334_vm7, %v3286_v26, %v3350_v58  ;;  %v18521_v55 = vpop.f32.mrb[136].mxu1  ;;  %v16260_v61 = vpop.f32.mrb[137].mxu0  ;;  %v3794_v32 = vld [vmem:[#allocation2 + $0x12f] sm:$0xff]  ;;  %16627 = vmatprep.subr.bf16.mxu0 %v19028_v4  ;;  %v3502_v57 = vpack.c.bf16 %v21239_v6, %v21232_v28  ;;  %v3944_v48 = vpack.c.bf16 %v3918_v37, %v3917_v54  ;;  %v3410_v47 = vld [vmem:[#allocation2 + $0x107] sm:$0xff]  ;;  %v19044_v37 = vld [vmem:[%s24789_s3 + $0xb8] sm:$0xff]  }
 0x214   : > { %3383 = vst [vmem:[#allocation2 + $0x170] sm:$0xff] %v21242_v51  ;;  %v3307_v22 = vadd.f32 %v18521_v55, %v3210_v17  ;;  %v16261_v34 = vadd.f32 %v16260_v61, %v16259_v18  ;;  %v3298_v16 = vpop.f32.mrb[137].mxu1  ;;  %v16262_v31 = vpop.f32.mrb[138].mxu0  ;;  %v21250_v3 = vpack.c.bf16 %v3794_v32, %v3793_v35  ;;  %v3501_v38 = vpack.c.bf16 %v21242_v51, %v21236_v5  ;;  %v19035_v26 = vld [vmem:[%s24789_s3 + $0xa0] sm:$0xff]   ;;  %v19037_v17 = vld [vmem:[%s24789_s3 + $0xe8] sm:$0xff]   ;;  %v19055_v5 = vld [vmem:[%s24789_s3 + $0x130] sm:$0xff]  }
 0x215   : > { %v3299_v10 = vadd.f32 %v3298_v16, %v21201_v8  ;;  %v18522_v15 = vpop.f32.mrb[138].mxu1  ;;  %v16263_v20 = vpop.f32.mrb[139].mxu0  ;;  %18548 = vmatmul.mubr.bf16.gmra.mrb[212].mxu0 %v3942_v23  ;;  %v3434_v2 = vpack.c.bf16 %v3411_v60, %v3410_v47  ;;  %v19040_v58 = vld [vmem:[%s24789_s3 + $0x148] sm:$0xff]   ;;  %v19067_v28 = vld [vmem:[%s24789_s3 + $0x1a0] sm:$0xff]  }
 0x216   : > { %vm3339_vm8 = vcmp.ge.f32.partialorder %v3307_v22, 0.0  ;;  %v3355_v56 = vmul.f32 0.01, %v3307_v22  ;;  %v3310_v50 = vadd.f32 %v18522_v15, %v3213_v29  ;;  %v16264_v59 = vadd.f32 %v16263_v20, %v16262_v31  ;;  %v3301_v27 = vpop.f32.mrb[139].mxu1  ;;  %5006 = vmatmul.mubr.bf16.gmra.mrb[204].mxu1 %v21250_v3  ;;  %18551 = vmatprep.mubr.bf16.mxu0 %v3943_v25  ;;  %v19038_v35 = vld [vmem:[%s24789_s3 + $0xa8] sm:$0xff]  }
 0x217   : > { %vm3337_vm9 = vcmp.ge.f32.partialorder %v3299_v10, 0.0  ;;  %v3353_v21 = vmul.f32 0.01, %v3299_v10  ;;  %v3302_v40 = vadd.f32 %v3301_v27, %v21209_v30  ;;  %5862 = vmatprep.mubr.bf16.mxu1 %v21181_v42  ;;  %16628 = vmatpush3.bf16.msra.mxu0 %v19030_v24  ;;  %v3218_v8 = vadd.f32 %v16261_v34, %v21171_v19  ;;  %v19033_v42 = vld [vmem:[%s24789_s3 + $0xe0] sm:$0xff]   ;;  %v19042_v31 = vld [vmem:[%s24789_s3 + $0x108] sm:$0xff]  }
 0x218   : > { %v21265_v36 = vsel %vm3339_vm8, %v3307_v22, %v3355_v56  ;;  %vm3340_vm10 = vcmp.ge.f32.partialorder %v3310_v50, 0.0  ;;  %v3356_v41 = vmul.f32 0.01, %v3310_v50  ;;  %16629 = vmatprep.subr.bf16.mxu0 %v19031_v45  ;;  %v3221_v49 = vadd.f32 %v16264_v59, %v21177_v53  ;;  %v19039_v22 = vld [vmem:[%s24789_s3 + $0xf0] sm:$0xff]   ;;  %v19068_v6 = vld [vmem:[%s24789_s3 + $0x1e8] sm:$0xff]  }
 0x219   : > { %3388 = vst [vmem:[#allocation2 + $0x1c8] sm:$0xff] %v21265_v36  ;;  %v21273_v19 = vsel %vm3337_vm9, %v3299_v10, %v3353_v21  ;;  %vm3338_vm11 = vcmp.ge.f32.partialorder %v3302_v40, 0.0  ;;  %v3354_v30 = vmul.f32 0.01, %v3302_v40  ;;  %v3921_v45 = vld [vmem:[#allocation2 + $0x129] sm:$0xff]  ;;  %v3922_v10 = vld [vmem:[#allocation2 + $0x131] sm:$0xff] }
 0x21a   : > { %3386 = vst [vmem:[#allocation2 + $0x1a8] sm:$0xff] %v21273_v19  ;;  %v21276_v44 = vsel %vm3340_vm10, %v3310_v50, %v3356_v41  ;;  %v16265_v46 = vpop.f32.mrb[140].mxu0  ;;  %v19045_v56 = vld [vmem:[%s24789_s3 + $0x150] sm:$0xff]   ;;  %v19043_v41 = vld [vmem:[%s24789_s3 + $0xf8] sm:$0xff]  }
 0x21b   : > { %3389 = vst [vmem:[#allocation2 + $0x1d0] sm:$0xff] %v21276_v44  ;;  %v21279_v53 = vsel %vm3338_vm11, %v3302_v40, %v3354_v30  ;;  %v18525_v52 = vpop.f32.mrb[140].mxu1  ;;  %v16266_v13 = vpop.f32.mrb[141].mxu0  ;;  %16630 = vmatpush3.bf16.msra.mxu0 %v19032_v33  ;;  %v3504_v4 = vpack.c.bf16 %v21276_v44, %v21265_v36  ;;  %v19041_v21 = vld [vmem:[%s24789_s3 + $0xb0] sm:$0xff]  }
 0x21c   : > { %3387 = vst [vmem:[#allocation2 + $0x1b0] sm:$0xff] %v21279_v53  ;;  %v16267_v0 = vadd.f32 %v16266_v13, %v16265_v46  ;;  %v3314_v29 = vpop.f32.mrb[141].mxu1  ;;  %v16268_v63 = vpop.f32.mrb[142].mxu0  ;;  %16631 = vmatprep.subr.bf16.mxu0 %v19033_v42  ;;  %v3503_v62 = vpack.c.bf16 %v21279_v53, %v21273_v19  ;;  %v19047_v42 = vld [vmem:[%s24789_s3 + $0x158] sm:$0xff]  }
 0x21d   : > { %v3315_v18 = vadd.f32 %v3314_v29, %v3218_v8  ;;  %v18526_v55 = vpop.f32.mrb[142].mxu1  ;;  %v16269_v61 = vpop.f32.mrb[143].mxu0  ;;  %18552 = vmatmul.mubr.bf16.gmra.mrb[216].mxu0 %v3944_v48  ;;  %v19048_v13 = vld [vmem:[%s24789_s3 + $0x118] sm:$0xff]   ;;  %v19054_v48 = vld [vmem:[%s24789_s3 + $0x1c0] sm:$0xff]  }
 0x21e   : > { %v3226_v32 = vadd.f32 %v16267_v0, %v21187_v7  ;;  %v16270_v23 = vadd.f32 %v16269_v61, %v16268_v63  ;;  %v3317_v24 = vpop.f32.mrb[143].mxu1  ;;  %5863 = vmatmul.mubr.bf16.vlgmr.msra.gmra.mrb[208].mxu1 %v3434_v2  ;;  %18555 = vmatprep.mubr.bf16.mxu0 %v21179_v9  ;;  %v3414_v0 = vld [vmem:[#allocation2 + $0x147] sm:$0xff]  ;;  %v19059_v61 = vld [vmem:[%s24789_s3 + $0x178] sm:$0xff]  }
 0x21f   : > { %vm3341_vm12 = vcmp.ge.f32.partialorder %v3315_v18, 0.0  ;;  %v3357_v34 = vmul.f32 0.01, %v3315_v18  ;;  %v3318_v16 = vadd.f32 %v3317_v24, %v3221_v49  ;;  %5870 = vmatprep.mubr.bf16.mxu1 %v21223_v43  ;;  %16632 = vmatpush3.bf16.msra.mxu0 %v19035_v26  ;;  %v19046_v49 = vld [vmem:[%s24789_s3 + $0x110] sm:$0xff]   ;;  %v19050_v29 = vld [vmem:[%s24789_s3 + $0x120] sm:$0xff]   ;;  %v19052_v2 = vld [vmem:[%s24789_s3 + $0x128] sm:$0xff]  }
 0x220   : > { %v3323_v7 = vadd.f32 %v18525_v52, %v3226_v32  ;;  %v3229_v25 = vadd.f32 %v16270_v23, %v21192_v14  ;;  %16688 = vmatpush3.bf16.msra.mxu1 %v19036_v39  ;;  %16633 = vmatprep.subr.bf16.mxu0 %v19037_v17  ;;  %v21319_v14 = vpack.c.bf16 %v3922_v10, %v3921_v45  ;;  %v19049_v17 = vld [vmem:[%s24789_s3 + $0x160] sm:$0xff]   ;;  %v19058_v39 = vld [vmem:[%s24789_s3 + $0x188] sm:$0xff]   ;;  %v19061_v23 = vld [vmem:[%s24789_s3 + $0x138] sm:$0xff]  }
 0x221   : > { %v21311_v15 = vsel %vm3341_vm12, %v3315_v18, %v3357_v34  ;;  %vm3342_vm13 = vcmp.ge.f32.partialorder %v3318_v16, 0.0  ;;  %v3358_v20 = vmul.f32 0.01, %v3318_v16  ;;  %16689 = vmatprep.subr.bf16.mxu1 %v19040_v58  ;;  %v3417_v58 = vld [vmem:[#allocation2 + $0x16f] sm:$0xff]  ;;  %v19064_v24 = vld [vmem:[%s24789_s3 + $0x198] sm:$0xff]  }
 0x222   : > { %vm3343_vm14 = vcmp.ge.f32.partialorder %v3323_v7, 0.0  ;;  %v3359_v50 = vmul.f32 0.01, %v3323_v7  ;;  %3390 = vst [vmem:[#allocation2 + $0x1e8] sm:$0xff] %v21311_v15  ;;  %v3326_v59 = vadd.f32 %v18526_v55, %v3229_v25  ;;  %v16303_v40 = vpop.f32.mrb[144].mxu0  ;;  %v19053_v18 = vld [vmem:[%s24789_s3 + $0x170] sm:$0xff]  }
 0x223   : > { %v21317_v27 = vsel %vm3342_vm13, %v3318_v16, %v3358_v20  ;;  %16634 = vmatpush3.bf16.msra.mxu0 %v19038_v35  ;;  %v16304_v54 = vpop.f32.mrb[145].mxu0  ;;  %v3416_v55 = vld [vmem:[#allocation2 + $0x167] sm:$0xff]  ;;  %v19063_v35 = vld [vmem:[%s24789_s3 + $0x1d8] sm:$0xff]  }
 0x224   : > { %v3375_v8 = vsel %vm3343_vm14, %v3323_v7, %v3359_v50  ;;  %vm3344_vm15 = vcmp.ge.f32.partialorder %v3326_v59, 0.0  ;;  %v3360_v33 = vmul.f32 0.01, %v3326_v59  ;;  %3391 = vst [vmem:[#allocation2 + $0x1f0] sm:$0xff] %v21317_v27  ;;  %16635 = vmatprep.subr.bf16.mxu0 %v19039_v22  ;;  %16690 = vmatpush3.bf16.msra.mxu1 %v19042_v31  ;;  %v3505_v30 = vpack.c.bf16 %v21317_v27, %v21311_v15  ;;  %v16306_v46 = vpop.f32.mrb[146].mxu0  ;;  %v3419_v22 = vld [vmem:[#allocation2 + $0x18f] sm:$0xff] }
 0x225   : > { %3392 = vst [vmem:[#allocation2 + $0x208] sm:$0xff] %v3375_v8  ;;  %18556 = vmatmul.mubr.bf16.gmra.mrb[220].mxu0 %v21319_v14  ;;  %16691 = vmatprep.subr.bf16.mxu1 %v19045_v56  ;;  %v21340_v60 = vadd.f32 %v16304_v54, %v16303_v40  ;;  %v16307_v47 = vpop.f32.mrb[147].mxu0  ;;  %v21403_v32 = vpack.c.bf16 %v3417_v58, %v3416_v55  ;;  %v3542_v34 = vld [vmem:[#allocation2 + $0x149] sm:$0xff]  ;;  %v3543_v16 = vld [vmem:[#allocation2 + $0x151] sm:$0xff]  ;;  %v19065_v31 = vld [vmem:[%s24789_s3 + $0x1e0] sm:$0xff]  }
 0x226   : > { %v3376_v52 = vsel %vm3344_vm15, %v3326_v59, %v3360_v33  ;;  %5871 = vmatmul.mubr.bf16.gmra.mrb[212].mxu1 %v21250_v3  ;;  %5959 = vmatprep.mubr.bf16.mxu0 %v21250_v3  ;;  %v21354_v26 = vadd.f32 %v16307_v47, %v16306_v46  ;;  %v3796_v3 = vld [vmem:[#allocation2 + $0x14f] sm:$0xff]  ;;  %v21423_v7 = vld [vmem:[%s24789_s3 + $0x200] sm:$0xff]   ;;  %v21433_v45 = vpack.c.bf16 %v3543_v16, %v3542_v34  ;;  %v19073_v19 = vld [vmem:[%s24789_s3 + $0x1f8] sm:$0xff]  }
 0x227   : > { %3393 = vst [vmem:[#allocation2 + $0x210] sm:$0xff] %v3376_v52  ;;  %5878 = vmatprep.mubr.bf16.mxu1 %v3500_v11  ;;  %16636 = vmatpush3.bf16.msra.mxu0 %v19041_v21  ;;  %v21362_v63 = vpack.c.bf16 %v3796_v3, %v3414_v0  ;;  %v19057_v11 = vld [vmem:[%s24789_s3 + $0x1c8] sm:$0xff]   ;;  %v3545_v50 = vld [vmem:[#allocation2 + $0x171] sm:$0xff]  ;;  %v19081_v52 = vld [vmem:[%s24791_s5 + $0x40] sm:$0xff]  }
 0x228   : > { %16637 = vmatprep.subr.bf16.mxu0 %v19043_v41  ;;  %16692 = vmatpush3.bf16.msra.mxu1 %v19046_v49  ;;  %v3418_v25 = vld [vmem:[#allocation2 + $0x187] sm:$0xff]  ;;  %v3421_v56 = vld [vmem:[#allocation2 + $0x1af] sm:$0xff]  ;;  %v19074_v33 = vld [vmem:[%s24789_s3 + $0x1b8] sm:$0xff]  }
 0x229   : > { %16693 = vmatprep.subr.bf16.mxu1 %v19047_v42  ;;  %v19069_v10 = vld [vmem:[%s24789_s3 + $0x1a8] sm:$0xff]   ;;  %v19070_v59 = vld [vmem:[%s24789_s3 + $0x1f0] sm:$0xff]  }
 0x22a   : > { %v3925_v20 = vld [vmem:[#allocation2 + $0x169] sm:$0xff]  ;;  %v3547_v54 = vld [vmem:[#allocation2 + $0x191] sm:$0xff] }
 0x22b   : > { %16638 = vmatpush3.bf16.msra.mxu0 %v19044_v37  ;;  %v3420_v21 = vld [vmem:[#allocation2 + $0x1a7] sm:$0xff]  ;;  %v19072_v40 = vld [vmem:[%s24789_s3 + $0x1b0] sm:$0xff]   ;;  %v21456_v8 = vpack.c.bf16 %v3545_v50, %v3925_v20 }
 0x22c   : > { %16694 = vmatpush3.bf16.msra.mxu1 %v19048_v13  ;;  %16751 = vmatprep.subr.bf16.mxu0 %v19054_v48  ;;  %v3423_v41 = vld [vmem:[#allocation2 + $0x1cf] sm:$0xff]  ;;  %v3422_v37 = vld [vmem:[#allocation2 + $0x1c7] sm:$0xff] }
 0x22d   : > { %16695 = vmatprep.subr.bf16.mxu1 %v19049_v17  ;;  %v3546_v49 = vld [vmem:[#allocation2 + $0x189] sm:$0xff]  ;;  %v21467_v42 = vpack.c.bf16 %v3423_v41, %v3422_v37  ;;  %v3549_v44 = vld [vmem:[#allocation2 + $0x1b1] sm:$0xff] }
 0x22e   : > { %5879 = vmatmul.mubr.bf16.gmra.mrb[216].mxu1 %v21362_v63  ;;  %5960 = vmatmul.mubr.bf16.vlgmr.msra.gmra.mrb[224].mxu0 %v21179_v9  ;;  %v19060_v9 = vld [vmem:[%s24789_s3 + $0x1d0] sm:$0xff]   ;;  %v21469_v46 = vpack.c.bf16 %v3547_v54, %v3546_v49  ;;  %v3616_v17 = vld [vmem:[#allocation2 + $0x207] sm:$0xff] }
 0x22f   : > { %5886 = vmatprep.mubr.bf16.mxu1 %v3501_v38  ;;  %5967 = vmatprep.mubr.bf16.mxu0 %v21362_v63  ;;  %v19062_v38 = vld [vmem:[%s24789_s3 + $0x190] sm:$0xff]  }
 0x230   : > { %16696 = vmatpush3.bf16.msra.mxu1 %v19050_v29  ;;  %16752 = vmatpush3.bf16.msra.mxu0 %v19056_v1  ;;  %v3548_v36 = vld [vmem:[#allocation2 + $0x1a9] sm:$0xff]  ;;  %v3551_v27 = vld [vmem:[#allocation2 + $0x1d1] sm:$0xff] }
 0x231   : > { %16697 = vmatprep.subr.bf16.mxu1 %v19051_v12  ;;  %16753 = vmatprep.subr.bf16.mxu0 %v19057_v11  ;;  %v3425_v13 = vld [vmem:[#allocation2 + $0x1ef] sm:$0xff]  ;;  %v21482_v47 = vpack.c.bf16 %v3549_v44, %v3548_v36 }
 0x232   : > { %v3550_v15 = vld [vmem:[#allocation2 + $0x1c9] sm:$0xff]  ;;  %v3553_v11 = vld [vmem:[#allocation2 + $0x1f1] sm:$0xff] }
 0x233   : > { %v21488_v3 = vpack.c.bf16 %v3551_v27, %v3550_v15  ;;  %v19071_v29 = vld [vmem:[%s24789_s3 + $0x208] sm:$0xff]   ;;  %v19075_v12 = vld [vmem:[%s24789_s3 + $0x210] sm:$0xff]  }
 0x234   : > { %16698 = vmatpush3.bf16.msra.mxu1 %v19052_v2  ;;  %16754 = vmatpush3.bf16.msra.mxu0 %v19058_v39  ;;  %v3552_v1 = vld [vmem:[#allocation2 + $0x1e9] sm:$0xff] }
 0x235   : > { %16699 = vmatprep.subr.bf16.mxu1 %v19053_v18  ;;  %16755 = vmatprep.subr.bf16.mxu0 %v19060_v9  ;;  %v3668_v2 = vld [vmem:[#allocation2 + $0x148] sm:$0xff]  ;;  %v21503_v39 = vpack.c.bf16 %v3553_v11, %v3552_v1  ;;  %v21512_v18 = vld [vmem:[%s24790_s4] ss:$0 sm:$0xff]  ;;  %v3862_v34 = vld [vmem:[#allocation2 + $0x170] sm:$0xff] }
 0x236   : > { %5887 = vmatmul.mubr.bf16.gmra.mrb[220].mxu1 %v21403_v32  ;;  %5968 = vmatmul.mubr.bf16.gmra.mrb[228].mxu0 %v21319_v14  ;;  %v4661_v55 = vadd.f32 %v21340_v60, %v21512_v18  ;;  %v4664_v16 = vadd.f32 %v21354_v26, %v21512_v18  ;;  %v19078_v60 = vld [vmem:[%s24789_s3 + $0x228] sm:$0xff]   ;;  %v19080_v11 = vld [vmem:[%s24789_s3 + $0x238] sm:$0xff]  }
 0x237   : > { %5894 = vmatprep.mubr.bf16.mxu1 %v3502_v57  ;;  %5975 = vmatprep.mubr.bf16.mxu0 %v21403_v32  ;;  %v21431_v57 = vpack.c.bf16 %v3419_v22, %v3418_v25  ;;  %v19083_v26 = vld [vmem:[%s24791_s5 + $0x48] sm:$0xff]  }
 0x238   : > { %16700 = vmatpush3.bf16.msra.mxu1 %v19055_v5  ;;  %16756 = vmatpush3.bf16.msra.mxu0 %v19062_v38  ;;  %v3672_v15 = vld [vmem:[#allocation2 + $0x188] sm:$0xff] }
 0x239   : > { %16701 = vmatprep.subr.bf16.mxu1 %v19059_v61  ;;  %16757 = vmatprep.subr.bf16.mxu0 %v19063_v35  ;;  %v3670_v61 = vld [vmem:[#allocation2 + $0x168] sm:$0xff]  ;;  %v19077_v35 = vld [vmem:[%s24789_s3 + $0x220] sm:$0xff]  }
 0x23a   : > { %v3884_v50 = vpack.c.bf16 %v3862_v34, %v3670_v61  ;;  %v19095_v34 = vld [vmem:[%s24791_s5 + $0x20] sm:$0xff]  }
 0x23c   : > { %16702 = vmatpush3.bf16.msra.mxu1 %v19061_v23  ;;  %16758 = vmatpush3.bf16.msra.mxu0 %v19064_v24 }
 0x23d   : > { %16759 = vmatprep.subr.bf16.mxu0 %v19065_v31  ;;  %18559 = vmatprep.subr.bf16.mxu1 %v21423_v7 }
 0x23e   : > { %5895 = vmatmul.mubr.bf16.gmra.mrb[224].mxu1 %v21431_v57  ;;  %5976 = vmatmul.mubr.bf16.gmra.mrb[232].mxu0 %v21433_v45 }
 0x23f   : > { %5902 = vmatprep.mubr.bf16.mxu1 %v3503_v62  ;;  %5983 = vmatprep.mubr.bf16.mxu0 %v21431_v57  ;;  %v21454_v62 = vpack.c.bf16 %v3421_v56, %v3420_v21 }
 0x240   : > { %16760 = vmatpush3.bf16.msra.mxu0 %v19067_v28  ;;  %v19082_v28 = vld [vmem:[%s24791_s5] sm:$0xff]  }
 0x241   : > { %16761 = vmatprep.subr.bf16.mxu0 %v19068_v6 }
 0x244   : > { %16762 = vmatpush3.bf16.msra.mxu0 %v19069_v10  ;;  %v3692_v10 = vpack.c.bf16 %v21242_v51, %v3670_v61  ;;  %v3673_v51 = vld [vmem:[#allocation2 + $0x190] sm:$0xff] }
 0x245   : > { %16763 = vmatprep.subr.bf16.mxu0 %v19070_v59 }
 0x246   : > { %5903 = vmatmul.mubr.bf16.gmra.mrb[228].mxu1 %v21454_v62  ;;  %5984 = vmatmul.mubr.bf16.gmra.mrb[236].mxu0 %v21456_v8 }
 0x247   : > { %5910 = vmatprep.mubr.bf16.mxu1 %v3504_v4  ;;  %5991 = vmatprep.mubr.bf16.mxu0 %v21454_v62  ;;  %v3424_v4 = vld [vmem:[#allocation2 + $0x1e7] sm:$0xff] }
 0x248   : > { %16764 = vmatpush3.bf16.msra.mxu0 %v19072_v40  ;;  %v21480_v48 = vpack.c.bf16 %v3425_v13, %v3424_v4  ;;  %v19079_v40 = vld [vmem:[%s24789_s3 + $0x230] sm:$0xff]  }
 0x249   : > { %16765 = vmatprep.subr.bf16.mxu0 %v19073_v19  ;;  %v19084_v19 = vld [vmem:[%s24791_s5 + $0x8] sm:$0xff]  }
 0x24c   : > { %16766 = vmatpush3.bf16.msra.mxu0 %v19074_v33 }
 0x24d   : > { %16831 = vmatprep.subr.bf16.mxu0 %v19081_v52 }
 0x24e   : > { %5911 = vmatmul.mubr.bf16.gmra.mrb[232].mxu1 %v21467_v42  ;;  %5992 = vmatmul.mubr.bf16.gmra.mrb[240].mxu0 %v21469_v46 }
 0x24f   : > { %5918 = vmatprep.mubr.bf16.mxu1 %v3505_v30  ;;  %5999 = vmatprep.mubr.bf16.mxu0 %v21467_v42  ;;  %v3617_v30 = vld [vmem:[#allocation2 + $0x20f] sm:$0xff] }
 0x250   : > { %v21490_v0 = vpack.c.bf16 %v3617_v30, %v3616_v17  ;;  %v3693_v17 = vpack.c.bf16 %v3673_v51, %v3672_v15 }
 0x256   : > { %5919 = vmatmul.mubr.bf16.gmra.mrb[236].mxu1 %v21480_v48  ;;  %6000 = vmatmul.mubr.bf16.gmra.mrb[244].mxu0 %v21482_v47 }
 0x257   : > { %6007 = vmatprep.mubr.bf16.mxu0 %v21480_v48  ;;  %6056 = vmatprep.mubr.bf16.mxu1 %v21319_v14  ;;  %v3669_v14 = vld [vmem:[#allocation2 + $0x150] sm:$0xff] }
 0x258   : > { %v3691_v58 = vpack.c.bf16 %v3669_v14, %v3668_v2  ;;  %v19089_v2 = vld [vmem:[%s24791_s5 + $0x58] sm:$0xff]  }
 0x25e   : > { %6008 = vmatmul.mubr.bf16.gmra.mrb[248].mxu0 %v21488_v3  ;;  %6057 = vmatmul.mubr.bf16.vlgmr.msra.gmra.mrb[240].mxu1 %v21223_v43  ;;  %v19076_v43 = vld [vmem:[%s24789_s3 + $0x218] sm:$0xff]  }
 0x25f   : > { %6015 = vmatprep.mubr.bf16.mxu0 %v21490_v0  ;;  %6064 = vmatprep.mubr.bf16.mxu1 %v21433_v45 }
 0x260   : > { %18560 = vmatpush3.bf16.msra.mxu1 %v21423_v7 }
 0x261   : > { %18561 = vmatprep.subr.bf16.mxu1 %v19071_v29 }
 0x264   : > { %18562 = vmatpush3.bf16.msra.mxu1 %v19071_v29  ;;  %v19087_v29 = vld [vmem:[%s24791_s5 + $0x10] sm:$0xff]  }
 0x265   : > { %18563 = vmatprep.subr.bf16.mxu1 %v19075_v12 }
 0x266   : > { %6016 = vmatmul.mubr.bf16.gmra.mrb[252].mxu0 %v21503_v39  ;;  %6065 = vmatmul.mubr.bf16.gmra.mrb[244].mxu1 %v3691_v58 }
 0x267   : > { %6072 = vmatprep.mubr.bf16.mxu1 %v21456_v8  ;;  %6153 = vmatprep.mubr.bf16.mxu0 %v3691_v58 }
 0x268   : > { %v16309_v9 = vpop.f32.mrb[148].mxu0  ;;  %18564 = vmatpush3.bf16.msra.mxu1 %v19075_v12 }
 0x269   : > { %v16310_v5 = vpop.f32.mrb[149].mxu0  ;;  %v16367_v38 = vpop.f32.mrb[144].mxu1  ;;  %18565 = vmatprep.subr.bf16.mxu1 %v19076_v43 }
 0x26a   : > { %v16311_v23 = vadd.f32 %v16310_v5, %v16309_v9  ;;  %v16312_v24 = vpop.f32.mrb[150].mxu0  ;;  %v16368_v22 = vpop.f32.mrb[145].mxu1  ;;  %v3866_v9 = vld [vmem:[#allocation2 + $0x1b0] sm:$0xff]  ;;  %v19091_v5 = vld [vmem:[%s24791_s5 + $0x18] sm:$0xff]  }
 0x26b   : > { %v16313_v31 = vpop.f32.mrb[151].mxu0  ;;  %v16369_v7 = vadd.f32 %v16368_v22, %v16367_v38  ;;  %v16370_v25 = vpop.f32.mrb[146].mxu1 }
 0x26c   : > { %v16314_v6 = vadd.f32 %v16313_v31, %v16312_v24  ;;  %v16371_v20 = vpop.f32.mrb[147].mxu1  ;;  %18566 = vmatpush3.bf16.msra.mxu1 %v19076_v43  ;;  %v4669_v36 = vadd.f32 %v16311_v23, %v21512_v18  ;;  %v3674_v43 = vld [vmem:[#allocation2 + $0x1a8] sm:$0xff] }
 0x26d   : > { %v21532_v56 = vadd.f32 %v16369_v7, %v4661_v55  ;;  %v16372_v59 = vadd.f32 %v16371_v20, %v16370_v25  ;;  %18567 = vmatprep.subr.bf16.mxu1 %v19077_v35  ;;  %v19086_v55 = vld [vmem:[%s24791_s5 + $0xc0] sm:$0xff]   ;;  %v19097_v20 = vld [vmem:[%s24791_s5 + $0x68] sm:$0xff]  }
 0x26e   : > { %6073 = vmatmul.mubr.bf16.gmra.mrb[248].mxu1 %v3692_v10  ;;  %6154 = vmatmul.mubr.bf16.vlgmr.msra.gmra.mrb[0].mxu0 %v21362_v63  ;;  %v19085_v63 = vld [vmem:[%s24791_s5 + $0x50] sm:$0xff]   ;;  %v4672_v14 = vadd.f32 %v16314_v6, %v21512_v18  ;;  %v3694_v6 = vpack.c.bf16 %v21279_v53, %v3674_v43  ;;  %v3886_v10 = vpack.c.bf16 %v3866_v9, %v3674_v43  ;;  %v19099_v53 = vld [vmem:[%s24791_s5 + $0x28] sm:$0xff]  }
 0x26f   : > { %6080 = vmatprep.mubr.bf16.mxu1 %v21469_v46  ;;  %6161 = vmatprep.mubr.bf16.mxu0 %v3884_v50  ;;  %v21536_v21 = vadd.f32 %v16372_v59, %v4664_v16  ;;  %v3870_v43 = vld [vmem:[#allocation2 + $0x1f0] sm:$0xff] }
 0x270   : > { %v16315_v33 = vpop.f32.mrb[152].mxu0  ;;  %18568 = vmatpush3.bf16.msra.mxu1 %v19077_v35  ;;  %16832 = vmatpush3.bf16.msra.mxu0 %v19082_v28 }
 0x271   : > { %v16373_v41 = vpop.f32.mrb[148].mxu1  ;;  %v16316_v49 = vpop.f32.mrb[153].mxu0  ;;  %18569 = vmatprep.subr.bf16.mxu1 %v19078_v60  ;;  %16833 = vmatprep.subr.bf16.mxu0 %v19083_v26 }
 0x272   : > { %v16317_v54 = vadd.f32 %v16316_v49, %v16315_v33  ;;  %v16374_v37 = vpop.f32.mrb[149].mxu1  ;;  %v16318_v52 = vpop.f32.mrb[154].mxu0  ;;  %v19101_v33 = vld [vmem:[%s24791_s5 + $0x70] sm:$0xff]   ;;  %v3676_v49 = vld [vmem:[#allocation2 + $0x1c8] sm:$0xff] }
 0x273   : > { %v16375_v44 = vadd.f32 %v16374_v37, %v16373_v41  ;;  %v16376_v4 = vpop.f32.mrb[150].mxu1  ;;  %v16319_v13 = vpop.f32.mrb[155].mxu0 }
 0x274   : > { %v16320_v27 = vadd.f32 %v16319_v13, %v16318_v52  ;;  %v16377_v30 = vpop.f32.mrb[151].mxu1  ;;  %18570 = vmatpush3.bf16.msra.mxu1 %v19078_v60  ;;  %16834 = vmatpush3.bf16.msra.mxu0 %v19084_v19  ;;  %v4677_v16 = vadd.f32 %v16317_v54, %v21512_v18  ;;  %v19103_v52 = vld [vmem:[%s24791_s5 + $0x30] sm:$0xff]  }
 0x275   : > { %v21552_v12 = vadd.f32 %v16375_v44, %v4669_v36  ;;  %v16378_v1 = vadd.f32 %v16377_v30, %v16376_v4  ;;  %18571 = vmatprep.subr.bf16.mxu1 %v19079_v40  ;;  %16835 = vmatprep.subr.bf16.mxu0 %v19085_v63 }
 0x276   : > { %6081 = vmatmul.mubr.bf16.gmra.mrb[252].mxu1 %v3693_v17  ;;  %6162 = vmatmul.mubr.bf16.gmra.mrb[4].mxu0 %v21403_v32  ;;  %v19093_v32 = vld [vmem:[%s24791_s5 + $0x60] sm:$0xff]   ;;  %v4680_v26 = vadd.f32 %v16320_v27, %v21512_v18 }
 0x277   : > { %v21561_v58 = vadd.f32 %v16378_v1, %v4672_v14  ;;  %6088 = vmatprep.mubr.bf16.mxu1 %v21482_v47  ;;  %6169 = vmatprep.mubr.bf16.mxu0 %v3693_v17  ;;  %v19105_v17 = vld [vmem:[%s24791_s5 + $0x78] sm:$0xff]  }
 0x278   : > { %v16321_v38 = vpop.f32.mrb[156].mxu0  ;;  %18572 = vmatpush3.bf16.msra.mxu1 %v19079_v40  ;;  %16836 = vmatpush3.bf16.msra.mxu0 %v19087_v29  ;;  %v3677_v40 = vld [vmem:[#allocation2 + $0x1d0] sm:$0xff] }
 0x279   : > { %v16379_v61 = vpop.f32.mrb[152].mxu1  ;;  %v16322_v35 = vpop.f32.mrb[157].mxu0  ;;  %18573 = vmatprep.subr.bf16.mxu1 %v19080_v11  ;;  %16837 = vmatprep.subr.bf16.mxu0 %v19089_v2  ;;  %v3695_v30 = vpack.c.bf16 %v3677_v40, %v3676_v49  ;;  %v3678_v2 = vld [vmem:[#allocation2 + $0x1e8] sm:$0xff] }
 0x27a   : > { %v16323_v23 = vadd.f32 %v16322_v35, %v16321_v38  ;;  %v16380_v24 = vpop.f32.mrb[153].mxu1  ;;  %v16324_v22 = vpop.f32.mrb[158].mxu0  ;;  %v19107_v38 = vld [vmem:[%s24791_s5 + $0x38] sm:$0xff]  }
 0x27b   : > { %v16381_v31 = vadd.f32 %v16380_v24, %v16379_v61  ;;  %v16382_v7 = vpop.f32.mrb[154].mxu1  ;;  %v16325_v25 = vpop.f32.mrb[159].mxu0 }
 0x27c   : > { %v16326_v60 = vadd.f32 %v16325_v25, %v16324_v22  ;;  %v16383_v28 = vpop.f32.mrb[155].mxu1  ;;  %18574 = vmatpush3.bf16.msra.mxu1 %v19080_v11  ;;  %16838 = vmatpush3.bf16.msra.mxu0 %v19091_v5  ;;  %v4685_v36 = vadd.f32 %v16323_v23, %v21512_v18  ;;  %v3745_v5 = vld [vmem:[#allocation2 + $0x211] sm:$0xff] }
 0x27d   : > { %v21582_v50 = vadd.f32 %v16381_v31, %v4677_v16  ;;  %v16384_v59 = vadd.f32 %v16383_v28, %v16382_v7  ;;  %16895 = vmatprep.subr.bf16.mxu1 %v19086_v55  ;;  %16839 = vmatprep.subr.bf16.mxu0 %v19093_v32  ;;  %v3744_v55 = vld [vmem:[#allocation2 + $0x209] sm:$0xff]  ;;  %v3888_v28 = vpack.c.bf16 %v3870_v43, %v3678_v2 }
 0x27e   : > { %6089 = vmatmul.mubr.bf16.gmra.mrb[0].mxu1 %v3694_v6  ;;  %6170 = vmatmul.mubr.bf16.gmra.mrb[8].mxu0 %v21431_v57  ;;  %v4688_v29 = vadd.f32 %v16326_v60, %v21512_v18  ;;  %v19642_v25 = vld [vmem:[#allocation2 + $0x1f0] sm:$0xff] }
 0x27f   : > { %v21588_v51 = vadd.f32 %v16384_v59, %v4680_v26  ;;  %6096 = vmatprep.mubr.bf16.mxu1 %v21488_v3  ;;  %6177 = vmatprep.mubr.bf16.mxu0 %v3886_v10  ;;  %v3696_v60 = vpack.c.bf16 %v19642_v25, %v3678_v2  ;;  %v21615_v26 = vpack.c.bf16 %v3745_v5, %v3744_v55  ;;  %v19113_v59 = vld [vmem:[%s24791_s5 + $0x140] sm:$0xff]   ;;  %v3810_v25 = vld [vmem:[#allocation2 + $0x22f] sm:$0xff] }
 0x280   : > { %v16327_v19 = vpop.f32.mrb[160].mxu0  ;;  %16840 = vmatpush3.bf16.msra.mxu0 %v19095_v34 }
 0x281   : > { %v16385_v63 = vpop.f32.mrb[156].mxu1  ;;  %v16328_v41 = vpop.f32.mrb[161].mxu0  ;;  %16841 = vmatprep.subr.bf16.mxu0 %v19097_v20 }
 0x282   : > { %v16329_v57 = vadd.f32 %v16328_v41, %v16327_v19  ;;  %v16386_v54 = vpop.f32.mrb[157].mxu1  ;;  %v16330_v37 = vpop.f32.mrb[162].mxu0 }
 0x283   : > { %v16387_v44 = vadd.f32 %v16386_v54, %v16385_v63  ;;  %v16388_v4 = vpop.f32.mrb[158].mxu1  ;;  %v16331_v13 = vpop.f32.mrb[163].mxu0  ;;  %v3681_v63 = vld [vmem:[#allocation2 + $0x210] sm:$0xff]  ;;  %v3680_v54 = vld [vmem:[#allocation2 + $0x208] sm:$0xff] }
 0x284   : > { %v16332_v15 = vadd.f32 %v16331_v13, %v16330_v37  ;;  %v16389_v27 = vpop.f32.mrb[159].mxu1  ;;  %16842 = vmatpush3.bf16.msra.mxu0 %v19099_v53  ;;  %v4693_v24 = vadd.f32 %v16329_v57, %v21512_v18  ;;  %v3697_v13 = vpack.c.bf16 %v3681_v63, %v3680_v54 }
 0x285   : > { %v21602_v14 = vadd.f32 %v16387_v44, %v4685_v36  ;;  %v16390_v1 = vadd.f32 %v16389_v27, %v16388_v4  ;;  %16843 = vmatprep.subr.bf16.mxu0 %v19101_v33 }
 0x286   : > { %6097 = vmatmul.mubr.bf16.gmra.mrb[4].mxu1 %v3695_v30  ;;  %6178 = vmatmul.mubr.bf16.gmra.mrb[12].mxu0 %v21454_v62  ;;  %v4696_v6 = vadd.f32 %v16332_v15, %v21512_v18 }
 0x287   : > { %v21605_v11 = vadd.f32 %v16390_v1, %v4688_v29  ;;  %6104 = vmatprep.mubr.bf16.mxu1 %v21503_v39  ;;  %6185 = vmatprep.mubr.bf16.mxu0 %v3695_v30 }
 0x288   : > { %v16333_v9 = vpop.f32.mrb[164].mxu0  ;;  %16844 = vmatpush3.bf16.msra.mxu0 %v19103_v52 }
 0x289   : > { %v16391_v32 = vpop.f32.mrb[160].mxu1  ;;  %v16334_v61 = vpop.f32.mrb[165].mxu0  ;;  %16845 = vmatprep.subr.bf16.mxu0 %v19105_v17 }
 0x28a   : > { %v16335_v35 = vadd.f32 %v16334_v61, %v16333_v9  ;;  %v16392_v62 = vpop.f32.mrb[161].mxu1  ;;  %v16336_v23 = vpop.f32.mrb[166].mxu0 }
 0x28b   : > { %v16393_v22 = vadd.f32 %v16392_v62, %v16391_v32  ;;  %v16394_v34 = vpop.f32.mrb[162].mxu1  ;;  %v16337_v16 = vpop.f32.mrb[167].mxu0 }
 0x28c   : > { %v16338_v31 = vadd.f32 %v16337_v16, %v16336_v23  ;;  %v16395_v7 = vpop.f32.mrb[163].mxu1  ;;  %16846 = vmatpush3.bf16.msra.mxu0 %v19107_v38  ;;  %v4701_v37 = vadd.f32 %v16335_v35, %v21512_v18  ;;  %v19643_v35 = vld [vmem:[#allocation2] sm:$0xff]  ;;  %v19090_v16 = vld [vmem:[%s24791_s5 + $0xc8] sm:$0xff]  }
 0x28d   : > { %v21613_v10 = vadd.f32 %v16393_v22, %v4693_v24  ;;  %v16396_v20 = vadd.f32 %v16395_v7, %v16394_v34  ;;  %16959 = vmatprep.subr.bf16.mxu0 %v19113_v59  ;;  %v3890_v62 = vpack.c.bf16 %v19643_v35, %v19643_v35  ;;  %v19088_v24 = vld [vmem:[%s24791_s5 + $0x80] sm:$0xff]  }
 0x28e   : > { %6105 = vmatmul.mubr.bf16.gmra.mrb[8].mxu1 %v3696_v60  ;;  %6186 = vmatmul.mubr.bf16.gmra.mrb[16].mxu0 %v21467_v42  ;;  %v4704_v15 = vadd.f32 %v16338_v31, %v21512_v18  ;;  %v3809_v31 = vld [vmem:[#allocation2 + $0x227] sm:$0xff] }
 0x28f   : > { %v21621_v53 = vadd.f32 %v16396_v20, %v4696_v6  ;;  %6112 = vmatprep.mubr.bf16.mxu1 %v21615_v26  ;;  %6193 = vmatprep.mubr.bf16.mxu0 %v3888_v28  ;;  %v19092_v28 = vld [vmem:[%s24791_s5 + $0x88] sm:$0xff]  }
 0x290   : > { %v16339_v40 = vpop.f32.mrb[168].mxu0 }
 0x291   : > { %v16397_v19 = vpop.f32.mrb[164].mxu1  ;;  %v16340_v33 = vpop.f32.mrb[169].mxu0 }
 0x292   : > { %v16341_v41 = vadd.f32 %v16340_v33, %v16339_v40  ;;  %v16398_v49 = vpop.f32.mrb[165].mxu1  ;;  %v16342_v57 = vpop.f32.mrb[170].mxu0 }
 0x293   : > { %v16399_v52 = vadd.f32 %v16398_v49, %v16397_v19  ;;  %v16400_v36 = vpop.f32.mrb[166].mxu1  ;;  %v16343_v44 = vpop.f32.mrb[171].mxu0  ;;  %v3826_v19 = vpack.c.bf16 %v3810_v25, %v3809_v31 }
 0x294   : > { %v16344_v42 = vadd.f32 %v16343_v44, %v16342_v57  ;;  %v16401_v4 = vpop.f32.mrb[167].mxu1  ;;  %v4709_v5 = vadd.f32 %v16341_v41, %v21512_v18 }
 0x295   : > { %v21626_v27 = vadd.f32 %v16399_v52, %v4701_v37  ;;  %v16402_v30 = vadd.f32 %v16401_v4, %v16400_v36  ;;  %v19096_v37 = vld [vmem:[%s24791_s5 + $0x90] sm:$0xff]  }
 0x296   : > { %6113 = vmatmul.mubr.bf16.gmra.mrb[12].mxu1 %v3697_v13  ;;  %6194 = vmatmul.mubr.bf16.gmra.mrb[20].mxu0 %v21480_v48 }
 0x297   : > { %v21629_v17 = vadd.f32 %v16402_v30, %v4704_v15  ;;  %6201 = vmatprep.mubr.bf16.mxu0 %v3697_v13  ;;  %18575 = vmatprep.mubr.bf16.mxu1 %v21433_v45  ;;  %v4712_v45 = vadd.f32 %v16344_v42, %v21512_v18  ;;  %v19098_v42 = vld [vmem:[%s24791_s5 + $0xd8] sm:$0xff]  }
 0x298   : > { %v16345_v29 = vpop.f32.mrb[172].mxu0  ;;  %v19100_v30 = vld [vmem:[%s24791_s5 + $0x98] sm:$0xff]  }
 0x299   : > { %v16403_v1 = vpop.f32.mrb[168].mxu1  ;;  %v16346_v2 = vpop.f32.mrb[173].mxu0 }
 0x29a   : > { %v16347_v43 = vadd.f32 %v16346_v2, %v16345_v29  ;;  %v16404_v9 = vpop.f32.mrb[169].mxu1  ;;  %v16348_v55 = vpop.f32.mrb[174].mxu0 }
 0x29b   : > { %v16405_v38 = vadd.f32 %v16404_v9, %v16403_v1  ;;  %v16406_v32 = vpop.f32.mrb[170].mxu1  ;;  %v16349_v61 = vpop.f32.mrb[175].mxu0 }
 0x29c   : > { %v16350_v23 = vadd.f32 %v16349_v61, %v16348_v55  ;;  %v16407_v48 = vpop.f32.mrb[171].mxu1  ;;  %v19115_v61 = vld [vmem:[%s24791_s5 + $0x100] sm:$0xff]  }
 0x29d   : > { %v21637_v22 = vadd.f32 %v16405_v38, %v4709_v5  ;;  %v16408_v34 = vadd.f32 %v16407_v48, %v16406_v32  ;;  %v19106_v32 = vld [vmem:[%s24791_s5 + $0xe8] sm:$0xff]  }
 0x29e   : > { %6202 = vmatmul.mubr.bf16.gmra.mrb[24].mxu0 %v21490_v0  ;;  %18576 = vmatmul.mubr.bf16.vlgmr.msra.gmra.mrb[16].mxu1 %v21456_v8  ;;  %v19094_v8 = vld [vmem:[%s24791_s5 + $0xd0] sm:$0xff]   ;;  %v4720_v52 = vadd.f32 %v16350_v23, %v21512_v18  ;;  %v19117_v48 = vld [vmem:[%s24791_s5 + $0x148] sm:$0xff]  }
 0x29f   : > { %v21644_v7 = vadd.f32 %v16408_v34, %v4712_v45  ;;  %18579 = vmatprep.mubr.bf16.mxu1 %v21469_v46  ;;  %6209 = vmatprep.mubr.bf16.mxu0 %v3890_v62  ;;  %v4717_v46 = vadd.f32 %v16347_v43, %v21512_v18  ;;  %v6380_v18 = vld [vmem:[#allocation2 + $0xf] sm:$0xff] }
 0x2a0   : > { %v16431_v60 = vpop.f32.mrb[176].mxu0  ;;  %16896 = vmatpush3.bf16.msra.mxu1 %v19088_v24  ;;  %v3937_v45 = vld [vmem:[#allocation2 + $0x229] sm:$0xff]  ;;  %v3938_v34 = vld [vmem:[#allocation2 + $0x231] sm:$0xff] }
 0x2a1   : > { %v16409_v6 = vpop.f32.mrb[172].mxu1  ;;  %v16432_v20 = vpop.f32.mrb[177].mxu0  ;;  %16897 = vmatprep.subr.bf16.mxu1 %v19090_v16 }
 0x2a2   : > { %v16410_v0 = vpop.f32.mrb[173].mxu1  ;;  %v16433_v59 = vadd.f32 %v16432_v20, %v16431_v60  ;;  %v16434_v40 = vpop.f32.mrb[178].mxu0  ;;  %v19118_v60 = vld [vmem:[%s24791_s5 + $0x108] sm:$0xff]  }
 0x2a3   : > { %v16411_v33 = vadd.f32 %v16410_v0, %v16409_v6  ;;  %v16412_v63 = vpop.f32.mrb[174].mxu1  ;;  %v16435_v41 = vpop.f32.mrb[179].mxu0 }
 0x2a4   : > { %v4855_v49 = vadd.f32 %v16433_v59, %v21532_v56  ;;  %v16413_v57 = vpop.f32.mrb[175].mxu1  ;;  %v16436_v54 = vadd.f32 %v16435_v41, %v16434_v40  ;;  %16898 = vmatpush3.bf16.msra.mxu1 %v19092_v28  ;;  %v6379_v56 = vld [vmem:[#allocation2 + $0x7] sm:$0xff]  ;;  %v3954_v59 = vpack.c.bf16 %v3938_v34, %v3937_v45  ;;  %v19110_v40 = vld [vmem:[%s24791_s5 + $0xb0] sm:$0xff]  }
 0x2a5   : > { %v21659_v36 = vadd.f32 %v16411_v33, %v4717_v46  ;;  %v16414_v44 = vadd.f32 %v16413_v57, %v16412_v63  ;;  %16899 = vmatprep.subr.bf16.mxu1 %v19094_v8  ;;  %v6411_v9 = vpack.c.bf16 %v6380_v18, %v6379_v56  ;;  %v19111_v63 = vld [vmem:[%s24791_s5 + $0xf8] sm:$0xff]   ;;  %v19121_v41 = vld [vmem:[%s24791_s5 + $0x110] sm:$0xff]   ;;  %v19114_v18 = vld [vmem:[%s24791_s5 + $0x1c0] sm:$0xff]  }
 0x2a6   : > { %v4858_v4 = vadd.f32 %v16436_v54, %v21536_v21  ;;  %6210 = vmatmul.mubr.bf16.gmra.mrb[28].mxu0 %v3826_v19  ;;  %18580 = vmatmul.mubr.bf16.gmra.mrb[20].mxu1 %v21482_v47  ;;  %v19102_v47 = vld [vmem:[%s24791_s5 + $0xe0] sm:$0xff]  }
 0x2a7   : > { %v21666_v13 = vadd.f32 %v16414_v44, %v4720_v52  ;;  %18583 = vmatprep.mubr.bf16.mxu1 %v21488_v3  ;;  %7642 = vmatprep.mubr.bf16.mxu0 %v3890_v62  ;;  %v19104_v3 = vld [vmem:[%s24791_s5 + $0xa0] sm:$0xff]  }
 0x2a8   : > { %v16437_v15 = vpop.f32.mrb[180].mxu0  ;;  %16900 = vmatpush3.bf16.msra.mxu1 %v19096_v37  ;;  %v19123_v37 = vld [vmem:[%s24791_s5 + $0x158] sm:$0xff]  }
 0x2a9   : > { %v16495_v29 = vpop.f32.mrb[176].mxu1  ;;  %v16438_v1 = vpop.f32.mrb[181].mxu0  ;;  %16901 = vmatprep.subr.bf16.mxu1 %v19098_v42  ;;  %v19124_v42 = vld [vmem:[%s24791_s5 + $0x118] sm:$0xff]  }
 0x2aa   : > { %v16439_v21 = vadd.f32 %v16438_v1, %v16437_v15  ;;  %v16496_v2 = vpop.f32.mrb[177].mxu1  ;;  %v16440_v43 = vpop.f32.mrb[182].mxu0  ;;  %v19127_v1 = vld [vmem:[%s24791_s5 + $0x120] sm:$0xff]  }
 0x2ab   : > { %v16497_v55 = vadd.f32 %v16496_v2, %v16495_v29  ;;  %v16498_v5 = vpop.f32.mrb[178].mxu1  ;;  %v16441_v38 = vpop.f32.mrb[183].mxu0 }
 0x2ac   : > { %v4863_v35 = vadd.f32 %v16439_v21, %v21552_v12  ;;  %v16442_v62 = vadd.f32 %v16441_v38, %v16440_v43  ;;  %v16499_v23 = vpop.f32.mrb[179].mxu1  ;;  %16902 = vmatpush3.bf16.msra.mxu1 %v19100_v30  ;;  %v19108_v12 = vld [vmem:[%s24791_s5 + $0xa8] sm:$0xff]   ;;  %v19125_v30 = vld [vmem:[%s24791_s5 + $0x160] sm:$0xff]  }
 0x2ad   : > { %v16500_v24 = vadd.f32 %v16499_v23, %v16498_v5  ;;  %v21688_v16 = vadd.f32 %v16497_v55, %v4855_v49  ;;  %16903 = vmatprep.subr.bf16.mxu1 %v19102_v47 }
 0x2ae   : > { %v4866_v31 = vadd.f32 %v16442_v62, %v21561_v58  ;;  %18584 = vmatmul.mubr.bf16.gmra.mrb[24].mxu1 %v21503_v39  ;;  %7643 = vmatmul.mubr.bf16.vlgmr.msra.gmra.mrb[32].mxu0 %v6411_v9  ;;  %v19119_v39 = vld [vmem:[%s24791_s5 + $0x150] sm:$0xff]   ;;  %v19131_v62 = vld [vmem:[%s24791_s5 + $0x128] sm:$0xff]  }
 0x2af   : > { %18587 = vmatprep.mubr.bf16.mxu1 %v21615_v26  ;;  %v21696_v25 = vadd.f32 %v16500_v24, %v4858_v4  ;;  %16960 = vmatpush3.bf16.msra.mxu0 %v19115_v61  ;;  %v19109_v26 = vld [vmem:[%s24791_s5 + $0xf0] sm:$0xff]  }
 0x2b0   : > { %v16443_v28 = vpop.f32.mrb[184].mxu0  ;;  %16904 = vmatpush3.bf16.msra.mxu1 %v19104_v3  ;;  %16961 = vmatprep.subr.bf16.mxu0 %v19117_v48  ;;  %v19133_v24 = vld [vmem:[%s24791_s5 + $0x170] sm:$0xff]  }
 0x2b1   : > { %v16501_v58 = vpop.f32.mrb[180].mxu1  ;;  %v16444_v6 = vpop.f32.mrb[185].mxu0  ;;  %16905 = vmatprep.subr.bf16.mxu1 %v19106_v32  ;;  %v19129_v32 = vld [vmem:[%s24791_s5 + $0x168] sm:$0xff]  }
 0x2b2   : > { %v16445_v20 = vadd.f32 %v16444_v6, %v16443_v28  ;;  %v16502_v8 = vpop.f32.mrb[181].mxu1  ;;  %v16446_v0 = vpop.f32.mrb[186].mxu0 }
 0x2b3   : > { %v16503_v19 = vadd.f32 %v16502_v8, %v16501_v58  ;;  %v16504_v46 = vpop.f32.mrb[182].mxu1  ;;  %v16447_v33 = vpop.f32.mrb[187].mxu0  ;;  %16962 = vmatpush3.bf16.msra.mxu0 %v19118_v60  ;;  %v19137_v8 = vld [vmem:[%s24791_s5 + $0x178] sm:$0xff]  }
 0x2b4   : > { %v4871_v49 = vadd.f32 %v16445_v20, %v21582_v50  ;;  %v16448_v57 = vadd.f32 %v16447_v33, %v16446_v0  ;;  %v16505_v54 = vpop.f32.mrb[183].mxu1  ;;  %16906 = vmatpush3.bf16.msra.mxu1 %v19108_v12  ;;  %16963 = vmatprep.subr.bf16.mxu0 %v19119_v39  ;;  %v19112_v50 = vld [vmem:[%s24791_s5 + $0xb8] sm:$0xff]  }
 0x2b5   : > { %v16506_v52 = vadd.f32 %v16505_v54, %v16504_v46  ;;  %v21720_v44 = vadd.f32 %v16503_v19, %v4863_v35  ;;  %16907 = vmatprep.subr.bf16.mxu1 %v19109_v26 }
 0x2b6   : > { %v4874_v4 = vadd.f32 %v16448_v57, %v21588_v51  ;;  %18588 = vmatmul.mubr.bf16.gmra.mrb[28].mxu1 %v3954_v59 }
 0x2b7   : > { %v21729_v56 = vadd.f32 %v16506_v52, %v4866_v31  ;;  %16964 = vmatpush3.bf16.msra.mxu0 %v19121_v41  ;;  %v19135_v31 = vld [vmem:[%s24791_s5 + $0x130] sm:$0xff]  }
 0x2b8   : > { %v16449_v15 = vpop.f32.mrb[188].mxu0  ;;  %16908 = vmatpush3.bf16.msra.mxu1 %v19110_v40  ;;  %16965 = vmatprep.subr.bf16.mxu0 %v19123_v37  ;;  %v19139_v40 = vld [vmem:[%s24791_s5 + $0x138] sm:$0xff]  }
 0x2b9   : > { %v16507_v51 = vpop.f32.mrb[184].mxu1  ;;  %v16450_v29 = vpop.f32.mrb[189].mxu0  ;;  %16909 = vmatprep.subr.bf16.mxu1 %v19111_v63 }
 0x2ba   : > { %v16451_v47 = vadd.f32 %v16450_v29, %v16449_v15  ;;  %v16508_v21 = vpop.f32.mrb[185].mxu1  ;;  %v16452_v2 = vpop.f32.mrb[190].mxu0  ;;  %v21776_v15 = vld [vmem:[%s24791_s5 + $0x200] sm:$0xff]  }
 0x2bb   : > { %v16509_v43 = vadd.f32 %v16508_v21, %v16507_v51  ;;  %v16510_v3 = vpop.f32.mrb[186].mxu1  ;;  %v16453_v9 = vpop.f32.mrb[191].mxu0  ;;  %16966 = vmatpush3.bf16.msra.mxu0 %v19124_v42 }
 0x2bc   : > { %v4879_v55 = vadd.f32 %v16451_v47, %v21602_v14  ;;  %v16454_v5 = vadd.f32 %v16453_v9, %v16452_v2  ;;  %v16511_v38 = vpop.f32.mrb[187].mxu1  ;;  %16910 = vmatpush3.bf16.msra.mxu1 %v19112_v50  ;;  %16967 = vmatprep.subr.bf16.mxu0 %v19125_v30 }
 0x2bd   : > { %v16512_v61 = vadd.f32 %v16511_v38, %v16510_v3  ;;  %v21744_v35 = vadd.f32 %v16509_v43, %v4871_v49  ;;  %17023 = vmatprep.subr.bf16.mxu1 %v19114_v18 }
 0x2be   : > { %v4882_v23 = vadd.f32 %v16454_v5, %v21605_v11 }
 0x2bf   : > { %v21750_v48 = vadd.f32 %v16512_v61, %v4874_v4  ;;  %16968 = vmatpush3.bf16.msra.mxu0 %v19127_v1 }
 0x2c0   : > { %v16455_v14 = vpop.f32.mrb[192].mxu0  ;;  %16969 = vmatprep.subr.bf16.mxu0 %v19129_v32 }
 0x2c1   : > { %v16513_v45 = vpop.f32.mrb[188].mxu1  ;;  %v16456_v34 = vpop.f32.mrb[193].mxu0 }
 0x2c2   : > { %v16457_v12 = vadd.f32 %v16456_v34, %v16455_v14  ;;  %v16514_v60 = vpop.f32.mrb[189].mxu1  ;;  %v16458_v28 = vpop.f32.mrb[194].mxu0 }
 0x2c3   : > { %v16515_v39 = vadd.f32 %v16514_v60, %v16513_v45  ;;  %v16516_v11 = vpop.f32.mrb[190].mxu1  ;;  %v16459_v58 = vpop.f32.mrb[195].mxu0  ;;  %16970 = vmatpush3.bf16.msra.mxu0 %v19131_v62 }
 0x2c4   : > { %v4887_v6 = vadd.f32 %v16457_v12, %v21613_v10  ;;  %v16460_v26 = vadd.f32 %v16459_v58, %v16458_v28  ;;  %v16517_v20 = vpop.f32.mrb[191].mxu1  ;;  %16971 = vmatprep.subr.bf16.mxu0 %v19133_v24 }
 0x2c5   : > { %v16518_v0 = vadd.f32 %v16517_v20, %v16516_v11  ;;  %v21762_v59 = vadd.f32 %v16515_v39, %v4879_v55 }
 0x2c6   : > { %v4890_v19 = vadd.f32 %v16460_v26, %v21621_v53 }
 0x2c7   : > { %v21768_v46 = vadd.f32 %v16518_v0, %v4882_v23  ;;  %16972 = vmatpush3.bf16.msra.mxu0 %v19135_v31 }
 0x2c8   : > { %v16461_v10 = vpop.f32.mrb[196].mxu0  ;;  %16973 = vmatprep.subr.bf16.mxu0 %v19137_v8 }
 0x2c9   : > { %v16519_v33 = vpop.f32.mrb[192].mxu1  ;;  %v16462_v63 = vpop.f32.mrb[197].mxu0 }
 0x2ca   : > { %v16463_v41 = vadd.f32 %v16462_v63, %v16461_v10  ;;  %v16520_v49 = vpop.f32.mrb[193].mxu1  ;;  %v16464_v57 = vpop.f32.mrb[198].mxu0 }
 0x2cb   : > { %v16521_v54 = vadd.f32 %v16520_v49, %v16519_v33  ;;  %v16522_v37 = vpop.f32.mrb[194].mxu1  ;;  %v16465_v52 = vpop.f32.mrb[199].mxu0  ;;  %16974 = vmatpush3.bf16.msra.mxu0 %v19139_v40 }
 0x2cc   : > { %v4895_v42 = vadd.f32 %v16463_v41, %v21626_v27  ;;  %v16466_v4 = vadd.f32 %v16465_v52, %v16464_v57  ;;  %v16523_v50 = vpop.f32.mrb[195].mxu1  ;;  %18591 = vmatprep.subr.bf16.mxu0 %v21776_v15 }
 0x2cd   : > { %v16524_v18 = vadd.f32 %v16523_v50, %v16522_v37  ;;  %v21771_v53 = vadd.f32 %v16521_v54, %v4887_v6 }
 0x2ce   : > { %v4898_v30 = vadd.f32 %v16466_v4, %v21629_v17 }
 0x2cf   : > { %v21779_v51 = vadd.f32 %v16524_v18, %v4890_v19 }
 0x2d0   : > { %v16467_v29 = vpop.f32.mrb[200].mxu0 }
 0x2d1   : > { %v16525_v1 = vpop.f32.mrb[196].mxu1  ;;  %v16468_v47 = vpop.f32.mrb[201].mxu0 }
 0x2d2   : > { %v16469_v27 = vadd.f32 %v16468_v47, %v16467_v29  ;;  %v16526_v21 = vpop.f32.mrb[197].mxu1  ;;  %v16470_v2 = vpop.f32.mrb[202].mxu0 }
 0x2d3   : > { %v16527_v43 = vadd.f32 %v16526_v21, %v16525_v1  ;;  %v16528_v3 = vpop.f32.mrb[198].mxu1  ;;  %v16471_v9 = vpop.f32.mrb[203].mxu0 }
 0x2d4   : > { %v4903_v55 = vadd.f32 %v16469_v27, %v21637_v22  ;;  %v16472_v5 = vadd.f32 %v16471_v9, %v16470_v2  ;;  %v16529_v38 = vpop.f32.mrb[199].mxu1 }
 0x2d5   : > { %v16530_v32 = vadd.f32 %v16529_v38, %v16528_v3  ;;  %v21783_v61 = vadd.f32 %v16527_v43, %v4895_v42 }
 0x2d6   : > { %v4906_v17 = vadd.f32 %v16472_v5, %v21644_v7  ;;  %v6508_v5 = vld [vmem:[#allocation2 + $0x11] sm:$0xff] }
 0x2d7   : > { %v21786_v62 = vadd.f32 %v16530_v32, %v4898_v30 }
 0x2d8   : > { %v16473_v23 = vpop.f32.mrb[204].mxu0 }
 0x2d9   : > { %v16531_v14 = vpop.f32.mrb[200].mxu1  ;;  %v16474_v24 = vpop.f32.mrb[205].mxu0 }
 0x2da   : > { %v16475_v45 = vadd.f32 %v16474_v24, %v16473_v23  ;;  %v16532_v34 = vpop.f32.mrb[201].mxu1  ;;  %v16476_v31 = vpop.f32.mrb[206].mxu0 }
 0x2db   : > { %v16533_v12 = vadd.f32 %v16532_v34, %v16531_v14  ;;  %v16534_v60 = vpop.f32.mrb[202].mxu1  ;;  %v16477_v28 = vpop.f32.mrb[207].mxu0 }
 0x2dc   : > { %v4911_v22 = vadd.f32 %v16475_v45, %v21659_v36  ;;  %v16478_v39 = vadd.f32 %v16477_v28, %v16476_v31  ;;  %v16535_v11 = vpop.f32.mrb[203].mxu1 }
 0x2dd   : > { %v16536_v58 = vadd.f32 %v16535_v11, %v16534_v60  ;;  %v21789_v6 = vadd.f32 %v16533_v12, %v4903_v55 }
 0x2de   : > { %v4914_v7 = vadd.f32 %v16478_v39, %v21666_v13 }
 0x2df   : > { %v21792_v26 = vadd.f32 %v16536_v58, %v4906_v17 }
 0x2e0   : > { %v18545_v20 = vpop.f32.mrb[208].mxu0 }
 0x2e1   : > { %v5057_v8 = vadd.f32 %v18545_v20, %v21720_v44  ;;  %v5048_v0 = vpop.f32.mrb[209].mxu0 }
 0x2e2   : > { %v5049_v40 = vadd.f32 %v5048_v0, %v21688_v16  ;;  %v18546_v19 = vpop.f32.mrb[210].mxu0 }
 0x2e3   : > { %vm5113_vm0 = vcmp.ge.f32.partialorder %v5057_v8, 0.0  ;;  %v5129_v10 = vmul.f32 0.01, %v5057_v8  ;;  %v5060_v36 = vadd.f32 %v18546_v19, %v21729_v56  ;;  %v5051_v33 = vpop.f32.mrb[211].mxu0 }
 0x2e4   : > { %vm5111_vm1 = vcmp.ge.f32.partialorder %v5049_v40, 0.0  ;;  %v5127_v63 = vmul.f32 0.01, %v5049_v40  ;;  %v5052_v41 = vadd.f32 %v5051_v33, %v21696_v25 }
 0x2e5   : > { %v21798_v49 = vsel %vm5113_vm0, %v5057_v8, %v5129_v10  ;;  %vm5114_vm2 = vcmp.ge.f32.partialorder %v5060_v36, 0.0  ;;  %v5130_v13 = vmul.f32 0.01, %v5060_v36 }
 0x2e6   : > { %5161 = vst [vmem:[#allocation2 + $0x48] sm:$0xff] %v21798_v49  ;;  %v5143_v44 = vsel %vm5111_vm1, %v5049_v40, %v5127_v63  ;;  %vm5112_vm3 = vcmp.ge.f32.partialorder %v5052_v41, 0.0  ;;  %v5128_v57 = vmul.f32 0.01, %v5052_v41 }
 0x2e7   : > { %5159 = vst [vmem:[#allocation2 + $0x28] sm:$0xff] %v5143_v44  ;;  %v21801_v16 = vsel %vm5114_vm2, %v5060_v36, %v5130_v13 }
 0x2e8   : > { %5162 = vst [vmem:[#allocation2 + $0x50] sm:$0xff] %v21801_v16  ;;  %v21804_v56 = vsel %vm5112_vm3, %v5052_v41, %v5128_v57  ;;  %v18549_v54 = vpop.f32.mrb[212].mxu0  ;;  %v6477_v25 = vpack.c.bf16 %v21801_v16, %v21798_v49  ;;  %v19126_v49 = vld [vmem:[%s24791_s5 + $0x1d0] sm:$0xff]  }
 0x2e9   : > { %5160 = vst [vmem:[#allocation2 + $0x30] sm:$0xff] %v21804_v56  ;;  %v16537_v37 = vpop.f32.mrb[204].mxu1  ;;  %v5073_v52 = vadd.f32 %v18549_v54, %v21762_v59  ;;  %v5064_v42 = vpop.f32.mrb[213].mxu0  ;;  %v6476_v4 = vpack.c.bf16 %v21804_v56, %v5143_v44 }
 0x2ea   : > { %v16538_v50 = vpop.f32.mrb[205].mxu1  ;;  %v5065_v18 = vadd.f32 %v5064_v42, %v21744_v35  ;;  %v18550_v30 = vpop.f32.mrb[214].mxu0  ;;  %v6507_v35 = vld [vmem:[#allocation2 + $0x9] sm:$0xff] }
 0x2eb   : > { %vm5117_vm4 = vcmp.ge.f32.partialorder %v5073_v52, 0.0  ;;  %v5133_v29 = vmul.f32 0.01, %v5073_v52  ;;  %v16539_v1 = vadd.f32 %v16538_v50, %v16537_v37  ;;  %v16540_v47 = vpop.f32.mrb[206].mxu1  ;;  %v5076_v27 = vadd.f32 %v18550_v30, %v21768_v46  ;;  %v5067_v21 = vpop.f32.mrb[215].mxu0  ;;  %7650 = vmatprep.mubr.bf16.mxu0 %v6476_v4 }
 0x2ec   : > { %vm5115_vm5 = vcmp.ge.f32.partialorder %v5065_v18, 0.0  ;;  %v5131_v2 = vmul.f32 0.01, %v5065_v18  ;;  %v16541_v43 = vpop.f32.mrb[207].mxu1  ;;  %v5068_v59 = vadd.f32 %v5067_v21, %v21750_v48  ;;  %v6539_v31 = vpack.c.bf16 %v6508_v5, %v6507_v35  ;;  %v19130_v35 = vld [vmem:[%s24791_s5 + $0x1d8] sm:$0xff]  }
 0x2ed   : > { %v21814_v3 = vsel %vm5117_vm4, %v5073_v52, %v5133_v29  ;;  %vm5118_vm6 = vcmp.ge.f32.partialorder %v5076_v27, 0.0  ;;  %v5134_v9 = vmul.f32 0.01, %v5076_v27  ;;  %v16542_v55 = vadd.f32 %v16541_v43, %v16540_v47  ;;  %v6573_v11 = vld [vmem:[#allocation2 + $0x47] sm:$0xff] }
 0x2ee   : > { %5165 = vst [vmem:[#allocation2 + $0x88] sm:$0xff] %v21814_v3  ;;  %v5147_v38 = vsel %vm5115_vm5, %v5065_v18, %v5131_v2  ;;  %vm5116_vm7 = vcmp.ge.f32.partialorder %v5068_v59, 0.0  ;;  %v5132_v32 = vmul.f32 0.01, %v5068_v59  ;;  %v5008_v46 = vadd.f32 %v16539_v1, %v4911_v22  ;;  %v6571_v45 = vld [vmem:[#allocation2 + $0x27] sm:$0xff] }
 0x2ef   : > { %5163 = vst [vmem:[#allocation2 + $0x68] sm:$0xff] %v5147_v38  ;;  %v21817_v17 = vsel %vm5118_vm6, %v5076_v27, %v5134_v9  ;;  %v6574_v23 = vld [vmem:[#allocation2 + $0x4f] sm:$0xff]  ;;  %v21819_v14 = vadd.f32 %v16542_v55, %v4914_v7  ;;  %v19116_v7 = vld [vmem:[%s24791_s5 + $0x180] sm:$0xff]  }
 0x2f0   : > { %5166 = vst [vmem:[#allocation2 + $0x90] sm:$0xff] %v21817_v17  ;;  %v21822_v48 = vsel %vm5116_vm7, %v5068_v59, %v5132_v32  ;;  %v18553_v24 = vpop.f32.mrb[216].mxu0  ;;  %v6572_v34 = vld [vmem:[#allocation2 + $0x2f] sm:$0xff]  ;;  %v6479_v12 = vpack.c.bf16 %v21817_v17, %v21814_v3  ;;  %v21835_v40 = vpack.c.bf16 %v6574_v23, %v6573_v11 }
 0x2f1   : > { %5164 = vst [vmem:[#allocation2 + $0x70] sm:$0xff] %v21822_v48  ;;  %v5089_v60 = vadd.f32 %v18553_v24, %v21783_v61  ;;  %v16575_v28 = vpop.f32.mrb[208].mxu1  ;;  %v5080_v22 = vpop.f32.mrb[217].mxu0  ;;  %v6603_v39 = vpack.c.bf16 %v6572_v34, %v6571_v45  ;;  %v21829_v58 = vpack.c.bf16 %v21822_v48, %v5147_v38  ;;  %v19120_v61 = vld [vmem:[%s24791_s5 + $0x1c8] sm:$0xff]   ;;  %v6510_v52 = vld [vmem:[#allocation2 + $0x31] sm:$0xff] }
 0x2f2   : > { %v5081_v20 = vadd.f32 %v5080_v22, %v21771_v53  ;;  %v16576_v8 = vpop.f32.mrb[209].mxu1  ;;  %v18554_v0 = vpop.f32.mrb[218].mxu0  ;;  %v19128_v27 = vld [vmem:[%s24791_s5 + $0x190] sm:$0xff]   ;;  %v19134_v22 = vld [vmem:[%s24791_s5 + $0x1e0] sm:$0xff]  }
 0x2f3   : > { %vm5121_vm8 = vcmp.ge.f32.partialorder %v5089_v60, 0.0  ;;  %v5137_v19 = vmul.f32 0.01, %v5089_v60  ;;  %v21840_v10 = vadd.f32 %v16576_v8, %v16575_v28  ;;  %v5092_v36 = vadd.f32 %v18554_v0, %v21786_v62  ;;  %v16578_v33 = vpop.f32.mrb[210].mxu1  ;;  %v5083_v63 = vpop.f32.mrb[219].mxu0  ;;  %7739 = vmatprep.mubr.bf16.mxu1 %v6603_v39  ;;  %7651 = vmatmul.mubr.bf16.gmra.mrb[36].mxu0 %v6603_v39  ;;  %v19122_v62 = vld [vmem:[%s24791_s5 + $0x188] sm:$0xff]  }
 0x2f4   : > { %vm5119_vm9 = vcmp.ge.f32.partialorder %v5081_v20, 0.0  ;;  %v5135_v53 = vmul.f32 0.01, %v5081_v20  ;;  %v5084_v41 = vadd.f32 %v5083_v63, %v21779_v51  ;;  %v16579_v13 = vpop.f32.mrb[211].mxu1  ;;  %7740 = vmatmul.mubr.bf16.vlgmr.msra.gmra.mrb[32].mxu1 %v6539_v31  ;;  %7658 = vmatprep.mubr.bf16.mxu0 %v6477_v25  ;;  %v6509_v25 = vld [vmem:[#allocation2 + $0x29] sm:$0xff] }
 0x2f5   : > { %v21847_v44 = vsel %vm5121_vm8, %v5089_v60, %v5137_v19  ;;  %vm5122_vm10 = vcmp.ge.f32.partialorder %v5092_v36, 0.0  ;;  %v5138_v57 = vmul.f32 0.01, %v5092_v36  ;;  %7747 = vmatprep.mubr.bf16.mxu1 %v21835_v40  ;;  %17024 = vmatpush3.bf16.msra.mxu1 %v19116_v7  ;;  %v21856_v37 = vadd.f32 %v16579_v13, %v16578_v33  ;;  %v6511_v11 = vld [vmem:[#allocation2 + $0x49] sm:$0xff]  ;;  %v6512_v7 = vld [vmem:[#allocation2 + $0x51] sm:$0xff]  ;;  %v19136_v13 = vld [vmem:[%s24791_s5 + $0x1a0] sm:$0xff]  }
 0x2f6   : > { %5169 = vst [vmem:[#allocation2 + $0xc8] sm:$0xff] %v21847_v44  ;;  %v21854_v51 = vsel %vm5119_vm9, %v5081_v20, %v5135_v53  ;;  %vm5120_vm11 = vcmp.ge.f32.partialorder %v5084_v41, 0.0  ;;  %v5136_v54 = vmul.f32 0.01, %v5084_v41  ;;  %17025 = vmatprep.subr.bf16.mxu1 %v19120_v61  ;;  %v6575_v1 = vld [vmem:[#allocation2 + $0x67] sm:$0xff]  ;;  %v21874_v59 = vpack.c.bf16 %v6510_v52, %v6509_v25  ;;  %v19141_v17 = vld [vmem:[%s24791_s5 + $0x1f0] sm:$0xff]  }
 0x2f7   : > { %5167 = vst [vmem:[#allocation2 + $0xa8] sm:$0xff] %v21854_v51  ;;  %v21862_v16 = vsel %vm5122_vm10, %v5092_v36, %v5138_v57  ;;  %v21905_v20 = vld [vmem:[%s24790_s4] ss:$0 sm:$0xff]  ;;  %v6578_v0 = vld [vmem:[#allocation2 + $0x8f] sm:$0xff]  ;;  %v21912_v53 = vpack.c.bf16 %v6512_v7, %v6511_v11 }
 0x2f8   : > { %5170 = vst [vmem:[#allocation2 + $0xd0] sm:$0xff] %v21862_v16  ;;  %v21865_v42 = vsel %vm5120_vm11, %v5084_v41, %v5136_v54  ;;  %v18557_v4 = vpop.f32.mrb[220].mxu0  ;;  %v6576_v50 = vld [vmem:[#allocation2 + $0x6f] sm:$0xff]  ;;  %v6481_v55 = vpack.c.bf16 %v21862_v16, %v21847_v44  ;;  %v6577_v41 = vld [vmem:[#allocation2 + $0x87] sm:$0xff]  ;;  %v5865_v57 = vadd.f32 %v21840_v10, %v21905_v20  ;;  %v5868_v10 = vadd.f32 %v21856_v37, %v21905_v20 }
 0x2f9   : > { %5168 = vst [vmem:[#allocation2 + $0xb0] sm:$0xff] %v21865_v42  ;;  %v5105_v18 = vadd.f32 %v18557_v4, %v5008_v46  ;;  %v16581_v30 = vpop.f32.mrb[212].mxu1  ;;  %v5096_v29 = vpop.f32.mrb[221].mxu0  ;;  %v6480_v47 = vpack.c.bf16 %v21865_v42, %v21854_v51  ;;  %17026 = vmatpush3.bf16.msra.mxu1 %v19122_v62  ;;  %v21876_v9 = vpack.c.bf16 %v6576_v50, %v6575_v1  ;;  %v19138_v4 = vld [vmem:[%s24791_s5 + $0x1e8] sm:$0xff]   ;;  %v6514_v3 = vld [vmem:[#allocation2 + $0x71] sm:$0xff]  ;;  %v19146_v51 = vld [vmem:[%s24791_s5 + $0x40] sm:$0xff]  }
 0x2fa   : > { %v5097_v21 = vadd.f32 %v5096_v29, %v21789_v6  ;;  %v16582_v2 = vpop.f32.mrb[213].mxu1  ;;  %v18558_v43 = vpop.f32.mrb[222].mxu0  ;;  %17027 = vmatprep.subr.bf16.mxu1 %v19126_v49  ;;  %v21922_v52 = vpack.c.bf16 %v6578_v0, %v6577_v41 }
 0x2fb   : > { %vm5125_vm12 = vcmp.ge.f32.partialorder %v5105_v18, 0.0  ;;  %v5141_v5 = vmul.f32 0.01, %v5105_v18  ;;  %v21883_v38 = vadd.f32 %v16582_v2, %v16581_v30  ;;  %v5108_v6 = vadd.f32 %v18558_v43, %v21819_v14  ;;  %v16584_v32 = vpop.f32.mrb[214].mxu1  ;;  %v5099_v46 = vpop.f32.mrb[223].mxu0  ;;  %7659 = vmatmul.mubr.bf16.gmra.mrb[40].mxu0 %v21835_v40  ;;  %v19132_v14 = vld [vmem:[%s24791_s5 + $0x198] sm:$0xff]  }
 0x2fc   : > { %vm5123_vm13 = vcmp.ge.f32.partialorder %v5097_v21, 0.0  ;;  %v5139_v23 = vmul.f32 0.01, %v5097_v21  ;;  %v5100_v24 = vadd.f32 %v5099_v46, %v21792_v26  ;;  %v16585_v45 = vpop.f32.mrb[215].mxu1  ;;  %7748 = vmatmul.mubr.bf16.gmra.mrb[36].mxu1 %v21874_v59  ;;  %7666 = vmatprep.mubr.bf16.mxu0 %v21829_v58  ;;  %v6513_v2 = vld [vmem:[#allocation2 + $0x69] sm:$0xff] }
 0x2fd   : > { %v5157_v34 = vsel %vm5125_vm12, %v5105_v18, %v5141_v5  ;;  %vm5126_vm14 = vcmp.ge.f32.partialorder %v5108_v6, 0.0  ;;  %v5142_v31 = vmul.f32 0.01, %v5108_v6  ;;  %7755 = vmatprep.mubr.bf16.mxu1 %v21876_v9  ;;  %17028 = vmatpush3.bf16.msra.mxu1 %v19128_v27  ;;  %v21896_v28 = vadd.f32 %v16585_v45, %v16584_v32  ;;  %v19140_v27 = vld [vmem:[%s24791_s5 + $0x1a8] sm:$0xff]  }
 0x2fe   : > { %5173 = vst [vmem:[#allocation2 + $0x108] sm:$0xff] %v5157_v34  ;;  %v21894_v60 = vsel %vm5123_vm13, %v5097_v21, %v5139_v23  ;;  %vm5124_vm15 = vcmp.ge.f32.partialorder %v5100_v24, 0.0  ;;  %v5140_v26 = vmul.f32 0.01, %v5100_v24  ;;  %17029 = vmatprep.subr.bf16.mxu1 %v19130_v35  ;;  %v5873_v35 = vadd.f32 %v21883_v38, %v21905_v20  ;;  %v6579_v46 = vld [vmem:[#allocation2 + $0xa7] sm:$0xff]  ;;  %v19142_v23 = vld [vmem:[%s24791_s5 + $0x1b0] sm:$0xff]  }
 0x2ff   : > { %5171 = vst [vmem:[#allocation2 + $0xe8] sm:$0xff] %v21894_v60  ;;  %v5158_v39 = vsel %vm5126_vm14, %v5108_v6, %v5142_v31  ;;  %v21948_v32 = vpack.c.bf16 %v6514_v3, %v6513_v2  ;;  %v19143_v38 = vld [vmem:[%s24791_s5 + $0x1f8] sm:$0xff]   ;;  %v5876_v11 = vadd.f32 %v21896_v28, %v21905_v20  ;;  %v6581_v41 = vld [vmem:[#allocation2 + $0xc7] sm:$0xff] }
 0x300   : > { %5174 = vst [vmem:[#allocation2 + $0x110] sm:$0xff] %v5158_v39  ;;  %v21907_v8 = vsel %vm5124_vm15, %v5100_v24, %v5140_v26  ;;  %v19144_v39 = vld [vmem:[%s24791_s5 + $0x1b8] sm:$0xff]  }
 0x301   : > { %5172 = vst [vmem:[#allocation2 + $0xf0] sm:$0xff] %v21907_v8  ;;  %v16587_v61 = vpop.f32.mrb[216].mxu1  ;;  %v16639_v19 = vpop.f32.mrb[224].mxu0  ;;  %v6482_v36 = vpack.c.bf16 %v21907_v8, %v21894_v60  ;;  %17030 = vmatpush3.bf16.msra.mxu1 %v19132_v14 }
 0x302   : > { %v16588_v33 = vpop.f32.mrb[217].mxu1  ;;  %v16640_v63 = vpop.f32.mrb[225].mxu0  ;;  %17031 = vmatprep.subr.bf16.mxu1 %v19134_v22 }
 0x303   : > { %v21919_v62 = vadd.f32 %v16588_v33, %v16587_v61  ;;  %v16641_v54 = vadd.f32 %v16640_v63, %v16639_v19  ;;  %v16590_v49 = vpop.f32.mrb[218].mxu1  ;;  %v16642_v25 = vpop.f32.mrb[226].mxu0  ;;  %7667 = vmatmul.mubr.bf16.gmra.mrb[44].mxu0 %v21876_v9  ;;  %v6515_v19 = vld [vmem:[#allocation2 + $0x89] sm:$0xff]  ;;  %v6516_v33 = vld [vmem:[#allocation2 + $0x91] sm:$0xff] }
 0x304   : > { %v16591_v50 = vpop.f32.mrb[219].mxu1  ;;  %v16643_v18 = vpop.f32.mrb[227].mxu0  ;;  %7756 = vmatmul.mubr.bf16.gmra.mrb[40].mxu1 %v21912_v53  ;;  %7674 = vmatprep.mubr.bf16.mxu0 %v6479_v12  ;;  %v6580_v12 = vld [vmem:[#allocation2 + $0xaf] sm:$0xff] }
 0x305   : > { %v21933_v30 = vadd.f32 %v16641_v54, %v5865_v57  ;;  %v21935_v29 = vadd.f32 %v16591_v50, %v16590_v49  ;;  %v16644_v1 = vadd.f32 %v16643_v18, %v16642_v25  ;;  %7763 = vmatprep.mubr.bf16.mxu1 %v21922_v52  ;;  %17032 = vmatpush3.bf16.msra.mxu1 %v19136_v13  ;;  %v6582_v63 = vld [vmem:[#allocation2 + $0xcf] sm:$0xff] }
 0x306   : > { %17033 = vmatprep.subr.bf16.mxu1 %v19138_v4  ;;  %v21954_v14 = vpack.c.bf16 %v6580_v12, %v6579_v46  ;;  %v21976_v49 = vpack.c.bf16 %v6516_v33, %v6515_v19  ;;  %v21978_v25 = vpack.c.bf16 %v6582_v63, %v6581_v41  ;;  %v5881_v4 = vadd.f32 %v21919_v62, %v21905_v20  ;;  %v6519_v33 = vld [vmem:[#allocation2 + $0xc9] sm:$0xff]  ;;  %v6520_v63 = vld [vmem:[#allocation2 + $0xd1] sm:$0xff] }
 0x307   : > { %v21941_v21 = vadd.f32 %v16644_v1, %v5868_v10  ;;  %v5884_v3 = vadd.f32 %v21935_v29, %v21905_v20  ;;  %v22010_v60 = vpack.c.bf16 %v6520_v63, %v6519_v33  ;;  %v19148_v63 = vld [vmem:[%s24791_s5 + $0x208] sm:$0xff]  }
 0x309   : > { %v16593_v37 = vpop.f32.mrb[220].mxu1  ;;  %v16645_v43 = vpop.f32.mrb[228].mxu0  ;;  %17034 = vmatpush3.bf16.msra.mxu1 %v19140_v27 }
 0x30a   : > { %v16594_v5 = vpop.f32.mrb[221].mxu1  ;;  %v16646_v6 = vpop.f32.mrb[229].mxu0  ;;  %17035 = vmatprep.subr.bf16.mxu1 %v19141_v17 }
 0x30b   : > { %v16595_v24 = vadd.f32 %v16594_v5, %v16593_v37  ;;  %v16647_v45 = vadd.f32 %v16646_v6, %v16645_v43  ;;  %v16596_v34 = vpop.f32.mrb[222].mxu1  ;;  %v16648_v31 = vpop.f32.mrb[230].mxu0  ;;  %7675 = vmatmul.mubr.bf16.gmra.mrb[48].mxu0 %v21922_v52  ;;  %v6517_v37 = vld [vmem:[#allocation2 + $0xa9] sm:$0xff]  ;;  %v6518_v43 = vld [vmem:[#allocation2 + $0xb1] sm:$0xff] }
 0x30c   : > { %v16597_v26 = vpop.f32.mrb[223].mxu1  ;;  %v16649_v22 = vpop.f32.mrb[231].mxu0  ;;  %7764 = vmatmul.mubr.bf16.gmra.mrb[44].mxu1 %v21948_v32  ;;  %7682 = vmatprep.mubr.bf16.mxu0 %v6480_v47  ;;  %v6583_v6 = vld [vmem:[#allocation2 + $0xe7] sm:$0xff]  ;;  %v21994_v16 = vpack.c.bf16 %v6518_v43, %v6517_v37 }
 0x30d   : > { %v21968_v7 = vadd.f32 %v16647_v45, %v5873_v35  ;;  %v16598_v0 = vadd.f32 %v16597_v26, %v16596_v34  ;;  %v16650_v61 = vadd.f32 %v16649_v22, %v16648_v31  ;;  %7771 = vmatprep.mubr.bf16.mxu1 %v21954_v14  ;;  %17036 = vmatpush3.bf16.msra.mxu1 %v19142_v23  ;;  %v6584_v35 = vld [vmem:[#allocation2 + $0xef] sm:$0xff] }
 0x30e   : > { %17037 = vmatprep.subr.bf16.mxu1 %v19143_v38  ;;  %v21998_v26 = vpack.c.bf16 %v6584_v35, %v6583_v6  ;;  %v6521_v35 = vld [vmem:[#allocation2 + $0xe9] sm:$0xff]  ;;  %v6522_v6 = vld [vmem:[#allocation2 + $0xf1] sm:$0xff] }
 0x30f   : > { %v21974_v47 = vadd.f32 %v16650_v61, %v5876_v11  ;;  %v5892_v11 = vadd.f32 %v16598_v0, %v21905_v20 }
 0x311   : > { %v16599_v13 = vpop.f32.mrb[224].mxu1  ;;  %v16651_v28 = vpop.f32.mrb[232].mxu0  ;;  %17038 = vmatpush3.bf16.msra.mxu1 %v19144_v39 }
 0x312   : > { %v16600_v57 = vpop.f32.mrb[225].mxu1  ;;  %v16652_v54 = vpop.f32.mrb[233].mxu0  ;;  %17103 = vmatprep.subr.bf16.mxu1 %v19146_v51  ;;  %v6586_v51 = vld [vmem:[#allocation2 + $0x10f] sm:$0xff] }
 0x313   : > { %v16601_v50 = vadd.f32 %v16600_v57, %v16599_v13  ;;  %v16653_v18 = vadd.f32 %v16652_v54, %v16651_v28  ;;  %v16602_v10 = vpop.f32.mrb[226].mxu1  ;;  %v16654_v1 = vpop.f32.mrb[234].mxu0  ;;  %7683 = vmatmul.mubr.bf16.gmra.mrb[52].mxu0 %v21954_v14  ;;  %v6585_v13 = vld [vmem:[#allocation2 + $0x107] sm:$0xff] }
 0x314   : > { %v16603_v27 = vpop.f32.mrb[227].mxu1  ;;  %v16655_v2 = vpop.f32.mrb[235].mxu0  ;;  %7772 = vmatmul.mubr.bf16.gmra.mrb[48].mxu1 %v21976_v49  ;;  %7690 = vmatprep.mubr.bf16.mxu0 %v6481_v55  ;;  %v5889_v55 = vadd.f32 %v16595_v24, %v21905_v20 }
 0x315   : > { %v21989_v17 = vadd.f32 %v16653_v18, %v5881_v4  ;;  %v16604_v62 = vadd.f32 %v16603_v27, %v16602_v10  ;;  %v16656_v12 = vadd.f32 %v16655_v2, %v16654_v1  ;;  %7779 = vmatprep.mubr.bf16.mxu1 %v21978_v25  ;;  %v5897_v8 = vadd.f32 %v16601_v50, %v21905_v20 }
 0x316   : > { %v22014_v1 = vpack.c.bf16 %v6586_v51, %v6585_v13 }
 0x317   : > { %v21992_v5 = vadd.f32 %v16656_v12, %v5884_v3  ;;  %v6635_v3 = vld [vmem:[#allocation2 + $0x28] sm:$0xff]  ;;  %v5900_v12 = vadd.f32 %v16604_v62, %v21905_v20 }
 0x319   : > { %v16605_v46 = vpop.f32.mrb[228].mxu1  ;;  %v16657_v23 = vpop.f32.mrb[236].mxu0 }
 0x31a   : > { %v16606_v45 = vpop.f32.mrb[229].mxu1  ;;  %v16658_v44 = vpop.f32.mrb[237].mxu0 }
 0x31b   : > { %v16607_v29 = vadd.f32 %v16606_v45, %v16605_v46  ;;  %v16659_v34 = vadd.f32 %v16658_v44, %v16657_v23  ;;  %v16608_v31 = vpop.f32.mrb[230].mxu1  ;;  %v16660_v38 = vpop.f32.mrb[238].mxu0  ;;  %7691 = vmatmul.mubr.bf16.gmra.mrb[56].mxu0 %v21978_v25  ;;  %v6828_v46 = vld [vmem:[#allocation2 + $0x50] sm:$0xff]  ;;  %v6827_v45 = vld [vmem:[#allocation2 + $0x48] sm:$0xff] }
 0x31c   : > { %v16609_v22 = vpop.f32.mrb[231].mxu1  ;;  %v16661_v39 = vpop.f32.mrb[239].mxu0  ;;  %7780 = vmatmul.mubr.bf16.gmra.mrb[52].mxu1 %v21994_v16  ;;  %7698 = vmatprep.mubr.bf16.mxu0 %v6482_v36  ;;  %v6859_v33 = vpack.c.bf16 %v6828_v46, %v6827_v45 }
 0x31d   : > { %v22005_v61 = vadd.f32 %v16659_v34, %v5889_v55  ;;  %v16610_v24 = vadd.f32 %v16609_v22, %v16608_v31  ;;  %v16662_v19 = vadd.f32 %v16661_v39, %v16660_v38  ;;  %7787 = vmatprep.mubr.bf16.mxu1 %v21998_v26  ;;  %v6667_v34 = vpack.c.bf16 %v21804_v56, %v6635_v3 }
 0x31e   : > { %v22025_v38 = vpack.c.bf16 %v6522_v6, %v6521_v35  ;;  %v5905_v62 = vadd.f32 %v16607_v29, %v21905_v20 }
 0x31f   : > { %v22008_v41 = vadd.f32 %v16662_v19, %v5892_v11  ;;  %v5908_v56 = vadd.f32 %v16610_v24, %v21905_v20  ;;  %v19147_v24 = vld [vmem:[%s24791_s5] sm:$0xff]  }
 0x321   : > { %v16611_v28 = vpop.f32.mrb[232].mxu1  ;;  %v16663_v57 = vpop.f32.mrb[240].mxu0 }
 0x322   : > { %v16612_v54 = vpop.f32.mrb[233].mxu1  ;;  %v16664_v4 = vpop.f32.mrb[241].mxu0 }
 0x323   : > { %v16613_v36 = vadd.f32 %v16612_v54, %v16611_v28  ;;  %v16665_v0 = vadd.f32 %v16664_v4, %v16663_v57  ;;  %v16614_v18 = vpop.f32.mrb[234].mxu1  ;;  %v16666_v10 = vpop.f32.mrb[242].mxu0  ;;  %7699 = vmatmul.mubr.bf16.gmra.mrb[60].mxu0 %v21998_v26  ;;  %v19149_v4 = vld [vmem:[%s24791_s5 + $0x210] sm:$0xff]  }
 0x324   : > { %v16615_v27 = vpop.f32.mrb[235].mxu1  ;;  %v16667_v2 = vpop.f32.mrb[243].mxu0  ;;  %7788 = vmatmul.mubr.bf16.gmra.mrb[56].mxu1 %v22010_v60  ;;  %7836 = vmatprep.mubr.bf16.mxu0 %v21874_v59 }
 0x325   : > { %v22019_v37 = vadd.f32 %v16665_v0, %v5897_v8  ;;  %v16616_v50 = vadd.f32 %v16615_v27, %v16614_v18  ;;  %v16668_v43 = vadd.f32 %v16667_v2, %v16666_v10  ;;  %7795 = vmatprep.mubr.bf16.mxu1 %v22014_v1  ;;  %v5913_v10 = vadd.f32 %v16613_v36, %v21905_v20 }
 0x327   : > { %v22022_v23 = vadd.f32 %v16668_v43, %v5900_v12  ;;  %v19150_v12 = vld [vmem:[%s24791_s5 + $0x48] sm:$0xff]   ;;  %v19152_v43 = vld [vmem:[%s24791_s5 + $0x218] sm:$0xff]   ;;  %v5916_v35 = vadd.f32 %v16616_v50, %v21905_v20 }
 0x328   : > { %v19151_v50 = vld [vmem:[%s24791_s5 + $0x8] sm:$0xff]  }
 0x329   : > { %v16617_v44 = vpop.f32.mrb[236].mxu1  ;;  %v16669_v55 = vpop.f32.mrb[244].mxu0 }
 0x32a   : > { %v16618_v59 = vpop.f32.mrb[237].mxu1  ;;  %v16670_v31 = vpop.f32.mrb[245].mxu0 }
 0x32b   : > { %v22028_v22 = vadd.f32 %v16618_v59, %v16617_v44  ;;  %v16671_v39 = vadd.f32 %v16670_v31, %v16669_v55  ;;  %v16620_v11 = vpop.f32.mrb[238].mxu1  ;;  %v16672_v19 = vpop.f32.mrb[246].mxu0  ;;  %7837 = vmatmul.mubr.bf16.vlgmr.msra.gmra.mrb[64].mxu0 %v6667_v34  ;;  %v6639_v34 = vld [vmem:[#allocation2 + $0x68] sm:$0xff] }
 0x32c   : > { %v16621_v51 = vpop.f32.mrb[239].mxu1  ;;  %v16673_v13 = vpop.f32.mrb[247].mxu0  ;;  %7796 = vmatmul.mubr.bf16.gmra.mrb[60].mxu1 %v22025_v38  ;;  %7844 = vmatprep.mubr.bf16.mxu0 %v21912_v53 }
 0x32d   : > { %v22036_v29 = vadd.f32 %v16671_v39, %v5905_v62  ;;  %v16622_v28 = vadd.f32 %v16621_v51, %v16620_v11  ;;  %v16674_v57 = vadd.f32 %v16673_v13, %v16672_v19  ;;  %7933 = vmatprep.mubr.bf16.mxu1 %v6859_v33  ;;  %18592 = vmatpush3.bf16.msra.mxu0 %v21776_v15  ;;  %v6831_v39 = vld [vmem:[#allocation2 + $0x88] sm:$0xff] }
 0x32e   : > { %18593 = vmatprep.subr.bf16.mxu0 %v19148_v63  ;;  %v6669_v62 = vpack.c.bf16 %v21822_v48, %v6639_v34  ;;  %v19155_v48 = vld [vmem:[%s24791_s5 + $0x10] sm:$0xff]  }
 0x32f   : > { %v22039_v54 = vadd.f32 %v16674_v57, %v5908_v56 }
 0x331   : > { %v16675_v8 = vpop.f32.mrb[248].mxu0  ;;  %v16703_v0 = vpop.f32.mrb[240].mxu1  ;;  %18594 = vmatpush3.bf16.msra.mxu0 %v19148_v63  ;;  %v5921_v63 = vadd.f32 %v22028_v22, %v21905_v20  ;;  %v19158_v22 = vld [vmem:[%s24791_s5 + $0x58] sm:$0xff]  }
 0x332   : > { %v16676_v18 = vpop.f32.mrb[249].mxu0  ;;  %v16704_v53 = vpop.f32.mrb[241].mxu1  ;;  %18595 = vmatprep.subr.bf16.mxu0 %v19149_v4 }
 0x333   : > { %v16677_v27 = vadd.f32 %v16676_v18, %v16675_v8  ;;  %v16705_v15 = vadd.f32 %v16704_v53, %v16703_v0  ;;  %v16678_v2 = vpop.f32.mrb[250].mxu0  ;;  %v16706_v3 = vpop.f32.mrb[242].mxu1  ;;  %7845 = vmatmul.mubr.bf16.gmra.mrb[68].mxu0 %v6859_v33  ;;  %v5924_v8 = vadd.f32 %v16622_v28, %v21905_v20  ;;  %v6833_v28 = vld [vmem:[#allocation2 + $0xa8] sm:$0xff] }
 0x334   : > { %v16679_v6 = vpop.f32.mrb[251].mxu0  ;;  %v16707_v46 = vpop.f32.mrb[243].mxu1  ;;  %7934 = vmatmul.mubr.bf16.vlgmr.msra.gmra.mrb[64].mxu1 %v21835_v40  ;;  %7852 = vmatprep.mubr.bf16.mxu0 %v21948_v32  ;;  %v6832_v32 = vld [vmem:[#allocation2 + $0x90] sm:$0xff] }
 0x335   : > { %v22057_v36 = vadd.f32 %v16677_v27, %v5913_v10  ;;  %v22060_v45 = vadd.f32 %v16705_v15, %v21933_v30  ;;  %v16680_v44 = vadd.f32 %v16679_v6, %v16678_v2  ;;  %v16708_v55 = vadd.f32 %v16707_v46, %v16706_v3  ;;  %7941 = vmatprep.mubr.bf16.mxu1 %v21829_v58  ;;  %v19153_v30 = vld [vmem:[%s24791_s5 + $0x220] sm:$0xff]   ;;  %v19159_v2 = vld [vmem:[%s24791_s5 + $0x18] sm:$0xff]  }
 0x336   : > { %17104 = vmatpush3.bf16.msra.mxu1 %v19147_v24  ;;  %18596 = vmatpush3.bf16.msra.mxu0 %v19149_v4  ;;  %v6861_v33 = vpack.c.bf16 %v6832_v32, %v6831_v39  ;;  %v19156_v4 = vld [vmem:[%s24791_s5 + $0x228] sm:$0xff]   ;;  %v6836_v39 = vld [vmem:[#allocation2 + $0xd0] sm:$0xff] }
 0x337   : > { %v22066_v59 = vadd.f32 %v16680_v44, %v5916_v35  ;;  %v22069_v40 = vadd.f32 %v16708_v55, %v21941_v21  ;;  %17105 = vmatprep.subr.bf16.mxu1 %v19150_v12  ;;  %18597 = vmatprep.subr.bf16.mxu0 %v19152_v43  ;;  %v19154_v21 = vld [vmem:[%s24791_s5 + $0x50] sm:$0xff]   ;;  %v6862_v44 = vpack.c.bf16 %v21865_v42, %v6833_v28  ;;  %v19160_v55 = vld [vmem:[%s24791_s5 + $0x238] sm:$0xff]   ;;  %v19163_v42 = vld [vmem:[%s24791_s5 + $0x20] sm:$0xff]  }
 0x339   : > { %v16681_v58 = vpop.f32.mrb[252].mxu0  ;;  %v16709_v31 = vpop.f32.mrb[244].mxu1 }
 0x33a   : > { %v16682_v11 = vpop.f32.mrb[253].mxu0  ;;  %v16710_v19 = vpop.f32.mrb[245].mxu1  ;;  %17106 = vmatpush3.bf16.msra.mxu1 %v19151_v50  ;;  %18598 = vmatpush3.bf16.msra.mxu0 %v19152_v43 }
 0x33b   : > { %v16683_v51 = vadd.f32 %v16682_v11, %v16681_v58  ;;  %v16711_v13 = vadd.f32 %v16710_v19, %v16709_v31  ;;  %v16684_v56 = vpop.f32.mrb[254].mxu0  ;;  %v16712_v57 = vpop.f32.mrb[246].mxu1  ;;  %7853 = vmatmul.mubr.bf16.gmra.mrb[72].mxu0 %v6669_v62  ;;  %18599 = vmatprep.subr.bf16.mxu0 %v19153_v30 }
 0x33c   : > { %v16685_v0 = vpop.f32.mrb[255].mxu0  ;;  %v16713_v18 = vpop.f32.mrb[247].mxu1  ;;  %7942 = vmatmul.mubr.bf16.gmra.mrb[68].mxu1 %v21876_v9  ;;  %7860 = vmatprep.mubr.bf16.mxu0 %v21976_v49  ;;  %v19157_v49 = vld [vmem:[%s24791_s5 + $0x230] sm:$0xff]  }
 0x33d   : > { %v22092_v53 = vadd.f32 %v16683_v51, %v5921_v63  ;;  %v22095_v24 = vadd.f32 %v16711_v13, %v21968_v7  ;;  %v16686_v10 = vadd.f32 %v16685_v0, %v16684_v56  ;;  %v16714_v27 = vadd.f32 %v16713_v18, %v16712_v57  ;;  %7949 = vmatprep.mubr.bf16.mxu1 %v6861_v33  ;;  %v19173_v57 = vld [vmem:[%s24791_s5 + $0x70] sm:$0xff]  }
 0x33e   : > { %17107 = vmatprep.subr.bf16.mxu1 %v19154_v21  ;;  %18600 = vmatpush3.bf16.msra.mxu0 %v19153_v30  ;;  %v6835_v21 = vld [vmem:[#allocation2 + $0xc8] sm:$0xff] }
 0x33f   : > { %v22097_v20 = vadd.f32 %v16686_v10, %v5924_v8  ;;  %v22100_v9 = vadd.f32 %v16714_v27, %v21974_v47  ;;  %17108 = vmatpush3.bf16.msra.mxu1 %v19155_v48  ;;  %18601 = vmatprep.subr.bf16.mxu0 %v19156_v4  ;;  %v19161_v47 = vld [vmem:[%s24791_s5 + $0x60] sm:$0xff]   ;;  %v19175_v10 = vld [vmem:[%s24791_s5 + $0x30] sm:$0xff]  }
 0x340   : > { %17109 = vmatprep.subr.bf16.mxu1 %v19158_v22 }
 0x341   : > { %v16715_v7 = vpop.f32.mrb[248].mxu1  ;;  %v16767_v15 = vpop.f32.mrb[0].mxu0 }
 0x342   : > { %v16716_v3 = vpop.f32.mrb[249].mxu1  ;;  %v16768_v12 = vpop.f32.mrb[1].mxu0  ;;  %18602 = vmatpush3.bf16.msra.mxu0 %v19156_v4 }
 0x343   : > { %v16717_v43 = vadd.f32 %v16716_v3, %v16715_v7  ;;  %v16769_v35 = vadd.f32 %v16768_v12, %v16767_v15  ;;  %v16718_v6 = vpop.f32.mrb[250].mxu1  ;;  %v16770_v46 = vpop.f32.mrb[2].mxu0  ;;  %7861 = vmatmul.mubr.bf16.gmra.mrb[76].mxu0 %v6861_v33  ;;  %18603 = vmatprep.subr.bf16.mxu0 %v19157_v49  ;;  %v19181_v3 = vld [vmem:[%s24791_s5 + $0x38] sm:$0xff]  }
 0x344   : > { %v16719_v34 = vpop.f32.mrb[251].mxu1  ;;  %v16771_v50 = vpop.f32.mrb[3].mxu0  ;;  %7950 = vmatmul.mubr.bf16.gmra.mrb[72].mxu1 %v21922_v52  ;;  %7868 = vmatprep.mubr.bf16.mxu0 %v21994_v16  ;;  %v19167_v52 = vld [vmem:[%s24791_s5 + $0x68] sm:$0xff]   ;;  %v19162_v16 = vld [vmem:[%s24791_s5 + $0xc0] sm:$0xff]  }
 0x345   : > { %v22118_v32 = vadd.f32 %v16717_v43, %v21989_v17  ;;  %v16720_v30 = vadd.f32 %v16719_v34, %v16718_v6  ;;  %v16772_v58 = vadd.f32 %v16771_v50, %v16770_v46  ;;  %7957 = vmatprep.mubr.bf16.mxu1 %v6862_v44  ;;  %17110 = vmatpush3.bf16.msra.mxu1 %v19159_v2  ;;  %v6837_v2 = vld [vmem:[#allocation2 + $0xe8] sm:$0xff] }
 0x346   : > { %18604 = vmatpush3.bf16.msra.mxu0 %v19157_v49  ;;  %17111 = vmatprep.subr.bf16.mxu1 %v19161_v47  ;;  %v22124_v31 = vadd.f32 %v16769_v35, %v22060_v45  ;;  %v6838_v49 = vld [vmem:[#allocation2 + $0xf0] sm:$0xff]  ;;  %v19185_v35 = vld [vmem:[%s24791_s5 + $0x140] sm:$0xff]  }
 0x347   : > { %v22130_v17 = vadd.f32 %v16720_v30, %v21992_v5  ;;  %18605 = vmatprep.subr.bf16.mxu0 %v19160_v55  ;;  %v22136_v62 = vadd.f32 %v16772_v58, %v22069_v40  ;;  %v19169_v5 = vld [vmem:[%s24791_s5 + $0x28] sm:$0xff]   ;;  %v6863_v40 = vpack.c.bf16 %v6836_v39, %v6835_v21  ;;  %v6864_v43 = vpack.c.bf16 %v6838_v49, %v6837_v2 }
 0x348   : > { %v6713_v58 = vld [vmem:[#allocation2 + $0x109] sm:$0xff] }
 0x349   : > { %v16721_v11 = vpop.f32.mrb[252].mxu1  ;;  %v16773_v19 = vpop.f32.mrb[4].mxu0  ;;  %17112 = vmatpush3.bf16.msra.mxu1 %v19163_v42  ;;  %v6714_v42 = vld [vmem:[#allocation2 + $0x111] sm:$0xff] }
 0x34a   : > { %v16722_v45 = vpop.f32.mrb[253].mxu1  ;;  %v16774_v33 = vpop.f32.mrb[5].mxu0  ;;  %18606 = vmatpush3.bf16.msra.mxu0 %v19160_v55  ;;  %17113 = vmatprep.subr.bf16.mxu1 %v19167_v52 }
 0x34b   : > { %v16723_v63 = vadd.f32 %v16722_v45, %v16721_v11  ;;  %v16775_v51 = vadd.f32 %v16774_v33, %v16773_v19  ;;  %v16724_v13 = vpop.f32.mrb[254].mxu1  ;;  %v16776_v56 = vpop.f32.mrb[6].mxu0  ;;  %7869 = vmatmul.mubr.bf16.gmra.mrb[80].mxu0 %v6862_v44  ;;  %17167 = vmatprep.subr.bf16.mxu0 %v19162_v16  ;;  %v22178_v19 = vpack.c.bf16 %v6714_v42, %v6713_v58  ;;  %v6839_v45 = vld [vmem:[#allocation2 + $0x108] sm:$0xff] }
 0x34c   : > { %v16725_v48 = vpop.f32.mrb[255].mxu1  ;;  %v16777_v4 = vpop.f32.mrb[7].mxu0  ;;  %7958 = vmatmul.mubr.bf16.gmra.mrb[76].mxu1 %v21954_v14  ;;  %7876 = vmatprep.mubr.bf16.mxu0 %v22010_v60 }
 0x34d   : > { %v22147_v8 = vadd.f32 %v16723_v63, %v22005_v61  ;;  %v16726_v0 = vadd.f32 %v16725_v48, %v16724_v13  ;;  %v16778_v18 = vadd.f32 %v16777_v4, %v16776_v56  ;;  %7965 = vmatprep.mubr.bf16.mxu1 %v6863_v40  ;;  %v22150_v22 = vadd.f32 %v16775_v51, %v22095_v24  ;;  %v19179_v61 = vld [vmem:[%s24791_s5 + $0x78] sm:$0xff]   ;;  %v6891_v48 = vld [vmem:[#allocation2 + $0x49] sm:$0xff] }
 0x34e   : > { %17114 = vmatpush3.bf16.msra.mxu1 %v19169_v5  ;;  %v6892_v4 = vld [vmem:[#allocation2 + $0x51] sm:$0xff] }
 0x34f   : > { %v6086_v27 = vadd.f32 %v16726_v0, %v22008_v41  ;;  %v22157_v14 = vadd.f32 %v16778_v18, %v22100_v9  ;;  %17115 = vmatprep.subr.bf16.mxu1 %v19173_v57  ;;  %v6923_v49 = vpack.c.bf16 %v6892_v4, %v6891_v48 }
 0x351   : > { %v16727_v28 = vpop.f32.mrb[0].mxu1  ;;  %v16779_v7 = vpop.f32.mrb[8].mxu0 }
 0x352   : > { %v16728_v24 = vpop.f32.mrb[1].mxu1  ;;  %v16780_v15 = vpop.f32.mrb[9].mxu0  ;;  %17116 = vmatpush3.bf16.msra.mxu1 %v19175_v10 }
 0x353   : > { %v16729_v41 = vadd.f32 %v16728_v24, %v16727_v28  ;;  %v16781_v12 = vadd.f32 %v16780_v15, %v16779_v7  ;;  %v16730_v9 = vpop.f32.mrb[2].mxu1  ;;  %v16782_v47 = vpop.f32.mrb[10].mxu0  ;;  %7877 = vmatmul.mubr.bf16.gmra.mrb[84].mxu0 %v6863_v40  ;;  %17117 = vmatprep.subr.bf16.mxu1 %v19179_v61 }
 0x354   : > { %v16731_v6 = vpop.f32.mrb[3].mxu1  ;;  %v16783_v46 = vpop.f32.mrb[11].mxu0  ;;  %7966 = vmatmul.mubr.bf16.gmra.mrb[80].mxu1 %v21978_v25  ;;  %7884 = vmatprep.mubr.bf16.mxu0 %v22025_v38  ;;  %v6840_v25 = vld [vmem:[#allocation2 + $0x110] sm:$0xff] }
 0x355   : > { %v6091_v44 = vadd.f32 %v16729_v41, %v22019_v37  ;;  %v16732_v55 = vadd.f32 %v16731_v6, %v16730_v9  ;;  %v16784_v34 = vadd.f32 %v16783_v46, %v16782_v47  ;;  %7973 = vmatprep.mubr.bf16.mxu1 %v6864_v43  ;;  %v22172_v50 = vadd.f32 %v16781_v12, %v22118_v32  ;;  %v6893_v41 = vld [vmem:[#allocation2 + $0x69] sm:$0xff]  ;;  %v6894_v12 = vld [vmem:[#allocation2 + $0x71] sm:$0xff] }
 0x356   : > { %17118 = vmatpush3.bf16.msra.mxu1 %v19181_v3  ;;  %v6895_v47 = vld [vmem:[#allocation2 + $0x89] sm:$0xff]  ;;  %v6924_v46 = vpack.c.bf16 %v6894_v12, %v6893_v41 }
 0x357   : > { %v6094_v30 = vadd.f32 %v16732_v55, %v22022_v23  ;;  %v22176_v52 = vadd.f32 %v16784_v34, %v22130_v17  ;;  %17231 = vmatprep.subr.bf16.mxu1 %v19185_v35  ;;  %v22180_v23 = vpack.c.bf16 %v6840_v25, %v6839_v45 }
 0x359   : > { %v16733_v16 = vpop.f32.mrb[4].mxu1  ;;  %v16785_v39 = vpop.f32.mrb[12].mxu0 }
 0x35a   : > { %v16734_v11 = vpop.f32.mrb[5].mxu1  ;;  %v16786_v37 = vpop.f32.mrb[13].mxu0 }
 0x35b   : > { %v16735_v33 = vadd.f32 %v16734_v11, %v16733_v16  ;;  %v16787_v32 = vadd.f32 %v16786_v37, %v16785_v39  ;;  %v16736_v21 = vpop.f32.mrb[6].mxu1  ;;  %v16788_v5 = vpop.f32.mrb[14].mxu0  ;;  %7885 = vmatmul.mubr.bf16.gmra.mrb[88].mxu0 %v6864_v43  ;;  %v6896_v43 = vld [vmem:[#allocation2 + $0x91] sm:$0xff]  ;;  %v19166_v11 = vld [vmem:[%s24791_s5 + $0x88] sm:$0xff]  }
 0x35c   : > { %v16737_v63 = vpop.f32.mrb[7].mxu1  ;;  %v16789_v51 = vpop.f32.mrb[15].mxu0  ;;  %7974 = vmatmul.mubr.bf16.gmra.mrb[84].mxu1 %v21998_v26  ;;  %7892 = vmatprep.mubr.bf16.mxu0 %v22178_v19  ;;  %v6925_v58 = vpack.c.bf16 %v6896_v43, %v6895_v47  ;;  %v19176_v43 = vld [vmem:[%s24791_s5 + $0xa0] sm:$0xff]  }
 0x35d   : > { %v6099_v17 = vadd.f32 %v16735_v33, %v22036_v29  ;;  %v16738_v13 = vadd.f32 %v16737_v63, %v16736_v21  ;;  %v16790_v56 = vadd.f32 %v16789_v51, %v16788_v5  ;;  %7981 = vmatprep.mubr.bf16.mxu1 %v22180_v23  ;;  %v22187_v40 = vadd.f32 %v16787_v32, %v22147_v8  ;;  %v19168_v32 = vld [vmem:[%s24791_s5 + $0xd0] sm:$0xff]  }
 0x35e   : > { %v6897_v5 = vld [vmem:[#allocation2 + $0xa9] sm:$0xff]  ;;  %v6898_v63 = vld [vmem:[#allocation2 + $0xb1] sm:$0xff] }
 0x35f   : > { %v6102_v57 = vadd.f32 %v16738_v13, %v22039_v54  ;;  %v22190_v0 = vadd.f32 %v16790_v56, %v6086_v27  ;;  %v6926_v4 = vpack.c.bf16 %v6898_v63, %v6897_v5 }
 0x361   : > { %v16739_v18 = vpop.f32.mrb[8].mxu1  ;;  %v16791_v10 = vpop.f32.mrb[16].mxu0 }
 0x362   : > { %v16740_v26 = vpop.f32.mrb[9].mxu1  ;;  %v16792_v61 = vpop.f32.mrb[17].mxu0 }
 0x363   : > { %v16741_v28 = vadd.f32 %v16740_v26, %v16739_v18  ;;  %v16793_v29 = vadd.f32 %v16792_v61, %v16791_v10  ;;  %v16742_v7 = vpop.f32.mrb[10].mxu1  ;;  %v16794_v24 = vpop.f32.mrb[18].mxu0  ;;  %7893 = vmatmul.mubr.bf16.gmra.mrb[92].mxu0 %v22180_v23 }
 0x364   : > { %v16743_v15 = vpop.f32.mrb[11].mxu1  ;;  %v16795_v8 = vpop.f32.mrb[19].mxu0  ;;  %7982 = vmatmul.mubr.bf16.gmra.mrb[88].mxu1 %v22014_v1  ;;  %18607 = vmatprep.mubr.bf16.mxu0 %v6923_v49  ;;  %v19164_v1 = vld [vmem:[%s24791_s5 + $0x80] sm:$0xff]  }
 0x365   : > { %v22195_v54 = vadd.f32 %v16741_v28, %v22057_v36  ;;  %v16744_v27 = vadd.f32 %v16743_v15, %v16742_v7  ;;  %v16796_v2 = vadd.f32 %v16795_v8, %v16794_v24  ;;  %v22197_v3 = vadd.f32 %v16793_v29, %v6091_v44  ;;  %v19165_v44 = vld [vmem:[%s24791_s5 + $0xc8] sm:$0xff]  }
 0x367   : > { %v22200_v9 = vadd.f32 %v16744_v27, %v22066_v59  ;;  %v22202_v35 = vadd.f32 %v16796_v2, %v6094_v30  ;;  %v19174_v27 = vld [vmem:[%s24791_s5 + $0xe0] sm:$0xff]  }
 0x369   : > { %v16745_v6 = vpop.f32.mrb[12].mxu1  ;;  %v16797_v36 = vpop.f32.mrb[20].mxu0 }
 0x36a   : > { %v16746_v55 = vpop.f32.mrb[13].mxu1  ;;  %v16798_v34 = vpop.f32.mrb[21].mxu0 }
 0x36b   : > { %v16747_v59 = vadd.f32 %v16746_v55, %v16745_v6  ;;  %v16799_v42 = vadd.f32 %v16798_v34, %v16797_v36  ;;  %v16748_v25 = vpop.f32.mrb[14].mxu1  ;;  %v16800_v16 = vpop.f32.mrb[22].mxu0  ;;  %18608 = vmatmul.mubr.bf16.vlgmr.msra.gmra.mrb[96].mxu0 %v6924_v46 }
 0x36c   : > { %v16749_v30 = vpop.f32.mrb[15].mxu1  ;;  %v16801_v39 = vpop.f32.mrb[23].mxu0  ;;  %18611 = vmatprep.mubr.bf16.mxu0 %v6925_v58  ;;  %17168 = vmatpush3.bf16.msra.mxu0 %v19164_v1 }
 0x36d   : > { %v22214_v37 = vadd.f32 %v16747_v59, %v22092_v53  ;;  %v16750_v45 = vadd.f32 %v16749_v30, %v16748_v25  ;;  %v16802_v33 = vadd.f32 %v16801_v39, %v16800_v16  ;;  %17169 = vmatprep.subr.bf16.mxu0 %v19165_v44  ;;  %v22219_v21 = vadd.f32 %v16799_v42, %v6099_v17  ;;  %v19170_v53 = vld [vmem:[%s24791_s5 + $0x90] sm:$0xff]   ;;  %v19171_v17 = vld [vmem:[%s24791_s5 + $0xd8] sm:$0xff]  }
 0x36f   : > { %v22222_v51 = vadd.f32 %v16750_v45, %v22097_v20  ;;  %v22224_v13 = vadd.f32 %v16802_v33, %v6102_v57 }
 0x370   : > { %17170 = vmatpush3.bf16.msra.mxu0 %v19166_v11 }
 0x371   : > { %v16803_v56 = vpop.f32.mrb[24].mxu0  ;;  %v18577_v48 = vpop.f32.mrb[16].mxu1  ;;  %17171 = vmatprep.subr.bf16.mxu0 %v19168_v32 }
 0x372   : > { %v6261_v18 = vadd.f32 %v18577_v48, %v22150_v22  ;;  %v16804_v10 = vpop.f32.mrb[25].mxu0  ;;  %v6252_v20 = vpop.f32.mrb[17].mxu1  ;;  %v19172_v22 = vld [vmem:[%s24791_s5 + $0x98] sm:$0xff]  }
 0x373   : > { %v16805_v26 = vadd.f32 %v16804_v10, %v16803_v56  ;;  %v6253_v57 = vadd.f32 %v6252_v20, %v22124_v31  ;;  %v16806_v61 = vpop.f32.mrb[26].mxu0  ;;  %v18578_v49 = vpop.f32.mrb[18].mxu1  ;;  %18612 = vmatmul.mubr.bf16.gmra.mrb[100].mxu0 %v6926_v4  ;;  %v19182_v4 = vld [vmem:[%s24791_s5 + $0xb0] sm:$0xff]  }
 0x374   : > { %vm6317_vm0 = vcmp.ge.f32.partialorder %v6261_v18, 0.0  ;;  %v6333_v28 = vmul.f32 0.01, %v6261_v18  ;;  %v6264_v29 = vadd.f32 %v18578_v49, %v22157_v14  ;;  %v16807_v7 = vpop.f32.mrb[27].mxu0  ;;  %v6255_v24 = vpop.f32.mrb[19].mxu1  ;;  %18615 = vmatprep.mubr.bf16.mxu0 %v22010_v60  ;;  %17172 = vmatpush3.bf16.msra.mxu0 %v19170_v53 }
 0x375   : > { %vm6315_vm1 = vcmp.ge.f32.partialorder %v6253_v57, 0.0  ;;  %v6331_v15 = vmul.f32 0.01, %v6253_v57  ;;  %v16808_v8 = vadd.f32 %v16807_v7, %v16806_v61  ;;  %v6256_v31 = vadd.f32 %v6255_v24, %v22136_v62  ;;  %17173 = vmatprep.subr.bf16.mxu0 %v19171_v17 }
 0x376   : > { %v6349_v14 = vsel %vm6317_vm0, %v6261_v18, %v6333_v28  ;;  %vm6318_vm2 = vcmp.ge.f32.partialorder %v6264_v29, 0.0  ;;  %v6334_v2 = vmul.f32 0.01, %v6264_v29  ;;  %v22244_v60 = vadd.f32 %v16805_v26, %v22195_v54  ;;  %v19177_v54 = vld [vmem:[%s24791_s5 + $0xe8] sm:$0xff]  }
 0x377   : > { %6365 = vst [vmem:[#allocation2 + $0x148] sm:$0xff] %v6349_v14  ;;  %v6347_v41 = vsel %vm6315_vm1, %v6253_v57, %v6331_v15  ;;  %vm6316_vm3 = vcmp.ge.f32.partialorder %v6256_v31, 0.0  ;;  %v6332_v12 = vmul.f32 0.01, %v6256_v31  ;;  %v22247_v47 = vadd.f32 %v16808_v8, %v22200_v9 }
 0x378   : > { %6363 = vst [vmem:[#allocation2 + $0x128] sm:$0xff] %v6347_v41  ;;  %v6350_v62 = vsel %vm6318_vm2, %v6264_v29, %v6334_v2  ;;  %17174 = vmatpush3.bf16.msra.mxu0 %v19172_v22  ;;  %v19183_v29 = vld [vmem:[%s24791_s5 + $0xf8] sm:$0xff]  }
 0x379   : > { %6366 = vst [vmem:[#allocation2 + $0x150] sm:$0xff] %v6350_v62  ;;  %v6348_v1 = vsel %vm6316_vm3, %v6256_v31, %v6332_v12  ;;  %v16809_v6 = vpop.f32.mrb[28].mxu0  ;;  %v18581_v36 = vpop.f32.mrb[20].mxu1  ;;  %17175 = vmatprep.subr.bf16.mxu0 %v19174_v27  ;;  %v22255_v46 = vpack.c.bf16 %v6350_v62, %v6349_v14 }
 0x37a   : > { %6364 = vst [vmem:[#allocation2 + $0x130] sm:$0xff] %v6348_v1  ;;  %v6277_v9 = vadd.f32 %v18581_v36, %v22187_v40  ;;  %v16810_v44 = vpop.f32.mrb[29].mxu0  ;;  %v6268_v55 = vpop.f32.mrb[21].mxu1  ;;  %v22258_v34 = vpack.c.bf16 %v6348_v1, %v6347_v41  ;;  %v19178_v40 = vld [vmem:[%s24791_s5 + $0xa8] sm:$0xff]  }
 0x37b   : > { %v16811_v58 = vadd.f32 %v16810_v44, %v16809_v6  ;;  %v6269_v59 = vadd.f32 %v6268_v55, %v22172_v50  ;;  %v16812_v42 = vpop.f32.mrb[30].mxu0  ;;  %v18582_v25 = vpop.f32.mrb[22].mxu1  ;;  %18616 = vmatmul.mubr.bf16.gmra.mrb[104].mxu0 %v22025_v38  ;;  %v19180_v38 = vld [vmem:[%s24791_s5 + $0xf0] sm:$0xff]   ;;  %v6395_v55 = vld [vmem:[#allocation2 + $0x107] sm:$0xff] }
 0x37c   : > { %vm6321_vm4 = vcmp.ge.f32.partialorder %v6277_v9, 0.0  ;;  %v6337_v16 = vmul.f32 0.01, %v6277_v9  ;;  %v6280_v30 = vadd.f32 %v18582_v25, %v22190_v0  ;;  %v16813_v39 = vpop.f32.mrb[31].mxu0  ;;  %v6271_v11 = vpop.f32.mrb[23].mxu1  ;;  %18619 = vmatprep.mubr.bf16.mxu0 %v22178_v19  ;;  %17176 = vmatpush3.bf16.msra.mxu0 %v19176_v43  ;;  %v19194_v43 = vld [vmem:[%s24791_s5 + $0x1c0] sm:$0xff]  }
 0x37d   : > { %vm6319_vm5 = vcmp.ge.f32.partialorder %v6269_v59, 0.0  ;;  %v6335_v45 = vmul.f32 0.01, %v6269_v59  ;;  %v16814_v50 = vadd.f32 %v16813_v39, %v16812_v42  ;;  %v6272_v33 = vadd.f32 %v6271_v11, %v22176_v52  ;;  %17177 = vmatprep.subr.bf16.mxu0 %v19177_v54  ;;  %7989 = vmatprep.mubr.bf16.mxu1 %v22258_v34  ;;  %v6396_v6 = vld [vmem:[#allocation2 + $0x10f] sm:$0xff]  ;;  %v19196_v11 = vld [vmem:[%s24791_s5 + $0x180] sm:$0xff]  }
 0x37e   : > { %v6353_v0 = vsel %vm6321_vm4, %v6277_v9, %v6337_v16  ;;  %vm6322_vm6 = vcmp.ge.f32.partialorder %v6280_v30, 0.0  ;;  %v6338_v32 = vmul.f32 0.01, %v6280_v30  ;;  %v22273_v5 = vadd.f32 %v16811_v58, %v22214_v37  ;;  %v6589_v16 = vld [vmem:[#allocation2 + $0x147] sm:$0xff] }
 0x37f   : > { %6369 = vst [vmem:[#allocation2 + $0x188] sm:$0xff] %v6353_v0  ;;  %v6351_v63 = vsel %vm6319_vm5, %v6269_v59, %v6335_v45  ;;  %vm6320_vm7 = vcmp.ge.f32.partialorder %v6272_v33, 0.0  ;;  %v6336_v53 = vmul.f32 0.01, %v6272_v33  ;;  %v22276_v56 = vadd.f32 %v16814_v50, %v22222_v51  ;;  %v6777_v48 = vld [vmem:[#allocation2 + $0x127] sm:$0xff] }
 0x380   : > { %6367 = vst [vmem:[#allocation2 + $0x168] sm:$0xff] %v6351_v63  ;;  %v6354_v52 = vsel %vm6322_vm6, %v6280_v30, %v6338_v32  ;;  %17178 = vmatpush3.bf16.msra.mxu0 %v19178_v40  ;;  %v6590_v54 = vld [vmem:[#allocation2 + $0x14f] sm:$0xff]  ;;  %v6419_v25 = vpack.c.bf16 %v6396_v6, %v6395_v55  ;;  %v19186_v30 = vld [vmem:[%s24791_s5 + $0x100] sm:$0xff]  }
 0x381   : > { %6370 = vst [vmem:[#allocation2 + $0x190] sm:$0xff] %v6354_v52  ;;  %v6352_v17 = vsel %vm6320_vm7, %v6272_v33, %v6336_v53  ;;  %v18585_v18 = vpop.f32.mrb[24].mxu1  ;;  %v6778_v37 = vld [vmem:[#allocation2 + $0x12f] sm:$0xff]  ;;  %17179 = vmatprep.subr.bf16.mxu0 %v19180_v38  ;;  %v22281_v26 = vpack.c.bf16 %v6354_v52, %v6353_v0  ;;  %v16847_v57 = vpop.f32.mrb[32].mxu0  ;;  %v22326_v50 = vpack.c.bf16 %v6590_v54, %v6589_v16 }
 0x382   : > { %v6905_v10 = vld [vmem:[#allocation2 + $0x129] sm:$0xff]  ;;  %v6906_v20 = vld [vmem:[#allocation2 + $0x131] sm:$0xff]  ;;  %6368 = vst [vmem:[#allocation2 + $0x170] sm:$0xff] %v6352_v17  ;;  %v6293_v51 = vadd.f32 %v18585_v18, %v22219_v21  ;;  %v6284_v61 = vpop.f32.mrb[25].mxu1  ;;  %v22284_v49 = vpack.c.bf16 %v6778_v37, %v6777_v48  ;;  %v22291_v7 = vpack.c.bf16 %v6352_v17, %v6351_v63  ;;  %v16848_v24 = vpop.f32.mrb[33].mxu0 }
 0x383   : > { %v22286_v28 = vpack.c.bf16 %v6906_v20, %v6905_v10  ;;  %v6285_v22 = vadd.f32 %v6284_v61, %v22197_v3  ;;  %v18586_v15 = vpop.f32.mrb[26].mxu1  ;;  %v22294_v8 = vadd.f32 %v16848_v24, %v16847_v57  ;;  %v16850_v31 = vpop.f32.mrb[34].mxu0  ;;  %v19184_v3 = vld [vmem:[%s24791_s5 + $0xb8] sm:$0xff]   ;;  %v19187_v33 = vld [vmem:[%s24791_s5 + $0x148] sm:$0xff]   ;;  %v19200_v17 = vld [vmem:[%s24791_s5 + $0x1d0] sm:$0xff]  }
 0x384   : > { %vm6325_vm8 = vcmp.ge.f32.partialorder %v6293_v51, 0.0  ;;  %v6341_v21 = vmul.f32 0.01, %v6293_v51  ;;  %v6296_v27 = vadd.f32 %v18586_v15, %v22224_v13  ;;  %v6287_v14 = vpop.f32.mrb[27].mxu1  ;;  %7990 = vmatmul.mubr.bf16.gmra.mrb[92].mxu1 %v22284_v49  ;;  %v16851_v2 = vpop.f32.mrb[35].mxu0  ;;  %17180 = vmatpush3.bf16.msra.mxu0 %v19182_v4  ;;  %v19197_v38 = vld [vmem:[%s24791_s5 + $0x1c8] sm:$0xff]  }
 0x385   : > { %18620 = vmatmul.mubr.bf16.gmra.mrb[108].mxu0 %v22286_v28  ;;  %vm6323_vm9 = vcmp.ge.f32.partialorder %v6285_v22, 0.0  ;;  %v6339_v41 = vmul.f32 0.01, %v6285_v22  ;;  %v6288_v12 = vadd.f32 %v6287_v14, %v22202_v35  ;;  %8846 = vmatprep.mubr.bf16.mxu1 %v22180_v23  ;;  %v22308_v1 = vadd.f32 %v16851_v2, %v16850_v31  ;;  %v19189_v4 = vld [vmem:[%s24791_s5 + $0x150] sm:$0xff]   ;;  %v19203_v15 = vld [vmem:[%s24791_s5 + $0x1d8] sm:$0xff]   ;;  %v19206_v2 = vld [vmem:[%s24791_s5 + $0x1e0] sm:$0xff]  }
 0x386   : > { %v6357_v62 = vsel %vm6325_vm8, %v6293_v51, %v6341_v21  ;;  %vm6326_vm10 = vcmp.ge.f32.partialorder %v6296_v27, 0.0  ;;  %v6342_v13 = vmul.f32 0.01, %v6296_v27  ;;  %8943 = vmatprep.mubr.bf16.mxu0 %v22284_v49  ;;  %17181 = vmatprep.subr.bf16.mxu0 %v19183_v29  ;;  %v19190_v51 = vld [vmem:[%s24791_s5 + $0x110] sm:$0xff]   ;;  %v19192_v31 = vld [vmem:[%s24791_s5 + $0x118] sm:$0xff]   ;;  %v19193_v21 = vld [vmem:[%s24791_s5 + $0x160] sm:$0xff]  }
 0x387   : > { %6373 = vst [vmem:[#allocation2 + $0x1c8] sm:$0xff] %v6357_v62  ;;  %v6355_v35 = vsel %vm6323_vm9, %v6285_v22, %v6339_v41  ;;  %vm6324_vm11 = vcmp.ge.f32.partialorder %v6288_v12, 0.0  ;;  %v6340_v23 = vmul.f32 0.01, %v6288_v12  ;;  %v6591_v57 = vld [vmem:[#allocation2 + $0x167] sm:$0xff]  ;;  %v19202_v61 = vld [vmem:[%s24791_s5 + $0x190] sm:$0xff]  }
 0x388   : > { %6371 = vst [vmem:[#allocation2 + $0x1a8] sm:$0xff] %v6355_v35  ;;  %v6358_v36 = vsel %vm6326_vm10, %v6296_v27, %v6342_v13  ;;  %17182 = vmatpush3.bf16.msra.mxu0 %v19184_v3  ;;  %v19191_v22 = vld [vmem:[%s24791_s5 + $0x158] sm:$0xff]   ;;  %v6527_v27 = vld [vmem:[#allocation2 + $0x149] sm:$0xff]  ;;  %v19208_v13 = vld [vmem:[%s24791_s5 + $0x1a0] sm:$0xff]  }
 0x389   : > { %6374 = vst [vmem:[#allocation2 + $0x1d0] sm:$0xff] %v6358_v36  ;;  %v22310_v9 = vsel %vm6324_vm11, %v6288_v12, %v6340_v23  ;;  %v18589_v44 = vpop.f32.mrb[28].mxu1  ;;  %v22312_v58 = vpack.c.bf16 %v6358_v36, %v6357_v62  ;;  %17295 = vmatprep.subr.bf16.mxu0 %v19194_v43  ;;  %v6592_v37 = vld [vmem:[#allocation2 + $0x16f] sm:$0xff]  ;;  %v6593_v3 = vld [vmem:[#allocation2 + $0x187] sm:$0xff] }
 0x38a   : > { %6372 = vst [vmem:[#allocation2 + $0x1b0] sm:$0xff] %v22310_v9  ;;  %v6309_v59 = vadd.f32 %v18589_v44, %v22273_v5  ;;  %v6300_v42 = vpop.f32.mrb[29].mxu1  ;;  %v22320_v39 = vpack.c.bf16 %v22310_v9, %v6355_v35  ;;  %v22371_v24 = vpack.c.bf16 %v6592_v37, %v6591_v57  ;;  %v6528_v14 = vld [vmem:[#allocation2 + $0x151] sm:$0xff]  ;;  %v19195_v62 = vld [vmem:[%s24791_s5 + $0x120] sm:$0xff]   ;;  %v19199_v35 = vld [vmem:[%s24791_s5 + $0x168] sm:$0xff]  }
 0x38b   : > { %v6301_v40 = vadd.f32 %v6300_v42, %v22244_v60  ;;  %v18590_v45 = vpop.f32.mrb[30].mxu1  ;;  %v6594_v41 = vld [vmem:[#allocation2 + $0x18f] sm:$0xff]  ;;  %v22395_v12 = vpack.c.bf16 %v6528_v14, %v6527_v27 }
 0x38c   : > { %vm6329_vm12 = vcmp.ge.f32.partialorder %v6309_v59, 0.0  ;;  %v6345_v0 = vmul.f32 0.01, %v6309_v59  ;;  %v6312_v32 = vadd.f32 %v18590_v45, %v22276_v56  ;;  %v6303_v5 = vpop.f32.mrb[31].mxu1  ;;  %8847 = vmatmul.mubr.bf16.vlgmr.msra.gmra.mrb[96].mxu1 %v6419_v25  ;;  %v19188_v56 = vld [vmem:[%s24791_s5 + $0x108] sm:$0xff]   ;;  %v22403_v43 = vpack.c.bf16 %v6594_v41, %v6593_v3  ;;  %v19205_v36 = vld [vmem:[%s24791_s5 + $0x170] sm:$0xff]  }
 0x38d   : > { %8944 = vmatmul.mubr.bf16.vlgmr.msra.gmra.mrb[112].mxu0 %v22178_v19  ;;  %vm6327_vm13 = vcmp.ge.f32.partialorder %v6301_v40, 0.0  ;;  %v6343_v60 = vmul.f32 0.01, %v6301_v40  ;;  %v6304_v63 = vadd.f32 %v6303_v5, %v22247_v47  ;;  %8854 = vmatprep.mubr.bf16.mxu1 %v22258_v34  ;;  %v19198_v19 = vld [vmem:[%s24791_s5 + $0x188] sm:$0xff]   ;;  %v6530_v55 = vld [vmem:[#allocation2 + $0x171] sm:$0xff] }
 0x38e   : > { %8951 = vmatprep.mubr.bf16.mxu0 %v22326_v50  ;;  %v22339_v53 = vsel %vm6329_vm12, %v6309_v59, %v6345_v0  ;;  %vm6330_vm14 = vcmp.ge.f32.partialorder %v6312_v32, 0.0  ;;  %v6346_v52 = vmul.f32 0.01, %v6312_v32  ;;  %17232 = vmatpush3.bf16.msra.mxu1 %v19186_v30  ;;  %v19209_v23 = vld [vmem:[%s24791_s5 + $0x1e8] sm:$0xff]   ;;  %v19212_v59 = vld [vmem:[%s24791_s5 + $0x1f0] sm:$0xff]   ;;  %v19211_v45 = vld [vmem:[%s24791_s5 + $0x178] sm:$0xff]  }
 0x38f   : > { %17296 = vmatpush3.bf16.msra.mxu0 %v19196_v11  ;;  %6377 = vst [vmem:[#allocation2 + $0x208] sm:$0xff] %v22339_v53  ;;  %v6359_v47 = vsel %vm6327_vm13, %v6301_v40, %v6343_v60  ;;  %vm6328_vm15 = vcmp.ge.f32.partialorder %v6304_v63, 0.0  ;;  %v6344_v48 = vmul.f32 0.01, %v6304_v63  ;;  %17233 = vmatprep.subr.bf16.mxu1 %v19187_v33  ;;  %v19201_v6 = vld [vmem:[%s24791_s5 + $0x128] sm:$0xff]   ;;  %v19207_v30 = vld [vmem:[%s24791_s5 + $0x130] sm:$0xff]  }
 0x390   : > { %17297 = vmatprep.subr.bf16.mxu0 %v19197_v38  ;;  %6375 = vst [vmem:[#allocation2 + $0x1e8] sm:$0xff] %v6359_v47  ;;  %v22354_v18 = vsel %vm6330_vm14, %v6312_v32, %v6346_v52  ;;  %v19210_v54 = vld [vmem:[%s24791_s5 + $0x1a8] sm:$0xff]   ;;  %v19214_v11 = vld [vmem:[%s24791_s5 + $0x1b0] sm:$0xff]   ;;  %v19215_v33 = vld [vmem:[%s24791_s5 + $0x1f8] sm:$0xff]  }
 0x391   : > { %6378 = vst [vmem:[#allocation2 + $0x210] sm:$0xff] %v22354_v18  ;;  %v22357_v10 = vsel %vm6328_vm15, %v6304_v63, %v6344_v48  ;;  %v6873_v20 = vpack.c.bf16 %v22354_v18, %v22339_v53  ;;  %v6529_v44 = vld [vmem:[#allocation2 + $0x169] sm:$0xff]  ;;  %v19213_v38 = vld [vmem:[%s24791_s5 + $0x138] sm:$0xff]   ;;  %v22456_v60 = vld [vmem:[%s24791_s5 + $0x200] sm:$0xff]  }
 0x392   : > { %6376 = vst [vmem:[#allocation2 + $0x1f0] sm:$0xff] %v22357_v10  ;;  %17234 = vmatpush3.bf16.msra.mxu1 %v19188_v56  ;;  %v22369_v29 = vpack.c.bf16 %v22357_v10, %v6359_v47  ;;  %v6596_v42 = vld [vmem:[#allocation2 + $0x1af] sm:$0xff]  ;;  %v22427_v25 = vpack.c.bf16 %v6530_v55, %v6529_v44  ;;  %v6595_v16 = vld [vmem:[#allocation2 + $0x1a7] sm:$0xff]  ;;  %v19216_v0 = vld [vmem:[%s24791_s5 + $0x1b8] sm:$0xff]  }
 0x393   : > { %17298 = vmatpush3.bf16.msra.mxu0 %v19198_v19  ;;  %17235 = vmatprep.subr.bf16.mxu1 %v19189_v4  ;;  %v22435_v40 = vpack.c.bf16 %v6596_v42, %v6595_v16  ;;  %v6531_v32 = vld [vmem:[#allocation2 + $0x189] sm:$0xff]  ;;  %v6532_v5 = vld [vmem:[#allocation2 + $0x191] sm:$0xff]  ;;  %v22495_v41 = vld [vmem:[%s24792_s6] ss:$0 sm:$0xff] }
 0x394   : > { %17299 = vmatprep.subr.bf16.mxu0 %v19200_v17  ;;  %8855 = vmatmul.mubr.bf16.gmra.mrb[100].mxu1 %v22284_v49  ;;  %v19204_v49 = vld [vmem:[%s24791_s5 + $0x198] sm:$0xff]   ;;  %v6598_v63 = vld [vmem:[#allocation2 + $0x1cf] sm:$0xff]  ;;  %v22458_v52 = vpack.c.bf16 %v6532_v5, %v6531_v32  ;;  %v6597_v56 = vld [vmem:[#allocation2 + $0x1c7] sm:$0xff] }
 0x395   : > { %8952 = vmatmul.mubr.bf16.gmra.mrb[116].mxu0 %v22286_v28  ;;  %8862 = vmatprep.mubr.bf16.mxu1 %v22255_v46  ;;  %v22460_v19 = vpack.c.bf16 %v6598_v63, %v6597_v56  ;;  %v19225_v47 = vld [vmem:[%s24793_s7 + $0x80] ss:$8 sps:$4 sm:$0xff]   ;;  %v6534_v4 = vld [vmem:[#allocation2 + $0x1b1] sm:$0xff] }
 0x396   : > { %8959 = vmatprep.mubr.bf16.mxu0 %v22371_v24  ;;  %17236 = vmatpush3.bf16.msra.mxu1 %v19190_v51  ;;  %v6533_v48 = vld [vmem:[#allocation2 + $0x1a9] sm:$0xff] }
 0x397   : > { %17300 = vmatpush3.bf16.msra.mxu0 %v19202_v61  ;;  %17237 = vmatprep.subr.bf16.mxu1 %v19191_v22  ;;  %v22470_v37 = vpack.c.bf16 %v6534_v4, %v6533_v48  ;;  %v6599_v57 = vld [vmem:[#allocation2 + $0x1e7] sm:$0xff]  ;;  %v6536_v22 = vld [vmem:[#allocation2 + $0x1d1] sm:$0xff] }
 0x398   : > { %17301 = vmatprep.subr.bf16.mxu0 %v19203_v15  ;;  %v6535_v61 = vld [vmem:[#allocation2 + $0x1c9] sm:$0xff] }
 0x399   : > { %v6600_v17 = vld [vmem:[#allocation2 + $0x1ef] sm:$0xff]  ;;  %v19226_v42 = vld [vmem:[%s24793_s7] ss:$8 sps:$4 sm:$0xff]  }
 0x39a   : > { %17238 = vmatpush3.bf16.msra.mxu1 %v19192_v31  ;;  %v22472_v51 = vpack.c.bf16 %v6600_v17, %v6599_v57  ;;  %v6602_v15 = vld [vmem:[#allocation2 + $0x20f] sm:$0xff]  ;;  %v22478_v31 = vpack.c.bf16 %v6536_v22, %v6535_v61 }
 0x39b   : > { %17302 = vmatpush3.bf16.msra.mxu0 %v19204_v49  ;;  %17239 = vmatprep.subr.bf16.mxu1 %v19193_v21  ;;  %v6601_v21 = vld [vmem:[#allocation2 + $0x207] sm:$0xff]  ;;  %v6538_v14 = vld [vmem:[#allocation2 + $0x1f1] sm:$0xff] }
 0x39c   : > { %17303 = vmatprep.subr.bf16.mxu0 %v19206_v2  ;;  %8863 = vmatmul.mubr.bf16.gmra.mrb[104].mxu1 %v22326_v50  ;;  %v22480_v49 = vpack.c.bf16 %v6602_v15, %v6601_v21  ;;  %v6537_v27 = vld [vmem:[#allocation2 + $0x1e9] sm:$0xff] }
 0x39d   : > { %8960 = vmatmul.mubr.bf16.gmra.mrb[120].mxu0 %v22395_v12  ;;  %8870 = vmatprep.mubr.bf16.mxu1 %v22291_v7  ;;  %v22486_v2 = vpack.c.bf16 %v6538_v14, %v6537_v27  ;;  %v6654_v32 = vld [vmem:[#allocation2 + $0x150] sm:$0xff]  ;;  %v6653_v17 = vld [vmem:[#allocation2 + $0x148] sm:$0xff] }
 0x39e   : > { %8967 = vmatprep.mubr.bf16.mxu0 %v22403_v43  ;;  %17240 = vmatpush3.bf16.msra.mxu1 %v19195_v62  ;;  %v7645_v62 = vadd.f32 %v22294_v8, %v22495_v41  ;;  %v6676_v22 = vpack.c.bf16 %v6654_v32, %v6653_v17  ;;  %v19231_v15 = vld [vmem:[%s24793_s7 + $0x20] ss:$8 sps:$4 sm:$0xff]   ;;  %v19241_v32 = vld [vmem:[%s24793_s7 + $0xd0] ss:$8 sps:$4 sm:$0xff]  }
 0x39f   : > { %17304 = vmatpush3.bf16.msra.mxu0 %v19208_v13  ;;  %17241 = vmatprep.subr.bf16.mxu1 %v19199_v35 }
 0x3a0   : > { %17305 = vmatprep.subr.bf16.mxu0 %v19209_v23 }
 0x3a2   : > { %17242 = vmatpush3.bf16.msra.mxu1 %v19201_v6 }
 0x3a3   : > { %17306 = vmatpush3.bf16.msra.mxu0 %v19210_v54  ;;  %17243 = vmatprep.subr.bf16.mxu1 %v19205_v36  ;;  %v7648_v54 = vadd.f32 %v22308_v1, %v22495_v41  ;;  %v19227_v1 = vld [vmem:[%s24793_s7 + $0x90] ss:$8 sps:$4 sm:$0xff]  }
 0x3a4   : > { %17307 = vmatprep.subr.bf16.mxu0 %v19212_v59  ;;  %8871 = vmatmul.mubr.bf16.gmra.mrb[108].mxu1 %v22371_v24 }
 0x3a5   : > { %8968 = vmatmul.mubr.bf16.gmra.mrb[124].mxu0 %v22427_v25  ;;  %8878 = vmatprep.mubr.bf16.mxu1 %v22281_v26 }
 0x3a6   : > { %8975 = vmatprep.mubr.bf16.mxu0 %v22435_v40  ;;  %17244 = vmatpush3.bf16.msra.mxu1 %v19207_v30  ;;  %v19218_v30 = vld [vmem:[%s24791_s5 + $0x208] sm:$0xff]  }
 0x3a7   : > { %17308 = vmatpush3.bf16.msra.mxu0 %v19214_v11  ;;  %17245 = vmatprep.subr.bf16.mxu1 %v19211_v45 }
 0x3a8   : > { %17309 = vmatprep.subr.bf16.mxu0 %v19215_v33  ;;  %v19228_v33 = vld [vmem:[%s24793_s7 + $0x10] ss:$8 sps:$4 sm:$0xff]  }
 0x3aa   : > { %17246 = vmatpush3.bf16.msra.mxu1 %v19213_v38 }
 0x3ab   : > { %17310 = vmatpush3.bf16.msra.mxu0 %v19216_v0  ;;  %18623 = vmatprep.subr.bf16.mxu1 %v22456_v60 }
 0x3ac   : > { %8879 = vmatmul.mubr.bf16.gmra.mrb[112].mxu1 %v22403_v43  ;;  %17375 = vmatprep.subr.bf16.mxu0 %v19225_v47 }
 0x3ad   : > { %8976 = vmatmul.mubr.bf16.gmra.mrb[128].mxu0 %v22458_v52  ;;  %8886 = vmatprep.mubr.bf16.mxu1 %v22320_v39 }
 0x3ae   : > { %8983 = vmatprep.mubr.bf16.mxu0 %v22460_v19 }
 0x3b4   : > { %8887 = vmatmul.mubr.bf16.gmra.mrb[116].mxu1 %v22435_v40 }
 0x3b5   : > { %8984 = vmatmul.mubr.bf16.gmra.mrb[132].mxu0 %v22470_v37  ;;  %8894 = vmatprep.mubr.bf16.mxu1 %v22312_v58 }
 0x3b6   : > { %8991 = vmatprep.mubr.bf16.mxu0 %v22472_v51 }
 0x3bc   : > { %8895 = vmatmul.mubr.bf16.gmra.mrb[120].mxu1 %v22460_v19 }
 0x3bd   : > { %8992 = vmatmul.mubr.bf16.gmra.mrb[136].mxu0 %v22478_v31  ;;  %8902 = vmatprep.mubr.bf16.mxu1 %v22369_v29 }
 0x3be   : > { %8999 = vmatprep.mubr.bf16.mxu0 %v22480_v49 }
 0x3c4   : > { %8903 = vmatmul.mubr.bf16.gmra.mrb[124].mxu1 %v22472_v51 }
 0x3c5   : > { %9000 = vmatmul.mubr.bf16.gmra.mrb[140].mxu0 %v22486_v2  ;;  %9040 = vmatprep.mubr.bf16.mxu1 %v22286_v28 }
 0x3c6   : > { %9137 = vmatprep.mubr.bf16.mxu0 %v22255_v46  ;;  %v16853_v3 = vpop.f32.mrb[36].mxu0 }
 0x3c7   : > { %v16854_v13 = vpop.f32.mrb[37].mxu0  ;;  %v16911_v35 = vpop.f32.mrb[32].mxu1 }
 0x3c8   : > { %v16855_v23 = vadd.f32 %v16854_v13, %v16853_v3  ;;  %v16856_v6 = vpop.f32.mrb[38].mxu0  ;;  %v16912_v36 = vpop.f32.mrb[33].mxu1  ;;  %v19220_v3 = vld [vmem:[%s24791_s5 + $0x218] sm:$0xff]  }
 0x3c9   : > { %v16857_v28 = vpop.f32.mrb[39].mxu0  ;;  %v16913_v44 = vadd.f32 %v16912_v36, %v16911_v35  ;;  %v16914_v46 = vpop.f32.mrb[34].mxu1 }
 0x3ca   : > { %v16858_v55 = vadd.f32 %v16857_v28, %v16856_v6  ;;  %v16915_v59 = vpop.f32.mrb[35].mxu1  ;;  %v7653_v56 = vadd.f32 %v16855_v23, %v22495_v41  ;;  %v19235_v23 = vld [vmem:[%s24793_s7 + $0x30] ss:$8 sps:$4 sm:$0xff]  }
 0x3cb   : > { %v22504_v16 = vadd.f32 %v16913_v44, %v7645_v62  ;;  %v16916_v8 = vadd.f32 %v16915_v59, %v16914_v46  ;;  %v19233_v62 = vld [vmem:[%s24793_s7 + $0xb0] ss:$8 sps:$4 sm:$0xff]  }
 0x3cc   : > { %9041 = vmatmul.mubr.bf16.vlgmr.msra.gmra.mrb[128].mxu1 %v22258_v34  ;;  %v19219_v34 = vld [vmem:[%s24791_s5 + $0x210] sm:$0xff]   ;;  %v7656_v21 = vadd.f32 %v16858_v55, %v22495_v41 }
 0x3cd   : > { %9138 = vmatmul.mubr.bf16.vlgmr.msra.gmra.mrb[144].mxu0 %v22326_v50  ;;  %9048 = vmatprep.mubr.bf16.mxu1 %v22395_v12  ;;  %v22516_v11 = vadd.f32 %v16916_v8, %v7648_v54  ;;  %v19229_v50 = vld [vmem:[%s24793_s7 + $0xa0] ss:$8 sps:$4 sm:$0xff]  }
 0x3ce   : > { %9145 = vmatprep.mubr.bf16.mxu0 %v22291_v7  ;;  %18624 = vmatpush3.bf16.msra.mxu1 %v22456_v60  ;;  %v16859_v45 = vpop.f32.mrb[40].mxu0  ;;  %v19237_v54 = vld [vmem:[%s24793_s7 + $0xc0] ss:$8 sps:$4 sm:$0xff]  }
 0x3cf   : > { %17376 = vmatpush3.bf16.msra.mxu0 %v19226_v42  ;;  %v16917_v38 = vpop.f32.mrb[36].mxu1  ;;  %v16860_v0 = vpop.f32.mrb[41].mxu0  ;;  %18625 = vmatprep.subr.bf16.mxu1 %v19218_v30 }
 0x3d0   : > { %17377 = vmatprep.subr.bf16.mxu0 %v19227_v1  ;;  %v16861_v5 = vadd.f32 %v16860_v0, %v16859_v45  ;;  %v16918_v60 = vpop.f32.mrb[37].mxu1  ;;  %v16862_v63 = vpop.f32.mrb[42].mxu0  ;;  %v19239_v1 = vld [vmem:[%s24793_s7 + $0x40] ss:$8 sps:$4 sm:$0xff]  }
 0x3d1   : > { %v16919_v47 = vadd.f32 %v16918_v60, %v16917_v38  ;;  %v16920_v48 = vpop.f32.mrb[38].mxu1  ;;  %v16863_v4 = vpop.f32.mrb[43].mxu0  ;;  %v19222_v0 = vld [vmem:[%s24791_s5 + $0x228] sm:$0xff]  }
 0x3d2   : > { %v16864_v57 = vadd.f32 %v16863_v4, %v16862_v63  ;;  %v16921_v61 = vpop.f32.mrb[39].mxu1  ;;  %18626 = vmatpush3.bf16.msra.mxu1 %v19218_v30  ;;  %v7661_v46 = vadd.f32 %v16861_v5, %v22495_v41  ;;  %v19243_v5 = vld [vmem:[%s24793_s7 + $0x50] ss:$8 sps:$4 sm:$0xff]  }
 0x3d3   : > { %17378 = vmatpush3.bf16.msra.mxu0 %v19228_v33  ;;  %v22533_v27 = vadd.f32 %v16919_v47, %v7653_v56  ;;  %v16922_v14 = vadd.f32 %v16921_v61, %v16920_v48  ;;  %18627 = vmatprep.subr.bf16.mxu1 %v19219_v34  ;;  %v6658_v56 = vld [vmem:[#allocation2 + $0x190] sm:$0xff] }
 0x3d4   : > { %17379 = vmatprep.subr.bf16.mxu0 %v19229_v50  ;;  %9049 = vmatmul.mubr.bf16.gmra.mrb[132].mxu1 %v6676_v22  ;;  %v7664_v45 = vadd.f32 %v16864_v57, %v22495_v41  ;;  %v6657_v22 = vld [vmem:[#allocation2 + $0x188] sm:$0xff] }
 0x3d5   : > { %9146 = vmatmul.mubr.bf16.gmra.mrb[148].mxu0 %v22371_v24  ;;  %v22542_v13 = vadd.f32 %v16922_v14, %v7656_v21  ;;  %9056 = vmatprep.mubr.bf16.mxu1 %v22427_v25  ;;  %v19221_v24 = vld [vmem:[%s24791_s5 + $0x220] sm:$0xff]   ;;  %v6678_v14 = vpack.c.bf16 %v6658_v56, %v6657_v22 }
 0x3d6   : > { %9153 = vmatprep.mubr.bf16.mxu0 %v22281_v26  ;;  %v16865_v35 = vpop.f32.mrb[44].mxu0  ;;  %18628 = vmatpush3.bf16.msra.mxu1 %v19219_v34 }
 0x3d7   : > { %17380 = vmatpush3.bf16.msra.mxu0 %v19231_v15  ;;  %v16923_v6 = vpop.f32.mrb[40].mxu1  ;;  %v16866_v36 = vpop.f32.mrb[45].mxu0  ;;  %18629 = vmatprep.subr.bf16.mxu1 %v19220_v3 }
 0x3d8   : > { %17381 = vmatprep.subr.bf16.mxu0 %v19233_v62  ;;  %v16867_v26 = vadd.f32 %v16866_v36, %v16865_v35  ;;  %v16924_v28 = vpop.f32.mrb[41].mxu1  ;;  %v16868_v44 = vpop.f32.mrb[46].mxu0  ;;  %v19249_v36 = vld [vmem:[%s24793_s7 + $0xf0] ss:$8 sps:$4 sm:$0xff]  }
 0x3d9   : > { %v16925_v55 = vadd.f32 %v16924_v28, %v16923_v6  ;;  %v16926_v59 = vpop.f32.mrb[42].mxu1  ;;  %v16869_v42 = vpop.f32.mrb[47].mxu0  ;;  %v19224_v6 = vld [vmem:[%s24791_s5 + $0x238] sm:$0xff]  }
 0x3da   : > { %v16870_v8 = vadd.f32 %v16869_v42, %v16868_v44  ;;  %v16927_v30 = vpop.f32.mrb[43].mxu1  ;;  %18630 = vmatpush3.bf16.msra.mxu1 %v19220_v3  ;;  %v7669_v4 = vadd.f32 %v16867_v26, %v22495_v41  ;;  %v19247_v3 = vld [vmem:[%s24793_s7 + $0x60] ss:$8 sps:$4 sm:$0xff]   ;;  %v19251_v26 = vld [vmem:[%s24793_s7 + $0x70] ss:$8 sps:$4 sm:$0xff]  }
 0x3db   : > { %17382 = vmatpush3.bf16.msra.mxu0 %v19235_v23  ;;  %v22560_v33 = vadd.f32 %v16925_v55, %v7661_v46  ;;  %v16928_v38 = vadd.f32 %v16927_v30, %v16926_v59  ;;  %18631 = vmatprep.subr.bf16.mxu1 %v19221_v24  ;;  %v6659_v46 = vld [vmem:[#allocation2 + $0x1a8] sm:$0xff] }
 0x3dc   : > { %17383 = vmatprep.subr.bf16.mxu0 %v19237_v54  ;;  %9057 = vmatmul.mubr.bf16.gmra.mrb[136].mxu1 %v22291_v7  ;;  %v19223_v7 = vld [vmem:[%s24791_s5 + $0x230] sm:$0xff]   ;;  %v7672_v62 = vadd.f32 %v16870_v8, %v22495_v41 }
 0x3dd   : > { %9154 = vmatmul.mubr.bf16.gmra.mrb[152].mxu0 %v22403_v43  ;;  %v22570_v34 = vadd.f32 %v16928_v38, %v7664_v45  ;;  %9064 = vmatprep.mubr.bf16.mxu1 %v22458_v52 }
 0x3de   : > { %9161 = vmatprep.mubr.bf16.mxu0 %v22320_v39  ;;  %v16871_v50 = vpop.f32.mrb[48].mxu0  ;;  %18632 = vmatpush3.bf16.msra.mxu1 %v19221_v24  ;;  %v19245_v39 = vld [vmem:[%s24793_s7 + $0xe0] ss:$8 sps:$4 sm:$0xff]  }
 0x3df   : > { %17384 = vmatpush3.bf16.msra.mxu0 %v19239_v1  ;;  %v16929_v60 = vpop.f32.mrb[44].mxu1  ;;  %v16872_v63 = vpop.f32.mrb[49].mxu0  ;;  %18633 = vmatprep.subr.bf16.mxu1 %v19222_v0 }
 0x3e0   : > { %17385 = vmatprep.subr.bf16.mxu0 %v19241_v32  ;;  %v16873_v43 = vadd.f32 %v16872_v63, %v16871_v50  ;;  %v16930_v47 = vpop.f32.mrb[45].mxu1  ;;  %v16874_v48 = vpop.f32.mrb[50].mxu0 }
 0x3e1   : > { %v16931_v17 = vadd.f32 %v16930_v47, %v16929_v60  ;;  %v16932_v57 = vpop.f32.mrb[46].mxu1  ;;  %v16875_v61 = vpop.f32.mrb[51].mxu0 }
 0x3e2   : > { %v16876_v15 = vadd.f32 %v16875_v61, %v16874_v48  ;;  %v16933_v21 = vpop.f32.mrb[47].mxu1  ;;  %18634 = vmatpush3.bf16.msra.mxu1 %v19222_v0  ;;  %v6679_v0 = vpack.c.bf16 %v22310_v9, %v6659_v46  ;;  %v19257_v9 = vld [vmem:[%s24793_s7 + $0x280] ss:$8 sps:$4 sm:$0xff]  }
 0x3e3   : > { %17386 = vmatpush3.bf16.msra.mxu0 %v19243_v5  ;;  %v22588_v35 = vadd.f32 %v16931_v17, %v7669_v4  ;;  %v16934_v23 = vadd.f32 %v16933_v21, %v16932_v57  ;;  %18635 = vmatprep.subr.bf16.mxu1 %v19223_v7  ;;  %v6661_v61 = vld [vmem:[#allocation2 + $0x1c8] sm:$0xff] }
 0x3e4   : > { %17387 = vmatprep.subr.bf16.mxu0 %v19245_v39  ;;  %9065 = vmatmul.mubr.bf16.gmra.mrb[140].mxu1 %v6678_v14  ;;  %v7680_v32 = vadd.f32 %v16876_v15, %v22495_v41  ;;  %v6662_v39 = vld [vmem:[#allocation2 + $0x1d0] sm:$0xff] }
 0x3e5   : > { %9162 = vmatmul.mubr.bf16.gmra.mrb[156].mxu0 %v22435_v40  ;;  %v22597_v24 = vadd.f32 %v16934_v23, %v7672_v62  ;;  %9072 = vmatprep.mubr.bf16.mxu1 %v22470_v37  ;;  %v19230_v40 = vld [vmem:[%s24793_s7 + $0x180] ss:$8 sps:$4 sm:$0xff]   ;;  %v6680_v15 = vpack.c.bf16 %v6662_v39, %v6661_v61 }
 0x3e6   : > { %9169 = vmatprep.mubr.bf16.mxu0 %v22312_v58  ;;  %v16877_v54 = vpop.f32.mrb[52].mxu0  ;;  %18636 = vmatpush3.bf16.msra.mxu1 %v19223_v7  ;;  %v7677_v58 = vadd.f32 %v16873_v43, %v22495_v41  ;;  %v6729_v46 = vld [vmem:[#allocation2 + $0x209] sm:$0xff] }
 0x3e7   : > { %17388 = vmatpush3.bf16.msra.mxu0 %v19247_v3  ;;  %v16935_v28 = vpop.f32.mrb[48].mxu1  ;;  %v16878_v44 = vpop.f32.mrb[53].mxu0  ;;  %18637 = vmatprep.subr.bf16.mxu1 %v19224_v6 }
 0x3e8   : > { %17389 = vmatprep.subr.bf16.mxu0 %v19249_v36  ;;  %v16879_v55 = vadd.f32 %v16878_v44, %v16877_v54  ;;  %v16936_v59 = vpop.f32.mrb[49].mxu1  ;;  %v16880_v42 = vpop.f32.mrb[54].mxu0  ;;  %v6663_v54 = vld [vmem:[#allocation2 + $0x1e8] sm:$0xff] }
 0x3e9   : > { %v16937_v8 = vadd.f32 %v16936_v59, %v16935_v28  ;;  %v16938_v30 = vpop.f32.mrb[50].mxu1  ;;  %v16881_v1 = vpop.f32.mrb[55].mxu0  ;;  %v6681_v18 = vpack.c.bf16 %v22357_v10, %v6663_v54 }
 0x3ea   : > { %v16882_v45 = vadd.f32 %v16881_v1, %v16880_v42  ;;  %v16939_v38 = vpop.f32.mrb[51].mxu1  ;;  %18638 = vmatpush3.bf16.msra.mxu1 %v19224_v6 }
 0x3eb   : > { %17390 = vmatpush3.bf16.msra.mxu0 %v19251_v26  ;;  %v22610_v50 = vadd.f32 %v16937_v8, %v7677_v58  ;;  %v16940_v5 = vadd.f32 %v16939_v38, %v16938_v30  ;;  %17439 = vmatprep.subr.bf16.mxu1 %v19230_v40  ;;  %v6730_v40 = vld [vmem:[#allocation2 + $0x211] sm:$0xff]  ;;  %v19644_v58 = vld [vmem:[#allocation2] sm:$0xff] }
 0x3ec   : > { %9073 = vmatmul.mubr.bf16.gmra.mrb[144].mxu1 %v6679_v0  ;;  %17503 = vmatprep.subr.bf16.mxu0 %v19257_v9  ;;  %v7688_v21 = vadd.f32 %v16882_v45, %v22495_v41  ;;  %v22632_v8 = vpack.c.bf16 %v19644_v58, %v19644_v58  ;;  %v22638_v38 = vpack.c.bf16 %v6730_v40, %v6729_v46 }
 0x3ed   : > { %9170 = vmatmul.mubr.bf16.gmra.mrb[160].mxu0 %v22460_v19  ;;  %v22613_v60 = vadd.f32 %v16940_v5, %v7680_v32  ;;  %9080 = vmatprep.mubr.bf16.mxu1 %v22478_v31  ;;  %v7685_v19 = vadd.f32 %v16879_v55, %v22495_v41  ;;  %v6793_v32 = vld [vmem:[#allocation2 + $0x227] sm:$0xff]  ;;  %v6794_v5 = vld [vmem:[#allocation2 + $0x22f] sm:$0xff] }
 0x3ee   : > { %9177 = vmatprep.mubr.bf16.mxu0 %v22369_v29  ;;  %v16883_v63 = vpop.f32.mrb[56].mxu0 }
 0x3ef   : > { %v16941_v56 = vpop.f32.mrb[52].mxu1  ;;  %v16884_v7 = vpop.f32.mrb[57].mxu0 }
 0x3f0   : > { %v16885_v43 = vadd.f32 %v16884_v7, %v16883_v63  ;;  %v16942_v47 = vpop.f32.mrb[53].mxu1  ;;  %v16886_v48 = vpop.f32.mrb[58].mxu0 }
 0x3f1   : > { %v16943_v4 = vadd.f32 %v16942_v47, %v16941_v56  ;;  %v16944_v17 = vpop.f32.mrb[54].mxu1  ;;  %v16887_v57 = vpop.f32.mrb[59].mxu0  ;;  %v6666_v56 = vld [vmem:[#allocation2 + $0x210] sm:$0xff]  ;;  %v6810_v47 = vpack.c.bf16 %v6794_v5, %v6793_v32 }
 0x3f2   : > { %v16888_v22 = vadd.f32 %v16887_v57, %v16886_v48  ;;  %v16945_v29 = vpop.f32.mrb[55].mxu1  ;;  %v7693_v55 = vadd.f32 %v16885_v43, %v22495_v41 }
 0x3f3   : > { %v22622_v14 = vadd.f32 %v16943_v4, %v7685_v19  ;;  %v16946_v3 = vadd.f32 %v16945_v29, %v16944_v17  ;;  %v6665_v17 = vld [vmem:[#allocation2 + $0x208] sm:$0xff] }
 0x3f4   : > { %9081 = vmatmul.mubr.bf16.gmra.mrb[148].mxu1 %v6680_v15  ;;  %v6682_v29 = vpack.c.bf16 %v6666_v56, %v6665_v17 }
 0x3f5   : > { %9178 = vmatmul.mubr.bf16.gmra.mrb[164].mxu0 %v22472_v51  ;;  %v22625_v62 = vadd.f32 %v16946_v3, %v7688_v21  ;;  %9088 = vmatprep.mubr.bf16.mxu1 %v22486_v2 }
 0x3f6   : > { %9185 = vmatprep.mubr.bf16.mxu0 %v6873_v20  ;;  %v16889_v23 = vpop.f32.mrb[60].mxu0  ;;  %v7696_v20 = vadd.f32 %v16888_v22, %v22495_v41 }
 0x3f7   : > { %v16947_v6 = vpop.f32.mrb[56].mxu1  ;;  %v16890_v36 = vpop.f32.mrb[61].mxu0 }
 0x3f8   : > { %v16891_v26 = vadd.f32 %v16890_v36, %v16889_v23  ;;  %v16948_v28 = vpop.f32.mrb[57].mxu1  ;;  %v16892_v44 = vpop.f32.mrb[62].mxu0  ;;  %v9363_v36 = vld [vmem:[#allocation2 + $0x7] sm:$0xff] }
 0x3f9   : > { %v16949_v51 = vadd.f32 %v16948_v28, %v16947_v6  ;;  %v16950_v59 = vpop.f32.mrb[58].mxu1  ;;  %v16893_v42 = vpop.f32.mrb[63].mxu0 }
 0x3fa   : > { %v16894_v30 = vadd.f32 %v16893_v42, %v16892_v44  ;;  %v16951_v53 = vpop.f32.mrb[59].mxu1  ;;  %v7701_v48 = vadd.f32 %v16891_v26, %v22495_v41 }
 0x3fb   : > { %v22636_v1 = vadd.f32 %v16949_v51, %v7693_v55  ;;  %v16952_v45 = vadd.f32 %v16951_v53, %v16950_v59  ;;  %v19232_v59 = vld [vmem:[%s24793_s7 + $0x100] ss:$8 sps:$4 sm:$0xff]  }
 0x3fc   : > { %9089 = vmatmul.mubr.bf16.gmra.mrb[152].mxu1 %v6681_v18  ;;  %v7704_v15 = vadd.f32 %v16894_v30, %v22495_v41  ;;  %v19234_v30 = vld [vmem:[%s24793_s7 + $0x190] ss:$8 sps:$4 sm:$0xff]   ;;  %v19258_v53 = vld [vmem:[%s24793_s7 + $0x200] ss:$8 sps:$4 sm:$0xff]  }
 0x3fd   : > { %9186 = vmatmul.mubr.bf16.gmra.mrb[168].mxu0 %v22480_v49  ;;  %v22641_v0 = vadd.f32 %v16952_v45, %v7696_v20  ;;  %9096 = vmatprep.mubr.bf16.mxu1 %v22638_v38  ;;  %v19259_v45 = vld [vmem:[%s24793_s7 + $0x290] ss:$8 sps:$4 sm:$0xff]  }
 0x3fe   : > { %9193 = vmatprep.mubr.bf16.mxu0 %v22632_v8  ;;  %v16975_v9 = vpop.f32.mrb[64].mxu0 }
 0x3ff   : > { %v16953_v10 = vpop.f32.mrb[60].mxu1  ;;  %v16976_v63 = vpop.f32.mrb[65].mxu0 }
 0x400   : > { %v16954_v7 = vpop.f32.mrb[61].mxu1  ;;  %v16977_v39 = vadd.f32 %v16976_v63, %v16975_v9  ;;  %v16978_v43 = vpop.f32.mrb[66].mxu0  ;;  %v19261_v63 = vld [vmem:[%s24793_s7 + $0x2a0] ss:$8 sps:$4 sm:$0xff]  }
 0x401   : > { %v16955_v19 = vadd.f32 %v16954_v7, %v16953_v10  ;;  %v16956_v49 = vpop.f32.mrb[62].mxu1  ;;  %v16979_v4 = vpop.f32.mrb[67].mxu0  ;;  %v19238_v10 = vld [vmem:[%s24793_s7 + $0x1a0] ss:$8 sps:$4 sm:$0xff]  }
 0x402   : > { %v7839_v57 = vadd.f32 %v16977_v39, %v22504_v16  ;;  %v16957_v61 = vpop.f32.mrb[63].mxu1  ;;  %v16980_v22 = vadd.f32 %v16979_v4, %v16978_v43  ;;  %v9364_v16 = vld [vmem:[#allocation2 + $0xf] sm:$0xff] }
 0x403   : > { %v22648_v21 = vadd.f32 %v16955_v19, %v7701_v48  ;;  %v16958_v3 = vadd.f32 %v16957_v61, %v16956_v49  ;;  %v22655_v40 = vpack.c.bf16 %v9364_v16, %v9363_v36  ;;  %v19240_v19 = vld [vmem:[%s24793_s7 + $0x120] ss:$8 sps:$4 sm:$0xff]  }
 0x404   : > { %v7842_v23 = vadd.f32 %v16980_v22, %v22516_v11  ;;  %9097 = vmatmul.mubr.bf16.gmra.mrb[156].mxu1 %v6682_v29  ;;  %v19263_v61 = vld [vmem:[%s24793_s7 + $0x220] ss:$8 sps:$4 sm:$0xff]  }
 0x405   : > { %9194 = vmatmul.mubr.bf16.gmra.mrb[172].mxu0 %v6810_v47  ;;  %v22651_v6 = vadd.f32 %v16958_v3, %v7704_v15  ;;  %18639 = vmatprep.mubr.bf16.mxu1 %v22395_v12  ;;  %v19244_v3 = vld [vmem:[%s24793_s7 + $0x130] ss:$8 sps:$4 sm:$0xff]   ;;  %v19246_v16 = vld [vmem:[%s24793_s7 + $0x1c0] ss:$8 sps:$4 sm:$0xff]  }
 0x406   : > { %10626 = vmatprep.mubr.bf16.mxu0 %v22632_v8  ;;  %v16981_v54 = vpop.f32.mrb[68].mxu0 }
 0x407   : > { %v17039_v26 = vpop.f32.mrb[64].mxu1  ;;  %v16982_v28 = vpop.f32.mrb[69].mxu0 }
 0x408   : > { %v16983_v44 = vadd.f32 %v16982_v28, %v16981_v54  ;;  %v17040_v41 = vpop.f32.mrb[65].mxu1  ;;  %v16984_v46 = vpop.f32.mrb[70].mxu0  ;;  %v19269_v54 = vld [vmem:[%s24793_s7 + $0x2c0] ss:$8 sps:$4 sm:$0xff]  }
 0x409   : > { %v17041_v55 = vadd.f32 %v17040_v41, %v17039_v26  ;;  %v17042_v11 = vpop.f32.mrb[66].mxu1  ;;  %v16985_v51 = vpop.f32.mrb[71].mxu0 }
 0x40a   : > { %v7847_v12 = vadd.f32 %v16983_v44, %v22533_v27  ;;  %v16986_v42 = vadd.f32 %v16985_v51, %v16984_v46  ;;  %v17043_v58 = vpop.f32.mrb[67].mxu1  ;;  %v19236_v27 = vld [vmem:[%s24793_s7 + $0x110] ss:$8 sps:$4 sm:$0xff]  }
 0x40b   : > { %v17044_v18 = vadd.f32 %v17043_v58, %v17042_v11  ;;  %v22667_v20 = vadd.f32 %v17041_v55, %v7839_v57  ;;  %v19242_v57 = vld [vmem:[%s24793_s7 + $0x1b0] ss:$8 sps:$4 sm:$0xff]   ;;  %v19248_v11 = vld [vmem:[%s24793_s7 + $0x140] ss:$8 sps:$4 sm:$0xff]  }
 0x40c   : > { %v7850_v32 = vadd.f32 %v16986_v42, %v22542_v13  ;;  %18640 = vmatmul.mubr.bf16.vlgmr.msra.gmra.mrb[160].mxu1 %v22427_v25  ;;  %v19260_v25 = vld [vmem:[%s24793_s7 + $0x210] ss:$8 sps:$4 sm:$0xff]   ;;  %v19271_v58 = vld [vmem:[%s24793_s7 + $0x240] ss:$8 sps:$4 sm:$0xff]  }
 0x40d   : > { %10627 = vmatmul.mubr.bf16.vlgmr.msra.gmra.mrb[176].mxu0 %v22655_v40  ;;  %18643 = vmatprep.mubr.bf16.mxu1 %v22458_v52  ;;  %v22679_v5 = vadd.f32 %v17044_v18, %v7842_v23  ;;  %v19250_v42 = vld [vmem:[%s24793_s7 + $0x1d0] ss:$8 sps:$4 sm:$0xff]  }
 0x40e   : > { %17440 = vmatpush3.bf16.msra.mxu1 %v19232_v59  ;;  %v16987_v9 = vpop.f32.mrb[72].mxu0  ;;  %17504 = vmatpush3.bf16.msra.mxu0 %v19258_v53 }
 0x40f   : > { %17441 = vmatprep.subr.bf16.mxu1 %v19234_v30  ;;  %v17045_v13 = vpop.f32.mrb[68].mxu1  ;;  %v16988_v52 = vpop.f32.mrb[73].mxu0  ;;  %17505 = vmatprep.subr.bf16.mxu0 %v19259_v45  ;;  %v6921_v45 = vld [vmem:[#allocation2 + $0x229] sm:$0xff] }
 0x410   : > { %v16989_v56 = vadd.f32 %v16988_v52, %v16987_v9  ;;  %v17046_v7 = vpop.f32.mrb[69].mxu1  ;;  %v16990_v39 = vpop.f32.mrb[74].mxu0 }
 0x411   : > { %v17047_v43 = vadd.f32 %v17046_v7, %v17045_v13  ;;  %v17048_v47 = vpop.f32.mrb[70].mxu1  ;;  %v16991_v48 = vpop.f32.mrb[75].mxu0  ;;  %v19277_v13 = vld [vmem:[%s24793_s7 + $0x2e0] ss:$8 sps:$4 sm:$0xff]  }
 0x412   : > { %17442 = vmatpush3.bf16.msra.mxu1 %v19236_v27  ;;  %v7855_v49 = vadd.f32 %v16989_v56, %v22560_v33  ;;  %v16992_v4 = vadd.f32 %v16991_v48, %v16990_v39  ;;  %v17049_v17 = vpop.f32.mrb[71].mxu1  ;;  %17506 = vmatpush3.bf16.msra.mxu0 %v19260_v25  ;;  %v19265_v33 = vld [vmem:[%s24793_s7 + $0x2b0] ss:$8 sps:$4 sm:$0xff]   ;;  %v19253_v25 = vld [vmem:[%s24793_s7 + $0x1e0] ss:$8 sps:$4 sm:$0xff]  }
 0x413   : > { %17443 = vmatprep.subr.bf16.mxu1 %v19238_v10  ;;  %v17050_v22 = vadd.f32 %v17049_v17, %v17048_v47  ;;  %v22700_v29 = vadd.f32 %v17047_v43, %v7847_v12  ;;  %17507 = vmatprep.subr.bf16.mxu0 %v19261_v63  ;;  %v19252_v27 = vld [vmem:[%s24793_s7 + $0x150] ss:$8 sps:$4 sm:$0xff]   ;;  %v19254_v48 = vld [vmem:[%s24793_s7 + $0x160] ss:$8 sps:$4 sm:$0xff]  }
 0x414   : > { %v7858_v15 = vadd.f32 %v16992_v4, %v22570_v34  ;;  %18644 = vmatmul.mubr.bf16.gmra.mrb[164].mxu1 %v22470_v37  ;;  %v19267_v37 = vld [vmem:[%s24793_s7 + $0x230] ss:$8 sps:$4 sm:$0xff]  }
 0x415   : > { %18647 = vmatprep.mubr.bf16.mxu1 %v22478_v31  ;;  %v22711_v23 = vadd.f32 %v17050_v22, %v7850_v32  ;;  %v6922_v32 = vld [vmem:[#allocation2 + $0x231] sm:$0xff] }
 0x416   : > { %17444 = vmatpush3.bf16.msra.mxu1 %v19240_v19  ;;  %v16993_v36 = vpop.f32.mrb[76].mxu0  ;;  %17508 = vmatpush3.bf16.msra.mxu0 %v19263_v61  ;;  %v6938_v7 = vpack.c.bf16 %v6922_v32, %v6921_v45  ;;  %v19255_v17 = vld [vmem:[%s24793_s7 + $0x1f0] ss:$8 sps:$4 sm:$0xff]  }
 0x417   : > { %17445 = vmatprep.subr.bf16.mxu1 %v19242_v57  ;;  %v17051_v34 = vpop.f32.mrb[72].mxu1  ;;  %v16994_v31 = vpop.f32.mrb[77].mxu0  ;;  %17509 = vmatprep.subr.bf16.mxu0 %v19265_v33  ;;  %v19279_v57 = vld [vmem:[%s24793_s7 + $0x260] ss:$8 sps:$4 sm:$0xff]  }
 0x418   : > { %v16995_v26 = vadd.f32 %v16994_v31, %v16993_v36  ;;  %v17052_v28 = vpop.f32.mrb[73].mxu1  ;;  %v16996_v44 = vpop.f32.mrb[78].mxu0 }
 0x419   : > { %v17053_v41 = vadd.f32 %v17052_v28, %v17051_v34  ;;  %v17054_v46 = vpop.f32.mrb[74].mxu1  ;;  %v16997_v55 = vpop.f32.mrb[79].mxu0 }
 0x41a   : > { %17446 = vmatpush3.bf16.msra.mxu1 %v19244_v3  ;;  %v7863_v51 = vadd.f32 %v16995_v26, %v22588_v35  ;;  %v16998_v59 = vadd.f32 %v16997_v55, %v16996_v44  ;;  %v17055_v12 = vpop.f32.mrb[75].mxu1  ;;  %17510 = vmatpush3.bf16.msra.mxu0 %v19267_v37  ;;  %v19273_v35 = vld [vmem:[%s24793_s7 + $0x2d0] ss:$8 sps:$4 sm:$0xff]  }
 0x41b   : > { %17447 = vmatprep.subr.bf16.mxu1 %v19246_v16  ;;  %v17056_v30 = vadd.f32 %v17055_v12, %v17054_v46  ;;  %v22732_v53 = vadd.f32 %v17053_v41, %v7855_v49  ;;  %17511 = vmatprep.subr.bf16.mxu0 %v19269_v54  ;;  %v19256_v3 = vld [vmem:[%s24793_s7 + $0x170] ss:$8 sps:$4 sm:$0xff]   ;;  %v19262_v16 = vld [vmem:[%s24793_s7 + $0x380] ss:$8 sps:$4 sm:$0xff]  }
 0x41c   : > { %v7866_v18 = vadd.f32 %v16998_v59, %v22597_v24  ;;  %18648 = vmatmul.mubr.bf16.gmra.mrb[168].mxu1 %v22486_v2  ;;  %v19275_v2 = vld [vmem:[%s24793_s7 + $0x250] ss:$8 sps:$4 sm:$0xff]  }
 0x41d   : > { %18651 = vmatprep.mubr.bf16.mxu1 %v22638_v38  ;;  %v22743_v9 = vadd.f32 %v17056_v30, %v7858_v15  ;;  %v19283_v37 = vld [vmem:[%s24793_s7 + $0x270] ss:$8 sps:$4 sm:$0xff]  }
 0x41e   : > { %17448 = vmatpush3.bf16.msra.mxu1 %v19248_v11  ;;  %v16999_v10 = vpop.f32.mrb[80].mxu0  ;;  %17512 = vmatpush3.bf16.msra.mxu0 %v19271_v58  ;;  %v22790_v58 = vld [vmem:[%s24793_s7 + $0x400] ss:$8 sps:$4 sm:$0xff]  }
 0x41f   : > { %17449 = vmatprep.subr.bf16.mxu1 %v19250_v42  ;;  %v17057_v24 = vpop.f32.mrb[76].mxu1  ;;  %v17000_v38 = vpop.f32.mrb[81].mxu0  ;;  %17513 = vmatprep.subr.bf16.mxu0 %v19273_v35 }
 0x420   : > { %v17001_v52 = vadd.f32 %v17000_v38, %v16999_v10  ;;  %v17058_v63 = vpop.f32.mrb[77].mxu1  ;;  %v17002_v56 = vpop.f32.mrb[82].mxu0 }
 0x421   : > { %v17059_v39 = vadd.f32 %v17058_v63, %v17057_v24  ;;  %v17060_v43 = vpop.f32.mrb[78].mxu1  ;;  %v17003_v47 = vpop.f32.mrb[83].mxu0 }
 0x422   : > { %17450 = vmatpush3.bf16.msra.mxu1 %v19252_v27  ;;  %v7871_v19 = vadd.f32 %v17001_v52, %v22610_v50  ;;  %v17004_v49 = vadd.f32 %v17003_v47, %v17002_v56  ;;  %v17061_v4 = vpop.f32.mrb[79].mxu1  ;;  %17514 = vmatpush3.bf16.msra.mxu0 %v19275_v2  ;;  %v19281_v50 = vld [vmem:[%s24793_s7 + $0x2f0] ss:$8 sps:$4 sm:$0xff]  }
 0x423   : > { %17451 = vmatprep.subr.bf16.mxu1 %v19253_v25  ;;  %v17062_v61 = vadd.f32 %v17061_v4, %v17060_v43  ;;  %v22764_v22 = vadd.f32 %v17059_v39, %v7863_v51  ;;  %17515 = vmatprep.subr.bf16.mxu0 %v19277_v13 }
 0x424   : > { %v7874_v33 = vadd.f32 %v17004_v49, %v22613_v60  ;;  %18652 = vmatmul.mubr.bf16.gmra.mrb[172].mxu1 %v6938_v7 }
 0x425   : > { %v22770_v15 = vadd.f32 %v17062_v61, %v7866_v18 }
 0x426   : > { %17452 = vmatpush3.bf16.msra.mxu1 %v19254_v48  ;;  %v17005_v36 = vpop.f32.mrb[84].mxu0  ;;  %17516 = vmatpush3.bf16.msra.mxu0 %v19279_v57 }
 0x427   : > { %17453 = vmatprep.subr.bf16.mxu1 %v19255_v17  ;;  %v17063_v60 = vpop.f32.mrb[80].mxu1  ;;  %v17006_v34 = vpop.f32.mrb[85].mxu0  ;;  %17517 = vmatprep.subr.bf16.mxu0 %v19281_v50 }
 0x428   : > { %v17007_v31 = vadd.f32 %v17006_v34, %v17005_v36  ;;  %v17064_v54 = vpop.f32.mrb[81].mxu1  ;;  %v17008_v26 = vpop.f32.mrb[86].mxu0 }
 0x429   : > { %v17065_v28 = vadd.f32 %v17064_v54, %v17063_v60  ;;  %v17066_v44 = vpop.f32.mrb[82].mxu1  ;;  %v17009_v41 = vpop.f32.mrb[87].mxu0 }
 0x42a   : > { %17454 = vmatpush3.bf16.msra.mxu1 %v19256_v3  ;;  %v7879_v46 = vadd.f32 %v17007_v31, %v22622_v14  ;;  %v17010_v55 = vadd.f32 %v17009_v41, %v17008_v26  ;;  %v17067_v11 = vpop.f32.mrb[83].mxu1  ;;  %17518 = vmatpush3.bf16.msra.mxu0 %v19283_v37 }
 0x42b   : > { %17567 = vmatprep.subr.bf16.mxu1 %v19262_v16  ;;  %v17068_v51 = vadd.f32 %v17067_v11, %v17066_v44  ;;  %v22782_v59 = vadd.f32 %v17065_v28, %v7871_v19  ;;  %18655 = vmatprep.subr.bf16.mxu0 %v22790_v58 }
 0x42c   : > { %v7882_v12 = vadd.f32 %v17010_v55, %v22625_v62 }
 0x42d   : > { %v22785_v42 = vadd.f32 %v17068_v51, %v7874_v33 }
 0x42e   : > { %v17011_v30 = vpop.f32.mrb[88].mxu0 }
 0x42f   : > { %v17069_v35 = vpop.f32.mrb[84].mxu1  ;;  %v17012_v18 = vpop.f32.mrb[89].mxu0 }
 0x430   : > { %v17013_v14 = vadd.f32 %v17012_v18, %v17011_v30  ;;  %v17070_v45 = vpop.f32.mrb[85].mxu1  ;;  %v17014_v32 = vpop.f32.mrb[90].mxu0 }
 0x431   : > { %v17071_v27 = vadd.f32 %v17070_v45, %v17069_v35  ;;  %v17072_v10 = vpop.f32.mrb[86].mxu1  ;;  %v17015_v25 = vpop.f32.mrb[91].mxu0 }
 0x432   : > { %v7887_v62 = vadd.f32 %v17013_v14, %v22636_v1  ;;  %v17016_v2 = vadd.f32 %v17015_v25, %v17014_v32  ;;  %v17073_v24 = vpop.f32.mrb[87].mxu1 }
 0x433   : > { %v17074_v38 = vadd.f32 %v17073_v24, %v17072_v10  ;;  %v22794_v13 = vadd.f32 %v17071_v27, %v7879_v46  ;;  %v9491_v27 = vld [vmem:[#allocation2 + $0x9] sm:$0xff]  ;;  %v9492_v10 = vld [vmem:[#allocation2 + $0x11] sm:$0xff] }
 0x434   : > { %v7890_v52 = vadd.f32 %v17016_v2, %v22641_v0 }
 0x435   : > { %v22797_v63 = vadd.f32 %v17074_v38, %v7882_v12 }
 0x436   : > { %v17017_v56 = vpop.f32.mrb[92].mxu0 }
 0x437   : > { %v17075_v7 = vpop.f32.mrb[88].mxu1  ;;  %v17018_v39 = vpop.f32.mrb[93].mxu0 }
 0x438   : > { %v17019_v43 = vadd.f32 %v17018_v39, %v17017_v56  ;;  %v17076_v47 = vpop.f32.mrb[89].mxu1  ;;  %v17020_v48 = vpop.f32.mrb[94].mxu0 }
 0x439   : > { %v17077_v19 = vadd.f32 %v17076_v47, %v17075_v7  ;;  %v17078_v49 = vpop.f32.mrb[90].mxu1  ;;  %v17021_v4 = vpop.f32.mrb[95].mxu0 }
 0x43a   : > { %v22800_v1 = vadd.f32 %v17019_v43, %v22648_v21  ;;  %v17022_v17 = vadd.f32 %v17021_v4, %v17020_v48  ;;  %v17079_v57 = vpop.f32.mrb[91].mxu1  ;;  %v19264_v48 = vld [vmem:[%s24793_s7 + $0x300] ss:$8 sps:$4 sm:$0xff]  }
 0x43b   : > { %v17080_v61 = vadd.f32 %v17079_v57, %v17078_v49  ;;  %v22802_v50 = vadd.f32 %v17077_v19, %v7887_v62 }
 0x43c   : > { %v22805_v0 = vadd.f32 %v17022_v17, %v22651_v6  ;;  %v19266_v17 = vld [vmem:[%s24793_s7 + $0x390] ss:$8 sps:$4 sm:$0xff]  }
 0x43d   : > { %v22807_v33 = vadd.f32 %v17080_v61, %v7890_v52  ;;  %v22828_v52 = vpack.c.bf16 %v9492_v10, %v9491_v27 }
 0x43e   : > { %v18609_v3 = vpop.f32.mrb[96].mxu0 }
 0x43f   : > { %v8041_v36 = vadd.f32 %v18609_v3, %v22700_v29  ;;  %v8032_v16 = vpop.f32.mrb[97].mxu0 }
 0x440   : > { %v8033_v37 = vadd.f32 %v8032_v16, %v22667_v20  ;;  %v18610_v60 = vpop.f32.mrb[98].mxu0 }
 0x441   : > { %vm8097_vm0 = vcmp.ge.f32.partialorder %v8041_v36, 0.0  ;;  %v8113_v21 = vmul.f32 0.01, %v8041_v36  ;;  %v8044_v34 = vadd.f32 %v18610_v60, %v22711_v23  ;;  %v8035_v31 = vpop.f32.mrb[99].mxu0 }
 0x442   : > { %vm8095_vm1 = vcmp.ge.f32.partialorder %v8033_v37, 0.0  ;;  %v8111_v54 = vmul.f32 0.01, %v8033_v37  ;;  %v8036_v26 = vadd.f32 %v8035_v31, %v22679_v5 }
 0x443   : > { %v8129_v6 = vsel %vm8097_vm0, %v8041_v36, %v8113_v21  ;;  %vm8098_vm2 = vcmp.ge.f32.partialorder %v8044_v34, 0.0  ;;  %v8114_v28 = vmul.f32 0.01, %v8044_v34 }
 0x444   : > { %8145 = vst [vmem:[#allocation2 + $0x48] sm:$0xff] %v8129_v6  ;;  %v8127_v44 = vsel %vm8095_vm1, %v8033_v37, %v8111_v54  ;;  %vm8096_vm3 = vcmp.ge.f32.partialorder %v8036_v26, 0.0  ;;  %v8112_v29 = vmul.f32 0.01, %v8036_v26 }
 0x445   : > { %8143 = vst [vmem:[#allocation2 + $0x28] sm:$0xff] %v8127_v44  ;;  %v22813_v41 = vsel %vm8098_vm2, %v8044_v34, %v8114_v28 }
 0x446   : > { %8146 = vst [vmem:[#allocation2 + $0x50] sm:$0xff] %v22813_v41  ;;  %v8128_v20 = vsel %vm8096_vm3, %v8036_v26, %v8112_v29  ;;  %v18613_v46 = vpop.f32.mrb[100].mxu0  ;;  %v22817_v23 = vpack.c.bf16 %v22813_v41, %v8129_v6 }
 0x447   : > { %8144 = vst [vmem:[#allocation2 + $0x30] sm:$0xff] %v8128_v20  ;;  %v8057_v5 = vadd.f32 %v18613_v46, %v22764_v22  ;;  %v8048_v55 = vpop.f32.mrb[101].mxu0  ;;  %v22820_v11 = vpack.c.bf16 %v8128_v20, %v8127_v44  ;;  %v19272_v46 = vld [vmem:[%s24793_s7 + $0x320] ss:$8 sps:$4 sm:$0xff]  }
 0x448   : > { %v8049_v51 = vadd.f32 %v8048_v55, %v22732_v53  ;;  %v18614_v12 = vpop.f32.mrb[102].mxu0 }
 0x449   : > { %vm8101_vm4 = vcmp.ge.f32.partialorder %v8057_v5, 0.0  ;;  %v8117_v30 = vmul.f32 0.01, %v8057_v5  ;;  %v8060_v35 = vadd.f32 %v18614_v12, %v22770_v15  ;;  %v8051_v18 = vpop.f32.mrb[103].mxu0  ;;  %10634 = vmatprep.mubr.bf16.mxu0 %v22820_v11 }
 0x44a   : > { %vm8099_vm5 = vcmp.ge.f32.partialorder %v8049_v51, 0.0  ;;  %v8115_v14 = vmul.f32 0.01, %v8049_v51  ;;  %v8052_v45 = vadd.f32 %v8051_v18, %v22743_v9 }
 0x44b   : > { %v8133_v32 = vsel %vm8101_vm4, %v8057_v5, %v8117_v30  ;;  %vm8102_vm6 = vcmp.ge.f32.partialorder %v8060_v35, 0.0  ;;  %v8118_v22 = vmul.f32 0.01, %v8060_v35  ;;  %v9557_v4 = vld [vmem:[#allocation2 + $0x47] sm:$0xff]  ;;  %v19274_v30 = vld [vmem:[%s24793_s7 + $0x3b0] ss:$8 sps:$4 sm:$0xff]  }
 0x44c   : > { %8149 = vst [vmem:[#allocation2 + $0x88] sm:$0xff] %v8133_v32  ;;  %v8131_v25 = vsel %vm8099_vm5, %v8049_v51, %v8115_v14  ;;  %vm8100_vm7 = vcmp.ge.f32.partialorder %v8052_v45, 0.0  ;;  %v8116_v53 = vmul.f32 0.01, %v8052_v45  ;;  %v9555_v24 = vld [vmem:[#allocation2 + $0x27] sm:$0xff] }
 0x44d   : > { %8147 = vst [vmem:[#allocation2 + $0x68] sm:$0xff] %v8131_v25  ;;  %v8134_v62 = vsel %vm8102_vm6, %v8060_v35, %v8118_v22  ;;  %v9558_v9 = vld [vmem:[#allocation2 + $0x4f] sm:$0xff] }
 0x44e   : > { %8150 = vst [vmem:[#allocation2 + $0x90] sm:$0xff] %v8134_v62  ;;  %v22826_v15 = vsel %vm8100_vm7, %v8052_v45, %v8116_v53  ;;  %v18617_v2 = vpop.f32.mrb[104].mxu0  ;;  %v9556_v38 = vld [vmem:[#allocation2 + $0x2f] sm:$0xff]  ;;  %v22830_v56 = vpack.c.bf16 %v8134_v62, %v8133_v32  ;;  %v22849_v3 = vpack.c.bf16 %v9558_v9, %v9557_v4 }
 0x44f   : > { %8148 = vst [vmem:[#allocation2 + $0x70] sm:$0xff] %v22826_v15  ;;  %v8073_v7 = vadd.f32 %v18617_v2, %v22794_v13  ;;  %v8064_v39 = vpop.f32.mrb[105].mxu0  ;;  %v22834_v43 = vpack.c.bf16 %v9556_v38, %v9555_v24  ;;  %v22837_v47 = vpack.c.bf16 %v22826_v15, %v8131_v25  ;;  %v9493_v31 = vld [vmem:[#allocation2 + $0x29] sm:$0xff]  ;;  %v9494_v54 = vld [vmem:[#allocation2 + $0x31] sm:$0xff] }
 0x450   : > { %v8065_v19 = vadd.f32 %v8064_v39, %v22782_v59  ;;  %v18618_v49 = vpop.f32.mrb[106].mxu0  ;;  %v22872_v51 = vpack.c.bf16 %v9494_v54, %v9493_v31  ;;  %v19278_v2 = vld [vmem:[%s24793_s7 + $0x3c0] ss:$8 sps:$4 sm:$0xff]  }
 0x451   : > { %vm8105_vm8 = vcmp.ge.f32.partialorder %v8073_v7, 0.0  ;;  %v8121_v13 = vmul.f32 0.01, %v8073_v7  ;;  %v8076_v57 = vadd.f32 %v18618_v49, %v22797_v63  ;;  %v8067_v61 = vpop.f32.mrb[107].mxu0  ;;  %10723 = vmatprep.mubr.bf16.mxu1 %v22834_v43  ;;  %10635 = vmatmul.mubr.bf16.gmra.mrb[180].mxu0 %v22834_v43  ;;  %v19268_v63 = vld [vmem:[%s24793_s7 + $0x310] ss:$8 sps:$4 sm:$0xff]  }
 0x452   : > { %vm8103_vm9 = vcmp.ge.f32.partialorder %v8065_v19, 0.0  ;;  %v8119_v36 = vmul.f32 0.01, %v8065_v19  ;;  %v8068_v59 = vadd.f32 %v8067_v61, %v22785_v42  ;;  %10724 = vmatmul.mubr.bf16.vlgmr.msra.gmra.mrb[176].mxu1 %v22828_v52  ;;  %10642 = vmatprep.mubr.bf16.mxu0 %v22817_v23  ;;  %v19270_v42 = vld [vmem:[%s24793_s7 + $0x3a0] ss:$8 sps:$4 sm:$0xff]  }
 0x453   : > { %v8137_v16 = vsel %vm8105_vm8, %v8073_v7, %v8121_v13  ;;  %vm8106_vm10 = vcmp.ge.f32.partialorder %v8076_v57, 0.0  ;;  %v8122_v37 = vmul.f32 0.01, %v8076_v57  ;;  %10731 = vmatprep.mubr.bf16.mxu1 %v22849_v3  ;;  %17568 = vmatpush3.bf16.msra.mxu1 %v19264_v48  ;;  %v9495_v9 = vld [vmem:[#allocation2 + $0x49] sm:$0xff]  ;;  %v9496_v7 = vld [vmem:[#allocation2 + $0x51] sm:$0xff] }
 0x454   : > { %8153 = vst [vmem:[#allocation2 + $0xc8] sm:$0xff] %v8137_v16  ;;  %v8135_v60 = vsel %vm8103_vm9, %v8065_v19, %v8119_v36  ;;  %vm8104_vm11 = vcmp.ge.f32.partialorder %v8068_v59, 0.0  ;;  %v8120_v21 = vmul.f32 0.01, %v8068_v59  ;;  %17569 = vmatprep.subr.bf16.mxu1 %v19266_v17  ;;  %v9559_v12 = vld [vmem:[#allocation2 + $0x67] sm:$0xff]  ;;  %v22900_v36 = vpack.c.bf16 %v9496_v7, %v9495_v9 }
 0x455   : > { %8151 = vst [vmem:[#allocation2 + $0xa8] sm:$0xff] %v8135_v60  ;;  %v8138_v34 = vsel %vm8106_vm10, %v8076_v57, %v8122_v37  ;;  %v9562_v39 = vld [vmem:[#allocation2 + $0x8f] sm:$0xff]  ;;  %v22896_v19 = vld [vmem:[%s24792_s6] ss:$0 sm:$0xff]  ;;  %v9561_v13 = vld [vmem:[#allocation2 + $0x87] sm:$0xff] }
 0x456   : > { %8154 = vst [vmem:[#allocation2 + $0xd0] sm:$0xff] %v8138_v34  ;;  %v22861_v26 = vsel %vm8104_vm11, %v8068_v59, %v8120_v21  ;;  %v9560_v6 = vld [vmem:[#allocation2 + $0x6f] sm:$0xff]  ;;  %v22863_v28 = vpack.c.bf16 %v8138_v34, %v8137_v16  ;;  %v22902_v59 = vpack.c.bf16 %v9562_v39, %v9561_v13  ;;  %v19280_v16 = vld [vmem:[%s24793_s7 + $0x340] ss:$8 sps:$4 sm:$0xff]  }
 0x457   : > { %8152 = vst [vmem:[#allocation2 + $0xb0] sm:$0xff] %v22861_v26  ;;  %v17081_v44 = vpop.f32.mrb[92].mxu1  ;;  %v22867_v20 = vpack.c.bf16 %v22861_v26, %v8135_v60  ;;  %17570 = vmatpush3.bf16.msra.mxu1 %v19268_v63  ;;  %v22879_v32 = vpack.c.bf16 %v9560_v6, %v9559_v12  ;;  %v19282_v37 = vld [vmem:[%s24793_s7 + $0x3d0] ss:$8 sps:$4 sm:$0xff]  }
 0x458   : > { %v18621_v29 = vpop.f32.mrb[108].mxu0  ;;  %v17082_v5 = vpop.f32.mrb[93].mxu1  ;;  %17571 = vmatprep.subr.bf16.mxu1 %v19270_v42  ;;  %v19284_v12 = vld [vmem:[%s24793_s7 + $0x350] ss:$8 sps:$4 sm:$0xff]  }
 0x459   : > { %v8080_v55 = vpop.f32.mrb[109].mxu0  ;;  %v17083_v35 = vadd.f32 %v17082_v5, %v17081_v44  ;;  %v17084_v14 = vpop.f32.mrb[94].mxu1  ;;  %10643 = vmatmul.mubr.bf16.gmra.mrb[184].mxu0 %v22849_v3 }
 0x45a   : > { %v8081_v18 = vadd.f32 %v8080_v55, %v22802_v50  ;;  %v18622_v45 = vpop.f32.mrb[110].mxu0  ;;  %v17085_v22 = vpop.f32.mrb[95].mxu1  ;;  %10732 = vmatmul.mubr.bf16.gmra.mrb[180].mxu1 %v22872_v51  ;;  %10650 = vmatprep.mubr.bf16.mxu0 %v22837_v47  ;;  %v19276_v50 = vld [vmem:[%s24793_s7 + $0x330] ss:$8 sps:$4 sm:$0xff]  }
 0x45b   : > { %v8083_v27 = vpop.f32.mrb[111].mxu0  ;;  %v7992_v10 = vadd.f32 %v17083_v35, %v22800_v1  ;;  %v17086_v53 = vadd.f32 %v17085_v22, %v17084_v14  ;;  %10739 = vmatprep.mubr.bf16.mxu1 %v22879_v32  ;;  %17572 = vmatpush3.bf16.msra.mxu1 %v19272_v46  ;;  %v9498_v14 = vld [vmem:[#allocation2 + $0x71] sm:$0xff] }
 0x45c   : > { %vm8107_vm12 = vcmp.ge.f32.partialorder %v8081_v18, 0.0  ;;  %v8123_v25 = vmul.f32 0.01, %v8081_v18  ;;  %v8084_v62 = vadd.f32 %v8083_v27, %v22807_v33  ;;  %17573 = vmatprep.subr.bf16.mxu1 %v19274_v30 }
 0x45d   : > { %v8089_v24 = vadd.f32 %v18621_v29, %v7992_v10  ;;  %v7995_v1 = vadd.f32 %v17086_v53, %v22805_v0 }
 0x45e   : > { %v8139_v38 = vsel %vm8107_vm12, %v8081_v18, %v8123_v25  ;;  %vm8108_vm13 = vcmp.ge.f32.partialorder %v8084_v62, 0.0  ;;  %v8124_v48 = vmul.f32 0.01, %v8084_v62  ;;  %v9497_v18 = vld [vmem:[#allocation2 + $0x69] sm:$0xff] }
 0x45f   : > { %8155 = vst [vmem:[#allocation2 + $0xe8] sm:$0xff] %v8139_v38  ;;  %vm8109_vm14 = vcmp.ge.f32.partialorder %v8089_v24, 0.0  ;;  %v8125_v33 = vmul.f32 0.01, %v8089_v24  ;;  %v8092_v49 = vadd.f32 %v18622_v45, %v7995_v1  ;;  %v17119_v4 = vpop.f32.mrb[96].mxu1  ;;  %17574 = vmatpush3.bf16.msra.mxu1 %v19276_v50  ;;  %v9564_v45 = vld [vmem:[#allocation2 + $0xaf] sm:$0xff] }
 0x460   : > { %v17183_v17 = vpop.f32.mrb[112].mxu0  ;;  %v22898_v57 = vsel %vm8108_vm13, %v8084_v62, %v8124_v48  ;;  %v17120_v0 = vpop.f32.mrb[97].mxu1  ;;  %17575 = vmatprep.subr.bf16.mxu1 %v19278_v2  ;;  %v19285_v25 = vld [vmem:[%s24793_s7 + $0x3e0] ss:$8 sps:$4 sm:$0xff]   ;;  %v22930_v62 = vpack.c.bf16 %v9498_v14, %v9497_v18  ;;  %v19287_v48 = vld [vmem:[%s24793_s7 + $0x3f0] ss:$8 sps:$4 sm:$0xff]  }
 0x461   : > { %v17184_v61 = vpop.f32.mrb[113].mxu0  ;;  %v8141_v63 = vsel %vm8109_vm14, %v8089_v24, %v8125_v33  ;;  %vm8110_vm15 = vcmp.ge.f32.partialorder %v8092_v49, 0.0  ;;  %v8126_v60 = vmul.f32 0.01, %v8092_v49  ;;  %8156 = vst [vmem:[#allocation2 + $0xf0] sm:$0xff] %v22898_v57  ;;  %v17121_v21 = vadd.f32 %v17120_v0, %v17119_v4  ;;  %v17122_v42 = vpop.f32.mrb[98].mxu1  ;;  %10651 = vmatmul.mubr.bf16.gmra.mrb[188].mxu0 %v22879_v32 }
 0x462   : > { %v17186_v34 = vpop.f32.mrb[114].mxu0  ;;  %8157 = vst [vmem:[#allocation2 + $0x108] sm:$0xff] %v8141_v63  ;;  %v17185_v31 = vadd.f32 %v17184_v61, %v17183_v17  ;;  %v17123_v54 = vpop.f32.mrb[99].mxu1  ;;  %10740 = vmatmul.mubr.bf16.gmra.mrb[184].mxu1 %v22900_v36  ;;  %10658 = vmatprep.mubr.bf16.mxu0 %v22830_v56  ;;  %v22915_v44 = vpack.c.bf16 %v22898_v57, %v8139_v38  ;;  %24866 = vst [vmem:[#allocation4_spill] sm:$0xff] %v22930_v62  ;;  %v9563_v2 = vld [vmem:[#allocation2 + $0xa7] sm:$0xff]  ;;  %v9500_v63 = vld [vmem:[#allocation2 + $0x91] sm:$0xff] }
 0x463   : > { %v17187_v6 = vpop.f32.mrb[115].mxu0  ;;  %v8142_v29 = vsel %vm8110_vm15, %v8092_v49, %v8126_v60  ;;  %v8849_v46 = vadd.f32 %v17121_v21, %v22896_v19  ;;  %v17124_v5 = vadd.f32 %v17123_v54, %v17122_v42  ;;  %10747 = vmatprep.mubr.bf16.mxu1 %v22902_v59  ;;  %17576 = vmatpush3.bf16.msra.mxu1 %v19280_v16  ;;  %v19286_v24 = vld [vmem:[%s24793_s7 + $0x360] ss:$8 sps:$4 sm:$0xff]   ;;  %v19288_v0 = vld [vmem:[%s24793_s7 + $0x370] ss:$8 sps:$4 sm:$0xff]  }
 0x464   : > { %v17188_v55 = vadd.f32 %v17187_v6, %v17186_v34  ;;  %8158 = vst [vmem:[#allocation2 + $0x110] sm:$0xff] %v8142_v29  ;;  %17577 = vmatprep.subr.bf16.mxu1 %v19282_v37  ;;  %v22936_v39 = vpack.c.bf16 %v9564_v45, %v9563_v2  ;;  %v9499_v37 = vld [vmem:[#allocation2 + $0x89] sm:$0xff] }
 0x465   : > { %v22922_v30 = vadd.f32 %v17185_v31, %v8849_v46  ;;  %v8852_v35 = vadd.f32 %v17124_v5, %v22896_v19  ;;  %v19294_v60 = vld [vmem:[%s24793_s7 + $0x80] ss:$8 sps:$4 sm:$0xff]   ;;  %v9566_v21 = vld [vmem:[#allocation2 + $0xcf] sm:$0xff]  ;;  %v22956_v29 = vpack.c.bf16 %v9500_v63, %v9499_v37 }
 0x466   : > { %v9565_v46 = vld [vmem:[#allocation2 + $0xc7] sm:$0xff] }
 0x467   : > { %v22925_v22 = vadd.f32 %v17188_v55, %v8852_v35  ;;  %v17125_v27 = vpop.f32.mrb[100].mxu1  ;;  %17578 = vmatpush3.bf16.msra.mxu1 %v19284_v12  ;;  %24867 = vst [vmem:[#allocation5_spill] sm:$0xff] %v22956_v29  ;;  %v22959_v18 = vpack.c.bf16 %v9566_v21, %v9565_v46  ;;  %v9501_v2 = vld [vmem:[#allocation2 + $0xa9] sm:$0xff] }
 0x468   : > { %v17189_v10 = vpop.f32.mrb[116].mxu0  ;;  %v17126_v53 = vpop.f32.mrb[101].mxu1  ;;  %17579 = vmatprep.subr.bf16.mxu1 %v19285_v25  ;;  %v9503_v46 = vld [vmem:[#allocation2 + $0xc9] sm:$0xff] }
 0x469   : > { %v17190_v50 = vpop.f32.mrb[117].mxu0  ;;  %v17127_v38 = vadd.f32 %v17126_v53, %v17125_v27  ;;  %v17128_v9 = vpop.f32.mrb[102].mxu1  ;;  %10659 = vmatmul.mubr.bf16.gmra.mrb[192].mxu0 %v22902_v59 }
 0x46a   : > { %v17191_v1 = vadd.f32 %v17190_v50, %v17189_v10  ;;  %v17192_v7 = vpop.f32.mrb[118].mxu0  ;;  %v17129_v33 = vpop.f32.mrb[103].mxu1  ;;  %10748 = vmatmul.mubr.bf16.gmra.mrb[188].mxu1 %v22930_v62  ;;  %10666 = vmatprep.mubr.bf16.mxu0 %v22867_v20 }
 0x46b   : > { %v17193_v49 = vpop.f32.mrb[119].mxu0  ;;  %v8857_v4 = vadd.f32 %v17127_v38, %v22896_v19  ;;  %v17130_v17 = vadd.f32 %v17129_v33, %v17128_v9  ;;  %10755 = vmatprep.mubr.bf16.mxu1 %v22936_v39  ;;  %17580 = vmatpush3.bf16.msra.mxu1 %v19286_v24  ;;  %v9502_v24 = vld [vmem:[#allocation2 + $0xb1] sm:$0xff] }
 0x46c   : > { %v17194_v13 = vadd.f32 %v17193_v49, %v17192_v7  ;;  %17581 = vmatprep.subr.bf16.mxu1 %v19287_v48  ;;  %v9568_v38 = vld [vmem:[#allocation2 + $0xef] sm:$0xff]  ;;  %v22970_v49 = vpack.c.bf16 %v9502_v24, %v9501_v2 }
 0x46d   : > { %v22948_v61 = vadd.f32 %v17191_v1, %v8857_v4  ;;  %v8860_v16 = vadd.f32 %v17130_v17, %v22896_v19  ;;  %v9567_v4 = vld [vmem:[#allocation2 + $0xe7] sm:$0xff] }
 0x46e   : > { %24868 = vst [vmem:[#allocation6_spill] sm:$0xff] %v22970_v49  ;;  %v22973_v37 = vpack.c.bf16 %v9568_v38, %v9567_v4 }
 0x46f   : > { %v22954_v42 = vadd.f32 %v17194_v13, %v8860_v16  ;;  %v17131_v34 = vpop.f32.mrb[104].mxu1  ;;  %17582 = vmatpush3.bf16.msra.mxu1 %v19288_v0 }
 0x470   : > { %v17195_v31 = vpop.f32.mrb[120].mxu0  ;;  %v17132_v54 = vpop.f32.mrb[105].mxu1  ;;  %17647 = vmatprep.subr.bf16.mxu1 %v19294_v60 }
 0x471   : > { %v17196_v6 = vpop.f32.mrb[121].mxu0  ;;  %v17133_v5 = vadd.f32 %v17132_v54, %v17131_v34  ;;  %v17134_v12 = vpop.f32.mrb[106].mxu1  ;;  %10667 = vmatmul.mubr.bf16.gmra.mrb[196].mxu0 %v22936_v39 }
 0x472   : > { %v17197_v55 = vadd.f32 %v17196_v6, %v17195_v31  ;;  %v17198_v35 = vpop.f32.mrb[122].mxu0  ;;  %v17135_v14 = vpop.f32.mrb[107].mxu1  ;;  %10756 = vmatmul.mubr.bf16.gmra.mrb[192].mxu1 %v22956_v29  ;;  %10674 = vmatprep.mubr.bf16.mxu0 %v22863_v28 }
 0x473   : > { %v17199_v45 = vpop.f32.mrb[123].mxu0  ;;  %v8865_v27 = vadd.f32 %v17133_v5, %v22896_v19  ;;  %v17136_v10 = vadd.f32 %v17135_v14, %v17134_v12  ;;  %10763 = vmatprep.mubr.bf16.mxu1 %v22959_v18  ;;  %v9504_v5 = vld [vmem:[#allocation2 + $0xd1] sm:$0xff] }
 0x474   : > { %v17200_v25 = vadd.f32 %v17199_v45, %v17198_v35 }
 0x475   : > { %v22965_v53 = vadd.f32 %v17197_v55, %v8865_v27  ;;  %v8868_v50 = vadd.f32 %v17136_v10, %v22896_v19  ;;  %v9570_v55 = vld [vmem:[#allocation2 + $0x10f] sm:$0xff]  ;;  %v22984_v10 = vpack.c.bf16 %v9504_v5, %v9503_v46 }
 0x477   : > { %v22968_v1 = vadd.f32 %v17200_v25, %v8868_v50  ;;  %v17137_v9 = vpop.f32.mrb[108].mxu1  ;;  %24869 = vst [vmem:[#allocation7_spill] sm:$0xff] %v22984_v10  ;;  %v9569_v25 = vld [vmem:[#allocation2 + $0x107] sm:$0xff] }
 0x478   : > { %v17201_v7 = vpop.f32.mrb[124].mxu0  ;;  %v17138_v48 = vpop.f32.mrb[109].mxu1 }
 0x479   : > { %v17202_v33 = vpop.f32.mrb[125].mxu0  ;;  %v17139_v17 = vadd.f32 %v17138_v48, %v17137_v9  ;;  %v17140_v0 = vpop.f32.mrb[110].mxu1  ;;  %10675 = vmatmul.mubr.bf16.gmra.mrb[200].mxu0 %v22959_v18  ;;  %v22987_v9 = vpack.c.bf16 %v9570_v55, %v9569_v25  ;;  %v19290_v55 = vld [vmem:[%s24793_s7 + $0x410] ss:$8 sps:$4 sm:$0xff]  }
 0x47a   : > { %v17203_v13 = vadd.f32 %v17202_v33, %v17201_v7  ;;  %v17204_v16 = vpop.f32.mrb[126].mxu0  ;;  %v17141_v63 = vpop.f32.mrb[111].mxu1  ;;  %10764 = vmatmul.mubr.bf16.gmra.mrb[196].mxu1 %v22970_v49  ;;  %10682 = vmatprep.mubr.bf16.mxu0 %v22915_v44 }
 0x47b   : > { %v17205_v60 = vpop.f32.mrb[127].mxu0  ;;  %v8873_v21 = vadd.f32 %v17139_v17, %v22896_v19  ;;  %v17142_v34 = vadd.f32 %v17141_v63, %v17140_v0  ;;  %10771 = vmatprep.mubr.bf16.mxu1 %v22973_v37  ;;  %24870 = vst [vmem:[#allocation8_spill] sm:$0xff] %v22987_v9  ;;  %v9506_v63 = vld [vmem:[#allocation2 + $0xf1] sm:$0xff] }
 0x47c   : > { %v17206_v31 = vadd.f32 %v17205_v60, %v17204_v16  ;;  %v9505_v16 = vld [vmem:[#allocation2 + $0xe9] sm:$0xff] }
 0x47d   : > { %v22979_v54 = vadd.f32 %v17203_v13, %v8873_v21  ;;  %v8876_v6 = vadd.f32 %v17142_v34, %v22896_v19  ;;  %v9811_v60 = vld [vmem:[#allocation2 + $0x48] sm:$0xff]  ;;  %v22998_v5 = vpack.c.bf16 %v9506_v63, %v9505_v16 }
 0x47e   : > { %v23005_v25 = vpack.c.bf16 %v22813_v41, %v9811_v60  ;;  %v19291_v41 = vld [vmem:[%s24793_s7 + $0x420] ss:$8 sps:$4 sm:$0xff]  }
 0x47f   : > { %v22982_v12 = vadd.f32 %v17206_v31, %v8876_v6  ;;  %v17143_v35 = vpop.f32.mrb[112].mxu1  ;;  %24871 = vst [vmem:[#allocation9_spill] sm:$0xff] %v22998_v5 }
 0x480   : > { %v17207_v14 = vpop.f32.mrb[128].mxu0  ;;  %v17144_v45 = vpop.f32.mrb[113].mxu1  ;;  %24872 = vst [vmem:[#allocation10_spill] sm:$0xff] %v23005_v25 }
 0x481   : > { %v17208_v27 = vpop.f32.mrb[129].mxu0  ;;  %v17145_v50 = vadd.f32 %v17144_v45, %v17143_v35  ;;  %v17146_v24 = vpop.f32.mrb[114].mxu1  ;;  %10683 = vmatmul.mubr.bf16.gmra.mrb[204].mxu0 %v22973_v37 }
 0x482   : > { %v17209_v2 = vadd.f32 %v17208_v27, %v17207_v14  ;;  %v17210_v38 = vpop.f32.mrb[130].mxu0  ;;  %v17147_v7 = vpop.f32.mrb[115].mxu1  ;;  %10772 = vmatmul.mubr.bf16.gmra.mrb[200].mxu1 %v22984_v10  ;;  %10820 = vmatprep.mubr.bf16.mxu0 %v22872_v51 }
 0x483   : > { %v17211_v48 = vpop.f32.mrb[131].mxu0  ;;  %v8881_v33 = vadd.f32 %v17145_v50, %v22896_v19  ;;  %v17148_v4 = vadd.f32 %v17147_v7, %v17146_v24  ;;  %10779 = vmatprep.mubr.bf16.mxu1 %v22987_v9 }
 0x484   : > { %v17212_v17 = vadd.f32 %v17211_v48, %v17210_v38  ;;  %v9622_v48 = vld [vmem:[#allocation2 + $0x50] sm:$0xff] }
 0x485   : > { %v22993_v13 = vadd.f32 %v17209_v2, %v8881_v33  ;;  %v8884_v0 = vadd.f32 %v17148_v4, %v22896_v19  ;;  %v23020_v63 = vpack.c.bf16 %v9622_v48, %v9811_v60  ;;  %v19298_v60 = vld [vmem:[%s24793_s7 + $0x90] ss:$8 sps:$4 sm:$0xff]  }
 0x486   : > { %v19299_v48 = vld [vmem:[%s24793_s7 + $0x10] ss:$8 sps:$4 sm:$0xff]  }
 0x487   : > { %v22996_v21 = vadd.f32 %v17212_v17, %v8884_v0  ;;  %v17149_v34 = vpop.f32.mrb[116].mxu1  ;;  %24873 = vst [vmem:[#allocation11_spill] sm:$0xff] %v23020_v63 }
 0x488   : > { %v17213_v31 = vpop.f32.mrb[132].mxu0  ;;  %v17150_v6 = vpop.f32.mrb[117].mxu1 }
 0x489   : > { %v17214_v46 = vpop.f32.mrb[133].mxu0  ;;  %v17151_v35 = vadd.f32 %v17150_v6, %v17149_v34  ;;  %v17152_v45 = vpop.f32.mrb[118].mxu1  ;;  %10821 = vmatmul.mubr.bf16.vlgmr.msra.gmra.mrb[208].mxu0 %v22820_v11  ;;  %v19295_v6 = vld [vmem:[%s24793_s7] ss:$8 sps:$4 sm:$0xff]  }
 0x48a   : > { %v17215_v14 = vadd.f32 %v17214_v46, %v17213_v31  ;;  %v17216_v27 = vpop.f32.mrb[134].mxu0  ;;  %v17153_v50 = vpop.f32.mrb[119].mxu1  ;;  %10780 = vmatmul.mubr.bf16.gmra.mrb[204].mxu1 %v22998_v5  ;;  %10828 = vmatprep.mubr.bf16.mxu0 %v22900_v36 }
 0x48b   : > { %v17217_v2 = vpop.f32.mrb[135].mxu0  ;;  %v8889_v24 = vadd.f32 %v17151_v35, %v22896_v19  ;;  %v17154_v38 = vadd.f32 %v17153_v50, %v17152_v45  ;;  %10917 = vmatprep.mubr.bf16.mxu1 %v23005_v25  ;;  %18656 = vmatpush3.bf16.msra.mxu0 %v22790_v58  ;;  %v19292_v58 = vld [vmem:[%s24793_s7 + $0x430] ss:$8 sps:$4 sm:$0xff]  }
 0x48c   : > { %v17218_v7 = vadd.f32 %v17217_v2, %v17216_v27  ;;  %18657 = vmatprep.subr.bf16.mxu0 %v19290_v55 }
 0x48d   : > { %v23015_v33 = vadd.f32 %v17215_v14, %v8889_v24  ;;  %v8892_v4 = vadd.f32 %v17154_v38, %v22896_v19  ;;  %v9623_v38 = vld [vmem:[#allocation2 + $0x68] sm:$0xff] }
 0x48f   : > { %v23018_v17 = vadd.f32 %v17218_v7, %v8892_v4  ;;  %v17155_v0 = vpop.f32.mrb[120].mxu1  ;;  %18658 = vmatpush3.bf16.msra.mxu0 %v19290_v55  ;;  %v19293_v7 = vld [vmem:[%s24793_s7 + $0x440] ss:$8 sps:$4 sm:$0xff]  }
 0x490   : > { %v17219_v16 = vpop.f32.mrb[136].mxu0  ;;  %v17156_v34 = vpop.f32.mrb[121].mxu1  ;;  %18659 = vmatprep.subr.bf16.mxu0 %v19291_v41 }
 0x491   : > { %v17220_v31 = vpop.f32.mrb[137].mxu0  ;;  %v17157_v46 = vadd.f32 %v17156_v34, %v17155_v0  ;;  %v17158_v14 = vpop.f32.mrb[122].mxu1  ;;  %10829 = vmatmul.mubr.bf16.gmra.mrb[212].mxu0 %v23020_v63 }
 0x492   : > { %v17221_v35 = vadd.f32 %v17220_v31, %v17219_v16  ;;  %v17222_v45 = vpop.f32.mrb[138].mxu0  ;;  %v17159_v55 = vpop.f32.mrb[123].mxu1  ;;  %10918 = vmatmul.mubr.bf16.vlgmr.msra.gmra.mrb[208].mxu1 %v22849_v3  ;;  %10836 = vmatprep.mubr.bf16.mxu0 %v22930_v62  ;;  %v9816_v16 = vld [vmem:[#allocation2 + $0x90] sm:$0xff] }
 0x493   : > { %v17223_v27 = vpop.f32.mrb[139].mxu0  ;;  %v8897_v50 = vadd.f32 %v17157_v46, %v22896_v19  ;;  %v17160_v2 = vadd.f32 %v17159_v55, %v17158_v14  ;;  %10925 = vmatprep.mubr.bf16.mxu1 %v22837_v47  ;;  %18660 = vmatpush3.bf16.msra.mxu0 %v19291_v41  ;;  %v19301_v41 = vld [vmem:[%s24793_s7 + $0xa0] ss:$8 sps:$4 sm:$0xff]  }
 0x494   : > { %v17224_v24 = vadd.f32 %v17223_v27, %v17222_v45  ;;  %18661 = vmatprep.subr.bf16.mxu0 %v19292_v58  ;;  %17648 = vmatpush3.bf16.msra.mxu1 %v19295_v6  ;;  %v23051_v6 = vpack.c.bf16 %v22826_v15, %v9623_v38  ;;  %v19302_v55 = vld [vmem:[%s24793_s7 + $0x20] ss:$8 sps:$4 sm:$0xff]  }
 0x495   : > { %v23042_v4 = vadd.f32 %v17221_v35, %v8897_v50  ;;  %v8900_v0 = vadd.f32 %v17160_v2, %v22896_v19  ;;  %17649 = vmatprep.subr.bf16.mxu1 %v19298_v60  ;;  %v19296_v35 = vld [vmem:[%s24793_s7 + $0x450] ss:$8 sps:$4 sm:$0xff]   ;;  %v9815_v60 = vld [vmem:[#allocation2 + $0x88] sm:$0xff] }
 0x496   : > { %24874 = vst [vmem:[#allocation12_spill] sm:$0xff] %v23051_v6  ;;  %v23060_v15 = vpack.c.bf16 %v9816_v16, %v9815_v60  ;;  %v19304_v16 = vld [vmem:[%s24793_s7 + $0x30] ss:$8 sps:$4 sm:$0xff]   ;;  %v19306_v60 = vld [vmem:[%s24793_s7 + $0xc0] ss:$8 sps:$4 sm:$0xff]  }
 0x497   : > { %v23048_v34 = vadd.f32 %v17224_v24, %v8900_v0  ;;  %v17161_v31 = vpop.f32.mrb[124].mxu1  ;;  %18662 = vmatpush3.bf16.msra.mxu0 %v19292_v58  ;;  %v19303_v58 = vld [vmem:[%s24793_s7 + $0xb0] ss:$8 sps:$4 sm:$0xff]  }
 0x498   : > { %v17225_v46 = vpop.f32.mrb[140].mxu0  ;;  %v17162_v14 = vpop.f32.mrb[125].mxu1  ;;  %18663 = vmatprep.subr.bf16.mxu0 %v19293_v7  ;;  %17650 = vmatpush3.bf16.msra.mxu1 %v19299_v48  ;;  %24875 = vst [vmem:[#allocation13_spill] sm:$0xff] %v23060_v15 }
 0x499   : > { %v17226_v45 = vpop.f32.mrb[141].mxu0  ;;  %v17163_v27 = vadd.f32 %v17162_v14, %v17161_v31  ;;  %v17164_v2 = vpop.f32.mrb[126].mxu1  ;;  %10837 = vmatmul.mubr.bf16.gmra.mrb[216].mxu0 %v23051_v6  ;;  %17651 = vmatprep.subr.bf16.mxu1 %v19301_v41  ;;  %v19297_v41 = vld [vmem:[%s24793_s7 + $0x460] ss:$8 sps:$4 sm:$0xff]  }
 0x49a   : > { %v17227_v50 = vadd.f32 %v17226_v45, %v17225_v46  ;;  %v17228_v24 = vpop.f32.mrb[142].mxu0  ;;  %v17165_v38 = vpop.f32.mrb[127].mxu1  ;;  %10926 = vmatmul.mubr.bf16.gmra.mrb[212].mxu1 %v22879_v32  ;;  %10844 = vmatprep.mubr.bf16.mxu0 %v22956_v29 }
 0x49b   : > { %v17229_v0 = vpop.f32.mrb[143].mxu0  ;;  %v8905_v48 = vadd.f32 %v17163_v27, %v22896_v19  ;;  %v17166_v31 = vadd.f32 %v17165_v38, %v17164_v2  ;;  %10933 = vmatprep.mubr.bf16.mxu1 %v23060_v15  ;;  %18664 = vmatpush3.bf16.msra.mxu0 %v19293_v7 }
 0x49c   : > { %v17230_v46 = vadd.f32 %v17229_v0, %v17228_v24  ;;  %18665 = vmatprep.subr.bf16.mxu0 %v19296_v35  ;;  %17652 = vmatpush3.bf16.msra.mxu1 %v19302_v55 }
 0x49d   : > { %v23075_v14 = vadd.f32 %v17227_v50, %v8905_v48  ;;  %v8908_v45 = vadd.f32 %v17166_v31, %v22896_v19  ;;  %17653 = vmatprep.subr.bf16.mxu1 %v19303_v58  ;;  %v19300_v50 = vld [vmem:[%s24793_s7 + $0x470] ss:$8 sps:$4 sm:$0xff]   ;;  %v19308_v19 = vld [vmem:[%s24793_s7 + $0x40] ss:$8 sps:$4 sm:$0xff]  }
 0x49f   : > { %v23081_v7 = vadd.f32 %v17230_v46, %v8908_v45  ;;  %v17247_v27 = vpop.f32.mrb[128].mxu1  ;;  %18666 = vmatpush3.bf16.msra.mxu0 %v19296_v35  ;;  %v19312_v35 = vld [vmem:[%s24793_s7 + $0xd0] ss:$8 sps:$4 sm:$0xff]  }
 0x4a0   : > { %v17311_v2 = vpop.f32.mrb[144].mxu0  ;;  %v17248_v24 = vpop.f32.mrb[129].mxu1  ;;  %18667 = vmatprep.subr.bf16.mxu0 %v19297_v41  ;;  %17654 = vmatpush3.bf16.msra.mxu1 %v19304_v16 }
 0x4a1   : > { %v17312_v55 = vpop.f32.mrb[145].mxu0  ;;  %v17249_v58 = vadd.f32 %v17248_v24, %v17247_v27  ;;  %v17250_v0 = vpop.f32.mrb[130].mxu1  ;;  %10845 = vmatmul.mubr.bf16.gmra.mrb[220].mxu0 %v23060_v15  ;;  %17655 = vmatprep.subr.bf16.mxu1 %v19306_v60  ;;  %v19305_v60 = vld [vmem:[%s24793_s7 + $0x180] ss:$8 sps:$4 sm:$0xff]   ;;  %v19314_v24 = vld [vmem:[%s24793_s7 + $0x50] ss:$8 sps:$4 sm:$0xff]  }
 0x4a2   : > { %v17313_v38 = vadd.f32 %v17312_v55, %v17311_v2  ;;  %v17314_v48 = vpop.f32.mrb[146].mxu0  ;;  %v17251_v31 = vpop.f32.mrb[131].mxu1  ;;  %10934 = vmatmul.mubr.bf16.gmra.mrb[216].mxu1 %v22902_v59  ;;  %10852 = vmatprep.mubr.bf16.mxu0 %v22970_v49  ;;  %v9627_v2 = vld [vmem:[#allocation2 + $0xa8] sm:$0xff] }
 0x4a3   : > { %v17315_v46 = vpop.f32.mrb[147].mxu0  ;;  %v9043_v16 = vadd.f32 %v17249_v58, %v22922_v30  ;;  %v17252_v45 = vadd.f32 %v17251_v31, %v17250_v0  ;;  %10941 = vmatprep.mubr.bf16.mxu1 %v22867_v20  ;;  %18668 = vmatpush3.bf16.msra.mxu0 %v19297_v41  ;;  %v19318_v30 = vld [vmem:[%s24793_s7 + $0xe0] ss:$8 sps:$4 sm:$0xff]   ;;  %v9820_v41 = vld [vmem:[#allocation2 + $0xd0] sm:$0xff] }
 0x4a4   : > { %v17316_v27 = vadd.f32 %v17315_v46, %v17314_v48  ;;  %18669 = vmatprep.subr.bf16.mxu0 %v19300_v50  ;;  %17656 = vmatpush3.bf16.msra.mxu1 %v19308_v19  ;;  %v23110_v48 = vpack.c.bf16 %v22861_v26, %v9627_v2  ;;  %v9819_v15 = vld [vmem:[#allocation2 + $0xc8] sm:$0xff] }
 0x4a5   : > { %v9046_v55 = vadd.f32 %v17252_v45, %v22925_v22  ;;  %v23104_v25 = vadd.f32 %v17313_v38, %v9043_v16  ;;  %17657 = vmatprep.subr.bf16.mxu1 %v19312_v35  ;;  %v19320_v22 = vld [vmem:[%s24793_s7 + $0x60] ss:$8 sps:$4 sm:$0xff]   ;;  %v23118_v26 = vpack.c.bf16 %v9820_v41, %v9819_v15  ;;  %v19326_v15 = vld [vmem:[%s24793_s7 + $0x70] ss:$8 sps:$4 sm:$0xff]  }
 0x4a6   : > { %24876 = vst [vmem:[#allocation14_spill] sm:$0xff] %v23110_v48 }
 0x4a7   : > { %v17253_v58 = vpop.f32.mrb[132].mxu1  ;;  %18670 = vmatpush3.bf16.msra.mxu0 %v19300_v50  ;;  %v23112_v19 = vadd.f32 %v17316_v27, %v9046_v55  ;;  %24877 = vst [vmem:[#allocation15_spill] sm:$0xff] %v23118_v26  ;;  %v19324_v50 = vld [vmem:[%s24793_s7 + $0xf0] ss:$8 sps:$4 sm:$0xff]  }
 0x4a8   : > { %v17317_v0 = vpop.f32.mrb[148].mxu0  ;;  %v17254_v31 = vpop.f32.mrb[133].mxu1  ;;  %17711 = vmatprep.subr.bf16.mxu0 %v19305_v60  ;;  %17658 = vmatpush3.bf16.msra.mxu1 %v19314_v24 }
 0x4a9   : > { %v17318_v46 = vpop.f32.mrb[149].mxu0  ;;  %v17255_v38 = vadd.f32 %v17254_v31, %v17253_v58  ;;  %v17256_v16 = vpop.f32.mrb[134].mxu1  ;;  %10853 = vmatmul.mubr.bf16.gmra.mrb[224].mxu0 %v23110_v48  ;;  %17659 = vmatprep.subr.bf16.mxu1 %v19318_v30  ;;  %v19329_v58 = vld [vmem:[%s24793_s7 + $0x280] ss:$8 sps:$4 sm:$0xff]  }
 0x4aa   : > { %v17319_v35 = vadd.f32 %v17318_v46, %v17317_v0  ;;  %v17320_v45 = vpop.f32.mrb[150].mxu0  ;;  %v17257_v27 = vpop.f32.mrb[135].mxu1  ;;  %10942 = vmatmul.mubr.bf16.gmra.mrb[220].mxu1 %v22936_v39  ;;  %10860 = vmatprep.mubr.bf16.mxu0 %v22984_v10  ;;  %v9821_v0 = vld [vmem:[#allocation2 + $0xe8] sm:$0xff] }
 0x4ab   : > { %v17321_v2 = vpop.f32.mrb[151].mxu0  ;;  %v9051_v60 = vadd.f32 %v17255_v38, %v22948_v61  ;;  %v17258_v24 = vadd.f32 %v17257_v27, %v17256_v16  ;;  %10949 = vmatprep.mubr.bf16.mxu1 %v23118_v26 }
 0x4ac   : > { %v17322_v55 = vadd.f32 %v17321_v2, %v17320_v45  ;;  %17660 = vmatpush3.bf16.msra.mxu1 %v19320_v22 }
 0x4ad   : > { %v9054_v30 = vadd.f32 %v17258_v24, %v22954_v42  ;;  %v23131_v41 = vadd.f32 %v17319_v35, %v9051_v60  ;;  %17661 = vmatprep.subr.bf16.mxu1 %v19324_v50  ;;  %v23140_v42 = vpack.c.bf16 %v22898_v57, %v9821_v0 }
 0x4af   : > { %v17259_v61 = vpop.f32.mrb[136].mxu1  ;;  %v23136_v46 = vadd.f32 %v17322_v55, %v9054_v30  ;;  %24878 = vst [vmem:[#allocation16_spill] sm:$0xff] %v23140_v42 }
 0x4b0   : > { %v17323_v31 = vpop.f32.mrb[152].mxu0  ;;  %v17260_v38 = vpop.f32.mrb[137].mxu1  ;;  %17662 = vmatpush3.bf16.msra.mxu1 %v19326_v15  ;;  %v9632_v15 = vld [vmem:[#allocation2 + $0xf0] sm:$0xff] }
 0x4b1   : > { %v17324_v22 = vpop.f32.mrb[153].mxu0  ;;  %v17261_v16 = vadd.f32 %v17260_v38, %v17259_v61  ;;  %v17262_v27 = vpop.f32.mrb[138].mxu1  ;;  %10861 = vmatmul.mubr.bf16.gmra.mrb[228].mxu0 %v23118_v26  ;;  %17775 = vmatprep.subr.bf16.mxu1 %v19329_v58  ;;  %v9697_v61 = vld [vmem:[#allocation2 + $0x109] sm:$0xff]  ;;  %v23149_v26 = vpack.c.bf16 %v9632_v15, %v9821_v0 }
 0x4b2   : > { %v17325_v45 = vadd.f32 %v17324_v22, %v17323_v31  ;;  %v17326_v2 = vpop.f32.mrb[154].mxu0  ;;  %v17263_v35 = vpop.f32.mrb[139].mxu1  ;;  %10950 = vmatmul.mubr.bf16.gmra.mrb[224].mxu1 %v22959_v18  ;;  %10868 = vmatprep.mubr.bf16.mxu0 %v22998_v5  ;;  %v9698_v31 = vld [vmem:[#allocation2 + $0x111] sm:$0xff] }
 0x4b3   : > { %v17327_v50 = vpop.f32.mrb[155].mxu0  ;;  %v9059_v60 = vadd.f32 %v17261_v16, %v22965_v53  ;;  %v17264_v24 = vadd.f32 %v17263_v35, %v17262_v27  ;;  %10957 = vmatprep.mubr.bf16.mxu1 %v23140_v42  ;;  %v9824_v58 = vld [vmem:[#allocation2 + $0x110] sm:$0xff]  ;;  %24879 = vst [vmem:[#allocation17_spill] sm:$0xff] %v23149_v26  ;;  %v23153_v16 = vpack.c.bf16 %v9698_v31, %v9697_v61  ;;  %v9823_v27 = vld [vmem:[#allocation2 + $0x108] sm:$0xff] }
 0x4b4   : > { %v17328_v55 = vadd.f32 %v17327_v50, %v17326_v2  ;;  %v9876_v61 = vld [vmem:[#allocation2 + $0x51] sm:$0xff] }
 0x4b5   : > { %v9062_v30 = vadd.f32 %v17264_v24, %v22968_v1  ;;  %v23147_v57 = vadd.f32 %v17325_v45, %v9059_v60  ;;  %24880 = vst [vmem:[#allocation18_spill] sm:$0xff] %v23153_v16  ;;  %v23156_v45 = vpack.c.bf16 %v9824_v58, %v9823_v27 }
 0x4b7   : > { %v17265_v38 = vpop.f32.mrb[140].mxu1  ;;  %v23151_v48 = vadd.f32 %v17328_v55, %v9062_v30  ;;  %24881 = vst [vmem:[#allocation19_spill] sm:$0xff] %v23156_v45  ;;  %v9875_v30 = vld [vmem:[#allocation2 + $0x49] sm:$0xff] }
 0x4b8   : > { %v17329_v22 = vpop.f32.mrb[156].mxu0  ;;  %v17266_v6 = vpop.f32.mrb[141].mxu1  ;;  %v23167_v42 = vpack.c.bf16 %v9876_v61, %v9875_v30  ;;  %v19307_v30 = vld [vmem:[%s24793_s7 + $0x100] ss:$8 sps:$4 sm:$0xff]  }
 0x4b9   : > { %v17330_v53 = vpop.f32.mrb[157].mxu0  ;;  %v17267_v2 = vadd.f32 %v17266_v6, %v17265_v38  ;;  %v17268_v50 = vpop.f32.mrb[142].mxu1  ;;  %10869 = vmatmul.mubr.bf16.gmra.mrb[232].mxu0 %v23149_v26 }
 0x4ba   : > { %v17331_v35 = vadd.f32 %v17330_v53, %v17329_v22  ;;  %v17332_v1 = vpop.f32.mrb[158].mxu0  ;;  %v17269_v60 = vpop.f32.mrb[143].mxu1  ;;  %10958 = vmatmul.mubr.bf16.gmra.mrb[228].mxu1 %v22973_v37  ;;  %10876 = vmatprep.mubr.bf16.mxu0 %v23153_v16  ;;  %24882 = vst [vmem:[#allocation20_spill] sm:$0xff] %v23167_v42 }
 0x4bb   : > { %v17333_v24 = vpop.f32.mrb[159].mxu0  ;;  %v9067_v0 = vadd.f32 %v17267_v2, %v22979_v54  ;;  %v17270_v55 = vadd.f32 %v17269_v60, %v17268_v50  ;;  %10965 = vmatprep.mubr.bf16.mxu1 %v23156_v45 }
 0x4bc   : > { %v17334_v15 = vadd.f32 %v17333_v24, %v17332_v1 }
 0x4bd   : > { %v9070_v6 = vadd.f32 %v17270_v55, %v22982_v12  ;;  %v23163_v31 = vadd.f32 %v17331_v35, %v9067_v0  ;;  %v9877_v0 = vld [vmem:[#allocation2 + $0x69] sm:$0xff]  ;;  %v9878_v55 = vld [vmem:[#allocation2 + $0x71] sm:$0xff] }
 0x4bf   : > { %v17271_v58 = vpop.f32.mrb[144].mxu1  ;;  %v23165_v22 = vadd.f32 %v17334_v15, %v9070_v6 }
 0x4c0   : > { %v17335_v38 = vpop.f32.mrb[160].mxu0  ;;  %v17272_v53 = vpop.f32.mrb[145].mxu1 }
 0x4c1   : > { %v17336_v27 = vpop.f32.mrb[161].mxu0  ;;  %v17273_v26 = vadd.f32 %v17272_v53, %v17271_v58  ;;  %v17274_v2 = vpop.f32.mrb[146].mxu1  ;;  %10877 = vmatmul.mubr.bf16.gmra.mrb[236].mxu0 %v23156_v45 }
 0x4c2   : > { %v17337_v54 = vadd.f32 %v17336_v27, %v17335_v38  ;;  %v17338_v50 = vpop.f32.mrb[162].mxu0  ;;  %v17275_v1 = vpop.f32.mrb[147].mxu1  ;;  %10966 = vmatmul.mubr.bf16.gmra.mrb[232].mxu1 %v22987_v9  ;;  %18671 = vmatprep.mubr.bf16.mxu0 %v23167_v42  ;;  %v23179_v38 = vpack.c.bf16 %v9878_v55, %v9877_v0  ;;  %v19311_v55 = vld [vmem:[%s24793_s7 + $0x1a0] ss:$8 sps:$4 sm:$0xff]  }
 0x4c3   : > { %v17339_v12 = vpop.f32.mrb[163].mxu0  ;;  %v9075_v35 = vadd.f32 %v17273_v26, %v22993_v13  ;;  %v17276_v60 = vadd.f32 %v17275_v1, %v17274_v2  ;;  %v19309_v13 = vld [vmem:[%s24793_s7 + $0x190] ss:$8 sps:$4 sm:$0xff]  }
 0x4c4   : > { %v17340_v24 = vadd.f32 %v17339_v12, %v17338_v50  ;;  %24883 = vst [vmem:[#allocation21_spill] sm:$0xff] %v23179_v38 }
 0x4c5   : > { %v9078_v15 = vadd.f32 %v17276_v60, %v22996_v21  ;;  %v23174_v6 = vadd.f32 %v17337_v54, %v9075_v35  ;;  %v19310_v35 = vld [vmem:[%s24793_s7 + $0x110] ss:$8 sps:$4 sm:$0xff]  }
 0x4c7   : > { %v17277_v61 = vpop.f32.mrb[148].mxu1  ;;  %v23184_v26 = vadd.f32 %v17340_v24, %v9078_v15 }
 0x4c8   : > { %v17341_v58 = vpop.f32.mrb[164].mxu0  ;;  %v17278_v53 = vpop.f32.mrb[149].mxu1 }
 0x4c9   : > { %v17342_v27 = vpop.f32.mrb[165].mxu0  ;;  %v17279_v2 = vadd.f32 %v17278_v53, %v17277_v61  ;;  %v17280_v54 = vpop.f32.mrb[150].mxu1  ;;  %18672 = vmatmul.mubr.bf16.vlgmr.msra.gmra.mrb[240].mxu0 %v23179_v38 }
 0x4ca   : > { %v17343_v21 = vadd.f32 %v17342_v27, %v17341_v58  ;;  %v17344_v50 = vpop.f32.mrb[166].mxu0  ;;  %v17281_v1 = vpop.f32.mrb[151].mxu1  ;;  %18675 = vmatprep.mubr.bf16.mxu0 %v22956_v29  ;;  %17712 = vmatpush3.bf16.msra.mxu0 %v19307_v30  ;;  %v19313_v30 = vld [vmem:[%s24793_s7 + $0x120] ss:$8 sps:$4 sm:$0xff]  }
 0x4cb   : > { %v17345_v12 = vpop.f32.mrb[167].mxu0  ;;  %v9083_v60 = vadd.f32 %v17279_v2, %v23015_v33  ;;  %v17282_v24 = vadd.f32 %v17281_v1, %v17280_v54  ;;  %17713 = vmatprep.subr.bf16.mxu0 %v19309_v13  ;;  %v19315_v33 = vld [vmem:[%s24793_s7 + $0x1b0] ss:$8 sps:$4 sm:$0xff]  }
 0x4cc   : > { %v17346_v0 = vadd.f32 %v17345_v12, %v17344_v50 }
 0x4cd   : > { %v9086_v15 = vadd.f32 %v17282_v24, %v23018_v17  ;;  %v23196_v61 = vadd.f32 %v17343_v21, %v9083_v60 }
 0x4ce   : > { %17714 = vmatpush3.bf16.msra.mxu0 %v19310_v35  ;;  %v19316_v35 = vld [vmem:[%s24793_s7 + $0x130] ss:$8 sps:$4 sm:$0xff]  }
 0x4cf   : > { %v17283_v58 = vpop.f32.mrb[152].mxu1  ;;  %17715 = vmatprep.subr.bf16.mxu0 %v19311_v55  ;;  %v23204_v13 = vadd.f32 %v17346_v0, %v9086_v15  ;;  %v19317_v55 = vld [vmem:[%s24793_s7 + $0x1c0] ss:$8 sps:$4 sm:$0xff]  }
 0x4d0   : > { %v17347_v53 = vpop.f32.mrb[168].mxu0  ;;  %v17284_v27 = vpop.f32.mrb[153].mxu1 }
 0x4d1   : > { %v17348_v2 = vpop.f32.mrb[169].mxu0  ;;  %v17285_v54 = vadd.f32 %v17284_v27, %v17283_v58  ;;  %v17286_v21 = vpop.f32.mrb[154].mxu1  ;;  %18676 = vmatmul.mubr.bf16.gmra.mrb[244].mxu0 %v22970_v49 }
 0x4d2   : > { %v17349_v17 = vadd.f32 %v17348_v2, %v17347_v53  ;;  %v17350_v50 = vpop.f32.mrb[170].mxu0  ;;  %v17287_v1 = vpop.f32.mrb[155].mxu1  ;;  %18679 = vmatprep.mubr.bf16.mxu0 %v22984_v10  ;;  %17716 = vmatpush3.bf16.msra.mxu0 %v19313_v30  ;;  %v19319_v30 = vld [vmem:[%s24793_s7 + $0x140] ss:$8 sps:$4 sm:$0xff]  }
 0x4d3   : > { %v17351_v12 = vpop.f32.mrb[171].mxu0  ;;  %v9091_v60 = vadd.f32 %v17285_v54, %v23042_v4  ;;  %v17288_v24 = vadd.f32 %v17287_v1, %v17286_v21  ;;  %17717 = vmatprep.subr.bf16.mxu0 %v19315_v33  ;;  %v19321_v4 = vld [vmem:[%s24793_s7 + $0x1d0] ss:$8 sps:$4 sm:$0xff]  }
 0x4d4   : > { %v17352_v0 = vadd.f32 %v17351_v12, %v17350_v50 }
 0x4d5   : > { %v9094_v15 = vadd.f32 %v17288_v24, %v23048_v34  ;;  %v23216_v58 = vadd.f32 %v17349_v17, %v9091_v60 }
 0x4d6   : > { %17718 = vmatpush3.bf16.msra.mxu0 %v19316_v35  ;;  %v19322_v35 = vld [vmem:[%s24793_s7 + $0x150] ss:$8 sps:$4 sm:$0xff]  }
 0x4d7   : > { %v17289_v53 = vpop.f32.mrb[156].mxu1  ;;  %17719 = vmatprep.subr.bf16.mxu0 %v19317_v55  ;;  %v23224_v33 = vadd.f32 %v17352_v0, %v9094_v15  ;;  %v19323_v55 = vld [vmem:[%s24793_s7 + $0x1e0] ss:$8 sps:$4 sm:$0xff]  }
 0x4d8   : > { %v17353_v27 = vpop.f32.mrb[172].mxu0  ;;  %v17290_v2 = vpop.f32.mrb[157].mxu1 }
 0x4d9   : > { %v17354_v54 = vpop.f32.mrb[173].mxu0  ;;  %v17291_v21 = vadd.f32 %v17290_v2, %v17289_v53  ;;  %v17292_v34 = vpop.f32.mrb[158].mxu1  ;;  %18680 = vmatmul.mubr.bf16.gmra.mrb[248].mxu0 %v22998_v5 }
 0x4da   : > { %v17355_v17 = vadd.f32 %v17354_v54, %v17353_v27  ;;  %v17356_v50 = vpop.f32.mrb[174].mxu0  ;;  %v17293_v1 = vpop.f32.mrb[159].mxu1  ;;  %18683 = vmatprep.mubr.bf16.mxu0 %v23153_v16  ;;  %17720 = vmatpush3.bf16.msra.mxu0 %v19319_v30  ;;  %v19325_v30 = vld [vmem:[%s24793_s7 + $0x160] ss:$8 sps:$4 sm:$0xff]  }
 0x4db   : > { %v17357_v12 = vpop.f32.mrb[175].mxu0  ;;  %v9099_v60 = vadd.f32 %v17291_v21, %v23075_v14  ;;  %v17294_v24 = vadd.f32 %v17293_v1, %v17292_v34  ;;  %17721 = vmatprep.subr.bf16.mxu0 %v19321_v4  ;;  %v19327_v14 = vld [vmem:[%s24793_s7 + $0x1f0] ss:$8 sps:$4 sm:$0xff]  }
 0x4dc   : > { %v17358_v0 = vadd.f32 %v17357_v12, %v17356_v50  ;;  %v19328_v50 = vld [vmem:[%s24793_s7 + $0x170] ss:$8 sps:$4 sm:$0xff]  }
 0x4dd   : > { %v9102_v15 = vadd.f32 %v17294_v24, %v23081_v7  ;;  %v23236_v53 = vadd.f32 %v17355_v17, %v9099_v60 }
 0x4de   : > { %17722 = vmatpush3.bf16.msra.mxu0 %v19322_v35 }
 0x4df   : > { %v18641_v27 = vpop.f32.mrb[160].mxu1  ;;  %17723 = vmatprep.subr.bf16.mxu0 %v19323_v55  ;;  %v23244_v4 = vadd.f32 %v17358_v0, %v9102_v15 }
 0x4e0   : > { %v17391_v2 = vpop.f32.mrb[176].mxu0  ;;  %v9245_v54 = vadd.f32 %v18641_v27, %v23131_v41  ;;  %v9236_v21 = vpop.f32.mrb[161].mxu1 }
 0x4e1   : > { %v17392_v7 = vpop.f32.mrb[177].mxu0  ;;  %v9237_v34 = vadd.f32 %v9236_v21, %v23104_v25  ;;  %v18642_v17 = vpop.f32.mrb[162].mxu1  ;;  %v19337_v25 = vld [vmem:[%s24793_s7 + $0x380] ss:$8 sps:$4 sm:$0xff]  }
 0x4e2   : > { %v23251_v1 = vadd.f32 %v17392_v7, %v17391_v2  ;;  %v17394_v12 = vpop.f32.mrb[178].mxu0  ;;  %vm9301_vm0 = vcmp.ge.f32.partialorder %v9245_v54, 0.0  ;;  %v9317_v35 = vmul.f32 0.01, %v9245_v54  ;;  %v9248_v60 = vadd.f32 %v18642_v17, %v23136_v46  ;;  %v9239_v24 = vpop.f32.mrb[163].mxu1  ;;  %17724 = vmatpush3.bf16.msra.mxu0 %v19325_v30 }
 0x4e3   : > { %v17395_v0 = vpop.f32.mrb[179].mxu0  ;;  %vm9299_vm1 = vcmp.ge.f32.partialorder %v9237_v34, 0.0  ;;  %v9315_v41 = vmul.f32 0.01, %v9237_v34  ;;  %v9240_v55 = vadd.f32 %v9239_v24, %v23112_v19  ;;  %17725 = vmatprep.subr.bf16.mxu0 %v19327_v14 }
 0x4e4   : > { %v9333_v15 = vsel %vm9301_vm0, %v9245_v54, %v9317_v35  ;;  %vm9302_vm2 = vcmp.ge.f32.partialorder %v9248_v60, 0.0  ;;  %v9318_v27 = vmul.f32 0.01, %v9248_v60  ;;  %v23258_v2 = vadd.f32 %v17395_v0, %v17394_v12 }
 0x4e5   : > { %9349 = vst [vmem:[#allocation2 + $0x148] sm:$0xff] %v9333_v15  ;;  %v9331_v21 = vsel %vm9299_vm1, %v9237_v34, %v9315_v41  ;;  %vm9300_vm3 = vcmp.ge.f32.partialorder %v9240_v55, 0.0  ;;  %v9316_v46 = vmul.f32 0.01, %v9240_v55 }
 0x4e6   : > { %9347 = vst [vmem:[#allocation2 + $0x128] sm:$0xff] %v9331_v21  ;;  %v9334_v30 = vsel %vm9302_vm2, %v9248_v60, %v9318_v27  ;;  %17726 = vmatpush3.bf16.msra.mxu0 %v19328_v50 }
 0x4e7   : > { %9350 = vst [vmem:[#allocation2 + $0x150] sm:$0xff] %v9334_v30  ;;  %v9332_v7 = vsel %vm9300_vm3, %v9240_v55, %v9316_v46  ;;  %v18645_v19 = vpop.f32.mrb[164].mxu1  ;;  %v23260_v14 = vpack.c.bf16 %v9334_v30, %v9333_v15  ;;  %17839 = vmatprep.subr.bf16.mxu0 %v19337_v25 }
 0x4e8   : > { %9348 = vst [vmem:[#allocation2 + $0x130] sm:$0xff] %v9332_v7  ;;  %v9261_v54 = vadd.f32 %v18645_v19, %v23163_v31  ;;  %v9252_v17 = vpop.f32.mrb[165].mxu1  ;;  %v23263_v35 = vpack.c.bf16 %v9332_v7, %v9331_v21 }
 0x4e9   : > { %24884 = vst [vmem:[#allocation22_spill] sm:$0xff] %v23260_v14  ;;  %v9253_v12 = vadd.f32 %v9252_v17, %v23147_v57  ;;  %v18646_v34 = vpop.f32.mrb[166].mxu1 }
 0x4ea   : > { %24885 = vst [vmem:[#allocation23_spill] sm:$0xff] %v23263_v35  ;;  %vm9305_vm4 = vcmp.ge.f32.partialorder %v9261_v54, 0.0  ;;  %v9321_v24 = vmul.f32 0.01, %v9261_v54  ;;  %v9264_v60 = vadd.f32 %v18646_v34, %v23165_v22  ;;  %v9255_v50 = vpop.f32.mrb[167].mxu1  ;;  %10973 = vmatprep.mubr.bf16.mxu1 %v23263_v35 }
 0x4eb   : > { %vm9303_vm5 = vcmp.ge.f32.partialorder %v9253_v12, 0.0  ;;  %v9319_v0 = vmul.f32 0.01, %v9253_v12  ;;  %v9256_v41 = vadd.f32 %v9255_v50, %v23151_v48 }
 0x4ec   : > { %v9337_v55 = vsel %vm9305_vm4, %v9261_v54, %v9321_v24  ;;  %vm9306_vm6 = vcmp.ge.f32.partialorder %v9264_v60, 0.0  ;;  %v9322_v31 = vmul.f32 0.01, %v9264_v60 }
 0x4ed   : > { %9353 = vst [vmem:[#allocation2 + $0x188] sm:$0xff] %v9337_v55  ;;  %v9335_v25 = vsel %vm9303_vm5, %v9253_v12, %v9319_v0  ;;  %vm9304_vm7 = vcmp.ge.f32.partialorder %v9256_v41, 0.0  ;;  %v9320_v15 = vmul.f32 0.01, %v9256_v41  ;;  %v9761_v27 = vld [vmem:[#allocation2 + $0x127] sm:$0xff] }
 0x4ee   : > { %9351 = vst [vmem:[#allocation2 + $0x168] sm:$0xff] %v9335_v25  ;;  %v9338_v57 = vsel %vm9306_vm6, %v9264_v60, %v9322_v31 }
 0x4ef   : > { %9354 = vst [vmem:[#allocation2 + $0x190] sm:$0xff] %v9338_v57  ;;  %v23269_v21 = vsel %vm9304_vm7, %v9256_v41, %v9320_v15  ;;  %v18649_v22 = vpop.f32.mrb[168].mxu1  ;;  %v9889_v46 = vld [vmem:[#allocation2 + $0x129] sm:$0xff]  ;;  %v9890_v30 = vld [vmem:[#allocation2 + $0x131] sm:$0xff]  ;;  %v23271_v19 = vpack.c.bf16 %v9338_v57, %v9337_v55 }
 0x4f0   : > { %v9762_v7 = vld [vmem:[#allocation2 + $0x12f] sm:$0xff]  ;;  %9352 = vst [vmem:[#allocation2 + $0x170] sm:$0xff] %v23269_v21  ;;  %v9277_v48 = vadd.f32 %v18649_v22, %v23196_v61  ;;  %v9268_v54 = vpop.f32.mrb[169].mxu1  ;;  %v23275_v17 = vpack.c.bf16 %v9890_v30, %v9889_v46  ;;  %v23280_v34 = vpack.c.bf16 %v23269_v21, %v9335_v25  ;;  %v9379_v46 = vld [vmem:[#allocation2 + $0x107] sm:$0xff] }
 0x4f1   : > { %24886 = vst [vmem:[#allocation24_spill] sm:$0xff] %v23271_v19  ;;  %v23277_v12 = vpack.c.bf16 %v9762_v7, %v9761_v27  ;;  %v9269_v24 = vadd.f32 %v9268_v54, %v23174_v6  ;;  %v18650_v60 = vpop.f32.mrb[170].mxu1  ;;  %v9380_v15 = vld [vmem:[#allocation2 + $0x10f] sm:$0xff] }
 0x4f2   : > { %24887 = vst [vmem:[#allocation25_spill] sm:$0xff] %v23275_v17  ;;  %24889 = vst [vmem:[#allocation27_spill] sm:$0xff] %v23280_v34  ;;  %vm9309_vm8 = vcmp.ge.f32.partialorder %v9277_v48, 0.0  ;;  %v9325_v50 = vmul.f32 0.01, %v9277_v48  ;;  %v9280_v0 = vadd.f32 %v18650_v60, %v23204_v13  ;;  %v9271_v41 = vpop.f32.mrb[171].mxu1  ;;  %18684 = vmatmul.mubr.bf16.gmra.mrb[252].mxu0 %v23275_v17  ;;  %v23296_v54 = vpack.c.bf16 %v9380_v15, %v9379_v46 }
 0x4f3   : > { %24888 = vst [vmem:[#allocation26_spill] sm:$0xff] %v23277_v12  ;;  %10974 = vmatmul.mubr.bf16.gmra.mrb[236].mxu1 %v23277_v12  ;;  %vm9307_vm9 = vcmp.ge.f32.partialorder %v9269_v24, 0.0  ;;  %v9323_v61 = vmul.f32 0.01, %v9269_v24  ;;  %v9272_v55 = vadd.f32 %v9271_v41, %v23184_v26  ;;  %11927 = vmatprep.mubr.bf16.mxu0 %v23277_v12  ;;  %v9574_v27 = vld [vmem:[#allocation2 + $0x14f] sm:$0xff] }
 0x4f4   : > { %11830 = vmatprep.mubr.bf16.mxu1 %v23156_v45  ;;  %v9341_v31 = vsel %vm9309_vm8, %v9277_v48, %v9325_v50  ;;  %vm9310_vm10 = vcmp.ge.f32.partialorder %v9280_v0, 0.0  ;;  %v9326_v6 = vmul.f32 0.01, %v9280_v0  ;;  %24891 = vst [vmem:[#allocation29_spill] sm:$0xff] %v23296_v54  ;;  %v19330_v60 = vld [vmem:[%s24793_s7 + $0x200] ss:$8 sps:$4 sm:$0xff]  }
 0x4f5   : > { %9357 = vst [vmem:[#allocation2 + $0x1c8] sm:$0xff] %v9341_v31  ;;  %v9339_v25 = vsel %vm9307_vm9, %v9269_v24, %v9323_v61  ;;  %vm9308_vm11 = vcmp.ge.f32.partialorder %v9272_v55, 0.0  ;;  %v9324_v13 = vmul.f32 0.01, %v9272_v55  ;;  %v9573_v24 = vld [vmem:[#allocation2 + $0x147] sm:$0xff] }
 0x4f6   : > { %9355 = vst [vmem:[#allocation2 + $0x1a8] sm:$0xff] %v9339_v25  ;;  %v23289_v57 = vsel %vm9310_vm10, %v9280_v0, %v9326_v6  ;;  %v19339_v50 = vld [vmem:[%s24793_s7 + $0x300] ss:$8 sps:$4 sm:$0xff]   ;;  %v19342_v46 = vld [vmem:[%s24793_s7 + $0x310] ss:$8 sps:$4 sm:$0xff]  }
 0x4f7   : > { %9358 = vst [vmem:[#allocation2 + $0x1d0] sm:$0xff] %v23289_v57  ;;  %v9340_v22 = vsel %vm9308_vm11, %v9272_v55, %v9324_v13  ;;  %v18653_v26 = vpop.f32.mrb[172].mxu1  ;;  %v23293_v30 = vpack.c.bf16 %v23289_v57, %v9341_v31  ;;  %v23307_v55 = vpack.c.bf16 %v9574_v27, %v9573_v24  ;;  %v19341_v31 = vld [vmem:[%s24793_s7 + $0x390] ss:$8 sps:$4 sm:$0xff]   ;;  %v19343_v24 = vld [vmem:[%s24793_s7 + $0x3a0] ss:$8 sps:$4 sm:$0xff]  }
 0x4f8   : > { %9356 = vst [vmem:[#allocation2 + $0x1b0] sm:$0xff] %v9340_v22  ;;  %v9293_v7 = vadd.f32 %v18653_v26, %v23236_v53  ;;  %v9284_v48 = vpop.f32.mrb[173].mxu1  ;;  %v23304_v0 = vpack.c.bf16 %v9340_v22, %v9339_v25  ;;  %v19331_v53 = vld [vmem:[%s24793_s7 + $0x290] ss:$8 sps:$4 sm:$0xff]  }
 0x4f9   : > { %24890 = vst [vmem:[#allocation28_spill] sm:$0xff] %v23293_v30  ;;  %v9285_v41 = vadd.f32 %v9284_v48, %v23216_v58  ;;  %v18654_v61 = vpop.f32.mrb[174].mxu1  ;;  %24893 = vst [vmem:[#allocation31_spill] sm:$0xff] %v23307_v55  ;;  %v19332_v58 = vld [vmem:[%s24793_s7 + $0x210] ss:$8 sps:$4 sm:$0xff]  }
 0x4fa   : > { %24892 = vst [vmem:[#allocation30_spill] sm:$0xff] %v23304_v0  ;;  %vm9313_vm12 = vcmp.ge.f32.partialorder %v9293_v7, 0.0  ;;  %v9329_v6 = vmul.f32 0.01, %v9293_v7  ;;  %v9296_v13 = vadd.f32 %v18654_v61, %v23244_v4  ;;  %v9287_v15 = vpop.f32.mrb[175].mxu1  ;;  %11928 = vmatmul.mubr.bf16.vlgmr.msra.gmra.mrb[0].mxu0 %v23153_v16  ;;  %v9576_v61 = vld [vmem:[#allocation2 + $0x16f] sm:$0xff] }
 0x4fb   : > { %11831 = vmatmul.mubr.bf16.vlgmr.msra.gmra.mrb[240].mxu1 %v23296_v54  ;;  %vm9311_vm13 = vcmp.ge.f32.partialorder %v9285_v41, 0.0  ;;  %v9327_v25 = vmul.f32 0.01, %v9285_v41  ;;  %v9288_v27 = vadd.f32 %v9287_v15, %v23224_v33  ;;  %11935 = vmatprep.mubr.bf16.mxu0 %v23307_v55  ;;  %v19333_v4 = vld [vmem:[%s24793_s7 + $0x2a0] ss:$8 sps:$4 sm:$0xff]  }
 0x4fc   : > { %11838 = vmatprep.mubr.bf16.mxu1 %v23263_v35  ;;  %v9345_v22 = vsel %vm9313_vm12, %v9293_v7, %v9329_v6  ;;  %vm9314_vm14 = vcmp.ge.f32.partialorder %v9296_v13, 0.0  ;;  %v9330_v26 = vmul.f32 0.01, %v9296_v13  ;;  %17776 = vmatpush3.bf16.msra.mxu1 %v19330_v60  ;;  %v19347_v15 = vld [vmem:[%s24793_s7 + $0x3b0] ss:$8 sps:$4 sm:$0xff]  }
 0x4fd   : > { %17840 = vmatpush3.bf16.msra.mxu0 %v19339_v50  ;;  %9361 = vst [vmem:[#allocation2 + $0x208] sm:$0xff] %v9345_v22  ;;  %v9343_v48 = vsel %vm9311_vm13, %v9285_v41, %v9327_v25  ;;  %vm9312_vm15 = vcmp.ge.f32.partialorder %v9288_v27, 0.0  ;;  %v9328_v33 = vmul.f32 0.01, %v9288_v27  ;;  %17777 = vmatprep.subr.bf16.mxu1 %v19331_v53  ;;  %v9575_v50 = vld [vmem:[#allocation2 + $0x167] sm:$0xff]  ;;  %v9512_v22 = vld [vmem:[#allocation2 + $0x151] sm:$0xff] }
 0x4fe   : > { %17841 = vmatprep.subr.bf16.mxu0 %v19341_v31  ;;  %9359 = vst [vmem:[#allocation2 + $0x1e8] sm:$0xff] %v9343_v48  ;;  %v9346_v7 = vsel %vm9314_vm14, %v9296_v13, %v9330_v26  ;;  %v19334_v41 = vld [vmem:[%s24793_s7 + $0x220] ss:$8 sps:$4 sm:$0xff]   ;;  %v23341_v6 = vpack.c.bf16 %v9576_v61, %v9575_v50  ;;  %v19335_v13 = vld [vmem:[%s24793_s7 + $0x2b0] ss:$8 sps:$4 sm:$0xff]  }
 0x4ff   : > { %9362 = vst [vmem:[#allocation2 + $0x210] sm:$0xff] %v9346_v7  ;;  %v9344_v60 = vsel %vm9312_vm15, %v9288_v27, %v9328_v33  ;;  %v19345_v53 = vld [vmem:[%s24793_s7 + $0x320] ss:$8 sps:$4 sm:$0xff]   ;;  %v19348_v27 = vld [vmem:[%s24793_s7 + $0x330] ss:$8 sps:$4 sm:$0xff]  }
 0x500   : > { %9360 = vst [vmem:[#allocation2 + $0x1f0] sm:$0xff] %v9344_v60  ;;  %17778 = vmatpush3.bf16.msra.mxu1 %v19332_v58  ;;  %v23339_v31 = vpack.c.bf16 %v9344_v60, %v9343_v48  ;;  %v19336_v58 = vld [vmem:[%s24793_s7 + $0x230] ss:$8 sps:$4 sm:$0xff]   ;;  %v19338_v25 = vld [vmem:[%s24793_s7 + $0x2c0] ss:$8 sps:$4 sm:$0xff]  }
 0x501   : > { %17842 = vmatpush3.bf16.msra.mxu0 %v19342_v46  ;;  %17779 = vmatprep.subr.bf16.mxu1 %v19333_v4  ;;  %v9511_v4 = vld [vmem:[#allocation2 + $0x149] sm:$0xff] }
 0x502   : > { %17843 = vmatprep.subr.bf16.mxu0 %v19343_v24  ;;  %11936 = vmatmul.mubr.bf16.gmra.mrb[4].mxu0 %v23275_v17  ;;  %v19349_v26 = vld [vmem:[%s24793_s7 + $0x3c0] ss:$8 sps:$4 sm:$0xff]   ;;  %v9578_v46 = vld [vmem:[#allocation2 + $0x18f] sm:$0xff]  ;;  %v23365_v48 = vpack.c.bf16 %v9512_v22, %v9511_v4 }
 0x503   : > { %11839 = vmatmul.mubr.bf16.gmra.mrb[244].mxu1 %v23277_v12  ;;  %11943 = vmatprep.mubr.bf16.mxu0 %v23341_v6  ;;  %v9577_v33 = vld [vmem:[#allocation2 + $0x187] sm:$0xff]  ;;  %v19344_v60 = vld [vmem:[%s24793_s7 + $0x2d0] ss:$8 sps:$4 sm:$0xff]  }
 0x504   : > { %11846 = vmatprep.mubr.bf16.mxu1 %v23260_v14  ;;  %17780 = vmatpush3.bf16.msra.mxu1 %v19334_v41  ;;  %24894 = vst [vmem:[#allocation32_spill] sm:$0xff] %v23365_v48  ;;  %v19340_v24 = vld [vmem:[%s24793_s7 + $0x240] ss:$8 sps:$4 sm:$0xff]   ;;  %v23373_v61 = vpack.c.bf16 %v9578_v46, %v9577_v33  ;;  %v19353_v50 = vld [vmem:[%s24793_s7 + $0x3d0] ss:$8 sps:$4 sm:$0xff]  }
 0x505   : > { %17844 = vmatpush3.bf16.msra.mxu0 %v19345_v53  ;;  %17781 = vmatprep.subr.bf16.mxu1 %v19335_v13  ;;  %v19351_v7 = vld [vmem:[%s24793_s7 + $0x340] ss:$8 sps:$4 sm:$0xff]   ;;  %v19346_v41 = vld [vmem:[%s24793_s7 + $0x250] ss:$8 sps:$4 sm:$0xff]  }
 0x506   : > { %17845 = vmatprep.subr.bf16.mxu0 %v19347_v15  ;;  %24895 = vst [vmem:[#allocation33_spill] sm:$0xff] %v23373_v61  ;;  %v19350_v53 = vld [vmem:[%s24793_s7 + $0x2e0] ss:$8 sps:$4 sm:$0xff]   ;;  %v19354_v13 = vld [vmem:[%s24793_s7 + $0x350] ss:$8 sps:$4 sm:$0xff]  }
 0x507   : > { %v9513_v15 = vld [vmem:[#allocation2 + $0x169] sm:$0xff] }
 0x508   : > { %17782 = vmatpush3.bf16.msra.mxu1 %v19336_v58  ;;  %v9514_v58 = vld [vmem:[#allocation2 + $0x171] sm:$0xff]  ;;  %v9579_v22 = vld [vmem:[#allocation2 + $0x1a7] sm:$0xff] }
 0x509   : > { %17846 = vmatpush3.bf16.msra.mxu0 %v19348_v27  ;;  %17783 = vmatprep.subr.bf16.mxu1 %v19338_v25  ;;  %v19355_v25 = vld [vmem:[%s24793_s7 + $0x3e0] ss:$8 sps:$4 sm:$0xff]   ;;  %v9580_v27 = vld [vmem:[#allocation2 + $0x1af] sm:$0xff]  ;;  %v23397_v4 = vpack.c.bf16 %v9514_v58, %v9513_v15 }
 0x50a   : > { %17847 = vmatprep.subr.bf16.mxu0 %v19349_v26  ;;  %11944 = vmatmul.mubr.bf16.gmra.mrb[8].mxu0 %v23365_v48  ;;  %v19352_v26 = vld [vmem:[%s24793_s7 + $0x260] ss:$8 sps:$4 sm:$0xff]   ;;  %v23405_v33 = vpack.c.bf16 %v9580_v27, %v9579_v22  ;;  %v19365_v15 = vld [vmem:[%s24793_s7 + $0x84] ss:$8 sps:$4 sm:$0xff]  }
 0x50b   : > { %11847 = vmatmul.mubr.bf16.gmra.mrb[248].mxu1 %v23307_v55  ;;  %11951 = vmatprep.mubr.bf16.mxu0 %v23373_v61  ;;  %24896 = vst [vmem:[#allocation34_spill] sm:$0xff] %v23397_v4  ;;  %v19357_v46 = vld [vmem:[%s24793_s7 + $0x360] ss:$8 sps:$4 sm:$0xff]   ;;  %v9582_v58 = vld [vmem:[#allocation2 + $0x1cf] sm:$0xff] }
 0x50c   : > { %11854 = vmatprep.mubr.bf16.mxu1 %v23280_v34  ;;  %17784 = vmatpush3.bf16.msra.mxu1 %v19340_v24  ;;  %24897 = vst [vmem:[#allocation35_spill] sm:$0xff] %v23405_v33  ;;  %v19356_v24 = vld [vmem:[%s24793_s7 + $0x2f0] ss:$8 sps:$4 sm:$0xff]   ;;  %v9581_v27 = vld [vmem:[#allocation2 + $0x1c7] sm:$0xff] }
 0x50d   : > { %17848 = vmatpush3.bf16.msra.mxu0 %v19351_v7  ;;  %17785 = vmatprep.subr.bf16.mxu1 %v19344_v60  ;;  %v19359_v7 = vld [vmem:[%s24793_s7 + $0x3f0] ss:$8 sps:$4 sm:$0xff]   ;;  %v23433_v22 = vpack.c.bf16 %v9582_v58, %v9581_v27  ;;  %v9585_v9 = vld [vmem:[#allocation2 + $0x207] sm:$0xff] }
 0x50e   : > { %17849 = vmatprep.subr.bf16.mxu0 %v19353_v50  ;;  %v19358_v60 = vld [vmem:[%s24793_s7 + $0x270] ss:$8 sps:$4 sm:$0xff]  }
 0x50f   : > { %v19360_v50 = vld [vmem:[%s24793_s7 + $0x370] ss:$8 sps:$4 sm:$0xff]  }
 0x510   : > { %17786 = vmatpush3.bf16.msra.mxu1 %v19346_v41  ;;  %v23426_v41 = vld [vmem:[%s24793_s7 + $0x400] ss:$8 sps:$4 sm:$0xff]   ;;  %v9586_v12 = vld [vmem:[#allocation2 + $0x20f] sm:$0xff] }
 0x511   : > { %17850 = vmatpush3.bf16.msra.mxu0 %v19354_v13  ;;  %17787 = vmatprep.subr.bf16.mxu1 %v19350_v53  ;;  %v9515_v53 = vld [vmem:[#allocation2 + $0x189] sm:$0xff]  ;;  %v9516_v13 = vld [vmem:[#allocation2 + $0x191] sm:$0xff] }
 0x512   : > { %17851 = vmatprep.subr.bf16.mxu0 %v19355_v25  ;;  %11952 = vmatmul.mubr.bf16.gmra.mrb[12].mxu0 %v23397_v4  ;;  %v23431_v25 = vpack.c.bf16 %v9516_v13, %v9515_v53  ;;  %v23451_v53 = vld [vmem:[%s24794_s8] ss:$0 sm:$0xff] }
 0x513   : > { %11855 = vmatmul.mubr.bf16.gmra.mrb[252].mxu1 %v23341_v6  ;;  %11959 = vmatprep.mubr.bf16.mxu0 %v23405_v33 }
 0x514   : > { %11862 = vmatprep.mubr.bf16.mxu1 %v23271_v19  ;;  %17788 = vmatpush3.bf16.msra.mxu1 %v19352_v26  ;;  %24898 = vst [vmem:[#allocation36_spill] sm:$0xff] %v23431_v25  ;;  %v9517_v26 = vld [vmem:[#allocation2 + $0x1a9] sm:$0xff] }
 0x515   : > { %17852 = vmatpush3.bf16.msra.mxu0 %v19357_v46  ;;  %17789 = vmatprep.subr.bf16.mxu1 %v19356_v24  ;;  %v9518_v46 = vld [vmem:[#allocation2 + $0x1b1] sm:$0xff] }
 0x516   : > { %17853 = vmatprep.subr.bf16.mxu0 %v19359_v7  ;;  %v9584_v24 = vld [vmem:[#allocation2 + $0x1ef] sm:$0xff]  ;;  %v23440_v7 = vpack.c.bf16 %v9518_v46, %v9517_v26 }
 0x517   : > { %v9519_v26 = vld [vmem:[#allocation2 + $0x1c9] sm:$0xff]  ;;  %v9520_v46 = vld [vmem:[#allocation2 + $0x1d1] sm:$0xff] }
 0x518   : > { %17790 = vmatpush3.bf16.msra.mxu1 %v19358_v60  ;;  %24899 = vst [vmem:[#allocation37_spill] sm:$0xff] %v23440_v7  ;;  %v9583_v60 = vld [vmem:[#allocation2 + $0x1e7] sm:$0xff]  ;;  %v23457_v5 = vpack.c.bf16 %v9520_v46, %v9519_v26 }
 0x519   : > { %17854 = vmatpush3.bf16.msra.mxu0 %v19360_v50  ;;  %18687 = vmatprep.subr.bf16.mxu1 %v23426_v41  ;;  %v23442_v50 = vpack.c.bf16 %v9584_v24, %v9583_v60 }
 0x51a   : > { %17919 = vmatprep.subr.bf16.mxu0 %v19365_v15  ;;  %11960 = vmatmul.mubr.bf16.gmra.mrb[16].mxu0 %v23431_v25  ;;  %v10629_v15 = vadd.f32 %v23251_v1, %v23451_v53  ;;  %v23459_v1 = vpack.c.bf16 %v9586_v12, %v9585_v9 }
 0x51b   : > { %11863 = vmatmul.mubr.bf16.gmra.mrb[0].mxu1 %v23373_v61  ;;  %11967 = vmatprep.mubr.bf16.mxu0 %v23433_v22 }
 0x51c   : > { %11870 = vmatprep.mubr.bf16.mxu1 %v23304_v0 }
 0x522   : > { %11968 = vmatmul.mubr.bf16.gmra.mrb[20].mxu0 %v23440_v7 }
 0x523   : > { %11871 = vmatmul.mubr.bf16.gmra.mrb[4].mxu1 %v23405_v33  ;;  %11975 = vmatprep.mubr.bf16.mxu0 %v23442_v50 }
 0x524   : > { %11878 = vmatprep.mubr.bf16.mxu1 %v23293_v30  ;;  %v17397_v13 = vpop.f32.mrb[180].mxu0  ;;  %v10632_v30 = vadd.f32 %v23258_v2, %v23451_v53 }
 0x525   : > { %v17398_v58 = vpop.f32.mrb[181].mxu0  ;;  %v17455_v27 = vpop.f32.mrb[176].mxu1 }
 0x526   : > { %v17399_v24 = vadd.f32 %v17398_v58, %v17397_v13  ;;  %v17400_v60 = vpop.f32.mrb[182].mxu0  ;;  %v17456_v54 = vpop.f32.mrb[177].mxu1  ;;  %v9521_v58 = vld [vmem:[#allocation2 + $0x1e9] sm:$0xff] }
 0x527   : > { %v17401_v38 = vpop.f32.mrb[183].mxu0  ;;  %v17457_v42 = vadd.f32 %v17456_v54, %v17455_v27  ;;  %v17458_v45 = vpop.f32.mrb[178].mxu1  ;;  %v9522_v27 = vld [vmem:[#allocation2 + $0x1f1] sm:$0xff] }
 0x528   : > { %v17402_v16 = vadd.f32 %v17401_v38, %v17400_v60  ;;  %v17459_v10 = vpop.f32.mrb[179].mxu1  ;;  %v23470_v29 = vpack.c.bf16 %v9522_v27, %v9521_v58 }
 0x529   : > { %v17460_v49 = vadd.f32 %v17459_v10, %v17458_v45  ;;  %v23461_v63 = vadd.f32 %v17457_v42, %v10629_v15  ;;  %v10637_v42 = vadd.f32 %v17399_v24, %v23451_v53 }
 0x52a   : > { %11976 = vmatmul.mubr.bf16.gmra.mrb[24].mxu0 %v23457_v5 }
 0x52b   : > { %11879 = vmatmul.mubr.bf16.gmra.mrb[8].mxu1 %v23433_v22  ;;  %11983 = vmatprep.mubr.bf16.mxu0 %v23459_v1  ;;  %v23467_v2 = vadd.f32 %v17460_v49, %v10632_v30  ;;  %v10640_v49 = vadd.f32 %v17402_v16, %v23451_v53 }
 0x52c   : > { %11886 = vmatprep.mubr.bf16.mxu1 %v23339_v31  ;;  %v17403_v38 = vpop.f32.mrb[184].mxu0 }
 0x52d   : > { %v17461_v54 = vpop.f32.mrb[180].mxu1  ;;  %v17404_v13 = vpop.f32.mrb[185].mxu0 }
 0x52e   : > { %v17405_v9 = vadd.f32 %v17404_v13, %v17403_v38  ;;  %v17462_v12 = vpop.f32.mrb[181].mxu1  ;;  %v17406_v10 = vpop.f32.mrb[186].mxu0 }
 0x52f   : > { %v17463_v45 = vadd.f32 %v17462_v12, %v17461_v54  ;;  %v17464_v15 = vpop.f32.mrb[182].mxu1  ;;  %v17407_v26 = vpop.f32.mrb[187].mxu0 }
 0x530   : > { %v17408_v46 = vadd.f32 %v17407_v26, %v17406_v10  ;;  %v17465_v60 = vpop.f32.mrb[183].mxu1  ;;  %v10645_v16 = vadd.f32 %v17405_v9, %v23451_v53  ;;  %v19368_v9 = vld [vmem:[%s24793_s7 + $0x94] ss:$8 sps:$4 sm:$0xff]  }
 0x531   : > { %v17466_v30 = vadd.f32 %v17465_v60, %v17464_v15  ;;  %v23473_v62 = vadd.f32 %v17463_v45, %v10637_v42  ;;  %v19367_v60 = vld [vmem:[%s24793_s7 + $0x4] ss:$8 sps:$4 sm:$0xff]  }
 0x532   : > { %11984 = vmatmul.mubr.bf16.gmra.mrb[28].mxu0 %v23470_v29 }
 0x533   : > { %11887 = vmatmul.mubr.bf16.gmra.mrb[12].mxu1 %v23442_v50  ;;  %12121 = vmatprep.mubr.bf16.mxu0 %v23260_v14  ;;  %v23479_v24 = vadd.f32 %v17466_v30, %v10640_v49  ;;  %v10648_v49 = vadd.f32 %v17408_v46, %v23451_v53  ;;  %v9637_v14 = vld [vmem:[#allocation2 + $0x148] sm:$0xff] }
 0x534   : > { %12024 = vmatprep.mubr.bf16.mxu1 %v23275_v17  ;;  %v17409_v38 = vpop.f32.mrb[188].mxu0 }
 0x535   : > { %v17467_v54 = vpop.f32.mrb[184].mxu1  ;;  %v17410_v13 = vpop.f32.mrb[189].mxu0 }
 0x536   : > { %v17411_v58 = vadd.f32 %v17410_v13, %v17409_v38  ;;  %v17468_v27 = vpop.f32.mrb[185].mxu1  ;;  %v17412_v12 = vpop.f32.mrb[190].mxu0  ;;  %v19362_v38 = vld [vmem:[%s24793_s7 + $0x410] ss:$8 sps:$4 sm:$0xff]  }
 0x537   : > { %v17469_v10 = vadd.f32 %v17468_v27, %v17467_v54  ;;  %v17470_v42 = vpop.f32.mrb[186].mxu1  ;;  %v17413_v45 = vpop.f32.mrb[191].mxu0  ;;  %v19363_v27 = vld [vmem:[%s24793_s7 + $0x420] ss:$8 sps:$4 sm:$0xff]  }
 0x538   : > { %v17414_v15 = vadd.f32 %v17413_v45, %v17412_v12  ;;  %v17471_v26 = vpop.f32.mrb[187].mxu1  ;;  %v19369_v12 = vld [vmem:[%s24793_s7 + $0x14] ss:$8 sps:$4 sm:$0xff]   ;;  %v19370_v45 = vld [vmem:[%s24793_s7 + $0xa4] ss:$8 sps:$4 sm:$0xff]  }
 0x539   : > { %v17472_v30 = vadd.f32 %v17471_v26, %v17470_v42  ;;  %v23492_v54 = vadd.f32 %v17469_v10, %v10645_v16  ;;  %v9638_v42 = vld [vmem:[#allocation2 + $0x150] sm:$0xff] }
 0x53a   : > { %12122 = vmatmul.mubr.bf16.vlgmr.msra.gmra.mrb[32].mxu0 %v23307_v55 }
 0x53b   : > { %12025 = vmatmul.mubr.bf16.vlgmr.msra.gmra.mrb[16].mxu1 %v23263_v35  ;;  %12129 = vmatprep.mubr.bf16.mxu0 %v23280_v34  ;;  %v23498_v46 = vadd.f32 %v17472_v30, %v10648_v49  ;;  %v10653_v30 = vadd.f32 %v17411_v58, %v23451_v53  ;;  %v23511_v35 = vpack.c.bf16 %v9638_v42, %v9637_v14  ;;  %v19364_v58 = vld [vmem:[%s24793_s7 + $0x430] ss:$8 sps:$4 sm:$0xff]   ;;  %v19373_v14 = vld [vmem:[%s24793_s7 + $0xb4] ss:$8 sps:$4 sm:$0xff]   ;;  %v9639_v42 = vld [vmem:[#allocation2 + $0x168] sm:$0xff] }
 0x53c   : > { %12032 = vmatprep.mubr.bf16.mxu1 %v23365_v48  ;;  %18688 = vmatpush3.bf16.msra.mxu1 %v23426_v41  ;;  %v17415_v13 = vpop.f32.mrb[192].mxu0 }
 0x53d   : > { %17920 = vmatpush3.bf16.msra.mxu0 %v19367_v60  ;;  %v17473_v16 = vpop.f32.mrb[188].mxu1  ;;  %v17416_v10 = vpop.f32.mrb[193].mxu0  ;;  %18689 = vmatprep.subr.bf16.mxu1 %v19362_v38  ;;  %24900 = vst [vmem:[#allocation38_spill] sm:$0xff] %v23511_v35 }
 0x53e   : > { %17921 = vmatprep.subr.bf16.mxu0 %v19368_v9  ;;  %v17417_v41 = vadd.f32 %v17416_v10, %v17415_v13  ;;  %v17474_v26 = vpop.f32.mrb[189].mxu1  ;;  %v17418_v49 = vpop.f32.mrb[194].mxu0  ;;  %v19372_v9 = vld [vmem:[%s24793_s7 + $0x24] ss:$8 sps:$4 sm:$0xff]   ;;  %v10656_v13 = vadd.f32 %v17414_v15, %v23451_v53 }
 0x53f   : > { %v17475_v34 = vadd.f32 %v17474_v26, %v17473_v16  ;;  %v17476_v60 = vpop.f32.mrb[190].mxu1  ;;  %v17419_v48 = vpop.f32.mrb[195].mxu0 }
 0x540   : > { %v17420_v55 = vadd.f32 %v17419_v48, %v17418_v49  ;;  %v17477_v17 = vpop.f32.mrb[191].mxu1  ;;  %18690 = vmatpush3.bf16.msra.mxu1 %v19362_v38  ;;  %v19366_v38 = vld [vmem:[%s24793_s7 + $0x440] ss:$8 sps:$4 sm:$0xff]  }
 0x541   : > { %17922 = vmatpush3.bf16.msra.mxu0 %v19369_v12  ;;  %v17478_v10 = vadd.f32 %v17477_v17, %v17476_v60  ;;  %18691 = vmatprep.subr.bf16.mxu1 %v19363_v27  ;;  %v23523_v48 = vadd.f32 %v17475_v34, %v10653_v30  ;;  %v19374_v34 = vld [vmem:[%s24793_s7 + $0x34] ss:$8 sps:$4 sm:$0xff]   ;;  %v10661_v30 = vadd.f32 %v17417_v41, %v23451_v53  ;;  %v19371_v41 = vld [vmem:[%s24793_s7 + $0x450] ss:$8 sps:$4 sm:$0xff]  }
 0x542   : > { %17923 = vmatprep.subr.bf16.mxu0 %v19370_v45  ;;  %12130 = vmatmul.mubr.bf16.gmra.mrb[36].mxu0 %v23341_v6  ;;  %v19375_v45 = vld [vmem:[%s24793_s7 + $0xc4] ss:$8 sps:$4 sm:$0xff]  }
 0x543   : > { %12033 = vmatmul.mubr.bf16.gmra.mrb[20].mxu1 %v23511_v35  ;;  %12137 = vmatprep.mubr.bf16.mxu0 %v23271_v19  ;;  %v23529_v17 = vadd.f32 %v17478_v10, %v10656_v13  ;;  %v23542_v19 = vpack.c.bf16 %v23269_v21, %v9639_v42  ;;  %v19378_v21 = vld [vmem:[%s24793_s7 + $0xd4] ss:$8 sps:$4 sm:$0xff]  }
 0x544   : > { %12040 = vmatprep.mubr.bf16.mxu1 %v23397_v4  ;;  %v17421_v15 = vpop.f32.mrb[196].mxu0  ;;  %18692 = vmatpush3.bf16.msra.mxu1 %v19363_v27 }
 0x545   : > { %17924 = vmatpush3.bf16.msra.mxu0 %v19372_v9  ;;  %v17479_v12 = vpop.f32.mrb[192].mxu1  ;;  %v17422_v16 = vpop.f32.mrb[197].mxu0  ;;  %18693 = vmatprep.subr.bf16.mxu1 %v19364_v58  ;;  %24901 = vst [vmem:[#allocation39_spill] sm:$0xff] %v23542_v19 }
 0x546   : > { %17925 = vmatprep.subr.bf16.mxu0 %v19373_v14  ;;  %v17423_v26 = vadd.f32 %v17422_v16, %v17421_v15  ;;  %v17480_v27 = vpop.f32.mrb[193].mxu1  ;;  %v17424_v49 = vpop.f32.mrb[198].mxu0  ;;  %v19377_v14 = vld [vmem:[%s24793_s7 + $0x44] ss:$8 sps:$4 sm:$0xff]   ;;  %v10664_v15 = vadd.f32 %v17420_v55, %v23451_v53 }
 0x547   : > { %v17481_v60 = vadd.f32 %v17480_v27, %v17479_v12  ;;  %v17482_v9 = vpop.f32.mrb[194].mxu1  ;;  %v17425_v13 = vpop.f32.mrb[199].mxu0  ;;  %v9642_v27 = vld [vmem:[#allocation2 + $0x190] sm:$0xff] }
 0x548   : > { %v17426_v10 = vadd.f32 %v17425_v13, %v17424_v49  ;;  %v17483_v35 = vpop.f32.mrb[195].mxu1  ;;  %18694 = vmatpush3.bf16.msra.mxu1 %v19364_v58  ;;  %v19376_v58 = vld [vmem:[%s24793_s7 + $0x460] ss:$8 sps:$4 sm:$0xff]   ;;  %v10669_v13 = vadd.f32 %v17423_v26, %v23451_v53 }
 0x549   : > { %17926 = vmatpush3.bf16.msra.mxu0 %v19374_v34  ;;  %v17484_v16 = vadd.f32 %v17483_v35, %v17482_v9  ;;  %18695 = vmatprep.subr.bf16.mxu1 %v19366_v38  ;;  %v23554_v12 = vadd.f32 %v17481_v60, %v10661_v30  ;;  %v19379_v34 = vld [vmem:[%s24793_s7 + $0x54] ss:$8 sps:$4 sm:$0xff]   ;;  %v23568_v49 = vld [vmem:[#allocation2 + $0x1c8] sm:$0xff] }
 0x54a   : > { %17927 = vmatprep.subr.bf16.mxu0 %v19375_v45  ;;  %12138 = vmatmul.mubr.bf16.gmra.mrb[40].mxu0 %v23373_v61  ;;  %v10672_v26 = vadd.f32 %v17426_v10, %v23451_v53 }
 0x54b   : > { %12041 = vmatmul.mubr.bf16.gmra.mrb[24].mxu1 %v23542_v19  ;;  %12145 = vmatprep.mubr.bf16.mxu0 %v23304_v0  ;;  %v23560_v35 = vadd.f32 %v17484_v16, %v10664_v15  ;;  %v9641_v19 = vld [vmem:[#allocation2 + $0x188] sm:$0xff] }
 0x54c   : > { %12048 = vmatprep.mubr.bf16.mxu1 %v23431_v25  ;;  %v17427_v55 = vpop.f32.mrb[200].mxu0  ;;  %18696 = vmatpush3.bf16.msra.mxu1 %v19366_v38  ;;  %v19380_v38 = vld [vmem:[%s24793_s7 + $0xe4] ss:$8 sps:$4 sm:$0xff]   ;;  %v23574_v4 = vpack.c.bf16 %v9642_v27, %v9641_v19  ;;  %v19381_v19 = vld [vmem:[%s24793_s7 + $0x470] ss:$8 sps:$4 sm:$0xff]  }
 0x54d   : > { %17928 = vmatpush3.bf16.msra.mxu0 %v19377_v14  ;;  %v17485_v42 = vpop.f32.mrb[196].mxu1  ;;  %v17428_v45 = vpop.f32.mrb[201].mxu0  ;;  %18697 = vmatprep.subr.bf16.mxu1 %v19371_v41 }
 0x54e   : > { %17929 = vmatprep.subr.bf16.mxu0 %v19378_v21  ;;  %v17429_v30 = vadd.f32 %v17428_v45, %v17427_v55  ;;  %v17486_v60 = vpop.f32.mrb[197].mxu1  ;;  %v17430_v9 = vpop.f32.mrb[202].mxu0  ;;  %24902 = vst [vmem:[#allocation40_spill] sm:$0xff] %v23574_v4  ;;  %v23578_v21 = vpack.c.bf16 %v23289_v57, %v23568_v49  ;;  %v19382_v55 = vld [vmem:[%s24793_s7 + $0x64] ss:$8 sps:$4 sm:$0xff]  }
 0x54f   : > { %v17487_v14 = vadd.f32 %v17486_v60, %v17485_v42  ;;  %v17488_v15 = vpop.f32.mrb[198].mxu1  ;;  %v17431_v16 = vpop.f32.mrb[203].mxu0  ;;  %v19383_v57 = vld [vmem:[%s24793_s7 + $0xf4] ss:$8 sps:$4 sm:$0xff]  }
 0x550   : > { %v17432_v0 = vadd.f32 %v17431_v16, %v17430_v9  ;;  %v17489_v25 = vpop.f32.mrb[199].mxu1  ;;  %24903 = vst [vmem:[#allocation41_spill] sm:$0xff] %v23578_v21  ;;  %18698 = vmatpush3.bf16.msra.mxu1 %v19371_v41  ;;  %v19384_v41 = vld [vmem:[%s24793_s7 + $0x74] ss:$8 sps:$4 sm:$0xff]   ;;  %v19401_v9 = vld [vmem:[%s24793_s7 + $0x284] ss:$8 sps:$4 sm:$0xff]  }
 0x551   : > { %17930 = vmatpush3.bf16.msra.mxu0 %v19379_v34  ;;  %v17490_v42 = vadd.f32 %v17489_v25, %v17488_v15  ;;  %18699 = vmatprep.subr.bf16.mxu1 %v19376_v58  ;;  %v23590_v45 = vadd.f32 %v17487_v14, %v10669_v13  ;;  %v19385_v34 = vld [vmem:[%s24793_s7 + $0x184] ss:$8 sps:$4 sm:$0xff]   ;;  %v9644_v60 = vld [vmem:[#allocation2 + $0x1b0] sm:$0xff]  ;;  %v10677_v15 = vadd.f32 %v17429_v30, %v23451_v53 }
 0x552   : > { %17931 = vmatprep.subr.bf16.mxu0 %v19380_v38  ;;  %12146 = vmatmul.mubr.bf16.gmra.mrb[44].mxu0 %v23405_v33 }
 0x553   : > { %12049 = vmatmul.mubr.bf16.gmra.mrb[28].mxu1 %v23574_v4  ;;  %12153 = vmatprep.mubr.bf16.mxu0 %v23578_v21  ;;  %v23596_v25 = vadd.f32 %v17490_v42, %v10672_v26  ;;  %v9643_v42 = vld [vmem:[#allocation2 + $0x1a8] sm:$0xff] }
 0x554   : > { %12056 = vmatprep.mubr.bf16.mxu1 %v23440_v7  ;;  %v17433_v10 = vpop.f32.mrb[204].mxu0  ;;  %18700 = vmatpush3.bf16.msra.mxu1 %v19376_v58  ;;  %v23608_v7 = vpack.c.bf16 %v9644_v60, %v9643_v42 }
 0x555   : > { %17932 = vmatpush3.bf16.msra.mxu0 %v19382_v55  ;;  %v17491_v27 = vpop.f32.mrb[200].mxu1  ;;  %v17434_v38 = vpop.f32.mrb[205].mxu0  ;;  %18701 = vmatprep.subr.bf16.mxu1 %v19381_v19 }
 0x556   : > { %17933 = vmatprep.subr.bf16.mxu0 %v19383_v57  ;;  %v17435_v13 = vadd.f32 %v17434_v38, %v17433_v10  ;;  %v17492_v58 = vpop.f32.mrb[201].mxu1  ;;  %v17436_v14 = vpop.f32.mrb[206].mxu0  ;;  %24904 = vst [vmem:[#allocation42_spill] sm:$0xff] %v23608_v7  ;;  %v10680_v57 = vadd.f32 %v17432_v0, %v23451_v53  ;;  %v9840_v38 = vld [vmem:[#allocation2 + $0x210] sm:$0xff] }
 0x557   : > { %v17493_v16 = vadd.f32 %v17492_v58, %v17491_v27  ;;  %v17494_v55 = vpop.f32.mrb[202].mxu1  ;;  %v17437_v26 = vpop.f32.mrb[207].mxu0  ;;  %v9646_v27 = vld [vmem:[#allocation2 + $0x1d0] sm:$0xff] }
 0x558   : > { %v17438_v21 = vadd.f32 %v17437_v26, %v17436_v14  ;;  %v17495_v4 = vpop.f32.mrb[203].mxu1  ;;  %18702 = vmatpush3.bf16.msra.mxu1 %v19381_v19  ;;  %v10685_v60 = vadd.f32 %v17435_v13, %v23451_v53  ;;  %v9839_v26 = vld [vmem:[#allocation2 + $0x208] sm:$0xff] }
 0x559   : > { %17934 = vmatpush3.bf16.msra.mxu0 %v19384_v41  ;;  %v17496_v33 = vadd.f32 %v17495_v4, %v17494_v55  ;;  %17983 = vmatprep.subr.bf16.mxu1 %v19385_v34  ;;  %v23611_v61 = vadd.f32 %v17493_v16, %v10677_v15 }
 0x55a   : > { %18047 = vmatprep.subr.bf16.mxu0 %v19401_v9  ;;  %12154 = vmatmul.mubr.bf16.gmra.mrb[48].mxu0 %v23433_v22  ;;  %v10688_v42 = vadd.f32 %v17438_v21, %v23451_v53  ;;  %v9648_v21 = vld [vmem:[#allocation2 + $0x1f0] sm:$0xff] }
 0x55b   : > { %12057 = vmatmul.mubr.bf16.gmra.mrb[32].mxu1 %v23608_v7  ;;  %12161 = vmatprep.mubr.bf16.mxu0 %v23339_v31  ;;  %v23617_v30 = vadd.f32 %v17496_v33, %v10680_v57  ;;  %v23622_v33 = vpack.c.bf16 %v9646_v27, %v23568_v49  ;;  %v23625_v7 = vpack.c.bf16 %v9840_v38, %v9839_v26 }
 0x55c   : > { %12064 = vmatprep.mubr.bf16.mxu1 %v23457_v5  ;;  %v17519_v10 = vpop.f32.mrb[208].mxu0 }
 0x55d   : > { %v17497_v19 = vpop.f32.mrb[204].mxu1  ;;  %v17520_v41 = vpop.f32.mrb[209].mxu0  ;;  %24905 = vst [vmem:[#allocation43_spill] sm:$0xff] %v23622_v33 }
 0x55e   : > { %v17498_v0 = vpop.f32.mrb[205].mxu1  ;;  %v17521_v4 = vadd.f32 %v17520_v41, %v17519_v10  ;;  %v17522_v34 = vpop.f32.mrb[210].mxu0 }
 0x55f   : > { %v17499_v9 = vadd.f32 %v17498_v0, %v17497_v19  ;;  %v17500_v58 = vpop.f32.mrb[206].mxu1  ;;  %v17523_v14 = vpop.f32.mrb[211].mxu0 }
 0x560   : > { %v10823_v15 = vadd.f32 %v17521_v4, %v23461_v63  ;;  %v17501_v16 = vpop.f32.mrb[207].mxu1  ;;  %v17524_v55 = vadd.f32 %v17523_v14, %v17522_v34  ;;  %v9713_v4 = vld [vmem:[#allocation2 + $0x209] sm:$0xff]  ;;  %v9714_v34 = vld [vmem:[#allocation2 + $0x211] sm:$0xff] }
 0x561   : > { %v17502_v57 = vadd.f32 %v17501_v16, %v17500_v58  ;;  %v23627_v10 = vadd.f32 %v17499_v9, %v10685_v60  ;;  %v9647_v9 = vld [vmem:[#allocation2 + $0x1e8] sm:$0xff]  ;;  %v19645_v58 = vld [vmem:[#allocation2] sm:$0xff] }
 0x562   : > { %v10826_v13 = vadd.f32 %v17524_v55, %v23467_v2  ;;  %12162 = vmatmul.mubr.bf16.gmra.mrb[52].mxu0 %v23442_v50  ;;  %v23636_v14 = vpack.c.bf16 %v19645_v58, %v19645_v58 }
 0x563   : > { %12065 = vmatmul.mubr.bf16.gmra.mrb[36].mxu1 %v23622_v33  ;;  %12169 = vmatprep.mubr.bf16.mxu0 %v23625_v7  ;;  %v23634_v63 = vadd.f32 %v17502_v57, %v10688_v42  ;;  %v23639_v42 = vpack.c.bf16 %v9648_v21, %v9647_v9  ;;  %v23641_v33 = vpack.c.bf16 %v9714_v34, %v9713_v4 }
 0x564   : > { %12072 = vmatprep.mubr.bf16.mxu1 %v23470_v29  ;;  %v17525_v49 = vpop.f32.mrb[212].mxu0  ;;  %24906 = vst [vmem:[#allocation44_spill] sm:$0xff] %v23636_v14 }
 0x565   : > { %v17583_v19 = vpop.f32.mrb[208].mxu1  ;;  %v17526_v53 = vpop.f32.mrb[213].mxu0  ;;  %24907 = vst [vmem:[#allocation45_spill] sm:$0xff] %v23639_v42 }
 0x566   : > { %v17527_v41 = vadd.f32 %v17526_v53, %v17525_v49  ;;  %v17584_v27 = vpop.f32.mrb[209].mxu1  ;;  %v17528_v0 = vpop.f32.mrb[214].mxu0 }
 0x567   : > { %v17585_v2 = vadd.f32 %v17584_v27, %v17583_v19  ;;  %v17586_v38 = vpop.f32.mrb[210].mxu1  ;;  %v17529_v60 = vpop.f32.mrb[215].mxu0  ;;  %v9778_v19 = vld [vmem:[#allocation2 + $0x22f] sm:$0xff] }
 0x568   : > { %v10831_v16 = vadd.f32 %v17527_v41, %v23473_v62  ;;  %v17530_v55 = vadd.f32 %v17529_v60, %v17528_v0  ;;  %v17587_v26 = vpop.f32.mrb[211].mxu1  ;;  %v9777_v62 = vld [vmem:[#allocation2 + $0x227] sm:$0xff] }
 0x569   : > { %v17588_v57 = vadd.f32 %v17587_v26, %v17586_v38  ;;  %v23643_v49 = vadd.f32 %v17585_v2, %v10823_v15  ;;  %v23652_v2 = vpack.c.bf16 %v9778_v19, %v9777_v62  ;;  %v9892_v38 = vld [vmem:[#allocation2 + $0x151] sm:$0xff] }
 0x56a   : > { %v10834_v53 = vadd.f32 %v17530_v55, %v23479_v24  ;;  %12170 = vmatmul.mubr.bf16.gmra.mrb[56].mxu0 %v23459_v1  ;;  %v9891_v24 = vld [vmem:[#allocation2 + $0x149] sm:$0xff] }
 0x56b   : > { %12073 = vmatmul.mubr.bf16.gmra.mrb[40].mxu1 %v23639_v42  ;;  %12177 = vmatprep.mubr.bf16.mxu0 %v23636_v14  ;;  %v23650_v41 = vadd.f32 %v17588_v57, %v10826_v13  ;;  %24908 = vst [vmem:[#allocation46_spill] sm:$0xff] %v23652_v2  ;;  %v23655_v13 = vpack.c.bf16 %v9892_v38, %v9891_v24 }
 0x56c   : > { %12080 = vmatprep.mubr.bf16.mxu1 %v23641_v33  ;;  %v17531_v21 = vpop.f32.mrb[216].mxu0 }
 0x56d   : > { %v17589_v27 = vpop.f32.mrb[212].mxu1  ;;  %v17532_v0 = vpop.f32.mrb[217].mxu0  ;;  %24909 = vst [vmem:[#allocation47_spill] sm:$0xff] %v23655_v13 }
 0x56e   : > { %v17533_v4 = vadd.f32 %v17532_v0, %v17531_v21  ;;  %v17590_v15 = vpop.f32.mrb[213].mxu1  ;;  %v17534_v34 = vpop.f32.mrb[218].mxu0  ;;  %v9894_v0 = vld [vmem:[#allocation2 + $0x171] sm:$0xff] }
 0x56f   : > { %v17591_v60 = vadd.f32 %v17590_v15, %v17589_v27  ;;  %v17592_v9 = vpop.f32.mrb[214].mxu1  ;;  %v17535_v58 = vpop.f32.mrb[219].mxu0 }
 0x570   : > { %v10839_v55 = vadd.f32 %v17533_v4, %v23492_v54  ;;  %v17536_v26 = vadd.f32 %v17535_v58, %v17534_v34  ;;  %v17593_v14 = vpop.f32.mrb[215].mxu1  ;;  %v9895_v34 = vld [vmem:[#allocation2 + $0x189] sm:$0xff] }
 0x571   : > { %v17594_v42 = vadd.f32 %v17593_v14, %v17592_v9  ;;  %v23657_v57 = vadd.f32 %v17591_v60, %v10831_v16  ;;  %v9893_v14 = vld [vmem:[#allocation2 + $0x169] sm:$0xff] }
 0x572   : > { %v10842_v21 = vadd.f32 %v17536_v26, %v23498_v46  ;;  %12178 = vmatmul.mubr.bf16.gmra.mrb[60].mxu0 %v23652_v2  ;;  %v9896_v46 = vld [vmem:[#allocation2 + $0x191] sm:$0xff] }
 0x573   : > { %12081 = vmatmul.mubr.bf16.gmra.mrb[44].mxu1 %v23625_v7  ;;  %13034 = vmatprep.mubr.bf16.mxu0 %v22632_v8  ;;  %v23664_v62 = vadd.f32 %v17594_v42, %v10834_v53  ;;  %v23667_v8 = vpack.c.bf16 %v9894_v0, %v9893_v14  ;;  %v19386_v42 = vld [vmem:[%s24793_s7 + $0x104] ss:$8 sps:$4 sm:$0xff]  }
 0x574   : > { %18703 = vmatprep.mubr.bf16.mxu1 %v23655_v13  ;;  %v17537_v54 = vpop.f32.mrb[220].mxu0  ;;  %v19402_v53 = vld [vmem:[%s24793_s7 + $0x204] ss:$8 sps:$4 sm:$0xff]  }
 0x575   : > { %v17595_v19 = vpop.f32.mrb[216].mxu1  ;;  %v17538_v27 = vpop.f32.mrb[221].mxu0  ;;  %24910 = vst [vmem:[#allocation48_spill] sm:$0xff] %v23667_v8 }
 0x576   : > { %v17539_v4 = vadd.f32 %v17538_v27, %v17537_v54  ;;  %v17596_v16 = vpop.f32.mrb[217].mxu1  ;;  %v17540_v15 = vpop.f32.mrb[222].mxu0  ;;  %v23675_v27 = vpack.c.bf16 %v9896_v46, %v9895_v34  ;;  %v9898_v34 = vld [vmem:[#allocation2 + $0x1b1] sm:$0xff] }
 0x577   : > { %v17597_v24 = vadd.f32 %v17596_v16, %v17595_v19  ;;  %v17598_v38 = vpop.f32.mrb[218].mxu1  ;;  %v17541_v60 = vpop.f32.mrb[223].mxu0  ;;  %v19387_v19 = vld [vmem:[%s24793_s7 + $0x194] ss:$8 sps:$4 sm:$0xff]  }
 0x578   : > { %v10847_v9 = vadd.f32 %v17539_v4, %v23523_v48  ;;  %v17542_v58 = vadd.f32 %v17541_v60, %v17540_v15  ;;  %v17599_v26 = vpop.f32.mrb[219].mxu1  ;;  %24911 = vst [vmem:[#allocation49_spill] sm:$0xff] %v23675_v27  ;;  %v19405_v48 = vld [vmem:[%s24793_s7 + $0x294] ss:$8 sps:$4 sm:$0xff]  }
 0x579   : > { %v17600_v54 = vadd.f32 %v17599_v26, %v17598_v38  ;;  %v23683_v14 = vadd.f32 %v17597_v24, %v10839_v55  ;;  %v19388_v4 = vld [vmem:[%s24793_s7 + $0x114] ss:$8 sps:$4 sm:$0xff]   ;;  %v9897_v55 = vld [vmem:[#allocation2 + $0x1a9] sm:$0xff] }
 0x57a   : > { %v10850_v0 = vadd.f32 %v17542_v58, %v23529_v17  ;;  %13035 = vmatmul.mubr.bf16.vlgmr.msra.gmra.mrb[64].mxu0 %v22655_v40  ;;  %v19406_v40 = vld [vmem:[%s24793_s7 + $0x214] ss:$8 sps:$4 sm:$0xff]   ;;  %v19389_v24 = vld [vmem:[%s24793_s7 + $0x1a4] ss:$8 sps:$4 sm:$0xff]   ;;  %v23705_v2 = vpack.c.bf16 %v9898_v34, %v9897_v55 }
 0x57b   : > { %18704 = vmatmul.mubr.bf16.vlgmr.msra.gmra.mrb[48].mxu1 %v23667_v8  ;;  %13042 = vmatprep.mubr.bf16.mxu0 %v22820_v11  ;;  %v23693_v16 = vadd.f32 %v17600_v54, %v10842_v21  ;;  %v19407_v21 = vld [vmem:[%s24793_s7 + $0x2a4] ss:$8 sps:$4 sm:$0xff]  }
 0x57c   : > { %18707 = vmatprep.mubr.bf16.mxu1 %v23675_v27  ;;  %17984 = vmatpush3.bf16.msra.mxu1 %v19386_v42  ;;  %v17543_v15 = vpop.f32.mrb[224].mxu0  ;;  %v9899_v26 = vld [vmem:[#allocation2 + $0x1c9] sm:$0xff]  ;;  %v9900_v42 = vld [vmem:[#allocation2 + $0x1d1] sm:$0xff] }
 0x57d   : > { %18048 = vmatpush3.bf16.msra.mxu0 %v19402_v53  ;;  %v17601_v17 = vpop.f32.mrb[220].mxu1  ;;  %v17544_v46 = vpop.f32.mrb[225].mxu0  ;;  %17985 = vmatprep.subr.bf16.mxu1 %v19387_v19 }
 0x57e   : > { %18049 = vmatprep.subr.bf16.mxu0 %v19405_v48  ;;  %v17545_v38 = vadd.f32 %v17544_v46, %v17543_v15  ;;  %v17602_v60 = vpop.f32.mrb[221].mxu1  ;;  %v17546_v58 = vpop.f32.mrb[226].mxu0  ;;  %v19390_v48 = vld [vmem:[%s24793_s7 + $0x124] ss:$8 sps:$4 sm:$0xff]  }
 0x57f   : > { %v17603_v53 = vadd.f32 %v17602_v60, %v17601_v17  ;;  %v17604_v54 = vpop.f32.mrb[222].mxu1  ;;  %v17547_v27 = vpop.f32.mrb[227].mxu0  ;;  %v19408_v15 = vld [vmem:[%s24793_s7 + $0x224] ss:$8 sps:$4 sm:$0xff]   ;;  %v23713_v17 = vpack.c.bf16 %v9900_v42, %v9899_v26 }
 0x580   : > { %v10855_v8 = vadd.f32 %v17545_v38, %v23554_v12  ;;  %17986 = vmatpush3.bf16.msra.mxu1 %v19388_v4  ;;  %v17548_v19 = vadd.f32 %v17547_v27, %v17546_v58  ;;  %v17605_v13 = vpop.f32.mrb[223].mxu1  ;;  %v19391_v12 = vld [vmem:[%s24793_s7 + $0x1b4] ss:$8 sps:$4 sm:$0xff]  }
 0x581   : > { %18050 = vmatpush3.bf16.msra.mxu0 %v19406_v40  ;;  %v17606_v46 = vadd.f32 %v17605_v13, %v17604_v54  ;;  %17987 = vmatprep.subr.bf16.mxu1 %v19389_v24  ;;  %v23718_v27 = vadd.f32 %v17603_v53, %v10847_v9  ;;  %v19411_v4 = vld [vmem:[%s24793_s7 + $0x2b4] ss:$8 sps:$4 sm:$0xff]  }
 0x582   : > { %18051 = vmatprep.subr.bf16.mxu0 %v19407_v21  ;;  %v10858_v55 = vadd.f32 %v17548_v19, %v23560_v35  ;;  %13043 = vmatmul.mubr.bf16.gmra.mrb[68].mxu0 %v22834_v43  ;;  %v19392_v9 = vld [vmem:[%s24793_s7 + $0x134] ss:$8 sps:$4 sm:$0xff]  }
 0x583   : > { %18708 = vmatmul.mubr.bf16.gmra.mrb[52].mxu1 %v23705_v2  ;;  %13050 = vmatprep.mubr.bf16.mxu0 %v22817_v23  ;;  %v23728_v13 = vadd.f32 %v17606_v46, %v10850_v0  ;;  %v19412_v35 = vld [vmem:[%s24793_s7 + $0x234] ss:$8 sps:$4 sm:$0xff]   ;;  %v19393_v23 = vld [vmem:[%s24793_s7 + $0x1c4] ss:$8 sps:$4 sm:$0xff]  }
 0x584   : > { %18711 = vmatprep.mubr.bf16.mxu1 %v23713_v17  ;;  %17988 = vmatpush3.bf16.msra.mxu1 %v19390_v48  ;;  %v17549_v34 = vpop.f32.mrb[228].mxu0  ;;  %v19413_v0 = vld [vmem:[%s24793_s7 + $0x2c4] ss:$8 sps:$4 sm:$0xff]  }
 0x585   : > { %18052 = vmatpush3.bf16.msra.mxu0 %v19408_v15  ;;  %v17607_v40 = vpop.f32.mrb[224].mxu1  ;;  %v17550_v24 = vpop.f32.mrb[229].mxu0  ;;  %17989 = vmatprep.subr.bf16.mxu1 %v19391_v12  ;;  %v19394_v48 = vld [vmem:[%s24793_s7 + $0x144] ss:$8 sps:$4 sm:$0xff]   ;;  %v19395_v12 = vld [vmem:[%s24793_s7 + $0x1d4] ss:$8 sps:$4 sm:$0xff]  }
 0x586   : > { %18053 = vmatprep.subr.bf16.mxu0 %v19411_v4  ;;  %v17551_v21 = vadd.f32 %v17550_v24, %v17549_v34  ;;  %v17608_v38 = vpop.f32.mrb[225].mxu1  ;;  %v17552_v60 = vpop.f32.mrb[230].mxu0  ;;  %v19414_v15 = vld [vmem:[%s24793_s7 + $0x244] ss:$8 sps:$4 sm:$0xff]  }
 0x587   : > { %v17609_v58 = vadd.f32 %v17608_v38, %v17607_v40  ;;  %v17610_v26 = vpop.f32.mrb[226].mxu1  ;;  %v17553_v42 = vpop.f32.mrb[231].mxu0 }
 0x588   : > { %v10863_v53 = vadd.f32 %v17551_v21, %v23590_v45  ;;  %17990 = vmatpush3.bf16.msra.mxu1 %v19392_v9  ;;  %v17554_v54 = vadd.f32 %v17553_v42, %v17552_v60  ;;  %v17611_v19 = vpop.f32.mrb[227].mxu1  ;;  %v19417_v45 = vld [vmem:[%s24793_s7 + $0x2d4] ss:$8 sps:$4 sm:$0xff]   ;;  %v9905_v9 = vld [vmem:[#allocation2 + $0x229] sm:$0xff] }
 0x589   : > { %18054 = vmatpush3.bf16.msra.mxu0 %v19412_v35  ;;  %v17612_v46 = vadd.f32 %v17611_v19, %v17610_v26  ;;  %17991 = vmatprep.subr.bf16.mxu1 %v19393_v23  ;;  %v23755_v4 = vadd.f32 %v17609_v58, %v10855_v8  ;;  %v9906_v35 = vld [vmem:[#allocation2 + $0x231] sm:$0xff]  ;;  %v19397_v21 = vld [vmem:[%s24793_s7 + $0x1e4] ss:$8 sps:$4 sm:$0xff]  }
 0x58a   : > { %18055 = vmatprep.subr.bf16.mxu0 %v19413_v0  ;;  %v10866_v34 = vadd.f32 %v17554_v54, %v23596_v25  ;;  %13051 = vmatmul.mubr.bf16.gmra.mrb[72].mxu0 %v22849_v3  ;;  %v19396_v8 = vld [vmem:[%s24793_s7 + $0x154] ss:$8 sps:$4 sm:$0xff]   ;;  %v23776_v26 = vpack.c.bf16 %v9906_v35, %v9905_v9 }
 0x58b   : > { %18712 = vmatmul.mubr.bf16.gmra.mrb[56].mxu1 %v23470_v29  ;;  %13058 = vmatprep.mubr.bf16.mxu0 %v22837_v47  ;;  %v23762_v40 = vadd.f32 %v17612_v46, %v10858_v55  ;;  %v19418_v25 = vld [vmem:[%s24793_s7 + $0x254] ss:$8 sps:$4 sm:$0xff]   ;;  %v19419_v55 = vld [vmem:[%s24793_s7 + $0x2e4] ss:$8 sps:$4 sm:$0xff]  }
 0x58c   : > { %18715 = vmatprep.mubr.bf16.mxu1 %v23641_v33  ;;  %17992 = vmatpush3.bf16.msra.mxu1 %v19394_v48  ;;  %v17555_v24 = vpop.f32.mrb[232].mxu0  ;;  %v19399_v9 = vld [vmem:[%s24793_s7 + $0x1f4] ss:$8 sps:$4 sm:$0xff]  }
 0x58d   : > { %18056 = vmatpush3.bf16.msra.mxu0 %v19414_v15  ;;  %v17613_v23 = vpop.f32.mrb[228].mxu1  ;;  %v17556_v0 = vpop.f32.mrb[233].mxu0  ;;  %17993 = vmatprep.subr.bf16.mxu1 %v19395_v12  ;;  %v19398_v12 = vld [vmem:[%s24793_s7 + $0x164] ss:$8 sps:$4 sm:$0xff]  }
 0x58e   : > { %18057 = vmatprep.subr.bf16.mxu0 %v19417_v45  ;;  %v17557_v38 = vadd.f32 %v17556_v0, %v17555_v24  ;;  %v17614_v60 = vpop.f32.mrb[229].mxu1  ;;  %v17558_v58 = vpop.f32.mrb[234].mxu0  ;;  %v19420_v45 = vld [vmem:[%s24793_s7 + $0x264] ss:$8 sps:$4 sm:$0xff]  }
 0x58f   : > { %v17615_v42 = vadd.f32 %v17614_v60, %v17613_v23  ;;  %v17616_v54 = vpop.f32.mrb[230].mxu1  ;;  %v17559_v19 = vpop.f32.mrb[235].mxu0  ;;  %v19400_v23 = vld [vmem:[%s24793_s7 + $0x174] ss:$8 sps:$4 sm:$0xff]  }
 0x590   : > { %v10871_v48 = vadd.f32 %v17557_v38, %v23611_v61  ;;  %17994 = vmatpush3.bf16.msra.mxu1 %v19396_v8  ;;  %v17560_v15 = vadd.f32 %v17559_v19, %v17558_v58  ;;  %v17617_v46 = vpop.f32.mrb[231].mxu1  ;;  %v19423_v61 = vld [vmem:[%s24793_s7 + $0x2f4] ss:$8 sps:$4 sm:$0xff]  }
 0x591   : > { %18058 = vmatpush3.bf16.msra.mxu0 %v19418_v25  ;;  %v17618_v24 = vadd.f32 %v17617_v46, %v17616_v54  ;;  %17995 = vmatprep.subr.bf16.mxu1 %v19397_v21  ;;  %v23788_v35 = vadd.f32 %v17615_v42, %v10863_v53  ;;  %v19404_v46 = vld [vmem:[%s24793_s7 + $0x304] ss:$8 sps:$4 sm:$0xff]  }
 0x592   : > { %18059 = vmatprep.subr.bf16.mxu0 %v19419_v55  ;;  %v10874_v8 = vadd.f32 %v17560_v15, %v23617_v30  ;;  %13059 = vmatmul.mubr.bf16.gmra.mrb[76].mxu0 %v22879_v32  ;;  %v19424_v30 = vld [vmem:[%s24793_s7 + $0x274] ss:$8 sps:$4 sm:$0xff]  }
 0x593   : > { %18716 = vmatmul.mubr.bf16.gmra.mrb[60].mxu1 %v23776_v26  ;;  %13066 = vmatprep.mubr.bf16.mxu0 %v22830_v56  ;;  %v23798_v25 = vadd.f32 %v17618_v24, %v10866_v34  ;;  %v19403_v56 = vld [vmem:[%s24793_s7 + $0x384] ss:$8 sps:$4 sm:$0xff]  }
 0x594   : > { %13131 = vmatprep.mubr.bf16.mxu1 %v22834_v43  ;;  %17996 = vmatpush3.bf16.msra.mxu1 %v19398_v12  ;;  %v17561_v53 = vpop.f32.mrb[236].mxu0  ;;  %v23812_v43 = vld [vmem:[%s24793_s7 + $0x404] ss:$8 sps:$4 sm:$0xff]  }
 0x595   : > { %18060 = vmatpush3.bf16.msra.mxu0 %v19420_v45  ;;  %v17619_v0 = vpop.f32.mrb[232].mxu1  ;;  %v17562_v21 = vpop.f32.mrb[237].mxu0  ;;  %17997 = vmatprep.subr.bf16.mxu1 %v19399_v9  ;;  %v19409_v45 = vld [vmem:[%s24793_s7 + $0x394] ss:$8 sps:$4 sm:$0xff]  }
 0x596   : > { %18061 = vmatprep.subr.bf16.mxu0 %v19423_v61  ;;  %v17563_v34 = vadd.f32 %v17562_v21, %v17561_v53  ;;  %v17620_v55 = vpop.f32.mrb[233].mxu1  ;;  %v17564_v38 = vpop.f32.mrb[238].mxu0 }
 0x597   : > { %v17621_v60 = vadd.f32 %v17620_v55, %v17619_v0  ;;  %v17622_v58 = vpop.f32.mrb[234].mxu1  ;;  %v17565_v42 = vpop.f32.mrb[239].mxu0  ;;  %v19425_v55 = vld [vmem:[%s24793_s7 + $0x3c4] ss:$8 sps:$4 sm:$0xff]  }
 0x598   : > { %v23815_v54 = vadd.f32 %v17563_v34, %v23627_v10  ;;  %17998 = vmatpush3.bf16.msra.mxu1 %v19400_v23  ;;  %v17566_v19 = vadd.f32 %v17565_v42, %v17564_v38  ;;  %v17623_v15 = vpop.f32.mrb[235].mxu1  ;;  %v19415_v23 = vld [vmem:[%s24793_s7 + $0x3a4] ss:$8 sps:$4 sm:$0xff]  }
 0x599   : > { %18062 = vmatpush3.bf16.msra.mxu0 %v19424_v30  ;;  %v17624_v12 = vadd.f32 %v17623_v15, %v17622_v58  ;;  %18111 = vmatprep.subr.bf16.mxu1 %v19403_v56  ;;  %v23823_v24 = vadd.f32 %v17621_v60, %v10871_v48  ;;  %v19410_v48 = vld [vmem:[%s24793_s7 + $0x314] ss:$8 sps:$4 sm:$0xff]  }
 0x59a   : > { %18719 = vmatprep.subr.bf16.mxu0 %v23812_v43  ;;  %v23827_v10 = vadd.f32 %v17566_v19, %v23634_v63  ;;  %13067 = vmatmul.mubr.bf16.gmra.mrb[80].mxu0 %v22902_v59  ;;  %v19421_v56 = vld [vmem:[%s24793_s7 + $0x3b4] ss:$8 sps:$4 sm:$0xff]  }
 0x59b   : > { %13074 = vmatprep.mubr.bf16.mxu0 %v22867_v20  ;;  %13132 = vmatmul.mubr.bf16.vlgmr.msra.gmra.mrb[64].mxu1 %v22828_v52  ;;  %v23832_v9 = vadd.f32 %v17624_v12, %v10874_v8 }
 0x59c   : > { %13139 = vmatprep.mubr.bf16.mxu1 %v22849_v3  ;;  %18112 = vmatpush3.bf16.msra.mxu1 %v19404_v46  ;;  %v18673_v61 = vpop.f32.mrb[240].mxu0  ;;  %v19428_v46 = vld [vmem:[%s24793_s7 + $0x354] ss:$8 sps:$4 sm:$0xff]  }
 0x59d   : > { %v11025_v53 = vadd.f32 %v18673_v61, %v23657_v57  ;;  %v11016_v63 = vpop.f32.mrb[241].mxu0  ;;  %18113 = vmatprep.subr.bf16.mxu1 %v19409_v45  ;;  %v19416_v57 = vld [vmem:[%s24793_s7 + $0x324] ss:$8 sps:$4 sm:$0xff]  }
 0x59e   : > { %v11017_v52 = vadd.f32 %v11016_v63, %v23643_v49  ;;  %v18674_v8 = vpop.f32.mrb[242].mxu0  ;;  %v19431_v63 = vld [vmem:[%s24793_s7 + $0x3f4] ss:$8 sps:$4 sm:$0xff]  }
 0x59f   : > { %v11028_v30 = vadd.f32 %v18674_v8, %v23664_v62  ;;  %v11019_v0 = vpop.f32.mrb[243].mxu0 }
 0x5a0   : > { %19513 = vtanh.f32 %v11017_v52  ;;  %v11020_v21 = vadd.f32 %v11019_v0, %v23650_v41  ;;  %18114 = vmatpush3.bf16.msra.mxu1 %v19410_v48  ;;  %v19422_v41 = vld [vmem:[%s24793_s7 + $0x334] ss:$8 sps:$4 sm:$0xff]   ;;  %v19434_v52 = vld [vmem:[%s24793_s7 + $0x84] ss:$8 sps:$4 sm:$0xff]  }
 0x5a1   : > { %18115 = vmatprep.subr.bf16.mxu1 %v19415_v23  ;;  %v24913_v0 = vld [vmem:[#allocation5_spill] sm:$0xff] }
 0x5a2   : > { %13075 = vmatmul.mubr.bf16.gmra.mrb[84].mxu0 %v22936_v39  ;;  %19515 = vtanh.f32 %v11020_v21 }
 0x5a3   : > { %13082 = vmatprep.mubr.bf16.mxu0 %v22863_v28  ;;  %13140 = vmatmul.mubr.bf16.gmra.mrb[68].mxu1 %v22872_v51  ;;  %19517 = vtanh.f32 %v11025_v53 }
 0x5a4   : > { %13147 = vmatprep.mubr.bf16.mxu1 %v22879_v32  ;;  %v18677_v49 = vpop.f32.mrb[244].mxu0  ;;  %18116 = vmatpush3.bf16.msra.mxu1 %v19416_v57  ;;  %19519 = vtanh.f32 %v11028_v30  ;;  %v24914_v57 = vld [vmem:[#allocation11_spill] sm:$0xff] }
 0x5a5   : > { %v11041_v62 = vadd.f32 %v18677_v49, %v23718_v27  ;;  %v11032_v34 = vpop.f32.mrb[245].mxu0  ;;  %18117 = vmatprep.subr.bf16.mxu1 %v19421_v56  ;;  %v19426_v27 = vld [vmem:[%s24793_s7 + $0x344] ss:$8 sps:$4 sm:$0xff]   ;;  %v24915_v49 = vld [vmem:[#allocation6_spill] sm:$0xff] }
 0x5a6   : > { %v11033_v28 = vadd.f32 %v11032_v34, %v23683_v14  ;;  %v18678_v38 = vpop.f32.mrb[246].mxu0  ;;  %v19427_v14 = vld [vmem:[%s24793_s7 + $0x3d4] ss:$8 sps:$4 sm:$0xff]  }
 0x5a7   : > { %v11044_v60 = vadd.f32 %v18678_v38, %v23728_v13  ;;  %v11035_v58 = vpop.f32.mrb[247].mxu0 }
 0x5a8   : > { %v11036_v42 = vadd.f32 %v11035_v58, %v23693_v16  ;;  %18118 = vmatpush3.bf16.msra.mxu1 %v19422_v41  ;;  %19521 = vtanh.f32 %v11033_v28 }
 0x5a9   : > { %18119 = vmatprep.subr.bf16.mxu1 %v19425_v55  ;;  %v19441_v55 = vld [vmem:[%s24793_s7 + $0x444] ss:$8 sps:$4 sm:$0xff]  }
 0x5aa   : > { %v19514_v19 = vpop.eup %19513  ;;  %13083 = vmatmul.mubr.bf16.gmra.mrb[88].mxu0 %v22959_v18  ;;  %19523 = vtanh.f32 %v11036_v42 }
 0x5ab   : > { %13090 = vmatprep.mubr.bf16.mxu0 %v22915_v44  ;;  %13148 = vmatmul.mubr.bf16.gmra.mrb[72].mxu1 %v22900_v36  ;;  %v19429_v44 = vld [vmem:[%s24793_s7 + $0x3e4] ss:$8 sps:$4 sm:$0xff]   ;;  %19525 = vtanh.f32 %v11041_v62 }
 0x5ac   : > { %13155 = vmatprep.mubr.bf16.mxu1 %v22902_v59  ;;  %11095 = vxpose.xlu0.b32.start [1/16] %v19514_v19, 128  ;;  %v18681_v16 = vpop.f32.mrb[248].mxu0  ;;  %v19516_v61 = vpop.eup %19515  ;;  %19527 = vtanh.f32 %v11044_v60 }
 0x5ad   : > { %v23876_v13 = vadd.f32 %v18681_v16, %v23788_v35  ;;  %v11048_v15 = vpop.f32.mrb[249].mxu0  ;;  %18120 = vmatpush3.bf16.msra.mxu1 %v19426_v27  ;;  %v19518_v23 = vpop.eup %19517 }
 0x5ae   : > { %v11049_v12 = vadd.f32 %v11048_v15, %v23755_v4  ;;  %v18682_v45 = vpop.f32.mrb[250].mxu0  ;;  %18121 = vmatprep.subr.bf16.mxu1 %v19427_v14  ;;  %v19430_v4 = vld [vmem:[%s24793_s7 + $0x364] ss:$8 sps:$4 sm:$0xff]   ;;  %v19520_v8 = vpop.eup %19519 }
 0x5af   : > { %v23886_v48 = vadd.f32 %v18682_v45, %v23798_v25  ;;  %v11051_v35 = vpop.f32.mrb[251].mxu0  ;;  %v24912_v25 = vld [vmem:[#allocation4_spill] sm:$0xff] }
 0x5b0   : > { %v11052_v53 = vadd.f32 %v11051_v35, %v23762_v40  ;;  %11096 = vxpose.xlu0.b32.cont [2/16] %v19516_v61, 128  ;;  %v19432_v40 = vld [vmem:[%s24793_s7 + $0x374] ss:$8 sps:$4 sm:$0xff]   ;;  %19529 = vtanh.f32 %v11049_v12 }
 0x5b1   : > { %18122 = vmatpush3.bf16.msra.mxu1 %v19428_v46  ;;  %v24916_v46 = vld [vmem:[#allocation12_spill] sm:$0xff]  ;;  %v24917_v61 = vld [vmem:[#allocation7_spill] sm:$0xff] }
 0x5b2   : > { %13091 = vmatmul.mubr.bf16.gmra.mrb[92].mxu0 %v22973_v37  ;;  %18123 = vmatprep.subr.bf16.mxu1 %v19429_v44  ;;  %v19522_v30 = vpop.eup %19521  ;;  %19531 = vtanh.f32 %v11052_v53 }
 0x5b3   : > { %13156 = vmatmul.mubr.bf16.gmra.mrb[76].mxu1 %v24912_v25  ;;  %13228 = vmatprep.mubr.bf16.mxu0 %v22872_v51  ;;  %v19436_v51 = vld [vmem:[%s24793_s7 + $0x414] ss:$8 sps:$4 sm:$0xff]   ;;  %19533 = vtanh.f32 %v23876_v13 }
 0x5b4   : > { %13163 = vmatprep.mubr.bf16.mxu1 %v22936_v39  ;;  %11097 = vxpose.xlu0.b32.cont [3/16] %v19518_v23, 128  ;;  %v19524_v21 = vpop.eup %19523  ;;  %19535 = vtanh.f32 %v23886_v48 }
 0x5b5   : > { %18124 = vmatpush3.bf16.msra.mxu1 %v19430_v4  ;;  %v19526_v56 = vpop.eup %19525  ;;  %v23944_v4 = vld [vmem:[%s24794_s8] ss:$0 sm:$0xff] }
 0x5b6   : > { %18125 = vmatprep.subr.bf16.mxu1 %v19431_v63  ;;  %v19528_v28 = vpop.eup %19527  ;;  %v19445_v63 = vld [vmem:[%s24793_s7 + $0x464] ss:$8 sps:$4 sm:$0xff]  }
 0x5b8   : > { %11098 = vxpose.xlu0.b32.cont [4/16] %v19520_v8, 128 }
 0x5b9   : > { %18126 = vmatpush3.bf16.msra.mxu1 %v19432_v40 }
 0x5ba   : > { %13229 = vmatmul.mubr.bf16.vlgmr.msra.gmra.mrb[96].mxu0 %v22820_v11  ;;  %18191 = vmatprep.subr.bf16.mxu1 %v19434_v52  ;;  %v19437_v11 = vld [vmem:[%s24793_s7 + $0x424] ss:$8 sps:$4 sm:$0xff]   ;;  %v19530_v12 = vpop.eup %19529 }
 0x5bb   : > { %13164 = vmatmul.mubr.bf16.gmra.mrb[80].mxu1 %v24913_v0  ;;  %13236 = vmatprep.mubr.bf16.mxu0 %v22900_v36  ;;  %v19440_v36 = vld [vmem:[%s24793_s7 + $0x434] ss:$8 sps:$4 sm:$0xff]  }
 0x5bc   : > { %13171 = vmatprep.mubr.bf16.mxu1 %v22959_v18  ;;  %11099 = vxpose.xlu0.b32.cont [5/16] %v19522_v30, 128  ;;  %v19532_v23 = vpop.eup %19531 }
 0x5bd   : > { %18720 = vmatpush3.bf16.msra.mxu0 %v23812_v43 }
 0x5be   : > { %18721 = vmatprep.subr.bf16.mxu0 %v19436_v51 }
 0x5c0   : > { %11100 = vxpose.xlu0.b32.cont [6/16] %v19524_v21, 128 }
 0x5c1   : > { %18722 = vmatpush3.bf16.msra.mxu0 %v19436_v51 }
 0x5c2   : > { %13237 = vmatmul.mubr.bf16.gmra.mrb[100].mxu0 %v24914_v57  ;;  %18723 = vmatprep.subr.bf16.mxu0 %v19437_v11  ;;  %v24919_v57 = vld [vmem:[#allocation13_spill] sm:$0xff] }
 0x5c3   : > { %13172 = vmatmul.mubr.bf16.gmra.mrb[84].mxu1 %v24915_v49  ;;  %13244 = vmatprep.mubr.bf16.mxu0 %v24912_v25 }
 0x5c4   : > { %13179 = vmatprep.mubr.bf16.mxu1 %v22973_v37  ;;  %11101 = vxpose.xlu0.b32.cont [7/16] %v19526_v56, 128  ;;  %v19534_v56 = vpop.eup %19533 }
 0x5c5   : > { %v18685_v43 = vpop.f32.mrb[252].mxu0  ;;  %18724 = vmatpush3.bf16.msra.mxu0 %v19437_v11 }
 0x5c6   : > { %v17625_v41 = vpop.f32.mrb[236].mxu1  ;;  %v11064_v62 = vpop.f32.mrb[253].mxu0  ;;  %18725 = vmatprep.subr.bf16.mxu0 %v19440_v36 }
 0x5c7   : > { %v17626_v34 = vpop.f32.mrb[237].mxu1  ;;  %v11065_v38 = vadd.f32 %v11064_v62, %v23823_v24  ;;  %v18686_v58 = vpop.f32.mrb[254].mxu0  ;;  %v19444_v24 = vld [vmem:[%s24793_s7 + $0x454] ss:$8 sps:$4 sm:$0xff]  }
 0x5c8   : > { %v17627_v60 = vadd.f32 %v17626_v34, %v17625_v41  ;;  %v17628_v42 = vpop.f32.mrb[238].mxu1  ;;  %v11067_v27 = vpop.f32.mrb[255].mxu0  ;;  %11102 = vxpose.xlu0.b32.cont [8/16] %v19528_v28, 128  ;;  %v24920_v41 = vld [vmem:[#allocation9_spill] sm:$0xff]  ;;  %v24921_v34 = vld [vmem:[#allocation10_spill] sm:$0xff] }
 0x5c9   : > { %v17629_v19 = vpop.f32.mrb[239].mxu1  ;;  %v11068_v16 = vadd.f32 %v11067_v27, %v23832_v9  ;;  %18726 = vmatpush3.bf16.msra.mxu0 %v19440_v36  ;;  %19537 = vtanh.f32 %v11065_v38  ;;  %v19448_v36 = vld [vmem:[%s24793_s7 + $0x474] ss:$8 sps:$4 sm:$0xff]   ;;  %v19536_v27 = vpop.eup %19535 }
 0x5ca   : > { %v10976_v14 = vadd.f32 %v17627_v60, %v23815_v54  ;;  %v17630_v15 = vadd.f32 %v17629_v19, %v17628_v42  ;;  %13245 = vmatmul.mubr.bf16.gmra.mrb[104].mxu0 %v24916_v46  ;;  %18727 = vmatprep.subr.bf16.mxu0 %v19441_v55  ;;  %v24918_v54 = vld [vmem:[#allocation8_spill] sm:$0xff] }
 0x5cb   : > { %13180 = vmatmul.mubr.bf16.gmra.mrb[88].mxu1 %v24917_v61  ;;  %13252 = vmatprep.mubr.bf16.mxu0 %v24913_v0  ;;  %19539 = vtanh.f32 %v11068_v16  ;;  %v19449_v42 = vld [vmem:[%s24793_s7 + $0x184] ss:$8 sps:$4 sm:$0xff]  }
 0x5cc   : > { %v11073_v45 = vadd.f32 %v18685_v43, %v10976_v14  ;;  %v10979_v44 = vadd.f32 %v17630_v15, %v23827_v10  ;;  %13187 = vmatprep.mubr.bf16.mxu1 %v24918_v54  ;;  %11103 = vxpose.xlu0.b32.cont [9/16] %v19530_v12, 128 }
 0x5cd   : > { %v17727_v13 = vpop.f32.mrb[0].mxu0  ;;  %18728 = vmatpush3.bf16.msra.mxu0 %v19441_v55 }
 0x5ce   : > { %v23939_v9 = vadd.f32 %v18686_v58, %v10979_v44  ;;  %v17663_v35 = vpop.f32.mrb[240].mxu1  ;;  %v17728_v53 = vpop.f32.mrb[1].mxu0  ;;  %18729 = vmatprep.subr.bf16.mxu0 %v19444_v24  ;;  %v19435_v44 = vld [vmem:[%s24793_s7 + $0x4] ss:$8 sps:$4 sm:$0xff]   ;;  %19541 = vtanh.f32 %v11073_v45 }
 0x5cf   : > { %v17664_v10 = vpop.f32.mrb[241].mxu1  ;;  %v17729_v25 = vadd.f32 %v17728_v53, %v17727_v13  ;;  %v17730_v40 = vpop.f32.mrb[2].mxu0  ;;  %v19438_v53 = vld [vmem:[%s24793_s7 + $0x94] ss:$8 sps:$4 sm:$0xff]  }
 0x5d0   : > { %v17665_v48 = vadd.f32 %v17664_v10, %v17663_v35  ;;  %v17666_v52 = vpop.f32.mrb[242].mxu1  ;;  %v17731_v8 = vpop.f32.mrb[3].mxu0  ;;  %11104 = vxpose.xlu0.b32.cont [10/16] %v19532_v23, 128  ;;  %v24922_v10 = vld [vmem:[#allocation14_spill] sm:$0xff]  ;;  %19543 = vtanh.f32 %v23939_v9 }
 0x5d1   : > { %v17667_v51 = vpop.f32.mrb[243].mxu1  ;;  %v17732_v11 = vadd.f32 %v17731_v8, %v17730_v40  ;;  %18730 = vmatpush3.bf16.msra.mxu0 %v19444_v24  ;;  %v19446_v9 = vld [vmem:[%s24793_s7 + $0xb4] ss:$8 sps:$4 sm:$0xff]  }
 0x5d2   : > { %v11833_v30 = vadd.f32 %v17665_v48, %v23944_v4  ;;  %v17668_v21 = vadd.f32 %v17667_v51, %v17666_v52  ;;  %13253 = vmatmul.mubr.bf16.gmra.mrb[108].mxu0 %v24919_v57  ;;  %18731 = vmatprep.subr.bf16.mxu0 %v19445_v63  ;;  %v19439_v48 = vld [vmem:[%s24793_s7 + $0x14] ss:$8 sps:$4 sm:$0xff]   ;;  %v19442_v52 = vld [vmem:[%s24793_s7 + $0xa4] ss:$8 sps:$4 sm:$0xff]  }
 0x5d3   : > { %13188 = vmatmul.mubr.bf16.gmra.mrb[92].mxu1 %v24920_v41  ;;  %13260 = vmatprep.mubr.bf16.mxu0 %v24915_v49 }
 0x5d4   : > { %v11836_v43 = vadd.f32 %v17668_v21, %v23944_v4  ;;  %v23957_v62 = vadd.f32 %v17729_v25, %v11833_v30  ;;  %13325 = vmatprep.mubr.bf16.mxu1 %v24921_v34  ;;  %11105 = vxpose.xlu0.b32.cont [11/16] %v19534_v56, 128  ;;  %v19538_v25 = vpop.eup %19537  ;;  %v19443_v34 = vld [vmem:[%s24793_s7 + $0x24] ss:$8 sps:$4 sm:$0xff]  }
 0x5d5   : > { %v17733_v55 = vpop.f32.mrb[4].mxu0  ;;  %18732 = vmatpush3.bf16.msra.mxu0 %v19445_v63 }
 0x5d6   : > { %v17669_v28 = vpop.f32.mrb[244].mxu1  ;;  %v23960_v38 = vadd.f32 %v17732_v11, %v11836_v43  ;;  %v17734_v60 = vpop.f32.mrb[5].mxu0  ;;  %18733 = vmatprep.subr.bf16.mxu0 %v19448_v36 }
 0x5d7   : > { %v17670_v58 = vpop.f32.mrb[245].mxu1  ;;  %v17735_v19 = vadd.f32 %v17734_v60, %v17733_v55  ;;  %v17736_v15 = vpop.f32.mrb[6].mxu0 }
 0x5d8   : > { %v17671_v14 = vadd.f32 %v17670_v58, %v17669_v28  ;;  %v17672_v46 = vpop.f32.mrb[246].mxu1  ;;  %v17737_v24 = vpop.f32.mrb[7].mxu0  ;;  %11106 = vxpose.xlu0.b32.cont [12/16] %v19536_v27, 128  ;;  %v24923_v58 = vld [vmem:[#allocation15_spill] sm:$0xff] }
 0x5d9   : > { %v17673_v12 = vpop.f32.mrb[247].mxu1  ;;  %v17738_v13 = vadd.f32 %v17737_v24, %v17736_v15  ;;  %18734 = vmatpush3.bf16.msra.mxu0 %v19448_v36  ;;  %v19540_v36 = vpop.eup %19539  ;;  %v19450_v24 = vld [vmem:[%s24793_s7 + $0xc4] ss:$8 sps:$4 sm:$0xff]  }
 0x5da   : > { %v11841_v16 = vadd.f32 %v17671_v14, %v23944_v4  ;;  %v17674_v35 = vadd.f32 %v17673_v12, %v17672_v46  ;;  %13261 = vmatmul.mubr.bf16.gmra.mrb[112].mxu0 %v24922_v10  ;;  %18255 = vmatprep.subr.bf16.mxu0 %v19449_v42  ;;  %v19447_v14 = vld [vmem:[%s24793_s7 + $0x34] ss:$8 sps:$4 sm:$0xff]  }
 0x5db   : > { %13268 = vmatprep.mubr.bf16.mxu0 %v24917_v61  ;;  %13326 = vmatmul.mubr.bf16.vlgmr.msra.gmra.mrb[96].mxu1 %v22849_v3 }
 0x5dc   : > { %v11844_v63 = vadd.f32 %v17674_v35, %v23944_v4  ;;  %v23976_v23 = vadd.f32 %v17735_v19, %v11841_v16  ;;  %13333 = vmatprep.mubr.bf16.mxu1 %v22837_v47  ;;  %18192 = vmatpush3.bf16.msra.mxu1 %v19435_v44  ;;  %v19542_v19 = vpop.eup %19541 }
 0x5dd   : > { %v17739_v45 = vpop.f32.mrb[8].mxu0  ;;  %11107 = vxpose.xlu0.b32.cont [13/16] %v19538_v25, 128  ;;  %18193 = vmatprep.subr.bf16.mxu1 %v19438_v53  ;;  %v19544_v53 = vpop.eup %19543  ;;  %v19452_v25 = vld [vmem:[%s24793_s7 + $0x44] ss:$8 sps:$4 sm:$0xff]  }
 0x5de   : > { %v17675_v40 = vpop.f32.mrb[248].mxu1  ;;  %v23985_v8 = vadd.f32 %v17738_v13, %v11844_v63  ;;  %v17740_v3 = vpop.f32.mrb[9].mxu0 }
 0x5df   : > { %v17676_v51 = vpop.f32.mrb[249].mxu1  ;;  %v17741_v47 = vadd.f32 %v17740_v3, %v17739_v45  ;;  %v17742_v11 = vpop.f32.mrb[10].mxu0  ;;  %v24924_v3 = vld [vmem:[#allocation17_spill] sm:$0xff] }
 0x5e0   : > { %v17677_v30 = vadd.f32 %v17676_v51, %v17675_v40  ;;  %v17678_v21 = vpop.f32.mrb[250].mxu1  ;;  %v17743_v56 = vpop.f32.mrb[11].mxu0  ;;  %18194 = vmatpush3.bf16.msra.mxu1 %v19439_v48 }
 0x5e1   : > { %v17679_v43 = vpop.f32.mrb[251].mxu1  ;;  %v17744_v28 = vadd.f32 %v17743_v56, %v17742_v11  ;;  %11108 = vxpose.xlu0.b32.cont [14/16] %v19540_v36, 128  ;;  %18195 = vmatprep.subr.bf16.mxu1 %v19442_v52  ;;  %v19456_v52 = vld [vmem:[%s24793_s7 + $0xd4] ss:$8 sps:$4 sm:$0xff]   ;;  %v19462_v56 = vld [vmem:[%s24793_s7 + $0xe4] ss:$8 sps:$4 sm:$0xff]  }
 0x5e2   : > { %v11849_v55 = vadd.f32 %v17677_v30, %v23944_v4  ;;  %v17680_v60 = vadd.f32 %v17679_v43, %v17678_v21  ;;  %13269 = vmatmul.mubr.bf16.gmra.mrb[116].mxu0 %v24923_v58  ;;  %v19458_v11 = vld [vmem:[%s24793_s7 + $0x54] ss:$8 sps:$4 sm:$0xff]  }
 0x5e3   : > { %13276 = vmatprep.mubr.bf16.mxu0 %v24920_v41  ;;  %13334 = vmatmul.mubr.bf16.gmra.mrb[100].mxu1 %v22879_v32 }
 0x5e4   : > { %v11852_v42 = vadd.f32 %v17680_v60, %v23944_v4  ;;  %v23999_v27 = vadd.f32 %v17741_v47, %v11849_v55  ;;  %13341 = vmatprep.mubr.bf16.mxu1 %v24919_v57  ;;  %18196 = vmatpush3.bf16.msra.mxu1 %v19443_v34  ;;  %v24925_v47 = vld [vmem:[#allocation18_spill] sm:$0xff] }
 0x5e5   : > { %v17745_v15 = vpop.f32.mrb[12].mxu0  ;;  %11109 = vxpose.xlu0.b32.cont [15/16] %v19542_v19, 128  ;;  %18197 = vmatprep.subr.bf16.mxu1 %v19446_v9  ;;  %v19464_v19 = vld [vmem:[%s24793_s7 + $0x64] ss:$8 sps:$4 sm:$0xff]  }
 0x5e6   : > { %v17681_v46 = vpop.f32.mrb[252].mxu1  ;;  %v24008_v12 = vadd.f32 %v17744_v28, %v11852_v42  ;;  %v17746_v32 = vpop.f32.mrb[13].mxu0 }
 0x5e7   : > { %v17682_v44 = vpop.f32.mrb[253].mxu1  ;;  %v17747_v16 = vadd.f32 %v17746_v32, %v17745_v15  ;;  %v17748_v57 = vpop.f32.mrb[14].mxu0  ;;  %v24926_v32 = vld [vmem:[#allocation19_spill] sm:$0xff] }
 0x5e8   : > { %v17683_v13 = vadd.f32 %v17682_v44, %v17681_v46  ;;  %v17684_v35 = vpop.f32.mrb[254].mxu1  ;;  %v17749_v10 = vpop.f32.mrb[15].mxu0  ;;  %18198 = vmatpush3.bf16.msra.mxu1 %v19447_v14 }
 0x5e9   : > { %v17685_v63 = vpop.f32.mrb[255].mxu1  ;;  %v17750_v45 = vadd.f32 %v17749_v10, %v17748_v57  ;;  %11110 = vxpose.xlu0.b32.end [16/16] %v19544_v53, 128  ;;  %18199 = vmatprep.subr.bf16.mxu1 %v19450_v24  ;;  %v19468_v24 = vld [vmem:[%s24793_s7 + $0xf4] ss:$8 sps:$4 sm:$0xff]   ;;  %v19473_v10 = vld [vmem:[%s24793_s7 + $0x284] ss:$8 sps:$4 sm:$0xff]  }
 0x5ea   : > { %v11857_v48 = vadd.f32 %v17683_v13, %v23944_v4  ;;  %v17686_v40 = vadd.f32 %v17685_v63, %v17684_v35  ;;  %13277 = vmatmul.mubr.bf16.gmra.mrb[120].mxu0 %v24924_v3  ;;  %v19470_v57 = vld [vmem:[%s24793_s7 + $0x74] ss:$8 sps:$4 sm:$0xff]  }
 0x5eb   : > { %13284 = vmatprep.mubr.bf16.mxu0 %v24925_v47  ;;  %13342 = vmatmul.mubr.bf16.gmra.mrb[104].mxu1 %v22902_v59 }
 0x5ec   : > { %v11860_v51 = vadd.f32 %v17686_v40, %v23944_v4  ;;  %v24021_v30 = vadd.f32 %v17747_v16, %v11857_v48  ;;  %13349 = vmatprep.mubr.bf16.mxu1 %v22867_v20  ;;  %18200 = vmatpush3.bf16.msra.mxu1 %v19452_v25  ;;  %v24927_v16 = vld [vmem:[#allocation20_spill] sm:$0xff] }
 0x5ed   : > { %v17751_v21 = vpop.f32.mrb[16].mxu0  ;;  %18201 = vmatprep.subr.bf16.mxu1 %v19456_v52 }
 0x5ee   : > { %v17687_v36 = vpop.f32.mrb[0].mxu1  ;;  %v24030_v43 = vadd.f32 %v17750_v45, %v11860_v51  ;;  %v17752_v34 = vpop.f32.mrb[17].mxu0  ;;  %v19451_v51 = vld [vmem:[%s24793_s7 + $0x104] ss:$8 sps:$4 sm:$0xff]  }
 0x5ef   : > { %v17688_v59 = vpop.f32.mrb[1].mxu1  ;;  %v17753_v55 = vadd.f32 %v17752_v34, %v17751_v21  ;;  %v17754_v60 = vpop.f32.mrb[18].mxu0  ;;  %v24928_v34 = vld [vmem:[#allocation21_spill] sm:$0xff] }
 0x5f0   : > { %v17689_v28 = vadd.f32 %v17688_v59, %v17687_v36  ;;  %v17690_v20 = vpop.f32.mrb[2].mxu1  ;;  %v17755_v9 = vpop.f32.mrb[19].mxu0  ;;  %18202 = vmatpush3.bf16.msra.mxu1 %v19458_v11 }
 0x5f1   : > { %v17691_v42 = vpop.f32.mrb[3].mxu1  ;;  %v17756_v15 = vadd.f32 %v17755_v9, %v17754_v60  ;;  %18203 = vmatprep.subr.bf16.mxu1 %v19462_v56  ;;  %v19453_v56 = vld [vmem:[%s24793_s7 + $0x194] ss:$8 sps:$4 sm:$0xff]  }
 0x5f2   : > { %v11865_v14 = vadd.f32 %v17689_v28, %v23944_v4  ;;  %v17692_v46 = vadd.f32 %v17691_v42, %v17690_v20  ;;  %13285 = vmatmul.mubr.bf16.gmra.mrb[124].mxu0 %v24926_v32  ;;  %v24929_v28 = vld [vmem:[#allocation16_spill] sm:$0xff]  ;;  %v19454_v60 = vld [vmem:[%s24793_s7 + $0x114] ss:$8 sps:$4 sm:$0xff]  }
 0x5f3   : > { %13350 = vmatmul.mubr.bf16.gmra.mrb[108].mxu1 %v22936_v39  ;;  %18735 = vmatprep.mubr.bf16.mxu0 %v24927_v16  ;;  %v19455_v42 = vld [vmem:[%s24793_s7 + $0x1a4] ss:$8 sps:$4 sm:$0xff]  }
 0x5f4   : > { %v11868_v44 = vadd.f32 %v17692_v46, %v23944_v4  ;;  %v24043_v13 = vadd.f32 %v17753_v55, %v11865_v14  ;;  %13357 = vmatprep.mubr.bf16.mxu1 %v24923_v58  ;;  %18204 = vmatpush3.bf16.msra.mxu1 %v19464_v19 }
 0x5f5   : > { %v17757_v35 = vpop.f32.mrb[20].mxu0  ;;  %18205 = vmatprep.subr.bf16.mxu1 %v19468_v24 }
 0x5f6   : > { %v17693_v53 = vpop.f32.mrb[4].mxu1  ;;  %v24052_v63 = vadd.f32 %v17756_v15, %v11868_v44  ;;  %v17758_v39 = vpop.f32.mrb[21].mxu0 }
 0x5f7   : > { %v17694_v25 = vpop.f32.mrb[5].mxu1  ;;  %v17759_v48 = vadd.f32 %v17758_v39, %v17757_v35  ;;  %v17760_v40 = vpop.f32.mrb[22].mxu0  ;;  %v19459_v39 = vld [vmem:[%s24793_s7 + $0x1b4] ss:$8 sps:$4 sm:$0xff]  }
 0x5f8   : > { %v17695_v45 = vadd.f32 %v17694_v25, %v17693_v53  ;;  %v17696_v58 = vpop.f32.mrb[6].mxu1  ;;  %v17761_v52 = vpop.f32.mrb[23].mxu0  ;;  %18206 = vmatpush3.bf16.msra.mxu1 %v19470_v57  ;;  %v19457_v57 = vld [vmem:[%s24793_s7 + $0x124] ss:$8 sps:$4 sm:$0xff]  }
 0x5f9   : > { %v17697_v3 = vpop.f32.mrb[7].mxu1  ;;  %v17762_v21 = vadd.f32 %v17761_v52, %v17760_v40  ;;  %18319 = vmatprep.subr.bf16.mxu1 %v19473_v10 }
 0x5fa   : > { %v11873_v11 = vadd.f32 %v17695_v45, %v23944_v4  ;;  %v17698_v36 = vadd.f32 %v17697_v3, %v17696_v58  ;;  %18736 = vmatmul.mubr.bf16.vlgmr.msra.gmra.mrb[128].mxu0 %v24928_v34  ;;  %v19460_v45 = vld [vmem:[%s24793_s7 + $0x134] ss:$8 sps:$4 sm:$0xff]   ;;  %v19463_v34 = vld [vmem:[%s24793_s7 + $0x144] ss:$8 sps:$4 sm:$0xff]  }
 0x5fb   : > { %13358 = vmatmul.mubr.bf16.gmra.mrb[112].mxu1 %v22959_v18  ;;  %18739 = vmatprep.mubr.bf16.mxu0 %v24913_v0 }
 0x5fc   : > { %v11876_v59 = vadd.f32 %v17698_v36, %v23944_v4  ;;  %v24065_v55 = vadd.f32 %v17759_v48, %v11873_v11  ;;  %18256 = vmatpush3.bf16.msra.mxu0 %v19451_v51  ;;  %13365 = vmatprep.mubr.bf16.mxu1 %v24929_v28 }
 0x5fd   : > { %v17763_v20 = vpop.f32.mrb[24].mxu0  ;;  %18257 = vmatprep.subr.bf16.mxu0 %v19453_v56 }
 0x5fe   : > { %v17699_v9 = vpop.f32.mrb[8].mxu1  ;;  %v24074_v19 = vadd.f32 %v17762_v21, %v11876_v59  ;;  %v17764_v18 = vpop.f32.mrb[25].mxu0 }
 0x5ff   : > { %v17700_v0 = vpop.f32.mrb[9].mxu1  ;;  %v17765_v14 = vadd.f32 %v17764_v18, %v17763_v20  ;;  %v17766_v46 = vpop.f32.mrb[26].mxu0  ;;  %v19465_v20 = vld [vmem:[%s24793_s7 + $0x1d4] ss:$8 sps:$4 sm:$0xff]  }
 0x600   : > { %v17701_v15 = vadd.f32 %v17700_v0, %v17699_v9  ;;  %v17702_v24 = vpop.f32.mrb[10].mxu1  ;;  %18258 = vmatpush3.bf16.msra.mxu0 %v19454_v60  ;;  %v17767_v44 = vpop.f32.mrb[27].mxu0  ;;  %v24930_v18 = vld [vmem:[#allocation23_spill] sm:$0xff] }
 0x601   : > { %v17703_v16 = vpop.f32.mrb[11].mxu1  ;;  %v17768_v53 = vadd.f32 %v17767_v44, %v17766_v46  ;;  %18259 = vmatprep.subr.bf16.mxu0 %v19455_v42  ;;  %v19466_v0 = vld [vmem:[%s24793_s7 + $0x154] ss:$8 sps:$4 sm:$0xff]  }
 0x602   : > { %v11881_v35 = vadd.f32 %v17701_v15, %v23944_v4  ;;  %v17704_v10 = vadd.f32 %v17703_v16, %v17702_v24  ;;  %18740 = vmatmul.mubr.bf16.gmra.mrb[132].mxu0 %v24915_v49  ;;  %v19461_v49 = vld [vmem:[%s24793_s7 + $0x1c4] ss:$8 sps:$4 sm:$0xff]  }
 0x603   : > { %13366 = vmatmul.mubr.bf16.gmra.mrb[116].mxu1 %v22973_v37  ;;  %18743 = vmatprep.mubr.bf16.mxu0 %v24917_v61 }
 0x604   : > { %v11884_v25 = vadd.f32 %v17704_v10, %v23944_v4  ;;  %v24087_v48 = vadd.f32 %v17765_v14, %v11881_v35  ;;  %18260 = vmatpush3.bf16.msra.mxu0 %v19457_v57  ;;  %13373 = vmatprep.mubr.bf16.mxu1 %v24926_v32  ;;  %v19469_v10 = vld [vmem:[%s24793_s7 + $0x164] ss:$8 sps:$4 sm:$0xff]  }
 0x605   : > { %v17769_v40 = vpop.f32.mrb[28].mxu0  ;;  %18261 = vmatprep.subr.bf16.mxu0 %v19459_v39 }
 0x606   : > { %v17705_v58 = vpop.f32.mrb[12].mxu1  ;;  %v24096_v52 = vadd.f32 %v17768_v53, %v11884_v25  ;;  %v17770_v37 = vpop.f32.mrb[29].mxu0 }
 0x607   : > { %v17706_v61 = vpop.f32.mrb[13].mxu1  ;;  %v17771_v3 = vadd.f32 %v17770_v37, %v17769_v40  ;;  %v17772_v11 = vpop.f32.mrb[30].mxu0  ;;  %v19471_v40 = vld [vmem:[%s24793_s7 + $0x1f4] ss:$8 sps:$4 sm:$0xff]  }
 0x608   : > { %v17707_v51 = vadd.f32 %v17706_v61, %v17705_v58  ;;  %v17708_v21 = vpop.f32.mrb[14].mxu1  ;;  %18262 = vmatpush3.bf16.msra.mxu0 %v19460_v45  ;;  %v17773_v36 = vpop.f32.mrb[31].mxu0  ;;  %v24931_v58 = vld [vmem:[#allocation25_spill] sm:$0xff]  ;;  %v24932_v37 = vld [vmem:[#allocation26_spill] sm:$0xff] }
 0x609   : > { %v17709_v56 = vpop.f32.mrb[15].mxu1  ;;  %v17774_v28 = vadd.f32 %v17773_v36, %v17772_v11  ;;  %18263 = vmatprep.subr.bf16.mxu0 %v19461_v49 }
 0x60a   : > { %v11889_v59 = vadd.f32 %v17707_v51, %v23944_v4  ;;  %v17710_v60 = vadd.f32 %v17709_v56, %v17708_v21  ;;  %18744 = vmatmul.mubr.bf16.gmra.mrb[136].mxu0 %v24920_v41 }
 0x60b   : > { %13374 = vmatmul.mubr.bf16.gmra.mrb[120].mxu1 %v24918_v54  ;;  %18747 = vmatprep.mubr.bf16.mxu0 %v24925_v47 }
 0x60c   : > { %v11892_v9 = vadd.f32 %v17710_v60, %v23944_v4  ;;  %v24109_v42 = vadd.f32 %v17771_v3, %v11889_v59  ;;  %18264 = vmatpush3.bf16.msra.mxu0 %v19463_v34  ;;  %13381 = vmatprep.mubr.bf16.mxu1 %v24930_v18  ;;  %v19467_v4 = vld [vmem:[%s24793_s7 + $0x1e4] ss:$8 sps:$4 sm:$0xff]  }
 0x60d   : > { %v17855_v14 = vpop.f32.mrb[32].mxu0  ;;  %18265 = vmatprep.subr.bf16.mxu0 %v19465_v20 }
 0x60e   : > { %v17791_v15 = vpop.f32.mrb[16].mxu1  ;;  %v24118_v41 = vadd.f32 %v17774_v28, %v11892_v9  ;;  %v17856_v54 = vpop.f32.mrb[33].mxu0 }
 0x60f   : > { %v17792_v46 = vpop.f32.mrb[17].mxu1  ;;  %v17857_v24 = vadd.f32 %v17856_v54, %v17855_v14  ;;  %v17858_v16 = vpop.f32.mrb[34].mxu0  ;;  %v19474_v14 = vld [vmem:[%s24793_s7 + $0x204] ss:$8 sps:$4 sm:$0xff]   ;;  %v19485_v54 = vld [vmem:[%s24793_s7 + $0x394] ss:$8 sps:$4 sm:$0xff]  }
 0x610   : > { %v17793_v44 = vadd.f32 %v17792_v46, %v17791_v15  ;;  %v17794_v57 = vpop.f32.mrb[18].mxu1  ;;  %18266 = vmatpush3.bf16.msra.mxu0 %v19466_v0  ;;  %v17859_v35 = vpop.f32.mrb[35].mxu0  ;;  %v19483_v15 = vld [vmem:[%s24793_s7 + $0x304] ss:$8 sps:$4 sm:$0xff]  }
 0x611   : > { %v17795_v53 = vpop.f32.mrb[19].mxu1  ;;  %v17860_v25 = vadd.f32 %v17859_v35, %v17858_v16  ;;  %18267 = vmatprep.subr.bf16.mxu0 %v19467_v4  ;;  %v19475_v4 = vld [vmem:[%s24793_s7 + $0x294] ss:$8 sps:$4 sm:$0xff]   ;;  %v24933_v46 = vld [vmem:[#allocation29_spill] sm:$0xff] }
 0x612   : > { %v12027_v39 = vadd.f32 %v17793_v44, %v23957_v62  ;;  %v17796_v45 = vadd.f32 %v17795_v53, %v17794_v57  ;;  %18748 = vmatmul.mubr.bf16.gmra.mrb[140].mxu0 %v24931_v58  ;;  %v19472_v62 = vld [vmem:[%s24793_s7 + $0x174] ss:$8 sps:$4 sm:$0xff]  }
 0x613   : > { %13382 = vmatmul.mubr.bf16.gmra.mrb[124].mxu1 %v24932_v37  ;;  %14335 = vmatprep.mubr.bf16.mxu0 %v24932_v37  ;;  %v24934_v44 = vld [vmem:[#allocation31_spill] sm:$0xff] }
 0x614   : > { %v12030_v49 = vadd.f32 %v17796_v45, %v23960_v38  ;;  %v24131_v61 = vadd.f32 %v17857_v24, %v12027_v39  ;;  %18268 = vmatpush3.bf16.msra.mxu0 %v19469_v10  ;;  %14238 = vmatprep.mubr.bf16.mxu1 %v24926_v32  ;;  %v19481_v38 = vld [vmem:[%s24793_s7 + $0x384] ss:$8 sps:$4 sm:$0xff]   ;;  %v19476_v35 = vld [vmem:[%s24793_s7 + $0x214] ss:$8 sps:$4 sm:$0xff]  }
 0x615   : > { %v17861_v3 = vpop.f32.mrb[36].mxu0  ;;  %18269 = vmatprep.subr.bf16.mxu0 %v19471_v40  ;;  %v19477_v39 = vld [vmem:[%s24793_s7 + $0x2a4] ss:$8 sps:$4 sm:$0xff]  }
 0x616   : > { %v17797_v51 = vpop.f32.mrb[20].mxu1  ;;  %v24140_v11 = vadd.f32 %v17860_v25, %v12030_v49  ;;  %v17862_v21 = vpop.f32.mrb[37].mxu0  ;;  %v19487_v25 = vld [vmem:[%s24793_s7 + $0x3a4] ss:$8 sps:$4 sm:$0xff]  }
 0x617   : > { %v17798_v36 = vpop.f32.mrb[21].mxu1  ;;  %v17863_v56 = vadd.f32 %v17862_v21, %v17861_v3  ;;  %v17864_v59 = vpop.f32.mrb[38].mxu0 }
 0x618   : > { %v17799_v34 = vadd.f32 %v17798_v36, %v17797_v51  ;;  %v17800_v28 = vpop.f32.mrb[22].mxu1  ;;  %18270 = vmatpush3.bf16.msra.mxu0 %v19472_v62  ;;  %v17865_v32 = vpop.f32.mrb[39].mxu0 }
 0x619   : > { %v17801_v60 = vpop.f32.mrb[23].mxu1  ;;  %v17866_v9 = vadd.f32 %v17865_v32, %v17864_v59  ;;  %18383 = vmatprep.subr.bf16.mxu0 %v19481_v38  ;;  %v19479_v59 = vld [vmem:[%s24793_s7 + $0x2b4] ss:$8 sps:$4 sm:$0xff]  }
 0x61a   : > { %v12035_v20 = vadd.f32 %v17799_v34, %v23976_v23  ;;  %v17802_v0 = vadd.f32 %v17801_v60, %v17800_v28  ;;  %v19489_v34 = vld [vmem:[%s24793_s7 + $0x324] ss:$8 sps:$4 sm:$0xff]   ;;  %v24935_v60 = vld [vmem:[#allocation22_spill] sm:$0xff] }
 0x61b   : > { %14336 = vmatmul.mubr.bf16.vlgmr.msra.gmra.mrb[144].mxu0 %v24925_v47  ;;  %14239 = vmatmul.mubr.bf16.vlgmr.msra.gmra.mrb[128].mxu1 %v24933_v46 }
 0x61c   : > { %v12038_v23 = vadd.f32 %v17802_v0, %v23985_v8  ;;  %v24158_v24 = vadd.f32 %v17863_v56, %v12035_v20  ;;  %14343 = vmatprep.mubr.bf16.mxu0 %v24934_v44  ;;  %14246 = vmatprep.mubr.bf16.mxu1 %v24930_v18  ;;  %v19486_v8 = vld [vmem:[%s24793_s7 + $0x314] ss:$8 sps:$4 sm:$0xff]   ;;  %v19478_v56 = vld [vmem:[%s24793_s7 + $0x224] ss:$8 sps:$4 sm:$0xff]  }
 0x61d   : > { %18320 = vmatpush3.bf16.msra.mxu1 %v19474_v14  ;;  %v17867_v16 = vpop.f32.mrb[40].mxu0  ;;  %18384 = vmatpush3.bf16.msra.mxu0 %v19483_v15  ;;  %v19480_v0 = vld [vmem:[%s24793_s7 + $0x234] ss:$8 sps:$4 sm:$0xff]  }
 0x61e   : > { %v17803_v57 = vpop.f32.mrb[24].mxu1  ;;  %v24168_v47 = vadd.f32 %v17866_v9, %v12038_v23  ;;  %v17868_v53 = vpop.f32.mrb[41].mxu0  ;;  %18321 = vmatprep.subr.bf16.mxu1 %v19475_v4  ;;  %18385 = vmatprep.subr.bf16.mxu0 %v19485_v54  ;;  %v19482_v4 = vld [vmem:[%s24793_s7 + $0x2c4] ss:$8 sps:$4 sm:$0xff]  }
 0x61f   : > { %v17804_v10 = vpop.f32.mrb[25].mxu1  ;;  %v17869_v45 = vadd.f32 %v17868_v53, %v17867_v16  ;;  %v17870_v49 = vpop.f32.mrb[42].mxu0  ;;  %v19493_v54 = vld [vmem:[%s24793_s7 + $0x3c4] ss:$8 sps:$4 sm:$0xff]  }
 0x620   : > { %v17805_v40 = vadd.f32 %v17804_v10, %v17803_v57  ;;  %v17806_v62 = vpop.f32.mrb[26].mxu1  ;;  %v17871_v3 = vpop.f32.mrb[43].mxu0 }
 0x621   : > { %v17807_v51 = vpop.f32.mrb[27].mxu1  ;;  %v17872_v21 = vadd.f32 %v17871_v3, %v17870_v49  ;;  %18322 = vmatpush3.bf16.msra.mxu1 %v19476_v35  ;;  %18386 = vmatpush3.bf16.msra.mxu0 %v19486_v8 }
 0x622   : > { %v12043_v38 = vadd.f32 %v17805_v40, %v23999_v27  ;;  %v17808_v36 = vadd.f32 %v17807_v51, %v17806_v62  ;;  %18323 = vmatprep.subr.bf16.mxu1 %v19477_v39  ;;  %18387 = vmatprep.subr.bf16.mxu0 %v19487_v25  ;;  %v19491_v27 = vld [vmem:[%s24793_s7 + $0x3b4] ss:$8 sps:$4 sm:$0xff]   ;;  %v19484_v25 = vld [vmem:[%s24793_s7 + $0x244] ss:$8 sps:$4 sm:$0xff]  }
 0x623   : > { %14344 = vmatmul.mubr.bf16.gmra.mrb[148].mxu0 %v24931_v58  ;;  %14247 = vmatmul.mubr.bf16.gmra.mrb[132].mxu1 %v24932_v37  ;;  %v19488_v40 = vld [vmem:[%s24793_s7 + $0x2d4] ss:$8 sps:$4 sm:$0xff]   ;;  %v24936_v62 = vld [vmem:[#allocation32_spill] sm:$0xff]  ;;  %v24937_v51 = vld [vmem:[#allocation33_spill] sm:$0xff] }
 0x624   : > { %v12046_v28 = vadd.f32 %v17808_v36, %v24008_v12  ;;  %v24192_v32 = vadd.f32 %v17869_v45, %v12043_v38  ;;  %14351 = vmatprep.mubr.bf16.mxu0 %v23341_v6  ;;  %14254 = vmatprep.mubr.bf16.mxu1 %v24935_v60  ;;  %v19492_v12 = vld [vmem:[%s24793_s7 + $0x334] ss:$8 sps:$4 sm:$0xff]   ;;  %v19495_v45 = vld [vmem:[%s24793_s7 + $0x344] ss:$8 sps:$4 sm:$0xff]  }
 0x625   : > { %v17873_v20 = vpop.f32.mrb[44].mxu0  ;;  %18324 = vmatpush3.bf16.msra.mxu1 %v19478_v56  ;;  %18388 = vmatpush3.bf16.msra.mxu0 %v19489_v34  ;;  %v24938_v38 = vld [vmem:[#allocation27_spill] sm:$0xff] }
 0x626   : > { %v17809_v9 = vpop.f32.mrb[28].mxu1  ;;  %v24202_v14 = vadd.f32 %v17872_v21, %v12046_v28  ;;  %v17874_v37 = vpop.f32.mrb[45].mxu0  ;;  %18325 = vmatprep.subr.bf16.mxu1 %v19479_v59  ;;  %18389 = vmatprep.subr.bf16.mxu0 %v19491_v27  ;;  %v19490_v56 = vld [vmem:[%s24793_s7 + $0x254] ss:$8 sps:$4 sm:$0xff]   ;;  %v19494_v28 = vld [vmem:[%s24793_s7 + $0x2e4] ss:$8 sps:$4 sm:$0xff]  }
 0x627   : > { %v17810_v15 = vpop.f32.mrb[29].mxu1  ;;  %v17875_v23 = vadd.f32 %v17874_v37, %v17873_v20  ;;  %v17876_v16 = vpop.f32.mrb[46].mxu0  ;;  %v19499_v20 = vld [vmem:[%s24793_s7 + $0x3e4] ss:$8 sps:$4 sm:$0xff]  }
 0x628   : > { %v17811_v46 = vadd.f32 %v17810_v15, %v17809_v9  ;;  %v17812_v57 = vpop.f32.mrb[30].mxu1  ;;  %v17877_v35 = vpop.f32.mrb[47].mxu0 }
 0x629   : > { %v17813_v8 = vpop.f32.mrb[31].mxu1  ;;  %v17878_v10 = vadd.f32 %v17877_v35, %v17876_v16  ;;  %18326 = vmatpush3.bf16.msra.mxu1 %v19480_v0  ;;  %18390 = vmatpush3.bf16.msra.mxu0 %v19492_v12  ;;  %v19496_v16 = vld [vmem:[%s24793_s7 + $0x264] ss:$8 sps:$4 sm:$0xff]   ;;  %v19500_v35 = vld [vmem:[%s24793_s7 + $0x2f4] ss:$8 sps:$4 sm:$0xff]  }
 0x62a   : > { %v12051_v53 = vadd.f32 %v17811_v46, %v24021_v30  ;;  %v17814_v39 = vadd.f32 %v17813_v8, %v17812_v57  ;;  %18327 = vmatprep.subr.bf16.mxu1 %v19482_v4  ;;  %18391 = vmatprep.subr.bf16.mxu0 %v19493_v54  ;;  %v19497_v30 = vld [vmem:[%s24793_s7 + $0x3d4] ss:$8 sps:$4 sm:$0xff]   ;;  %v19501_v57 = vld [vmem:[%s24793_s7 + $0x364] ss:$8 sps:$4 sm:$0xff]  }
 0x62b   : > { %14352 = vmatmul.mubr.bf16.gmra.mrb[152].mxu0 %v24936_v62  ;;  %14255 = vmatmul.mubr.bf16.gmra.mrb[136].mxu1 %v24934_v44 }
 0x62c   : > { %v12054_v49 = vadd.f32 %v17814_v39, %v24030_v43  ;;  %v24226_v3 = vadd.f32 %v17875_v23, %v12051_v53  ;;  %14359 = vmatprep.mubr.bf16.mxu0 %v24937_v51  ;;  %14262 = vmatprep.mubr.bf16.mxu1 %v24938_v38  ;;  %v19498_v43 = vld [vmem:[%s24793_s7 + $0x354] ss:$8 sps:$4 sm:$0xff]  }
 0x62d   : > { %v17879_v21 = vpop.f32.mrb[48].mxu0  ;;  %18328 = vmatpush3.bf16.msra.mxu1 %v19484_v25  ;;  %18392 = vmatpush3.bf16.msra.mxu0 %v19495_v45  ;;  %v24939_v53 = vld [vmem:[#allocation34_spill] sm:$0xff]  ;;  %v24940_v39 = vld [vmem:[#allocation35_spill] sm:$0xff]  ;;  %v24941_v25 = vld [vmem:[#allocation24_spill] sm:$0xff] }
 0x62e   : > { %v17815_v36 = vpop.f32.mrb[32].mxu1  ;;  %v24236_v34 = vadd.f32 %v17878_v10, %v12054_v49  ;;  %v17880_v59 = vpop.f32.mrb[49].mxu0  ;;  %18329 = vmatprep.subr.bf16.mxu1 %v19488_v40  ;;  %18393 = vmatprep.subr.bf16.mxu0 %v19497_v30  ;;  %v19502_v30 = vld [vmem:[%s24793_s7 + $0x274] ss:$8 sps:$4 sm:$0xff]  }
 0x62f   : > { %v17816_v27 = vpop.f32.mrb[33].mxu1  ;;  %v17881_v9 = vadd.f32 %v17880_v59, %v17879_v21  ;;  %v17882_v12 = vpop.f32.mrb[50].mxu0 }
 0x630   : > { %v17817_v0 = vadd.f32 %v17816_v27, %v17815_v36  ;;  %v17818_v37 = vpop.f32.mrb[34].mxu1  ;;  %v17883_v15 = vpop.f32.mrb[51].mxu0 }
 0x631   : > { %v17819_v4 = vpop.f32.mrb[35].mxu1  ;;  %v17884_v23 = vadd.f32 %v17883_v15, %v17882_v12  ;;  %18330 = vmatpush3.bf16.msra.mxu1 %v19490_v56  ;;  %18394 = vmatpush3.bf16.msra.mxu0 %v19498_v43  ;;  %v24275_v56 = vld [vmem:[%s24793_s7 + $0x404] ss:$8 sps:$4 sm:$0xff]  }
 0x632   : > { %v12059_v54 = vadd.f32 %v17817_v0, %v24043_v13  ;;  %v17820_v46 = vadd.f32 %v17819_v4, %v17818_v37  ;;  %18331 = vmatprep.subr.bf16.mxu1 %v19494_v28  ;;  %18395 = vmatprep.subr.bf16.mxu0 %v19499_v20  ;;  %v19503_v13 = vld [vmem:[%s24793_s7 + $0x3f4] ss:$8 sps:$4 sm:$0xff]   ;;  %v24942_v4 = vld [vmem:[#allocation36_spill] sm:$0xff] }
 0x633   : > { %14360 = vmatmul.mubr.bf16.gmra.mrb[156].mxu0 %v24939_v53  ;;  %14263 = vmatmul.mubr.bf16.gmra.mrb[140].mxu1 %v23341_v6 }
 0x634   : > { %v12062_v8 = vadd.f32 %v17820_v46, %v24052_v63  ;;  %v24260_v10 = vadd.f32 %v17881_v9, %v12059_v54  ;;  %14367 = vmatprep.mubr.bf16.mxu0 %v24940_v39  ;;  %14270 = vmatprep.mubr.bf16.mxu1 %v24941_v25  ;;  %v19504_v63 = vld [vmem:[%s24793_s7 + $0x374] ss:$8 sps:$4 sm:$0xff]  }
 0x635   : > { %v17885_v45 = vpop.f32.mrb[52].mxu0  ;;  %18332 = vmatpush3.bf16.msra.mxu1 %v19496_v16  ;;  %18396 = vmatpush3.bf16.msra.mxu0 %v19501_v57 }
 0x636   : > { %v17821_v40 = vpop.f32.mrb[36].mxu1  ;;  %v24270_v49 = vadd.f32 %v17884_v23, %v12062_v8  ;;  %v17886_v21 = vpop.f32.mrb[53].mxu0  ;;  %18333 = vmatprep.subr.bf16.mxu1 %v19500_v35  ;;  %18397 = vmatprep.subr.bf16.mxu0 %v19503_v13  ;;  %v24943_v23 = vld [vmem:[#allocation30_spill] sm:$0xff] }
 0x637   : > { %v17822_v36 = vpop.f32.mrb[37].mxu1  ;;  %v17887_v43 = vadd.f32 %v17886_v21, %v17885_v45  ;;  %v17888_v27 = vpop.f32.mrb[54].mxu0 }
 0x638   : > { %v17823_v59 = vadd.f32 %v17822_v36, %v17821_v40  ;;  %v17824_v28 = vpop.f32.mrb[38].mxu1  ;;  %v17889_v20 = vpop.f32.mrb[55].mxu0 }
 0x639   : > { %v17825_v9 = vpop.f32.mrb[39].mxu1  ;;  %v17890_v12 = vadd.f32 %v17889_v20, %v17888_v27  ;;  %18334 = vmatpush3.bf16.msra.mxu1 %v19502_v30  ;;  %18398 = vmatpush3.bf16.msra.mxu0 %v19504_v63 }
 0x63a   : > { %v12067_v0 = vadd.f32 %v17823_v59, %v24065_v55  ;;  %v17826_v37 = vadd.f32 %v17825_v9, %v17824_v28  ;;  %18751 = vmatprep.subr.bf16.mxu1 %v24275_v56  ;;  %v24944_v59 = vld [vmem:[#allocation37_spill] sm:$0xff]  ;;  %v24945_v28 = vld [vmem:[#allocation28_spill] sm:$0xff] }
 0x63b   : > { %14368 = vmatmul.mubr.bf16.gmra.mrb[160].mxu0 %v24942_v4  ;;  %14271 = vmatmul.mubr.bf16.gmra.mrb[144].mxu1 %v24937_v51 }
 0x63c   : > { %v12070_v15 = vadd.f32 %v17826_v37, %v24074_v19  ;;  %v24282_v54 = vadd.f32 %v17887_v43, %v12067_v0  ;;  %14375 = vmatprep.mubr.bf16.mxu0 %v23433_v22  ;;  %14278 = vmatprep.mubr.bf16.mxu1 %v24943_v23 }
 0x63d   : > { %v17891_v46 = vpop.f32.mrb[56].mxu0 }
 0x63e   : > { %v17827_v55 = vpop.f32.mrb[40].mxu1  ;;  %v24286_v16 = vadd.f32 %v17890_v12, %v12070_v15  ;;  %v17892_v57 = vpop.f32.mrb[57].mxu0 }
 0x63f   : > { %v17828_v35 = vpop.f32.mrb[41].mxu1  ;;  %v17893_v13 = vadd.f32 %v17892_v57, %v17891_v46  ;;  %v17894_v45 = vpop.f32.mrb[58].mxu0 }
 0x640   : > { %v17829_v8 = vadd.f32 %v17828_v35, %v17827_v55  ;;  %v17830_v19 = vpop.f32.mrb[42].mxu1  ;;  %v17895_v40 = vpop.f32.mrb[59].mxu0 }
 0x641   : > { %v17831_v30 = vpop.f32.mrb[43].mxu1  ;;  %v17896_v21 = vadd.f32 %v17895_v40, %v17894_v45 }
 0x642   : > { %v12075_v63 = vadd.f32 %v17829_v8, %v24087_v48  ;;  %v17832_v36 = vadd.f32 %v17831_v30, %v17830_v19 }
 0x643   : > { %14376 = vmatmul.mubr.bf16.gmra.mrb[164].mxu0 %v24944_v59  ;;  %14279 = vmatmul.mubr.bf16.gmra.mrb[148].mxu1 %v24940_v39 }
 0x644   : > { %v12078_v43 = vadd.f32 %v17832_v36, %v24096_v52  ;;  %v24292_v27 = vadd.f32 %v17893_v13, %v12075_v63  ;;  %14383 = vmatprep.mubr.bf16.mxu0 %v23442_v50  ;;  %14286 = vmatprep.mubr.bf16.mxu1 %v24945_v28 }
 0x645   : > { %v17897_v9 = vpop.f32.mrb[60].mxu0 }
 0x646   : > { %v17833_v20 = vpop.f32.mrb[44].mxu1  ;;  %v24296_v0 = vadd.f32 %v17896_v21, %v12078_v43  ;;  %v17898_v48 = vpop.f32.mrb[61].mxu0 }
 0x647   : > { %v17834_v12 = vpop.f32.mrb[45].mxu1  ;;  %v17899_v46 = vadd.f32 %v17898_v48, %v17897_v9  ;;  %v17900_v52 = vpop.f32.mrb[62].mxu0 }
 0x648   : > { %v17835_v37 = vadd.f32 %v17834_v12, %v17833_v20  ;;  %v17836_v15 = vpop.f32.mrb[46].mxu1  ;;  %v17901_v57 = vpop.f32.mrb[63].mxu0 }
 0x649   : > { %v17837_v55 = vpop.f32.mrb[47].mxu1  ;;  %v17902_v8 = vadd.f32 %v17901_v57, %v17900_v52 }
 0x64a   : > { %v12083_v35 = vadd.f32 %v17835_v37, %v24109_v42  ;;  %v17838_v13 = vadd.f32 %v17837_v55, %v17836_v15 }
 0x64b   : > { %14384 = vmatmul.mubr.bf16.gmra.mrb[168].mxu0 %v23457_v5  ;;  %14287 = vmatmul.mubr.bf16.gmra.mrb[152].mxu1 %v23433_v22 }
 0x64c   : > { %v12086_v45 = vadd.f32 %v17838_v13, %v24118_v41  ;;  %v24302_v19 = vadd.f32 %v17899_v46, %v12083_v35  ;;  %14391 = vmatprep.mubr.bf16.mxu0 %v23459_v1  ;;  %14294 = vmatprep.mubr.bf16.mxu1 %v23339_v31 }
 0x64d   : > { %v17935_v30 = vpop.f32.mrb[64].mxu0 }
 0x64e   : > { %v18705_v40 = vpop.f32.mrb[48].mxu1  ;;  %v24306_v63 = vadd.f32 %v17902_v8, %v12086_v45  ;;  %v17936_v36 = vpop.f32.mrb[65].mxu0 }
 0x64f   : > { %v12229_v42 = vadd.f32 %v18705_v40, %v24158_v24  ;;  %v12220_v21 = vpop.f32.mrb[49].mxu1  ;;  %v24310_v28 = vadd.f32 %v17936_v36, %v17935_v30  ;;  %v17938_v20 = vpop.f32.mrb[66].mxu0 }
 0x650   : > { %v12221_v41 = vadd.f32 %v12220_v21, %v24131_v61  ;;  %v18706_v43 = vpop.f32.mrb[50].mxu1  ;;  %v17939_v48 = vpop.f32.mrb[67].mxu0 }
 0x651   : > { %v12232_v9 = vadd.f32 %v18706_v43, %v24168_v47  ;;  %v12223_v12 = vpop.f32.mrb[51].mxu1  ;;  %v24314_v15 = vadd.f32 %v17939_v48, %v17938_v20 }
 0x652   : > { %19545 = vtanh.f32 %v12221_v41  ;;  %v12224_v37 = vadd.f32 %v12223_v12, %v24140_v11 }
 0x653   : > { %14392 = vmatmul.mubr.bf16.gmra.mrb[172].mxu0 %v23470_v29  ;;  %14295 = vmatmul.mubr.bf16.gmra.mrb[156].mxu1 %v23442_v50 }
 0x654   : > { %14529 = vmatprep.mubr.bf16.mxu0 %v24935_v60  ;;  %14432 = vmatprep.mubr.bf16.mxu1 %v24931_v58  ;;  %19547 = vtanh.f32 %v12224_v37 }
 0x655   : > { %v17941_v61 = vpop.f32.mrb[68].mxu0  ;;  %19549 = vtanh.f32 %v12229_v42 }
 0x656   : > { %v18709_v24 = vpop.f32.mrb[52].mxu1  ;;  %v17942_v46 = vpop.f32.mrb[69].mxu0  ;;  %19551 = vtanh.f32 %v12232_v9  ;;  %v24946_v9 = vld [vmem:[#allocation38_spill] sm:$0xff] }
 0x657   : > { %v24321_v47 = vadd.f32 %v18709_v24, %v24226_v3  ;;  %v12236_v52 = vpop.f32.mrb[53].mxu1  ;;  %v24323_v55 = vadd.f32 %v17942_v46, %v17941_v61  ;;  %v17944_v57 = vpop.f32.mrb[70].mxu0  ;;  %v19506_v3 = vld [vmem:[%s24793_s7 + $0x414] ss:$8 sps:$4 sm:$0xff]  }
 0x658   : > { %v12237_v11 = vadd.f32 %v12236_v52, %v24192_v32  ;;  %v18710_v35 = vpop.f32.mrb[54].mxu1  ;;  %v17945_v60 = vpop.f32.mrb[71].mxu0 }
 0x659   : > { %v24327_v13 = vadd.f32 %v18710_v35, %v24236_v34  ;;  %v12239_v8 = vpop.f32.mrb[55].mxu1  ;;  %v24329_v58 = vadd.f32 %v17945_v60, %v17944_v57 }
 0x65a   : > { %v12240_v45 = vadd.f32 %v12239_v8, %v24202_v14  ;;  %19553 = vtanh.f32 %v12237_v11 }
 0x65b   : > { %14530 = vmatmul.mubr.bf16.vlgmr.msra.gmra.mrb[176].mxu0 %v24934_v44  ;;  %14433 = vmatmul.mubr.bf16.vlgmr.msra.gmra.mrb[160].mxu1 %v24930_v18  ;;  %v19507_v18 = vld [vmem:[%s24793_s7 + $0x424] ss:$8 sps:$4 sm:$0xff]  }
 0x65c   : > { %v19546_v40 = vpop.eup %19545  ;;  %14537 = vmatprep.mubr.bf16.mxu0 %v24938_v38  ;;  %14440 = vmatprep.mubr.bf16.mxu1 %v24936_v62  ;;  %19555 = vtanh.f32 %v12240_v45 }
 0x65d   : > { %18752 = vmatpush3.bf16.msra.mxu1 %v24275_v56  ;;  %v17947_v32 = vpop.f32.mrb[72].mxu0  ;;  %12299 = vxpose.xlu1.b32.start [1/16] %v19546_v40, 128  ;;  %19557 = vtanh.f32 %v24321_v47 }
 0x65e   : > { %v18713_v34 = vpop.f32.mrb[56].mxu1  ;;  %v17948_v30 = vpop.f32.mrb[73].mxu0  ;;  %18753 = vmatprep.subr.bf16.mxu1 %v19506_v3  ;;  %19559 = vtanh.f32 %v24327_v13 }
 0x65f   : > { %v24341_v14 = vadd.f32 %v18713_v34, %v24282_v54  ;;  %v12252_v42 = vpop.f32.mrb[57].mxu1  ;;  %v24346_v44 = vadd.f32 %v17948_v30, %v17947_v32  ;;  %v17950_v38 = vpop.f32.mrb[74].mxu0 }
 0x660   : > { %v24349_v62 = vadd.f32 %v12252_v42, %v24260_v10  ;;  %v18714_v56 = vpop.f32.mrb[58].mxu1  ;;  %v19548_v21 = vpop.eup %19547  ;;  %v19508_v10 = vld [vmem:[%s24793_s7 + $0x434] ss:$8 sps:$4 sm:$0xff]  }
 0x661   : > { %v24352_v36 = vadd.f32 %v18714_v56, %v24286_v16  ;;  %v17951_v54 = vpop.f32.mrb[75].mxu0  ;;  %v12255_v41 = vpop.f32.mrb[59].mxu1  ;;  %12300 = vxpose.xlu1.b32.cont [2/16] %v19548_v21, 128  ;;  %18754 = vmatpush3.bf16.msra.mxu1 %v19506_v3 }
 0x662   : > { %v24354_v43 = vadd.f32 %v17951_v54, %v17950_v38  ;;  %v24357_v20 = vadd.f32 %v12255_v41, %v24270_v49  ;;  %18755 = vmatprep.subr.bf16.mxu1 %v19507_v18  ;;  %v19550_v16 = vpop.eup %19549  ;;  %19561 = vtanh.f32 %v24349_v62  ;;  %v19512_v54 = vld [vmem:[%s24793_s7 + $0x474] ss:$8 sps:$4 sm:$0xff]  }
 0x663   : > { %14538 = vmatmul.mubr.bf16.gmra.mrb[180].mxu0 %v23341_v6  ;;  %14441 = vmatmul.mubr.bf16.gmra.mrb[164].mxu1 %v24946_v9  ;;  %v19509_v6 = vld [vmem:[%s24793_s7 + $0x444] ss:$8 sps:$4 sm:$0xff]   ;;  %v19552_v52 = vpop.eup %19551 }
 0x664   : > { %14545 = vmatprep.mubr.bf16.mxu0 %v24941_v25  ;;  %14448 = vmatprep.mubr.bf16.mxu1 %v24939_v53  ;;  %v19554_v8 = vpop.eup %19553  ;;  %v24949_v9 = vld [vmem:[#allocation41_spill] sm:$0xff]  ;;  %19563 = vtanh.f32 %v24357_v20 }
 0x665   : > { %v17953_v12 = vpop.f32.mrb[76].mxu0  ;;  %12301 = vxpose.xlu1.b32.cont [3/16] %v19550_v16, 128  ;;  %18756 = vmatpush3.bf16.msra.mxu1 %v19507_v18  ;;  %19565 = vtanh.f32 %v24341_v14 }
 0x666   : > { %v18717_v49 = vpop.f32.mrb[60].mxu1  ;;  %v17954_v37 = vpop.f32.mrb[77].mxu0  ;;  %18757 = vmatprep.subr.bf16.mxu1 %v19508_v10  ;;  %19567 = vtanh.f32 %v24352_v36 }
 0x667   : > { %v24367_v48 = vadd.f32 %v18717_v49, %v24302_v19  ;;  %v12268_v61 = vpop.f32.mrb[61].mxu1  ;;  %v24372_v24 = vadd.f32 %v17954_v37, %v17953_v12  ;;  %v17956_v53 = vpop.f32.mrb[78].mxu0 }
 0x668   : > { %v24375_v25 = vadd.f32 %v12268_v61, %v24292_v27  ;;  %v18718_v46 = vpop.f32.mrb[62].mxu1  ;;  %v17957_v19 = vpop.f32.mrb[79].mxu0  ;;  %v19510_v27 = vld [vmem:[%s24793_s7 + $0x454] ss:$8 sps:$4 sm:$0xff]  }
 0x669   : > { %v24378_v11 = vadd.f32 %v18718_v46, %v24306_v63  ;;  %v12271_v57 = vpop.f32.mrb[63].mxu1  ;;  %v24380_v35 = vadd.f32 %v17957_v19, %v17956_v53  ;;  %12302 = vxpose.xlu1.b32.cont [4/16] %v19552_v52, 128  ;;  %18758 = vmatpush3.bf16.msra.mxu1 %v19508_v10  ;;  %v24947_v63 = vld [vmem:[#allocation39_spill] sm:$0xff]  ;;  %v19556_v34 = vpop.eup %19555 }
 0x66a   : > { %v24383_v60 = vadd.f32 %v12271_v57, %v24296_v0  ;;  %18759 = vmatprep.subr.bf16.mxu1 %v19509_v6  ;;  %v24396_v0 = vld [vmem:[%s24794_s8 + $0x1] ss:$0 sm:$0xff]  ;;  %v19558_v41 = vpop.eup %19557  ;;  %19569 = vtanh.f32 %v24375_v25 }
 0x66b   : > { %14546 = vmatmul.mubr.bf16.gmra.mrb[184].mxu0 %v24937_v51  ;;  %14449 = vmatmul.mubr.bf16.gmra.mrb[168].mxu1 %v24947_v63  ;;  %v13037_v45 = vadd.f32 %v24310_v28, %v24396_v0  ;;  %v13040_v30 = vadd.f32 %v24314_v15, %v24396_v0  ;;  %v24948_v15 = vld [vmem:[#allocation40_spill] sm:$0xff]  ;;  %v19560_v61 = vpop.eup %19559  ;;  %v13048_v20 = vadd.f32 %v24329_v58, %v24396_v0  ;;  %v24950_v63 = vld [vmem:[#allocation42_spill] sm:$0xff] }
 0x66c   : > { %14553 = vmatprep.mubr.bf16.mxu0 %v24943_v23  ;;  %14456 = vmatprep.mubr.bf16.mxu1 %v24942_v4  ;;  %v19511_v4 = vld [vmem:[%s24793_s7 + $0x464] ss:$8 sps:$4 sm:$0xff]   ;;  %v13056_v36 = vadd.f32 %v24354_v43, %v24396_v0  ;;  %19571 = vtanh.f32 %v24383_v60  ;;  %v13064_v60 = vadd.f32 %v24380_v35, %v24396_v0 }
 0x66d   : > { %v17959_v47 = vpop.f32.mrb[80].mxu0  ;;  %12303 = vxpose.xlu1.b32.cont [5/16] %v19554_v8, 128  ;;  %18760 = vmatpush3.bf16.msra.mxu1 %v19509_v6  ;;  %v13045_v6 = vadd.f32 %v24323_v55, %v24396_v0  ;;  %v19562_v55 = vpop.eup %19561  ;;  %19573 = vtanh.f32 %v24367_v48 }
 0x66e   : > { %v17960_v51 = vpop.f32.mrb[81].mxu0  ;;  %v17999_v3 = vpop.f32.mrb[64].mxu1  ;;  %18761 = vmatprep.subr.bf16.mxu1 %v19510_v27  ;;  %19575 = vtanh.f32 %v24378_v11 }
 0x66f   : > { %v24404_v23 = vadd.f32 %v17960_v51, %v17959_v47  ;;  %v17962_v40 = vpop.f32.mrb[82].mxu0  ;;  %v18000_v32 = vpop.f32.mrb[65].mxu1 }
 0x670   : > { %v18001_v42 = vadd.f32 %v18000_v32, %v17999_v3  ;;  %v17963_v18 = vpop.f32.mrb[83].mxu0  ;;  %v18002_v28 = vpop.f32.mrb[66].mxu1 }
 0x671   : > { %v24408_v38 = vadd.f32 %v17963_v18, %v17962_v40  ;;  %v18003_v13 = vpop.f32.mrb[67].mxu1  ;;  %12304 = vxpose.xlu1.b32.cont [6/16] %v19556_v34, 128  ;;  %18762 = vmatpush3.bf16.msra.mxu1 %v19510_v27  ;;  %v24951_v18 = vld [vmem:[#allocation43_spill] sm:$0xff] }
 0x672   : > { %v24411_v56 = vadd.f32 %v18001_v42, %v13037_v45  ;;  %v18004_v21 = vadd.f32 %v18003_v13, %v18002_v28  ;;  %18763 = vmatprep.subr.bf16.mxu1 %v19511_v4 }
 0x673   : > { %14554 = vmatmul.mubr.bf16.gmra.mrb[188].mxu0 %v24940_v39  ;;  %14457 = vmatmul.mubr.bf16.gmra.mrb[172].mxu1 %v24948_v15  ;;  %v13072_v11 = vadd.f32 %v24408_v38, %v24396_v0 }
 0x674   : > { %v24418_v10 = vadd.f32 %v18004_v21, %v13040_v30  ;;  %14561 = vmatprep.mubr.bf16.mxu0 %v24949_v9  ;;  %14464 = vmatprep.mubr.bf16.mxu1 %v24944_v59 }
 0x675   : > { %v17965_v62 = vpop.f32.mrb[84].mxu0  ;;  %12305 = vxpose.xlu1.b32.cont [7/16] %v19558_v41, 128  ;;  %18764 = vmatpush3.bf16.msra.mxu1 %v19511_v4  ;;  %v13053_v4 = vadd.f32 %v24346_v44, %v24396_v0  ;;  %v13061_v41 = vadd.f32 %v24372_v24, %v24396_v0 }
 0x676   : > { %v17966_v16 = vpop.f32.mrb[85].mxu0  ;;  %v18005_v12 = vpop.f32.mrb[68].mxu1  ;;  %18765 = vmatprep.subr.bf16.mxu1 %v19512_v54 }
 0x677   : > { %v24423_v49 = vadd.f32 %v17966_v16, %v17965_v62  ;;  %v17968_v39 = vpop.f32.mrb[86].mxu0  ;;  %v18006_v37 = vpop.f32.mrb[69].mxu1 }
 0x678   : > { %v18007_v53 = vadd.f32 %v18006_v37, %v18005_v12  ;;  %v17969_v46 = vpop.f32.mrb[87].mxu0  ;;  %v18008_v52 = vpop.f32.mrb[70].mxu1 }
 0x679   : > { %v24427_v59 = vadd.f32 %v17969_v46, %v17968_v39  ;;  %v18009_v19 = vpop.f32.mrb[71].mxu1  ;;  %12306 = vxpose.xlu1.b32.cont [8/16] %v19560_v61, 128  ;;  %18766 = vmatpush3.bf16.msra.mxu1 %v19512_v54  ;;  %v24953_v46 = vld [vmem:[#allocation44_spill] sm:$0xff] }
 0x67a   : > { %v24432_v57 = vadd.f32 %v18007_v53, %v13045_v6  ;;  %v18010_v27 = vadd.f32 %v18009_v19, %v18008_v52  ;;  %v24952_v6 = vld [vmem:[#allocation45_spill] sm:$0xff] }
 0x67b   : > { %14562 = vmatmul.mubr.bf16.gmra.mrb[192].mxu0 %v23433_v22  ;;  %14465 = vmatmul.mubr.bf16.gmra.mrb[176].mxu1 %v24950_v63  ;;  %v19564_v22 = vpop.eup %19563 }
 0x67c   : > { %v24436_v8 = vadd.f32 %v18010_v27, %v13048_v20  ;;  %14569 = vmatprep.mubr.bf16.mxu0 %v23339_v31  ;;  %14472 = vmatprep.mubr.bf16.mxu1 %v23457_v5  ;;  %v19566_v44 = vpop.eup %19565 }
 0x67d   : > { %v17971_v47 = vpop.f32.mrb[88].mxu0  ;;  %12307 = vxpose.xlu1.b32.cont [9/16] %v19562_v55, 128 }
 0x67e   : > { %v17972_v58 = vpop.f32.mrb[89].mxu0  ;;  %v18011_v14 = vpop.f32.mrb[72].mxu1 }
 0x67f   : > { %v24441_v45 = vadd.f32 %v17972_v58, %v17971_v47  ;;  %v17974_v51 = vpop.f32.mrb[90].mxu0  ;;  %v18012_v3 = vpop.f32.mrb[73].mxu1 }
 0x680   : > { %v18013_v40 = vadd.f32 %v18012_v3, %v18011_v14  ;;  %v17975_v32 = vpop.f32.mrb[91].mxu0  ;;  %v18014_v34 = vpop.f32.mrb[74].mxu1 }
 0x681   : > { %v24445_v31 = vadd.f32 %v17975_v32, %v17974_v51  ;;  %v18015_v5 = vpop.f32.mrb[75].mxu1  ;;  %12308 = vxpose.xlu1.b32.cont [10/16] %v19564_v22, 128 }
 0x682   : > { %v24450_v30 = vadd.f32 %v18013_v40, %v13053_v4  ;;  %v18016_v42 = vadd.f32 %v18015_v5, %v18014_v34 }
 0x683   : > { %14570 = vmatmul.mubr.bf16.gmra.mrb[196].mxu0 %v23442_v50  ;;  %14473 = vmatmul.mubr.bf16.gmra.mrb[180].mxu1 %v24951_v18  ;;  %v19568_v50 = vpop.eup %19567 }
 0x684   : > { %v24454_v28 = vadd.f32 %v18016_v42, %v13056_v36  ;;  %14577 = vmatprep.mubr.bf16.mxu0 %v23625_v7  ;;  %14480 = vmatprep.mubr.bf16.mxu1 %v23470_v29  ;;  %v19570_v24 = vpop.eup %19569 }
 0x685   : > { %v17977_v13 = vpop.f32.mrb[92].mxu0  ;;  %12309 = vxpose.xlu1.b32.cont [11/16] %v19566_v44, 128  ;;  %v19572_v63 = vpop.eup %19571 }
 0x686   : > { %v17978_v43 = vpop.f32.mrb[93].mxu0  ;;  %v18017_v25 = vpop.f32.mrb[76].mxu1 }
 0x687   : > { %v24459_v21 = vadd.f32 %v17978_v43, %v17977_v13  ;;  %v17980_v54 = vpop.f32.mrb[94].mxu0  ;;  %v18018_v15 = vpop.f32.mrb[77].mxu1 }
 0x688   : > { %v18019_v9 = vadd.f32 %v18018_v15, %v18017_v25  ;;  %v17981_v62 = vpop.f32.mrb[95].mxu0  ;;  %v18020_v16 = vpop.f32.mrb[78].mxu1 }
 0x689   : > { %v24463_v12 = vadd.f32 %v17981_v62, %v17980_v54  ;;  %v18021_v39 = vpop.f32.mrb[79].mxu1  ;;  %12310 = vxpose.xlu1.b32.cont [12/16] %v19568_v50, 128  ;;  %v19574_v32 = vpop.eup %19573 }
 0x68a   : > { %v24468_v37 = vadd.f32 %v18019_v9, %v13061_v41  ;;  %v18022_v61 = vadd.f32 %v18021_v39, %v18020_v16  ;;  %v19576_v13 = vpop.eup %19575  ;;  %v13080_v41 = vadd.f32 %v24427_v59, %v24396_v0  ;;  %v24956_v39 = vld [vmem:[#allocation48_spill] sm:$0xff]  ;;  %v13085_v59 = vadd.f32 %v24441_v45, %v24396_v0 }
 0x68b   : > { %14578 = vmatmul.mubr.bf16.gmra.mrb[200].mxu0 %v23459_v1  ;;  %14481 = vmatmul.mubr.bf16.gmra.mrb[184].mxu1 %v24952_v6  ;;  %v13069_v1 = vadd.f32 %v24404_v23, %v24396_v0  ;;  %v24954_v23 = vld [vmem:[#allocation46_spill] sm:$0xff] }
 0x68c   : > { %v24472_v53 = vadd.f32 %v18022_v61, %v13064_v60  ;;  %14488 = vmatprep.mubr.bf16.mxu1 %v23641_v33  ;;  %14585 = vmatprep.mubr.bf16.mxu0 %v24953_v46  ;;  %v24957_v60 = vld [vmem:[#allocation49_spill] sm:$0xff] }
 0x68d   : > { %v18063_v52 = vpop.f32.mrb[96].mxu0  ;;  %12311 = vxpose.xlu1.b32.cont [13/16] %v19570_v24, 128 }
 0x68e   : > { %v18023_v48 = vpop.f32.mrb[80].mxu1  ;;  %v18064_v35 = vpop.f32.mrb[97].mxu0 }
 0x68f   : > { %v18065_v19 = vadd.f32 %v18064_v35, %v18063_v52  ;;  %v18024_v20 = vpop.f32.mrb[81].mxu1  ;;  %v18066_v27 = vpop.f32.mrb[98].mxu0 }
 0x690   : > { %v18025_v55 = vadd.f32 %v18024_v20, %v18023_v48  ;;  %v18026_v47 = vpop.f32.mrb[82].mxu1  ;;  %v18067_v58 = vpop.f32.mrb[99].mxu0 }
 0x691   : > { %v24480_v14 = vadd.f32 %v18065_v19, %v24411_v56  ;;  %v18068_v51 = vadd.f32 %v18067_v58, %v18066_v27  ;;  %v18027_v3 = vpop.f32.mrb[83].mxu1  ;;  %12312 = vxpose.xlu1.b32.cont [14/16] %v19572_v63, 128  ;;  %v24955_v56 = vld [vmem:[#allocation47_spill] sm:$0xff]  ;;  %v13088_v63 = vadd.f32 %v24445_v31, %v24396_v0  ;;  %v13093_v31 = vadd.f32 %v24459_v21, %v24396_v0 }
 0x692   : > { %v24484_v22 = vadd.f32 %v18025_v55, %v13069_v1  ;;  %v18028_v4 = vadd.f32 %v18027_v3, %v18026_v47 }
 0x693   : > { %v24487_v40 = vadd.f32 %v18068_v51, %v24418_v10  ;;  %14489 = vmatmul.mubr.bf16.gmra.mrb[188].mxu1 %v23625_v7  ;;  %14586 = vmatmul.mubr.bf16.gmra.mrb[204].mxu0 %v24954_v23  ;;  %v13077_v10 = vadd.f32 %v24423_v49, %v24396_v0 }
 0x694   : > { %v24491_v34 = vadd.f32 %v18028_v4, %v13072_v11  ;;  %18767 = vmatprep.mubr.bf16.mxu1 %v24955_v56 }
 0x695   : > { %v18069_v5 = vpop.f32.mrb[100].mxu0  ;;  %12313 = vxpose.xlu1.b32.cont [15/16] %v19574_v32, 128 }
 0x696   : > { %v18029_v36 = vpop.f32.mrb[84].mxu1  ;;  %v18070_v42 = vpop.f32.mrb[101].mxu0 }
 0x697   : > { %v18071_v38 = vadd.f32 %v18070_v42, %v18069_v5  ;;  %v18030_v18 = vpop.f32.mrb[85].mxu1  ;;  %v18072_v44 = vpop.f32.mrb[102].mxu0 }
 0x698   : > { %v18031_v43 = vadd.f32 %v18030_v18, %v18029_v36  ;;  %v18032_v7 = vpop.f32.mrb[86].mxu1  ;;  %v18073_v25 = vpop.f32.mrb[103].mxu0 }
 0x699   : > { %v24497_v54 = vadd.f32 %v18071_v38, %v24432_v57  ;;  %v18074_v15 = vadd.f32 %v18073_v25, %v18072_v44  ;;  %v18033_v50 = vpop.f32.mrb[87].mxu1  ;;  %12314 = vxpose.xlu1.b32.end [16/16] %v19576_v13, 128 }
 0x69a   : > { %v24501_v9 = vadd.f32 %v18031_v43, %v13077_v10  ;;  %v18034_v62 = vadd.f32 %v18033_v50, %v18032_v7 }
 0x69b   : > { %v24504_v16 = vadd.f32 %v18074_v15, %v24436_v8  ;;  %18768 = vmatmul.mubr.bf16.vlgmr.msra.gmra.mrb[192].mxu1 %v24956_v39 }
 0x69c   : > { %v24507_v49 = vadd.f32 %v18034_v62, %v13080_v41  ;;  %18771 = vmatprep.mubr.bf16.mxu1 %v24957_v60 }
 0x69d   : > { %v18075_v57 = vpop.f32.mrb[104].mxu0 }
 0x69e   : > { %v18035_v61 = vpop.f32.mrb[88].mxu1  ;;  %v18076_v6 = vpop.f32.mrb[105].mxu0 }
 0x69f   : > { %v18077_v24 = vadd.f32 %v18076_v6, %v18075_v57  ;;  %v18036_v46 = vpop.f32.mrb[89].mxu1  ;;  %v18078_v52 = vpop.f32.mrb[106].mxu0 }
 0x6a0   : > { %v18037_v48 = vadd.f32 %v18036_v46, %v18035_v61  ;;  %v18038_v35 = vpop.f32.mrb[90].mxu1  ;;  %v18079_v19 = vpop.f32.mrb[107].mxu0 }
 0x6a1   : > { %v24513_v8 = vadd.f32 %v18077_v24, %v24450_v30  ;;  %v18080_v20 = vadd.f32 %v18079_v19, %v18078_v52  ;;  %v18039_v27 = vpop.f32.mrb[91].mxu1 }
 0x6a2   : > { %v24517_v1 = vadd.f32 %v18037_v48, %v13085_v59  ;;  %v18040_v55 = vadd.f32 %v18039_v27, %v18038_v35 }
 0x6a3   : > { %v24520_v47 = vadd.f32 %v18080_v20, %v24454_v28  ;;  %18772 = vmatmul.mubr.bf16.gmra.mrb[196].mxu1 %v23705_v2 }
 0x6a4   : > { %v24523_v45 = vadd.f32 %v18040_v55, %v13088_v63  ;;  %18775 = vmatprep.mubr.bf16.mxu1 %v23713_v17  ;;  %v13096_v17 = vadd.f32 %v24463_v12, %v24396_v0 }
 0x6a5   : > { %v18081_v58 = vpop.f32.mrb[108].mxu0 }
 0x6a6   : > { %v18041_v30 = vpop.f32.mrb[92].mxu1  ;;  %v18082_v51 = vpop.f32.mrb[109].mxu0 }
 0x6a7   : > { %v18083_v3 = vadd.f32 %v18082_v51, %v18081_v58  ;;  %v18042_v11 = vpop.f32.mrb[93].mxu1  ;;  %v18084_v4 = vpop.f32.mrb[110].mxu0 }
 0x6a8   : > { %v18043_v23 = vadd.f32 %v18042_v11, %v18041_v30  ;;  %v18044_v32 = vpop.f32.mrb[94].mxu1  ;;  %v18085_v56 = vpop.f32.mrb[111].mxu0 }
 0x6a9   : > { %v24529_v28 = vadd.f32 %v18083_v3, %v24468_v37  ;;  %v18086_v2 = vadd.f32 %v18085_v56, %v18084_v4  ;;  %v18045_v5 = vpop.f32.mrb[95].mxu1 }
 0x6aa   : > { %v24533_v36 = vadd.f32 %v18043_v23, %v13093_v31  ;;  %v18046_v42 = vadd.f32 %v18045_v5, %v18044_v32 }
 0x6ab   : > { %v24536_v38 = vadd.f32 %v18086_v2, %v24472_v53  ;;  %18776 = vmatmul.mubr.bf16.gmra.mrb[200].mxu1 %v23470_v29 }
 0x6ac   : > { %v24539_v21 = vadd.f32 %v18046_v42, %v13096_v17  ;;  %18779 = vmatprep.mubr.bf16.mxu1 %v23641_v33 }
 0x6ad   : > { %v18087_v18 = vpop.f32.mrb[112].mxu0 }
 0x6ae   : > { %v18088_v37 = vpop.f32.mrb[113].mxu0  ;;  %v18127_v44 = vpop.f32.mrb[96].mxu1 }
 0x6af   : > { %v18089_v13 = vadd.f32 %v18088_v37, %v18087_v18  ;;  %v18090_v10 = vpop.f32.mrb[114].mxu0  ;;  %v18128_v43 = vpop.f32.mrb[97].mxu1 }
 0x6b0   : > { %v18129_v7 = vadd.f32 %v18128_v43, %v18127_v44  ;;  %v18091_v12 = vpop.f32.mrb[115].mxu0  ;;  %v18130_v25 = vpop.f32.mrb[98].mxu1 }
 0x6b1   : > { %v24543_v15 = vadd.f32 %v18089_v13, %v24484_v22  ;;  %v18092_v53 = vadd.f32 %v18091_v12, %v18090_v10  ;;  %v18131_v50 = vpop.f32.mrb[99].mxu1 }
 0x6b2   : > { %v18132_v41 = vadd.f32 %v18131_v50, %v18130_v25  ;;  %v13328_v29 = vadd.f32 %v18129_v7, %v24480_v14 }
 0x6b3   : > { %v24547_v62 = vadd.f32 %v18092_v53, %v24491_v34  ;;  %18780 = vmatmul.mubr.bf16.gmra.mrb[204].mxu1 %v23776_v26 }
 0x6b4   : > { %v13331_v33 = vadd.f32 %v18132_v41, %v24487_v40 }
 0x6b5   : > { %v18093_v39 = vpop.f32.mrb[116].mxu0 }
 0x6b6   : > { %v18094_v60 = vpop.f32.mrb[117].mxu0  ;;  %v18133_v57 = vpop.f32.mrb[100].mxu1 }
 0x6b7   : > { %v18095_v61 = vadd.f32 %v18094_v60, %v18093_v39  ;;  %v18096_v6 = vpop.f32.mrb[118].mxu0  ;;  %v18134_v24 = vpop.f32.mrb[101].mxu1 }
 0x6b8   : > { %v18135_v22 = vadd.f32 %v18134_v24, %v18133_v57  ;;  %v18097_v46 = vpop.f32.mrb[119].mxu0  ;;  %v18136_v52 = vpop.f32.mrb[102].mxu1 }
 0x6b9   : > { %v24552_v59 = vadd.f32 %v18095_v61, %v24501_v9  ;;  %v18098_v14 = vadd.f32 %v18097_v46, %v18096_v6  ;;  %v18137_v48 = vpop.f32.mrb[103].mxu1 }
 0x6ba   : > { %v18138_v34 = vadd.f32 %v18137_v48, %v18136_v52  ;;  %v13336_v35 = vadd.f32 %v18135_v22, %v24497_v54 }
 0x6bb   : > { %v24556_v26 = vadd.f32 %v18098_v14, %v24507_v49 }
 0x6bc   : > { %v13339_v40 = vadd.f32 %v18138_v34, %v24504_v16 }
 0x6bd   : > { %v18099_v19 = vpop.f32.mrb[120].mxu0 }
 0x6be   : > { %v18100_v20 = vpop.f32.mrb[121].mxu0  ;;  %v18139_v27 = vpop.f32.mrb[104].mxu1 }
 0x6bf   : > { %v18101_v63 = vadd.f32 %v18100_v20, %v18099_v19  ;;  %v18102_v55 = vpop.f32.mrb[122].mxu0  ;;  %v18140_v58 = vpop.f32.mrb[105].mxu1 }
 0x6c0   : > { %v18141_v30 = vadd.f32 %v18140_v58, %v18139_v27  ;;  %v18103_v51 = vpop.f32.mrb[123].mxu0  ;;  %v18142_v9 = vpop.f32.mrb[106].mxu1 }
 0x6c1   : > { %v24560_v3 = vadd.f32 %v18101_v63, %v24517_v1  ;;  %v18104_v11 = vadd.f32 %v18103_v51, %v18102_v55  ;;  %v18143_v4 = vpop.f32.mrb[107].mxu1 }
 0x6c2   : > { %v18144_v54 = vadd.f32 %v18143_v4, %v18142_v9  ;;  %v13344_v49 = vadd.f32 %v18141_v30, %v24513_v8 }
 0x6c3   : > { %v24564_v31 = vadd.f32 %v18104_v11, %v24523_v45 }
 0x6c4   : > { %v13347_v16 = vadd.f32 %v18144_v54, %v24520_v47 }
 0x6c5   : > { %v18105_v23 = vpop.f32.mrb[124].mxu0 }
 0x6c6   : > { %v18106_v32 = vpop.f32.mrb[125].mxu0  ;;  %v18145_v56 = vpop.f32.mrb[108].mxu1 }
 0x6c7   : > { %v18107_v2 = vadd.f32 %v18106_v32, %v18105_v23  ;;  %v18108_v5 = vpop.f32.mrb[126].mxu0  ;;  %v18146_v17 = vpop.f32.mrb[109].mxu1 }
 0x6c8   : > { %v18147_v42 = vadd.f32 %v18146_v17, %v18145_v56  ;;  %v18109_v18 = vpop.f32.mrb[127].mxu0  ;;  %v18148_v1 = vpop.f32.mrb[110].mxu1 }
 0x6c9   : > { %v24568_v37 = vadd.f32 %v18107_v2, %v24533_v36  ;;  %v18110_v44 = vadd.f32 %v18109_v18, %v18108_v5  ;;  %v18149_v13 = vpop.f32.mrb[111].mxu1 }
 0x6ca   : > { %v18150_v8 = vadd.f32 %v18149_v13, %v18148_v1  ;;  %v13352_v45 = vadd.f32 %v18147_v42, %v24529_v28 }
 0x6cb   : > { %v24572_v10 = vadd.f32 %v18110_v44, %v24539_v21 }
 0x6cc   : > { %v13355_v47 = vadd.f32 %v18150_v8, %v24536_v38 }
 0x6cd   : > { %v18737_v43 = vpop.f32.mrb[128].mxu0 }
 0x6ce   : > { %v13433_v7 = vadd.f32 %v18737_v43, %v13336_v35  ;;  %v18151_v12 = vpop.f32.mrb[112].mxu1  ;;  %v13424_v25 = vpop.f32.mrb[129].mxu0 }
 0x6cf   : > { %v13425_v53 = vadd.f32 %v13424_v25, %v13328_v29  ;;  %v18152_v50 = vpop.f32.mrb[113].mxu1  ;;  %v18738_v41 = vpop.f32.mrb[130].mxu0 }
 0x6d0   : > { %v18153_v39 = vadd.f32 %v18152_v50, %v18151_v12  ;;  %v13436_v36 = vadd.f32 %v18738_v41, %v13339_v40  ;;  %v18154_v60 = vpop.f32.mrb[114].mxu1  ;;  %v13427_v57 = vpop.f32.mrb[131].mxu0 }
 0x6d1   : > { %19577 = vtanh.f32 %v13425_v53  ;;  %v13428_v61 = vadd.f32 %v13427_v57, %v13331_v33  ;;  %v18155_v6 = vpop.f32.mrb[115].mxu1 }
 0x6d2   : > { %v18156_v28 = vadd.f32 %v18155_v6, %v18154_v60  ;;  %v13360_v21 = vadd.f32 %v18153_v39, %v24543_v15 }
 0x6d3   : > { %19579 = vtanh.f32 %v13428_v61 }
 0x6d4   : > { %v13363_v24 = vadd.f32 %v18156_v28, %v24547_v62  ;;  %19581 = vtanh.f32 %v13433_v7 }
 0x6d5   : > { %v18741_v38 = vpop.f32.mrb[132].mxu0  ;;  %19583 = vtanh.f32 %v13436_v36 }
 0x6d6   : > { %v13449_v22 = vadd.f32 %v18741_v38, %v13352_v45  ;;  %v18157_v46 = vpop.f32.mrb[116].mxu1  ;;  %v13440_v52 = vpop.f32.mrb[133].mxu0 }
 0x6d7   : > { %v13441_v29 = vadd.f32 %v13440_v52, %v13344_v49  ;;  %v18158_v14 = vpop.f32.mrb[117].mxu1  ;;  %v18742_v48 = vpop.f32.mrb[134].mxu0 }
 0x6d8   : > { %v18159_v34 = vadd.f32 %v18158_v14, %v18157_v46  ;;  %v13452_v35 = vadd.f32 %v18742_v48, %v13355_v47  ;;  %v18160_v40 = vpop.f32.mrb[118].mxu1  ;;  %v13443_v19 = vpop.f32.mrb[135].mxu0 }
 0x6d9   : > { %v13444_v33 = vadd.f32 %v13443_v19, %v13347_v16  ;;  %v18161_v20 = vpop.f32.mrb[119].mxu1  ;;  %19585 = vtanh.f32 %v13441_v29 }
 0x6da   : > { %v18162_v27 = vadd.f32 %v18161_v20, %v18160_v40  ;;  %v13368_v15 = vadd.f32 %v18159_v34, %v24552_v59 }
 0x6db   : > { %v19578_v63 = vpop.eup %19577  ;;  %19587 = vtanh.f32 %v13444_v33 }
 0x6dc   : > { %13503 = vxpose.xlu0.b32.start [1/16] %v19578_v63, 128  ;;  %v13371_v62 = vadd.f32 %v18162_v27, %v24556_v26  ;;  %19589 = vtanh.f32 %v13449_v22 }
 0x6dd   : > { %v18745_v55 = vpop.f32.mrb[136].mxu0  ;;  %v19580_v9 = vpop.eup %19579  ;;  %19591 = vtanh.f32 %v13452_v35 }
 0x6de   : > { %v24579_v58 = vadd.f32 %v18745_v55, %v13368_v15  ;;  %v18163_v30 = vpop.f32.mrb[120].mxu1  ;;  %v13456_v51 = vpop.f32.mrb[137].mxu0 }
 0x6df   : > { %v13457_v11 = vadd.f32 %v13456_v51, %v13360_v21  ;;  %v18164_v4 = vpop.f32.mrb[121].mxu1  ;;  %v18746_v54 = vpop.f32.mrb[138].mxu0 }
 0x6e0   : > { %v18165_v49 = vadd.f32 %v18164_v4, %v18163_v30  ;;  %v24581_v16 = vadd.f32 %v18746_v54, %v13371_v62  ;;  %v18166_v23 = vpop.f32.mrb[122].mxu1  ;;  %v13459_v32 = vpop.f32.mrb[139].mxu0  ;;  %13504 = vxpose.xlu0.b32.cont [2/16] %v19580_v9, 128 }
 0x6e1   : > { %v13460_v59 = vadd.f32 %v13459_v32, %v13363_v24  ;;  %v18167_v56 = vpop.f32.mrb[123].mxu1  ;;  %v19582_v5 = vpop.eup %19581  ;;  %19593 = vtanh.f32 %v13457_v11 }
 0x6e2   : > { %v18168_v26 = vadd.f32 %v18167_v56, %v18166_v23  ;;  %v13376_v2 = vadd.f32 %v18165_v49, %v24560_v3  ;;  %v19584_v44 = vpop.eup %19583 }
 0x6e3   : > { %v19586_v53 = vpop.eup %19585  ;;  %19595 = vtanh.f32 %v13460_v59 }
 0x6e4   : > { %13505 = vxpose.xlu0.b32.cont [3/16] %v19582_v5, 128  ;;  %v13379_v17 = vadd.f32 %v18168_v26, %v24564_v31  ;;  %19597 = vtanh.f32 %v24579_v58 }
 0x6e5   : > { %v18749_v42 = vpop.f32.mrb[140].mxu0  ;;  %v19588_v57 = vpop.eup %19587  ;;  %19599 = vtanh.f32 %v24581_v16 }
 0x6e6   : > { %v18169_v18 = vpop.f32.mrb[124].mxu1  ;;  %v13472_v1 = vpop.f32.mrb[141].mxu0 }
 0x6e7   : > { %v24585_v13 = vadd.f32 %v13472_v1, %v13376_v2  ;;  %v18170_v8 = vpop.f32.mrb[125].mxu1  ;;  %v18750_v45 = vpop.f32.mrb[142].mxu0 }
 0x6e8   : > { %v18171_v47 = vadd.f32 %v18170_v8, %v18169_v18  ;;  %v18172_v43 = vpop.f32.mrb[126].mxu1  ;;  %v13475_v7 = vpop.f32.mrb[143].mxu0  ;;  %13506 = vxpose.xlu0.b32.cont [4/16] %v19584_v44, 128 }
 0x6e9   : > { %v24587_v12 = vadd.f32 %v13475_v7, %v13379_v17  ;;  %v18173_v3 = vpop.f32.mrb[127].mxu1  ;;  %v19590_v29 = vpop.eup %19589  ;;  %19601 = vtanh.f32 %v24585_v13 }
 0x6ea   : > { %v13384_v25 = vadd.f32 %v18171_v47, %v24568_v37  ;;  %v18174_v31 = vadd.f32 %v18173_v3, %v18172_v43  ;;  %v19592_v19 = vpop.eup %19591 }
 0x6eb   : > { %v19594_v4 = vpop.eup %19593  ;;  %19603 = vtanh.f32 %v24587_v12 }
 0x6ec   : > { %v24590_v50 = vadd.f32 %v18749_v42, %v13384_v25  ;;  %v13387_v41 = vadd.f32 %v18174_v31, %v24572_v10  ;;  %13507 = vxpose.xlu0.b32.cont [5/16] %v19586_v53, 128 }
 0x6ed   : > { %v19596_v56 = vpop.eup %19595 }
 0x6ee   : > { %v24593_v39 = vadd.f32 %v18750_v45, %v13387_v41  ;;  %v18271_v36 = vpop.f32.mrb[144].mxu0  ;;  %v18207_v60 = vpop.f32.mrb[128].mxu1  ;;  %19605 = vtanh.f32 %v24590_v50 }
 0x6ef   : > { %v18272_v61 = vpop.f32.mrb[145].mxu0  ;;  %v18208_v6 = vpop.f32.mrb[129].mxu1 }
 0x6f0   : > { %v18273_v28 = vadd.f32 %v18272_v61, %v18271_v36  ;;  %v18209_v21 = vadd.f32 %v18208_v6, %v18207_v60  ;;  %v18274_v24 = vpop.f32.mrb[146].mxu0  ;;  %v18210_v38 = vpop.f32.mrb[130].mxu1  ;;  %13508 = vxpose.xlu0.b32.cont [6/16] %v19588_v57, 128  ;;  %19607 = vtanh.f32 %v24593_v39 }
 0x6f1   : > { %v18275_v37 = vpop.f32.mrb[147].mxu0  ;;  %v18211_v22 = vpop.f32.mrb[131].mxu1 }
 0x6f2   : > { %v14241_v46 = vadd.f32 %v18209_v21, %v24396_v0  ;;  %v18276_v10 = vadd.f32 %v18275_v37, %v18274_v24  ;;  %v18212_v52 = vadd.f32 %v18211_v22, %v18210_v38  ;;  %v19598_v45 = vpop.eup %19597 }
 0x6f3   : > { %v19600_v31 = vpop.eup %19599 }
 0x6f4   : > { %v14244_v14 = vadd.f32 %v18212_v52, %v24396_v0  ;;  %13509 = vxpose.xlu0.b32.cont [7/16] %v19590_v29, 128  ;;  %v24597_v48 = vadd.f32 %v18273_v28, %v14241_v46  ;;  %v19602_v24 = vpop.eup %19601 }
 0x6f5   : > { %v19604_v52 = vpop.eup %19603 }
 0x6f6   : > { %v18277_v34 = vpop.f32.mrb[148].mxu0  ;;  %v18213_v35 = vpop.f32.mrb[132].mxu1  ;;  %v24599_v40 = vadd.f32 %v18276_v10, %v14244_v14 }
 0x6f7   : > { %v18278_v33 = vpop.f32.mrb[149].mxu0  ;;  %v18214_v20 = vpop.f32.mrb[133].mxu1 }
 0x6f8   : > { %v18279_v27 = vadd.f32 %v18278_v33, %v18277_v34  ;;  %v18215_v15 = vadd.f32 %v18214_v20, %v18213_v35  ;;  %v18280_v63 = vpop.f32.mrb[150].mxu0  ;;  %v18216_v62 = vpop.f32.mrb[134].mxu1  ;;  %13510 = vxpose.xlu0.b32.cont [8/16] %v19592_v19, 128 }
 0x6f9   : > { %v18281_v55 = vpop.f32.mrb[151].mxu0  ;;  %v18217_v30 = vpop.f32.mrb[135].mxu1 }
 0x6fa   : > { %v14249_v51 = vadd.f32 %v18215_v15, %v24396_v0  ;;  %v18282_v9 = vadd.f32 %v18281_v55, %v18280_v63  ;;  %v18218_v11 = vadd.f32 %v18217_v30, %v18216_v62  ;;  %v19606_v62 = vpop.eup %19605 }
 0x6fc   : > { %v14252_v54 = vadd.f32 %v18218_v11, %v24396_v0  ;;  %13511 = vxpose.xlu0.b32.cont [9/16] %v19594_v4, 128  ;;  %v24604_v49 = vadd.f32 %v18279_v27, %v14249_v51  ;;  %v19608_v11 = vpop.eup %19607 }
 0x6fe   : > { %v18283_v23 = vpop.f32.mrb[152].mxu0  ;;  %v18219_v32 = vpop.f32.mrb[136].mxu1  ;;  %v24607_v59 = vadd.f32 %v18282_v9, %v14252_v54 }
 0x6ff   : > { %v18284_v58 = vpop.f32.mrb[153].mxu0  ;;  %v18220_v26 = vpop.f32.mrb[137].mxu1 }
 0x700   : > { %v18285_v2 = vadd.f32 %v18284_v58, %v18283_v23  ;;  %v18221_v5 = vadd.f32 %v18220_v26, %v18219_v32  ;;  %v18286_v17 = vpop.f32.mrb[154].mxu0  ;;  %v18222_v42 = vpop.f32.mrb[138].mxu1  ;;  %13512 = vxpose.xlu0.b32.cont [10/16] %v19596_v56, 128 }
 0x701   : > { %v18287_v18 = vpop.f32.mrb[155].mxu0  ;;  %v18223_v1 = vpop.f32.mrb[139].mxu1 }
 0x702   : > { %v14257_v44 = vadd.f32 %v18221_v5, %v24396_v0  ;;  %v18288_v8 = vadd.f32 %v18287_v18, %v18286_v17  ;;  %v18224_v16 = vadd.f32 %v18223_v1, %v18222_v42 }
 0x704   : > { %v14260_v47 = vadd.f32 %v18224_v16, %v24396_v0  ;;  %13513 = vxpose.xlu0.b32.cont [11/16] %v19598_v45, 128  ;;  %v24612_v43 = vadd.f32 %v18285_v2, %v14257_v44 }
 0x706   : > { %v18289_v7 = vpop.f32.mrb[156].mxu0  ;;  %v18225_v3 = vpop.f32.mrb[140].mxu1  ;;  %v24615_v25 = vadd.f32 %v18288_v8, %v14260_v47 }
 0x707   : > { %v18290_v13 = vpop.f32.mrb[157].mxu0  ;;  %v18226_v53 = vpop.f32.mrb[141].mxu1 }
 0x708   : > { %v18291_v41 = vadd.f32 %v18290_v13, %v18289_v7  ;;  %v18227_v36 = vadd.f32 %v18226_v53, %v18225_v3  ;;  %v18292_v60 = vpop.f32.mrb[158].mxu0  ;;  %v18228_v57 = vpop.f32.mrb[142].mxu1  ;;  %13514 = vxpose.xlu0.b32.cont [12/16] %v19600_v31, 128 }
 0x709   : > { %v18293_v61 = vpop.f32.mrb[159].mxu0  ;;  %v18229_v6 = vpop.f32.mrb[143].mxu1 }
 0x70a   : > { %v14265_v28 = vadd.f32 %v18227_v36, %v24396_v0  ;;  %v18294_v21 = vadd.f32 %v18293_v61, %v18292_v60  ;;  %v18230_v12 = vadd.f32 %v18229_v6, %v18228_v57 }
 0x70c   : > { %v14268_v38 = vadd.f32 %v18230_v12, %v24396_v0  ;;  %13515 = vxpose.xlu0.b32.cont [13/16] %v19602_v24, 128  ;;  %v24620_v37 = vadd.f32 %v18291_v41, %v14265_v28 }
 0x70e   : > { %v18295_v22 = vpop.f32.mrb[160].mxu0  ;;  %v18231_v46 = vpop.f32.mrb[144].mxu1  ;;  %v24623_v10 = vadd.f32 %v18294_v21, %v14268_v38 }
 0x70f   : > { %v18296_v50 = vpop.f32.mrb[161].mxu0  ;;  %v18232_v29 = vpop.f32.mrb[145].mxu1 }
 0x710   : > { %v18297_v14 = vadd.f32 %v18296_v50, %v18295_v22  ;;  %v18233_v34 = vadd.f32 %v18232_v29, %v18231_v46  ;;  %v18298_v35 = vpop.f32.mrb[162].mxu0  ;;  %v18234_v19 = vpop.f32.mrb[146].mxu1  ;;  %13516 = vxpose.xlu0.b32.cont [14/16] %v19604_v52, 128 }
 0x711   : > { %v18299_v33 = vpop.f32.mrb[163].mxu0  ;;  %v18235_v20 = vpop.f32.mrb[147].mxu1 }
 0x712   : > { %v14273_v27 = vadd.f32 %v18233_v34, %v24396_v0  ;;  %v18300_v15 = vadd.f32 %v18299_v33, %v18298_v35  ;;  %v18236_v63 = vadd.f32 %v18235_v20, %v18234_v19 }
 0x714   : > { %v14276_v39 = vadd.f32 %v18236_v63, %v24396_v0  ;;  %13517 = vxpose.xlu0.b32.cont [15/16] %v19606_v62, 128  ;;  %v24627_v55 = vadd.f32 %v18297_v14, %v14273_v27 }
 0x716   : > { %v18301_v30 = vpop.f32.mrb[164].mxu0  ;;  %v18237_v51 = vpop.f32.mrb[148].mxu1  ;;  %v24629_v9 = vadd.f32 %v18300_v15, %v14276_v39 }
 0x717   : > { %v18302_v4 = vpop.f32.mrb[165].mxu0  ;;  %v18238_v54 = vpop.f32.mrb[149].mxu1 }
 0x718   : > { %v18303_v23 = vadd.f32 %v18302_v4, %v18301_v30  ;;  %v18239_v32 = vadd.f32 %v18238_v54, %v18237_v51  ;;  %v18304_v56 = vpop.f32.mrb[166].mxu0  ;;  %v18240_v58 = vpop.f32.mrb[150].mxu1  ;;  %13518 = vxpose.xlu0.b32.end [16/16] %v19608_v11, 128 }
 0x719   : > { %v18305_v26 = vpop.f32.mrb[167].mxu0  ;;  %v18241_v2 = vpop.f32.mrb[151].mxu1 }
 0x71a   : > { %v14281_v5 = vadd.f32 %v18239_v32, %v24396_v0  ;;  %v18306_v17 = vadd.f32 %v18305_v26, %v18304_v56  ;;  %v18242_v42 = vadd.f32 %v18241_v2, %v18240_v58 }
 0x71c   : > { %v14284_v18 = vadd.f32 %v18242_v42, %v24396_v0  ;;  %v24633_v1 = vadd.f32 %v18303_v23, %v14281_v5 }
 0x71e   : > { %v18307_v44 = vpop.f32.mrb[168].mxu0  ;;  %v18243_v8 = vpop.f32.mrb[152].mxu1  ;;  %v24635_v16 = vadd.f32 %v18306_v17, %v14284_v18 }
 0x71f   : > { %v18308_v45 = vpop.f32.mrb[169].mxu0  ;;  %v18244_v47 = vpop.f32.mrb[153].mxu1 }
 0x720   : > { %v18309_v7 = vadd.f32 %v18308_v45, %v18307_v44  ;;  %v18245_v3 = vadd.f32 %v18244_v47, %v18243_v8  ;;  %v18310_v31 = vpop.f32.mrb[170].mxu0  ;;  %v18246_v13 = vpop.f32.mrb[154].mxu1 }
 0x721   : > { %v18311_v53 = vpop.f32.mrb[171].mxu0  ;;  %v18247_v41 = vpop.f32.mrb[155].mxu1 }
 0x722   : > { %v14289_v36 = vadd.f32 %v18245_v3, %v24396_v0  ;;  %v18312_v60 = vadd.f32 %v18311_v53, %v18310_v31  ;;  %v18248_v57 = vadd.f32 %v18247_v41, %v18246_v13  ;;  %v11111_v53 = vpop.trf.xlu0 }
 0x723   : > { %11127 = vst [vmem:[%s24660_s11] sm:$0xff] %v11111_v53 }
 0x724   : > { %v14292_v61 = vadd.f32 %v18248_v57, %v24396_v0  ;;  %v24639_v6 = vadd.f32 %v18309_v7, %v14289_v36 }
 0x726   : > { %v18313_v28 = vpop.f32.mrb[172].mxu0  ;;  %v18249_v21 = vpop.f32.mrb[156].mxu1  ;;  %v24641_v12 = vadd.f32 %v18312_v60, %v14292_v61 }
 0x727   : > { %v18314_v24 = vpop.f32.mrb[173].mxu0  ;;  %v18250_v38 = vpop.f32.mrb[157].mxu1 }
 0x728   : > { %v18315_v22 = vadd.f32 %v18314_v24, %v18313_v28  ;;  %v18251_v46 = vadd.f32 %v18250_v38, %v18249_v21  ;;  %v18316_v52 = vpop.f32.mrb[174].mxu0  ;;  %v18252_v50 = vpop.f32.mrb[158].mxu1 }
 0x729   : > { %v18317_v29 = vpop.f32.mrb[175].mxu0  ;;  %v18253_v14 = vpop.f32.mrb[159].mxu1 }
 0x72a   : > { %v14297_v34 = vadd.f32 %v18251_v46, %v24396_v0  ;;  %v18318_v35 = vadd.f32 %v18317_v29, %v18316_v52  ;;  %v18254_v19 = vadd.f32 %v18253_v14, %v18252_v50 }
 0x72c   : > { %v14300_v33 = vadd.f32 %v18254_v19, %v24396_v0  ;;  %v24645_v20 = vadd.f32 %v18315_v22, %v14297_v34  ;;  %v11112_v34 = vpop.trf.xlu0 }
 0x72d   : > { %11128 = vst [vmem:[%s24660_s11 + $0x10] sm:$0xff] %v11112_v34 }
 0x72e   : > { %v18399_v27 = vpop.f32.mrb[176].mxu0  ;;  %v18335_v15 = vpop.f32.mrb[160].mxu1  ;;  %v24647_v63 = vadd.f32 %v18318_v35, %v14300_v33 }
 0x72f   : > { %v18400_v62 = vpop.f32.mrb[177].mxu0  ;;  %v18336_v39 = vpop.f32.mrb[161].mxu1 }
 0x730   : > { %v18401_v30 = vadd.f32 %v18400_v62, %v18399_v27  ;;  %v18337_v51 = vadd.f32 %v18336_v39, %v18335_v15  ;;  %v18402_v11 = vpop.f32.mrb[178].mxu0  ;;  %v18338_v4 = vpop.f32.mrb[162].mxu1 }
 0x731   : > { %v18403_v54 = vpop.f32.mrb[179].mxu0  ;;  %v18339_v23 = vpop.f32.mrb[163].mxu1 }
 0x732   : > { %v14435_v32 = vadd.f32 %v18337_v51, %v24597_v48  ;;  %v18404_v56 = vadd.f32 %v18403_v54, %v18402_v11  ;;  %v18340_v58 = vadd.f32 %v18339_v23, %v18338_v4 }
 0x734   : > { %v14438_v0 = vadd.f32 %v18340_v58, %v24599_v40  ;;  %v24651_v26 = vadd.f32 %v18401_v30, %v14435_v32  ;;  %v12315_v40 = vpop.trf.xlu1  ;;  %v11113_v58 = vpop.trf.xlu0 }
 0x735   : > { %12331 = vst [vmem:[%s24660_s11 + $0x8] sm:$0xff] %v12315_v40  ;;  %11129 = vst [vmem:[%s24660_s11 + $0x20] sm:$0xff] %v11113_v58 }
 0x736   : > { %v18405_v2 = vpop.f32.mrb[180].mxu0  ;;  %v18341_v5 = vpop.f32.mrb[164].mxu1  ;;  %v24653_v17 = vadd.f32 %v18404_v56, %v14438_v0 }
 0x737   : > { %v18406_v42 = vpop.f32.mrb[181].mxu0  ;;  %v18342_v18 = vpop.f32.mrb[165].mxu1 }
 0x738   : > { %v18407_v44 = vadd.f32 %v18406_v42, %v18405_v2  ;;  %v18343_v8 = vadd.f32 %v18342_v18, %v18341_v5  ;;  %v18408_v45 = vpop.f32.mrb[182].mxu0  ;;  %v18344_v47 = vpop.f32.mrb[166].mxu1 }
 0x739   : > { %v18409_v7 = vpop.f32.mrb[183].mxu0  ;;  %v18345_v3 = vpop.f32.mrb[167].mxu1 }
 0x73a   : > { %v14443_v48 = vadd.f32 %v18343_v8, %v24604_v49  ;;  %v18410_v31 = vadd.f32 %v18409_v7, %v18408_v45  ;;  %v18346_v13 = vadd.f32 %v18345_v3, %v18344_v47  ;;  %v12316_v14 = vpop.trf.xlu1  ;;  %v11114_v53 = vpop.trf.xlu0 }
 0x73b   : > { %12332 = vst [vmem:[%s24660_s11 + $0x18] sm:$0xff] %v12316_v14  ;;  %11130 = vst [vmem:[%s24660_s11 + $0x30] sm:$0xff] %v11114_v53 }
 0x73c   : > { %v14446_v41 = vadd.f32 %v18346_v13, %v24607_v59  ;;  %v24665_v36 = vadd.f32 %v18407_v44, %v14443_v48 }
 0x73e   : > { %v18411_v60 = vpop.f32.mrb[184].mxu0  ;;  %v18347_v49 = vpop.f32.mrb[168].mxu1  ;;  %v24667_v57 = vadd.f32 %v18410_v31, %v14446_v41 }
 0x73f   : > { %v18412_v61 = vpop.f32.mrb[185].mxu0  ;;  %v18348_v28 = vpop.f32.mrb[169].mxu1 }
 0x740   : > { %v18413_v21 = vadd.f32 %v18412_v61, %v18411_v60  ;;  %v18349_v24 = vadd.f32 %v18348_v28, %v18347_v49  ;;  %v18414_v38 = vpop.f32.mrb[186].mxu0  ;;  %v18350_v22 = vpop.f32.mrb[170].mxu1 }
 0x741   : > { %v18415_v46 = vpop.f32.mrb[187].mxu0  ;;  %v18351_v52 = vpop.f32.mrb[171].mxu1 }
 0x742   : > { %v14451_v50 = vadd.f32 %v18349_v24, %v24612_v43  ;;  %v18416_v29 = vadd.f32 %v18415_v46, %v18414_v38  ;;  %v18352_v59 = vadd.f32 %v18351_v52, %v18350_v22  ;;  %v12317_v56 = vpop.trf.xlu1  ;;  %v11115_v34 = vpop.trf.xlu0 }
 0x743   : > { %12333 = vst [vmem:[%s24660_s11 + $0x28] sm:$0xff] %v12317_v56  ;;  %11131 = vst [vmem:[%s24660_s11 + $0x40] sm:$0xff] %v11115_v34 }
 0x744   : > { %v14454_v35 = vadd.f32 %v18352_v59, %v24615_v25  ;;  %v24673_v19 = vadd.f32 %v18413_v21, %v14451_v50 }
 0x746   : > { %v18417_v33 = vpop.f32.mrb[188].mxu0  ;;  %v18353_v27 = vpop.f32.mrb[172].mxu1  ;;  %v24675_v15 = vadd.f32 %v18416_v29, %v14454_v35 }
 0x747   : > { %v18418_v62 = vpop.f32.mrb[189].mxu0  ;;  %v18354_v39 = vpop.f32.mrb[173].mxu1 }
 0x748   : > { %v18419_v30 = vadd.f32 %v18418_v62, %v18417_v33  ;;  %v18355_v43 = vadd.f32 %v18354_v39, %v18353_v27  ;;  %v18420_v51 = vpop.f32.mrb[190].mxu0  ;;  %v18356_v11 = vpop.f32.mrb[174].mxu1 }
 0x749   : > { %v18421_v4 = vpop.f32.mrb[191].mxu0  ;;  %v18357_v54 = vpop.f32.mrb[175].mxu1 }
 0x74a   : > { %v14459_v23 = vadd.f32 %v18355_v43, %v24620_v37  ;;  %v18422_v32 = vadd.f32 %v18421_v4, %v18420_v51  ;;  %v18358_v25 = vadd.f32 %v18357_v54, %v18356_v11  ;;  %v12318_v40 = vpop.trf.xlu1  ;;  %v11116_v58 = vpop.trf.xlu0 }
 0x74b   : > { %12334 = vst [vmem:[%s24660_s11 + $0x38] sm:$0xff] %v12318_v40  ;;  %11132 = vst [vmem:[%s24660_s11 + $0x50] sm:$0xff] %v11116_v58 }
 0x74c   : > { %v14462_v0 = vadd.f32 %v18358_v25, %v24623_v10  ;;  %v24681_v2 = vadd.f32 %v18419_v30, %v14459_v23 }
 0x74e   : > { %v18423_v5 = vpop.f32.mrb[192].mxu0  ;;  %v18359_v42 = vpop.f32.mrb[176].mxu1  ;;  %v24683_v18 = vadd.f32 %v18422_v32, %v14462_v0 }
 0x74f   : > { %v18424_v44 = vpop.f32.mrb[193].mxu0  ;;  %v18360_v8 = vpop.f32.mrb[177].mxu1 }
 0x750   : > { %v18425_v45 = vadd.f32 %v18424_v44, %v18423_v5  ;;  %v18361_v37 = vadd.f32 %v18360_v8, %v18359_v42  ;;  %v18426_v47 = vpop.f32.mrb[194].mxu0  ;;  %v18362_v7 = vpop.f32.mrb[178].mxu1 }
 0x751   : > { %v18427_v3 = vpop.f32.mrb[195].mxu0  ;;  %v18363_v48 = vpop.f32.mrb[179].mxu1 }
 0x752   : > { %v14467_v31 = vadd.f32 %v18361_v37, %v24627_v55  ;;  %v18428_v13 = vadd.f32 %v18427_v3, %v18426_v47  ;;  %v18364_v10 = vadd.f32 %v18363_v48, %v18362_v7  ;;  %v12319_v14 = vpop.trf.xlu1  ;;  %v11117_v53 = vpop.trf.xlu0 }
 0x753   : > { %12335 = vst [vmem:[%s24660_s11 + $0x48] sm:$0xff] %v12319_v14  ;;  %11133 = vst [vmem:[%s24660_s11 + $0x60] sm:$0xff] %v11117_v53 }
 0x754   : > { %v14470_v41 = vadd.f32 %v18364_v10, %v24629_v9  ;;  %v24689_v60 = vadd.f32 %v18425_v45, %v14467_v31 }
 0x756   : > { %v18429_v49 = vpop.f32.mrb[196].mxu0  ;;  %v18365_v61 = vpop.f32.mrb[180].mxu1  ;;  %v24691_v28 = vadd.f32 %v18428_v13, %v14470_v41 }
 0x757   : > { %v18430_v21 = vpop.f32.mrb[197].mxu0  ;;  %v18366_v24 = vpop.f32.mrb[181].mxu1 }
 0x758   : > { %v18431_v38 = vadd.f32 %v18430_v21, %v18429_v49  ;;  %v18367_v55 = vadd.f32 %v18366_v24, %v18365_v61  ;;  %v18432_v22 = vpop.f32.mrb[198].mxu0  ;;  %v18368_v46 = vpop.f32.mrb[182].mxu1 }
 0x759   : > { %v18433_v52 = vpop.f32.mrb[199].mxu0  ;;  %v18369_v50 = vpop.f32.mrb[183].mxu1 }
 0x75a   : > { %v14475_v29 = vadd.f32 %v18367_v55, %v24633_v1  ;;  %v18434_v59 = vadd.f32 %v18433_v52, %v18432_v22  ;;  %v18370_v9 = vadd.f32 %v18369_v50, %v18368_v46  ;;  %v12320_v56 = vpop.trf.xlu1  ;;  %v11118_v55 = vpop.trf.xlu0 }
 0x75b   : > { %12336 = vst [vmem:[%s24660_s11 + $0x58] sm:$0xff] %v12320_v56  ;;  %11134 = vst [vmem:[%s24660_s11 + $0x70] sm:$0xff] %v11118_v55 }
 0x75c   : > { %v14478_v35 = vadd.f32 %v18370_v9, %v24635_v16  ;;  %v24697_v33 = vadd.f32 %v18431_v38, %v14475_v29 }
 0x75e   : > { %v18435_v27 = vpop.f32.mrb[200].mxu0  ;;  %v18371_v62 = vpop.f32.mrb[184].mxu1  ;;  %v24699_v39 = vadd.f32 %v18434_v59, %v14478_v35 }
 0x75f   : > { %v18436_v30 = vpop.f32.mrb[201].mxu0  ;;  %v18372_v43 = vpop.f32.mrb[185].mxu1 }
 0x760   : > { %v18437_v51 = vadd.f32 %v18436_v30, %v18435_v27  ;;  %v18373_v1 = vadd.f32 %v18372_v43, %v18371_v62  ;;  %v18438_v11 = vpop.f32.mrb[202].mxu0  ;;  %v18374_v4 = vpop.f32.mrb[186].mxu1 }
 0x761   : > { %v18439_v54 = vpop.f32.mrb[203].mxu0  ;;  %v18375_v23 = vpop.f32.mrb[187].mxu1 }
 0x762   : > { %v14483_v32 = vadd.f32 %v18373_v1, %v24639_v6  ;;  %v18440_v25 = vadd.f32 %v18439_v54, %v18438_v11  ;;  %v18376_v16 = vadd.f32 %v18375_v23, %v18374_v4  ;;  %v12321_v40 = vpop.trf.xlu1  ;;  %v11119_v59 = vpop.trf.xlu0 }
 0x763   : > { %12337 = vst [vmem:[%s24660_s11 + $0x68] sm:$0xff] %v12321_v40  ;;  %11135 = vst [vmem:[%s24660_s11 + $0x80] sm:$0xff] %v11119_v59 }
 0x764   : > { %v14486_v0 = vadd.f32 %v18376_v16, %v24641_v12  ;;  %v24705_v5 = vadd.f32 %v18437_v51, %v14483_v32 }
 0x766   : > { %v18377_v42 = vpop.f32.mrb[188].mxu1  ;;  %v18441_v44 = vpop.f32.mrb[204].mxu0  ;;  %v24707_v8 = vadd.f32 %v18440_v25, %v14486_v0 }
 0x767   : > { %v18378_v45 = vpop.f32.mrb[189].mxu1  ;;  %v18442_v37 = vpop.f32.mrb[205].mxu0 }
 0x768   : > { %v18379_v47 = vadd.f32 %v18378_v45, %v18377_v42  ;;  %v18380_v6 = vpop.f32.mrb[190].mxu1  ;;  %v18443_v7 = vadd.f32 %v18442_v37, %v18441_v44  ;;  %v18444_v3 = vpop.f32.mrb[206].mxu0 }
 0x769   : > { %v18381_v48 = vpop.f32.mrb[191].mxu1  ;;  %v18445_v31 = vpop.f32.mrb[207].mxu0 }
 0x76a   : > { %v14491_v13 = vadd.f32 %v18379_v47, %v24645_v20  ;;  %v18382_v12 = vadd.f32 %v18381_v48, %v18380_v6  ;;  %v18446_v10 = vadd.f32 %v18445_v31, %v18444_v3  ;;  %v12322_v24 = vpop.trf.xlu1  ;;  %v11120_v34 = vpop.trf.xlu0 }
 0x76b   : > { %12338 = vst [vmem:[%s24660_s11 + $0x78] sm:$0xff] %v12322_v24  ;;  %11136 = vst [vmem:[%s24660_s11 + $0x90] sm:$0xff] %v11120_v34 }
 0x76c   : > { %v14494_v41 = vadd.f32 %v18382_v12, %v24647_v63  ;;  %v24713_v49 = vadd.f32 %v18443_v7, %v14491_v13 }
 0x76e   : > { %v18769_v61 = vpop.f32.mrb[192].mxu1  ;;  %v24715_v21 = vadd.f32 %v18446_v10, %v14494_v41  ;;  %v12323_v29 = vpop.trf.xlu1 }
 0x76f   : > { %v14637_v38 = vadd.f32 %v18769_v61, %v24665_v36  ;;  %v14628_v20 = vpop.f32.mrb[193].mxu1  ;;  %12339 = vst [vmem:[%s24660_s11 + $0x88] sm:$0xff] %v12323_v29  ;;  %v11121_v43 = vpop.trf.xlu0 }
 0x770   : > { %v14629_v22 = vadd.f32 %v14628_v20, %v24651_v26  ;;  %v18770_v46 = vpop.f32.mrb[194].mxu1  ;;  %11137 = vst [vmem:[%s24660_s11 + $0xa0] sm:$0xff] %v11121_v43 }
 0x771   : > { %v14640_v63 = vadd.f32 %v18770_v46, %v24667_v57  ;;  %v14631_v52 = vpop.f32.mrb[195].mxu1 }
 0x772   : > { %19609 = vtanh.f32 %v14629_v22  ;;  %v14632_v50 = vadd.f32 %v14631_v52, %v24653_v17  ;;  %v12324_v9 = vpop.trf.xlu1 }
 0x773   : > { %12340 = vst [vmem:[%s24660_s11 + $0x98] sm:$0xff] %v12324_v9 }
 0x774   : > { %19611 = vtanh.f32 %v14632_v50 }
 0x775   : > { %19613 = vtanh.f32 %v14637_v38 }
 0x776   : > { %v18773_v36 = vpop.f32.mrb[196].mxu1  ;;  %v12325_v30 = vpop.trf.xlu1  ;;  %19615 = vtanh.f32 %v14640_v63 }
 0x777   : > { %v14653_v26 = vadd.f32 %v18773_v36, %v24681_v2  ;;  %v14644_v14 = vpop.f32.mrb[197].mxu1  ;;  %12341 = vst [vmem:[%s24660_s11 + $0xa8] sm:$0xff] %v12325_v30 }
 0x778   : > { %v14645_v57 = vadd.f32 %v14644_v14, %v24673_v19  ;;  %v18774_v35 = vpop.f32.mrb[198].mxu1 }
 0x779   : > { %v14656_v17 = vadd.f32 %v18774_v35, %v24683_v18  ;;  %v14647_v27 = vpop.f32.mrb[199].mxu1  ;;  %v11122_v18 = vpop.trf.xlu0 }
 0x77a   : > { %v14648_v62 = vadd.f32 %v14647_v27, %v24675_v15  ;;  %v12326_v19 = vpop.trf.xlu1  ;;  %11138 = vst [vmem:[%s24660_s11 + $0xb0] sm:$0xff] %v11122_v18  ;;  %19617 = vtanh.f32 %v14645_v57 }
 0x77b   : > { %12342 = vst [vmem:[%s24660_s11 + $0xb8] sm:$0xff] %v12326_v19 }
 0x77c   : > { %v19610_v51 = vpop.eup %19609  ;;  %19619 = vtanh.f32 %v14648_v62 }
 0x77d   : > { %14707 = vxpose.xlu1.b32.start [1/16] %v19610_v51, 128  ;;  %19621 = vtanh.f32 %v14653_v26 }
 0x77e   : > { %v18777_v2 = vpop.f32.mrb[200].mxu1  ;;  %v19612_v4 = vpop.eup %19611  ;;  %19623 = vtanh.f32 %v14656_v17 }
 0x77f   : > { %v14669_v1 = vadd.f32 %v18777_v2, %v24697_v33  ;;  %v14660_v11 = vpop.f32.mrb[201].mxu1  ;;  %v12327_v16 = vpop.trf.xlu1 }
 0x780   : > { %v14661_v15 = vadd.f32 %v14660_v11, %v24689_v60  ;;  %v18778_v54 = vpop.f32.mrb[202].mxu1  ;;  %12343 = vst [vmem:[%s24660_s11 + $0xc8] sm:$0xff] %v12327_v16  ;;  %v11123_v33 = vpop.trf.xlu0 }
 0x781   : > { %v14672_v23 = vadd.f32 %v18778_v54, %v24699_v39  ;;  %v14663_v32 = vpop.f32.mrb[203].mxu1  ;;  %14708 = vxpose.xlu1.b32.cont [2/16] %v19612_v4, 128  ;;  %v19614_v56 = vpop.eup %19613  ;;  %11139 = vst [vmem:[%s24660_s11 + $0xc0] sm:$0xff] %v11123_v33 }
 0x782   : > { %v14664_v25 = vadd.f32 %v14663_v32, %v24691_v28  ;;  %v19616_v44 = vpop.eup %19615  ;;  %19625 = vtanh.f32 %v14661_v15 }
 0x783   : > { %v12328_v60 = vpop.trf.xlu1 }
 0x784   : > { %12344 = vst [vmem:[%s24660_s11 + $0xd8] sm:$0xff] %v12328_v60  ;;  %v11124_v42 = vpop.trf.xlu0  ;;  %v19618_v48 = vpop.eup %19617  ;;  %19627 = vtanh.f32 %v14664_v25 }
 0x785   : > { %14709 = vxpose.xlu1.b32.cont [3/16] %v19614_v56, 128  ;;  %11140 = vst [vmem:[%s24660_s11 + $0xd0] sm:$0xff] %v11124_v42  ;;  %19629 = vtanh.f32 %v14669_v1 }
 0x786   : > { %v18781_v58 = vpop.f32.mrb[204].mxu1  ;;  %v19620_v13 = vpop.eup %19619  ;;  %19631 = vtanh.f32 %v14672_v23 }
 0x787   : > { %v14685_v0 = vadd.f32 %v18781_v58, %v24713_v49  ;;  %v14676_v39 = vpop.f32.mrb[205].mxu1  ;;  %v12329_v7 = vpop.trf.xlu1 }
 0x788   : > { %v14677_v28 = vadd.f32 %v14676_v39, %v24705_v5  ;;  %v18782_v45 = vpop.f32.mrb[206].mxu1  ;;  %12345 = vst [vmem:[%s24660_s11 + $0xe8] sm:$0xff] %v12329_v7  ;;  %v11125_v3 = vpop.trf.xlu0 }
 0x789   : > { %v14688_v37 = vadd.f32 %v18782_v45, %v24715_v21  ;;  %v14679_v47 = vpop.f32.mrb[207].mxu1  ;;  %14710 = vxpose.xlu1.b32.cont [4/16] %v19616_v44, 128  ;;  %11141 = vst [vmem:[%s24660_s11 + $0xe0] sm:$0xff] %v11125_v3  ;;  %v19622_v10 = vpop.eup %19621 }
 0x78a   : > { %v14680_v6 = vadd.f32 %v14679_v47, %v24707_v8  ;;  %v19624_v40 = vpop.eup %19623  ;;  %19633 = vtanh.f32 %v14677_v28 }
 0x78b   : > { %v12330_v5 = vpop.trf.xlu1 }
 0x78c   : > { %12346 = vst [vmem:[%s24660_s11 + $0xf8] sm:$0xff] %v12330_v5  ;;  %v11126_v31 = vpop.trf.xlu0  ;;  %v19626_v41 = vpop.eup %19625  ;;  %19635 = vtanh.f32 %v14680_v6 }
 0x78d   : > { %14711 = vxpose.xlu1.b32.cont [5/16] %v19618_v48, 128  ;;  %11142 = vst [vmem:[%s24660_s11 + $0xf0] sm:$0xff] %v11126_v31  ;;  %19637 = vtanh.f32 %v14685_v0 }
 0x78e   : > { %v19628_v61 = vpop.eup %19627  ;;  %19639 = vtanh.f32 %v14688_v37 }
 0x78f   : > { %v19630_v24 = vpop.eup %19629 }
 0x790   : > { %v13519_v12 = vpop.trf.xlu0  ;;  %v19632_v20 = vpop.eup %19631 }
 0x791   : > { %14712 = vxpose.xlu1.b32.cont [6/16] %v19620_v13, 128  ;;  %13535 = vst [vmem:[%s24660_s11 + $0x100] sm:$0xff] %v13519_v12 }
 0x794   : > { %v13520_v8 = vpop.trf.xlu0  ;;  %v19634_v22 = vpop.eup %19633 }
 0x795   : > { %14713 = vxpose.xlu1.b32.cont [7/16] %v19622_v10, 128  ;;  %13536 = vst [vmem:[%s24660_s11 + $0x110] sm:$0xff] %v13520_v8 }
 0x796   : > { %v19636_v63 = vpop.eup %19635 }
 0x797   : > { %v19638_v50 = vpop.eup %19637 }
 0x798   : > { %v13521_v53 = vpop.trf.xlu0  ;;  %v19640_v59 = vpop.eup %19639 }
 0x799   : > { %14714 = vxpose.xlu1.b32.cont [8/16] %v19624_v40, 128  ;;  %13537 = vst [vmem:[%s24660_s11 + $0x120] sm:$0xff] %v13521_v53 }
 0x79c   : > { %v13522_v49 = vpop.trf.xlu0 }
 0x79d   : > { %14715 = vxpose.xlu1.b32.cont [9/16] %v19626_v41, 128  ;;  %13538 = vst [vmem:[%s24660_s11 + $0x130] sm:$0xff] %v13522_v49 }
 0x7a0   : > { %v13523_v21 = vpop.trf.xlu0 }
 0x7a1   : > { %14716 = vxpose.xlu1.b32.cont [10/16] %v19628_v61, 128  ;;  %13539 = vst [vmem:[%s24660_s11 + $0x140] sm:$0xff] %v13523_v21 }
 0x7a4   : > { %v13524_v38 = vpop.trf.xlu0 }
 0x7a5   : > { %14717 = vxpose.xlu1.b32.cont [11/16] %v19630_v24, 128  ;;  %13540 = vst [vmem:[%s24660_s11 + $0x150] sm:$0xff] %v13524_v38 }
 0x7a8   : > { %v13525_v55 = vpop.trf.xlu0 }
 0x7a9   : > { %14718 = vxpose.xlu1.b32.cont [12/16] %v19632_v20, 128  ;;  %13541 = vst [vmem:[%s24660_s11 + $0x160] sm:$0xff] %v13525_v55 }
 0x7ac   : > { %v13526_v46 = vpop.trf.xlu0 }
 0x7ad   : > { %14719 = vxpose.xlu1.b32.cont [13/16] %v19634_v22, 128  ;;  %13542 = vst [vmem:[%s24660_s11 + $0x170] sm:$0xff] %v13526_v46 }
 0x7b0   : > { %v13527_v52 = vpop.trf.xlu0 }
 0x7b1   : > { %14720 = vxpose.xlu1.b32.cont [14/16] %v19636_v63, 128  ;;  %13543 = vst [vmem:[%s24660_s11 + $0x180] sm:$0xff] %v13527_v52 }
 0x7b4   : > { %v13528_v29 = vpop.trf.xlu0 }
 0x7b5   : > { %14721 = vxpose.xlu1.b32.cont [15/16] %v19638_v50, 128  ;;  %13544 = vst [vmem:[%s24660_s11 + $0x190] sm:$0xff] %v13528_v29 }
 0x7b8   : > { %v13529_v36 = vpop.trf.xlu0 }
 0x7b9   : > { %14722 = vxpose.xlu1.b32.end [16/16] %v19640_v59, 128  ;;  %13545 = vst [vmem:[%s24660_s11 + $0x1a0] sm:$0xff] %v13529_v36 }
 0x7bc   : > { %v13530_v9 = vpop.trf.xlu0 }
 0x7bd   : > { %13546 = vst [vmem:[%s24660_s11 + $0x1b0] sm:$0xff] %v13530_v9 }
 0x7c0   : > { %v13531_v26 = vpop.trf.xlu0 }
 0x7c1   : > { %13547 = vst [vmem:[%s24660_s11 + $0x1c0] sm:$0xff] %v13531_v26 }
 0x7c4   : > { %v13532_v14 = vpop.trf.xlu0 }
 0x7c5   : > { %13548 = vst [vmem:[%s24660_s11 + $0x1d0] sm:$0xff] %v13532_v14 }
 0x7c8   : > { %v13533_v34 = vpop.trf.xlu0 }
 0x7c9   : > { %13549 = vst [vmem:[%s24660_s11 + $0x1e0] sm:$0xff] %v13533_v34 }
 0x7cc   : > { %v13534_v57 = vpop.trf.xlu0 }
 0x7cd   : > { %13550 = vst [vmem:[%s24660_s11 + $0x1f0] sm:$0xff] %v13534_v57 }
 0x7fd   : > { %v14723_v35 = vpop.trf.xlu1 }
 0x7fe   : > { %14739 = vst [vmem:[%s24660_s11 + $0x108] sm:$0xff] %v14723_v35 }
 0x801   : > { %v14724_v17 = vpop.trf.xlu1 }
 0x802   : > { %14740 = vst [vmem:[%s24660_s11 + $0x118] sm:$0xff] %v14724_v17 }
 0x805   : > { %v14725_v27 = vpop.trf.xlu1 }
 0x806   : > { %14741 = vst [vmem:[%s24660_s11 + $0x128] sm:$0xff] %v14725_v27 }
 0x809   : > { %v14726_v62 = vpop.trf.xlu1 }
 0x80a   : > { %14742 = vst [vmem:[%s24660_s11 + $0x138] sm:$0xff] %v14726_v62 }
 0x80d   : > { %v14727_v30 = vpop.trf.xlu1 }
 0x80e   : > { %14743 = vst [vmem:[%s24660_s11 + $0x148] sm:$0xff] %v14727_v30 }
 0x811   : > { %v14728_v43 = vpop.trf.xlu1 }
 0x812   : > { %14744 = vst [vmem:[%s24660_s11 + $0x158] sm:$0xff] %v14728_v43 }
 0x815   : > { %v14729_v51 = vpop.trf.xlu1 }
 0x816   : > { %14745 = vst [vmem:[%s24660_s11 + $0x168] sm:$0xff] %v14729_v51 }
 0x819   : > { %v14730_v2 = vpop.trf.xlu1 }
 0x81a   : > { %14746 = vst [vmem:[%s24660_s11 + $0x178] sm:$0xff] %v14730_v2 }
 0x81d   : > { %v14731_v19 = vpop.trf.xlu1 }
 0x81e   : > { %14747 = vst [vmem:[%s24660_s11 + $0x188] sm:$0xff] %v14731_v19 }
 0x821   : > { %v14732_v1 = vpop.trf.xlu1 }
 0x822   : > { %14748 = vst [vmem:[%s24660_s11 + $0x198] sm:$0xff] %v14732_v1 }
 0x825   : > { %v14733_v11 = vpop.trf.xlu1 }
 0x826   : > { %14749 = vst [vmem:[%s24660_s11 + $0x1a8] sm:$0xff] %v14733_v11 }
 0x829   : > { %v14734_v18 = vpop.trf.xlu1 }
 0x82a   : > { %14750 = vst [vmem:[%s24660_s11 + $0x1b8] sm:$0xff] %v14734_v18 }
 0x82d   : > { %v14735_v4 = vpop.trf.xlu1 }
 0x82e   : > { %14751 = vst [vmem:[%s24660_s11 + $0x1c8] sm:$0xff] %v14735_v4 }
 0x831   : > { %v14736_v15 = vpop.trf.xlu1 }
 0x832   : > { %14752 = vst [vmem:[%s24660_s11 + $0x1d8] sm:$0xff] %v14736_v15 }
 0x835   : > { %v14737_v54 = vpop.trf.xlu1 }
 0x836   : > { %14753 = vst [vmem:[%s24660_s11 + $0x1e8] sm:$0xff] %v14737_v54 }
 0x839   : > { %v14738_v23 = vpop.trf.xlu1 }
 0x83a   : > { %14754 = vst [vmem:[%s24660_s11 + $0x1f8] sm:$0xff] %v14738_v23 }
 0x83b PF: > { %s19_s30 = sadd.s32 1, %s19652_s30  }
 0x83c   : > { %p16_p4 = scmp.ge.s32.totalorder %s19_s30, 4  }
 0x83e   :  { %18 = sbr.rel (!%p16_p4) target bundleno = 1 (0x1), region = 91 }

</bundles_post_ra>
